<compile_context>
chip_gen: v5e
topology: v5e:2x2
jax: 0.10.0
libtpu: 0.0.40
codegen_flags: <defaults>
</compile_context>

<pallas_src>
import functools

import jax
import jax.numpy as jnp
from jax.experimental import pallas as pl
from jax.experimental.pallas import tpu as pltpu


# ---------------------------------------------------------------------------
# Fused whole-forward Pallas kernel
# ---------------------------------------------------------------------------
def _generator_kernel(z_ref, lw_ref, lb_ref,
                      wih_ref, whh_ref, b_ref,
                      w1_ref, b1_ref, w2_ref, b2_ref,
                      noise_ref, lastw_ref, lastb_ref,
                      out_ref, y_scratch,
                      *, layers, s_len, bp, hidden):
    """Full Generator forward on VMEM-resident tensors.

    z_ref     : (S*BP, Din)         time-major rows, batch padded to BP
    lw/lb     : (Din, H), (1, H)    initial Linear
    wih/whh   : (layers*4, H, H)    LSTM weights, gate-split, order [i|f|g|o]
    b         : (layers*4, 1, H)    b_ih + b_hh, gate-split
    w1/b1/w2/b2 : stacked per-layer gMLP params
    noise     : (layers, S*BP, H)   fresh Gaussian noise per layer
    lastw/lastb : (H, OUT_PAD), (1, OUT_PAD)  final Linear, lane-dense padded
    out_ref   : (S*BP, OUT_PAD)
    y_scratch : (S*BP, H)           per-layer LSTM output buffer
    """
    f32 = jnp.float32

    # Initial projection: (S*BP, Din) @ (Din, H) + (1, H)
    z = jnp.dot(z_ref[...], lw_ref[...], preferred_element_type=f32) + lb_ref[...]

    # LSTM state chained across layers (reproduces the un-incremented `count`),
    # initialised to zeros for the (padded) batch.
    h = jnp.zeros((bp, hidden), f32)
    c = jnp.zeros((bp, hidden), f32)

    for l in range(layers):
        # Hoisted per-gate input projection with bias folded in: 4 x (S*BP, H).
        xg = [jnp.dot(z, wih_ref[l * 4 + gi], preferred_element_type=f32)
              + b_ref[l * 4 + gi]
              for gi in range(4)]
        # Hoist recurrent weight reads out of the time loop.
        wg = [whh_ref[l * 4 + gi] for gi in range(4)]

        # Fully-unrolled recurrence over the short static time axis.
        for t in range(s_len):
            r0 = t * bp
            pre = [xg[gi][r0:r0 + bp, :]
                   + jnp.dot(h, wg[gi], preferred_element_type=f32)
                   for gi in range(4)]
            i_g = jax.nn.sigmoid(pre[0])
            f_g = jax.nn.sigmoid(pre[1])
            g_g = jnp.tanh(pre[2])
            o_g = jax.nn.sigmoid(pre[3])
            c = f_g * c + i_g * g_g
            h = o_g * jnp.tanh(c)
            y_scratch[pl.ds(r0, bp), :] = h
        res = y_scratch[...]                                    # (S*BP, H)

        # gMLP on fresh noise, fused with the residual add.
        hm = jnp.dot(noise_ref[l], w1_ref[l], preferred_element_type=f32) + b1_ref[l]
        hm = jnp.maximum(hm, 0.0)
        mid = jnp.dot(hm, w2_ref[l], preferred_element_type=f32) + b2_ref[l]
        z = res + mid

    # Final linear + sigmoid, written lane-dense (OUT_PAD = multiple of 128).
    out = jnp.dot(z, lastw_ref[...], preferred_element_type=f32) + lastb_ref[...]
    out_ref[...] = jax.nn.sigmoid(out)


# ---------------------------------------------------------------------------
# Parameter construction (deterministic, PyTorch-style uniform init)
# ---------------------------------------------------------------------------
def init_generator_params(key, input_dim, output_dim, layers, g_size):
    def unif(k, shape, fan_in):
        bound = 1.0 / float(fan_in) ** 0.5
        return jax.random.uniform(k, shape, jnp.float32, -bound, bound)

    keys = jax.random.split(key, 12)
    p = {}
    p["L_w"] = unif(keys[0], (input_dim, g_size), input_dim)          # x @ W layout
    p["L_b"] = unif(keys[1], (1, g_size), input_dim)

    # LSTM weights, gate order [i|f|g|o], split per gate, stacked over layers.
    p["wih"] = unif(keys[2], (layers * 4, g_size, g_size), g_size)
    p["whh"] = unif(keys[3], (layers * 4, g_size, g_size), g_size)
    b_ih = unif(keys[4], (layers * 4, 1, g_size), g_size)
    b_hh = unif(keys[5], (layers * 4, 1, g_size), g_size)
    p["b"] = b_ih + b_hh

    # Per-layer gMLP (Linear -> ReLU -> Linear), stacked over layers.
    p["w1"] = unif(keys[6], (layers, g_size, g_size), g_size)
    p["b1"] = unif(keys[7], (layers, 1, g_size), g_size)
    p["w2"] = unif(keys[8], (layers, g_size, g_size), g_size)
    p["b2"] = unif(keys[9], (layers, 1, g_size), g_size)

    # Final linear, zero-padded to a lane-dense (>=128-wide) output slab.
    out_pad = max(128, ((output_dim + 127) // 128) * 128)
    lw = unif(keys[10], (g_size, output_dim), g_size)
    lb = unif(keys[11], (1, output_dim), g_size)
    p["last_w"] = jnp.zeros((g_size, out_pad), jnp.float32).at[:, :output_dim].set(lw)
    p["last_b"] = jnp.zeros((1, out_pad), jnp.float32).at[:, :output_dim].set(lb)
    return p


# ---------------------------------------------------------------------------
# Forward pass: one fused pallas_call
# ---------------------------------------------------------------------------
def generator_forward(params, z, noise_key, g_size, output_dim):
    # z: (B, S, input_dim), batch-first like the PyTorch module.
    bsz, s_len, din = z.shape
    hidden = g_size
    layers = params["wih"].shape[0] // 4
    out_pad = params["last_w"].shape[1]
    bp = ((bsz + 7) // 8) * 8                      # pad batch to a sublane multiple

    # Single layout end-to-end: time-major, batch padded, rows grouped by step.
    z_tm = jnp.transpose(z, (1, 0, 2))             # (S, B, Din)
    z_tm = jnp.pad(z_tm, ((0, 0), (0, bp - bsz), (0, 0)))
    z2d = z_tm.reshape(s_len * bp, din)

    # One RNG call for all layers' Gaussian noise (== torch.randn per layer,
    # different random stream; padded rows' noise is discarded with the rows).
    noise = jax.random.normal(noise_key, (layers, s_len * bp, hidden), jnp.float32)

    # TODO(synk): the PyTorch module mutates self.internal_state across forward
    # calls; here the chained (h, c) state lives only for one forward pass.
    kernel = functools.partial(_generator_kernel,
                               layers=layers, s_len=s_len, bp=bp, hidden=hidden)
    vmem = pl.BlockSpec(memory_space=pltpu.MemorySpace.VMEM)
    out2d = pl.pallas_call(
        kernel,
        out_shape=jax.ShapeDtypeStruct((s_len * bp, out_pad), jnp.float32),
        in_specs=[vmem] * 13,
        out_specs=vmem,
        scratch_shapes=[pltpu.VMEM((s_len * bp, hidden), jnp.float32)],
    )(z2d, params["L_w"], params["L_b"],
      params["wih"], params["whh"], params["b"],
      params["w1"], params["b1"], params["w2"], params["b2"],
      noise, params["last_w"], params["last_b"])

    # Un-pad batch, keep the true output_dim column(s), back to batch-first.
    out = out2d.reshape(s_len, bp, out_pad)[:, :bsz, :output_dim]   # (S, B, out)
    return jnp.transpose(out, (1, 0, 2))                            # (B, S, out)


# ---------------------------------------------------------------------------
if __name__ == "__main__":
    INPUT_DIM, OUTPUT_DIM, LAYERS, G_SIZE = 32, 1, 3, 32   # small, module-consistent sizes
    B, S = 2, 8

    root = jax.random.PRNGKey(0)
    pkey, zkey, nkey = jax.random.split(root, 3)

    params = init_generator_params(pkey, INPUT_DIM, OUTPUT_DIM, LAYERS, G_SIZE)
    z = jax.random.normal(zkey, (B, S, INPUT_DIM), jnp.float32)

    out = generator_forward(params, z, nkey, G_SIZE, OUTPUT_DIM)
    out = jax.block_until_ready(out)

    assert out.shape == (B, S, OUTPUT_DIM), out.shape
    assert bool(jnp.all(jnp.isfinite(out)))
    assert bool(jnp.all((out >= 0.0) & (out <= 1.0)))      # sigmoid range
    print("KERNEL_OK")
</pallas_src>

<mosaic_0001>
module attributes {stable_mosaic.version = 11 : i64} {
  func.func @_generator_kernel(%arg0: memref<64x32xf32, #tpu.memory_space<vmem>>, %arg1: memref<32x32xf32, #tpu.memory_space<vmem>>, %arg2: memref<1x32xf32, #tpu.memory_space<vmem>>, %arg3: memref<12x32x32xf32, #tpu.memory_space<vmem>>, %arg4: memref<12x32x32xf32, #tpu.memory_space<vmem>>, %arg5: memref<12x1x32xf32, #tpu.memory_space<vmem>>, %arg6: memref<3x32x32xf32, #tpu.memory_space<vmem>>, %arg7: memref<3x1x32xf32, #tpu.memory_space<vmem>>, %arg8: memref<3x32x32xf32, #tpu.memory_space<vmem>>, %arg9: memref<3x1x32xf32, #tpu.memory_space<vmem>>, %arg10: memref<3x64x32xf32, #tpu.memory_space<vmem>>, %arg11: memref<32x128xf32, #tpu.memory_space<vmem>>, %arg12: memref<1x128xf32, #tpu.memory_space<vmem>>, %arg13: memref<64x128xf32, #tpu.memory_space<vmem>>, %arg14: memref<64x32xf32, #tpu.memory_space<vmem>>) attributes {dimension_semantics = [], scalar_prefetch = 0 : i64, scratch_operands = 1 : i64, tpu.core_type = #tpu.core_type<tc>} {
    %c0 = arith.constant 0 : index
    %c0_0 = arith.constant 0 : index
    %0 = vector.load %arg0[%c0, %c0_0] : memref<64x32xf32, #tpu.memory_space<vmem>>, vector<64x32xf32>
    %c0_1 = arith.constant 0 : index
    %c0_2 = arith.constant 0 : index
    %1 = vector.load %arg1[%c0_1, %c0_2] : memref<32x32xf32, #tpu.memory_space<vmem>>, vector<32x32xf32>
    %cst = arith.constant dense<0.000000e+00> : vector<64x32xf32>
    %2 = tpu.matmul %0, %1, %cst {dimension_numbers = #tpu.dot_dimension_numbers<[1], [0], [0], [1], [0, 0, 1, 1], [], []>} : vector<64x32xf32>, vector<32x32xf32>, vector<64x32xf32> -> vector<64x32xf32>
    %c0_3 = arith.constant 0 : index
    %c0_4 = arith.constant 0 : index
    %3 = vector.load %arg2[%c0_3, %c0_4] : memref<1x32xf32, #tpu.memory_space<vmem>>, vector<1x32xf32>
    %4 = vector.broadcast %3 : vector<1x32xf32> to vector<64x32xf32>
    %5 = arith.addf %2, %4 : vector<64x32xf32>
    %cst_5 = arith.constant 0.000000e+00 : f32
    %6 = vector.broadcast %cst_5 : f32 to vector<8x32xf32>
    %cst_6 = arith.constant 0.000000e+00 : f32
    %7 = vector.broadcast %cst_6 : f32 to vector<8x32xf32>
    %c0_7 = arith.constant 0 : index
    %c0_8 = arith.constant 0 : index
    %c0_9 = arith.constant 0 : index
    %8 = vector.load %arg3[%c0_7, %c0_8, %c0_9] : memref<12x32x32xf32, #tpu.memory_space<vmem>>, vector<1x32x32xf32>
    %9 = vector.shape_cast %8 : vector<1x32x32xf32> to vector<32x32xf32>
    %cst_10 = arith.constant dense<0.000000e+00> : vector<64x32xf32>
    %10 = tpu.matmul %5, %9, %cst_10 {dimension_numbers = #tpu.dot_dimension_numbers<[1], [0], [0], [1], [0, 0, 1, 1], [], []>} : vector<64x32xf32>, vector<32x32xf32>, vector<64x32xf32> -> vector<64x32xf32>
    %c0_11 = arith.constant 0 : index
    %c0_12 = arith.constant 0 : index
    %c0_13 = arith.constant 0 : index
    %11 = vector.load %arg5[%c0_11, %c0_12, %c0_13] : memref<12x1x32xf32, #tpu.memory_space<vmem>>, vector<1x1x32xf32>
    %12 = vector.shape_cast %11 : vector<1x1x32xf32> to vector<1x32xf32>
    %13 = vector.broadcast %12 : vector<1x32xf32> to vector<64x32xf32>
    %14 = arith.addf %10, %13 : vector<64x32xf32>
    %c1 = arith.constant 1 : index
    %c0_14 = arith.constant 0 : index
    %c0_15 = arith.constant 0 : index
    %15 = vector.load %arg3[%c1, %c0_14, %c0_15] : memref<12x32x32xf32, #tpu.memory_space<vmem>>, vector<1x32x32xf32>
    %16 = vector.shape_cast %15 : vector<1x32x32xf32> to vector<32x32xf32>
    %cst_16 = arith.constant dense<0.000000e+00> : vector<64x32xf32>
    %17 = tpu.matmul %5, %16, %cst_16 {dimension_numbers = #tpu.dot_dimension_numbers<[1], [0], [0], [1], [0, 0, 1, 1], [], []>} : vector<64x32xf32>, vector<32x32xf32>, vector<64x32xf32> -> vector<64x32xf32>
    %c1_17 = arith.constant 1 : index
    %c0_18 = arith.constant 0 : index
    %c0_19 = arith.constant 0 : index
    %18 = vector.load %arg5[%c1_17, %c0_18, %c0_19] : memref<12x1x32xf32, #tpu.memory_space<vmem>>, vector<1x1x32xf32>
    %19 = vector.shape_cast %18 : vector<1x1x32xf32> to vector<1x32xf32>
    %20 = vector.broadcast %19 : vector<1x32xf32> to vector<64x32xf32>
    %21 = arith.addf %17, %20 : vector<64x32xf32>
    %c2 = arith.constant 2 : index
    %c0_20 = arith.constant 0 : index
    %c0_21 = arith.constant 0 : index
    %22 = vector.load %arg3[%c2, %c0_20, %c0_21] : memref<12x32x32xf32, #tpu.memory_space<vmem>>, vector<1x32x32xf32>
    %23 = vector.shape_cast %22 : vector<1x32x32xf32> to vector<32x32xf32>
    %cst_22 = arith.constant dense<0.000000e+00> : vector<64x32xf32>
    %24 = tpu.matmul %5, %23, %cst_22 {dimension_numbers = #tpu.dot_dimension_numbers<[1], [0], [0], [1], [0, 0, 1, 1], [], []>} : vector<64x32xf32>, vector<32x32xf32>, vector<64x32xf32> -> vector<64x32xf32>
    %c2_23 = arith.constant 2 : index
    %c0_24 = arith.constant 0 : index
    %c0_25 = arith.constant 0 : index
    %25 = vector.load %arg5[%c2_23, %c0_24, %c0_25] : memref<12x1x32xf32, #tpu.memory_space<vmem>>, vector<1x1x32xf32>
    %26 = vector.shape_cast %25 : vector<1x1x32xf32> to vector<1x32xf32>
    %27 = vector.broadcast %26 : vector<1x32xf32> to vector<64x32xf32>
    %28 = arith.addf %24, %27 : vector<64x32xf32>
    %c3 = arith.constant 3 : index
    %c0_26 = arith.constant 0 : index
    %c0_27 = arith.constant 0 : index
    %29 = vector.load %arg3[%c3, %c0_26, %c0_27] : memref<12x32x32xf32, #tpu.memory_space<vmem>>, vector<1x32x32xf32>
    %30 = vector.shape_cast %29 : vector<1x32x32xf32> to vector<32x32xf32>
    %cst_28 = arith.constant dense<0.000000e+00> : vector<64x32xf32>
    %31 = tpu.matmul %5, %30, %cst_28 {dimension_numbers = #tpu.dot_dimension_numbers<[1], [0], [0], [1], [0, 0, 1, 1], [], []>} : vector<64x32xf32>, vector<32x32xf32>, vector<64x32xf32> -> vector<64x32xf32>
    %c3_29 = arith.constant 3 : index
    %c0_30 = arith.constant 0 : index
    %c0_31 = arith.constant 0 : index
    %32 = vector.load %arg5[%c3_29, %c0_30, %c0_31] : memref<12x1x32xf32, #tpu.memory_space<vmem>>, vector<1x1x32xf32>
    %33 = vector.shape_cast %32 : vector<1x1x32xf32> to vector<1x32xf32>
    %34 = vector.broadcast %33 : vector<1x32xf32> to vector<64x32xf32>
    %35 = arith.addf %31, %34 : vector<64x32xf32>
    %c0_32 = arith.constant 0 : index
    %c0_33 = arith.constant 0 : index
    %c0_34 = arith.constant 0 : index
    %36 = vector.load %arg4[%c0_32, %c0_33, %c0_34] : memref<12x32x32xf32, #tpu.memory_space<vmem>>, vector<1x32x32xf32>
    %37 = vector.shape_cast %36 : vector<1x32x32xf32> to vector<32x32xf32>
    %c1_35 = arith.constant 1 : index
    %c0_36 = arith.constant 0 : index
    %c0_37 = arith.constant 0 : index
    %38 = vector.load %arg4[%c1_35, %c0_36, %c0_37] : memref<12x32x32xf32, #tpu.memory_space<vmem>>, vector<1x32x32xf32>
    %39 = vector.shape_cast %38 : vector<1x32x32xf32> to vector<32x32xf32>
    %c2_38 = arith.constant 2 : index
    %c0_39 = arith.constant 0 : index
    %c0_40 = arith.constant 0 : index
    %40 = vector.load %arg4[%c2_38, %c0_39, %c0_40] : memref<12x32x32xf32, #tpu.memory_space<vmem>>, vector<1x32x32xf32>
    %41 = vector.shape_cast %40 : vector<1x32x32xf32> to vector<32x32xf32>
    %c3_41 = arith.constant 3 : index
    %c0_42 = arith.constant 0 : index
    %c0_43 = arith.constant 0 : index
    %42 = vector.load %arg4[%c3_41, %c0_42, %c0_43] : memref<12x32x32xf32, #tpu.memory_space<vmem>>, vector<1x32x32xf32>
    %43 = vector.shape_cast %42 : vector<1x32x32xf32> to vector<32x32xf32>
    %44 = vector.extract_strided_slice %14 {offsets = [0, 0], sizes = [8, 32], strides = [1, 1]} : vector<64x32xf32> to vector<8x32xf32>
    %cst_44 = arith.constant dense<0.000000e+00> : vector<8x32xf32>
    %45 = tpu.matmul %6, %37, %cst_44 {dimension_numbers = #tpu.dot_dimension_numbers<[1], [0], [0], [1], [0, 0, 1, 1], [], []>} : vector<8x32xf32>, vector<32x32xf32>, vector<8x32xf32> -> vector<8x32xf32>
    %46 = arith.addf %44, %45 : vector<8x32xf32>
    %47 = vector.extract_strided_slice %21 {offsets = [0, 0], sizes = [8, 32], strides = [1, 1]} : vector<64x32xf32> to vector<8x32xf32>
    %cst_45 = arith.constant dense<0.000000e+00> : vector<8x32xf32>
    %48 = tpu.matmul %6, %39, %cst_45 {dimension_numbers = #tpu.dot_dimension_numbers<[1], [0], [0], [1], [0, 0, 1, 1], [], []>} : vector<8x32xf32>, vector<32x32xf32>, vector<8x32xf32> -> vector<8x32xf32>
    %49 = arith.addf %47, %48 : vector<8x32xf32>
    %50 = vector.extract_strided_slice %28 {offsets = [0, 0], sizes = [8, 32], strides = [1, 1]} : vector<64x32xf32> to vector<8x32xf32>
    %cst_46 = arith.constant dense<0.000000e+00> : vector<8x32xf32>
    %51 = tpu.matmul %6, %41, %cst_46 {dimension_numbers = #tpu.dot_dimension_numbers<[1], [0], [0], [1], [0, 0, 1, 1], [], []>} : vector<8x32xf32>, vector<32x32xf32>, vector<8x32xf32> -> vector<8x32xf32>
    %52 = arith.addf %50, %51 : vector<8x32xf32>
    %53 = vector.extract_strided_slice %35 {offsets = [0, 0], sizes = [8, 32], strides = [1, 1]} : vector<64x32xf32> to vector<8x32xf32>
    %cst_47 = arith.constant dense<0.000000e+00> : vector<8x32xf32>
    %54 = tpu.matmul %6, %43, %cst_47 {dimension_numbers = #tpu.dot_dimension_numbers<[1], [0], [0], [1], [0, 0, 1, 1], [], []>} : vector<8x32xf32>, vector<32x32xf32>, vector<8x32xf32> -> vector<8x32xf32>
    %55 = arith.addf %53, %54 : vector<8x32xf32>
    %56 = arith.negf %46 : vector<8x32xf32>
    %57 = math.exp %56 : vector<8x32xf32>
    %cst_48 = arith.constant 1.000000e+00 : f32
    %58 = vector.broadcast %cst_48 : f32 to vector<8x32xf32>
    %59 = arith.addf %58, %57 : vector<8x32xf32>
    %60 = arith.divf %58, %59 : vector<8x32xf32>
    %61 = arith.negf %49 : vector<8x32xf32>
    %62 = math.exp %61 : vector<8x32xf32>
    %cst_49 = arith.constant 1.000000e+00 : f32
    %63 = vector.broadcast %cst_49 : f32 to vector<8x32xf32>
    %64 = arith.addf %63, %62 : vector<8x32xf32>
    %65 = arith.divf %63, %64 : vector<8x32xf32>
    %66 = math.tanh %52 : vector<8x32xf32>
    %67 = arith.negf %55 : vector<8x32xf32>
    %68 = math.exp %67 : vector<8x32xf32>
    %cst_50 = arith.constant 1.000000e+00 : f32
    %69 = vector.broadcast %cst_50 : f32 to vector<8x32xf32>
    %70 = arith.addf %69, %68 : vector<8x32xf32>
    %71 = arith.divf %69, %70 : vector<8x32xf32>
    %72 = arith.mulf %65, %7 : vector<8x32xf32>
    %73 = arith.mulf %60, %66 : vector<8x32xf32>
    %74 = arith.addf %72, %73 : vector<8x32xf32>
    %75 = math.tanh %74 : vector<8x32xf32>
    %76 = arith.mulf %71, %75 : vector<8x32xf32>
    %c0_51 = arith.constant 0 : index
    %c0_52 = arith.constant 0 : index
    %77 = vector.load %arg14[%c0_51, %c0_52] : memref<64x32xf32, #tpu.memory_space<vmem>>, vector<8x32xf32>
    tpu.vector_store %arg14[%c0_51, %c0_52], %76 {strides = array<i32>} : memref<64x32xf32, #tpu.memory_space<vmem>>, vector<8x32xf32>,
    %78 = vector.extract_strided_slice %14 {offsets = [8, 0], sizes = [8, 32], strides = [1, 1]} : vector<64x32xf32> to vector<8x32xf32>
    %cst_53 = arith.constant dense<0.000000e+00> : vector<8x32xf32>
    %79 = tpu.matmul %76, %37, %cst_53 {dimension_numbers = #tpu.dot_dimension_numbers<[1], [0], [0], [1], [0, 0, 1, 1], [], []>} : vector<8x32xf32>, vector<32x32xf32>, vector<8x32xf32> -> vector<8x32xf32>
    %80 = arith.addf %78, %79 : vector<8x32xf32>
    %81 = vector.extract_strided_slice %21 {offsets = [8, 0], sizes = [8, 32], strides = [1, 1]} : vector<64x32xf32> to vector<8x32xf32>
    %cst_54 = arith.constant dense<0.000000e+00> : vector<8x32xf32>
    %82 = tpu.matmul %76, %39, %cst_54 {dimension_numbers = #tpu.dot_dimension_numbers<[1], [0], [0], [1], [0, 0, 1, 1], [], []>} : vector<8x32xf32>, vector<32x32xf32>, vector<8x32xf32> -> vector<8x32xf32>
    %83 = arith.addf %81, %82 : vector<8x32xf32>
    %84 = vector.extract_strided_slice %28 {offsets = [8, 0], sizes = [8, 32], strides = [1, 1]} : vector<64x32xf32> to vector<8x32xf32>
    %cst_55 = arith.constant dense<0.000000e+00> : vector<8x32xf32>
    %85 = tpu.matmul %76, %41, %cst_55 {dimension_numbers = #tpu.dot_dimension_numbers<[1], [0], [0], [1], [0, 0, 1, 1], [], []>} : vector<8x32xf32>, vector<32x32xf32>, vector<8x32xf32> -> vector<8x32xf32>
    %86 = arith.addf %84, %85 : vector<8x32xf32>
    %87 = vector.extract_strided_slice %35 {offsets = [8, 0], sizes = [8, 32], strides = [1, 1]} : vector<64x32xf32> to vector<8x32xf32>
    %cst_56 = arith.constant dense<0.000000e+00> : vector<8x32xf32>
    %88 = tpu.matmul %76, %43, %cst_56 {dimension_numbers = #tpu.dot_dimension_numbers<[1], [0], [0], [1], [0, 0, 1, 1], [], []>} : vector<8x32xf32>, vector<32x32xf32>, vector<8x32xf32> -> vector<8x32xf32>
    %89 = arith.addf %87, %88 : vector<8x32xf32>
    %90 = arith.negf %80 : vector<8x32xf32>
    %91 = math.exp %90 : vector<8x32xf32>
    %cst_57 = arith.constant 1.000000e+00 : f32
    %92 = vector.broadcast %cst_57 : f32 to vector<8x32xf32>
    %93 = arith.addf %92, %91 : vector<8x32xf32>
    %94 = arith.divf %92, %93 : vector<8x32xf32>
    %95 = arith.negf %83 : vector<8x32xf32>
    %96 = math.exp %95 : vector<8x32xf32>
    %cst_58 = arith.constant 1.000000e+00 : f32
    %97 = vector.broadcast %cst_58 : f32 to vector<8x32xf32>
    %98 = arith.addf %97, %96 : vector<8x32xf32>
    %99 = arith.divf %97, %98 : vector<8x32xf32>
    %100 = math.tanh %86 : vector<8x32xf32>
    %101 = arith.negf %89 : vector<8x32xf32>
    %102 = math.exp %101 : vector<8x32xf32>
    %cst_59 = arith.constant 1.000000e+00 : f32
    %103 = vector.broadcast %cst_59 : f32 to vector<8x32xf32>
    %104 = arith.addf %103, %102 : vector<8x32xf32>
    %105 = arith.divf %103, %104 : vector<8x32xf32>
    %106 = arith.mulf %99, %74 : vector<8x32xf32>
    %107 = arith.mulf %94, %100 : vector<8x32xf32>
    %108 = arith.addf %106, %107 : vector<8x32xf32>
    %109 = math.tanh %108 : vector<8x32xf32>
    %110 = arith.mulf %105, %109 : vector<8x32xf32>
    %c8 = arith.constant 8 : index
    %c0_60 = arith.constant 0 : index
    %111 = vector.load %arg14[%c8, %c0_60] : memref<64x32xf32, #tpu.memory_space<vmem>>, vector<8x32xf32>
    tpu.vector_store %arg14[%c8, %c0_60], %110 {strides = array<i32>} : memref<64x32xf32, #tpu.memory_space<vmem>>, vector<8x32xf32>,
    %112 = vector.extract_strided_slice %14 {offsets = [16, 0], sizes = [8, 32], strides = [1, 1]} : vector<64x32xf32> to vector<8x32xf32>
    %cst_61 = arith.constant dense<0.000000e+00> : vector<8x32xf32>
    %113 = tpu.matmul %110, %37, %cst_61 {dimension_numbers = #tpu.dot_dimension_numbers<[1], [0], [0], [1], [0, 0, 1, 1], [], []>} : vector<8x32xf32>, vector<32x32xf32>, vector<8x32xf32> -> vector<8x32xf32>
    %114 = arith.addf %112, %113 : vector<8x32xf32>
    %115 = vector.extract_strided_slice %21 {offsets = [16, 0], sizes = [8, 32], strides = [1, 1]} : vector<64x32xf32> to vector<8x32xf32>
    %cst_62 = arith.constant dense<0.000000e+00> : vector<8x32xf32>
    %116 = tpu.matmul %110, %39, %cst_62 {dimension_numbers = #tpu.dot_dimension_numbers<[1], [0], [0], [1], [0, 0, 1, 1], [], []>} : vector<8x32xf32>, vector<32x32xf32>, vector<8x32xf32> -> vector<8x32xf32>
    %117 = arith.addf %115, %116 : vector<8x32xf32>
    %118 = vector.extract_strided_slice %28 {offsets = [16, 0], sizes = [8, 32], strides = [1, 1]} : vector<64x32xf32> to vector<8x32xf32>
    %cst_63 = arith.constant dense<0.000000e+00> : vector<8x32xf32>
    %119 = tpu.matmul %110, %41, %cst_63 {dimension_numbers = #tpu.dot_dimension_numbers<[1], [0], [0], [1], [0, 0, 1, 1], [], []>} : vector<8x32xf32>, vector<32x32xf32>, vector<8x32xf32> -> vector<8x32xf32>
    %120 = arith.addf %118, %119 : vector<8x32xf32>
    %121 = vector.extract_strided_slice %35 {offsets = [16, 0], sizes = [8, 32], strides = [1, 1]} : vector<64x32xf32> to vector<8x32xf32>
    %cst_64 = arith.constant dense<0.000000e+00> : vector<8x32xf32>
    %122 = tpu.matmul %110, %43, %cst_64 {dimension_numbers = #tpu.dot_dimension_numbers<[1], [0], [0], [1], [0, 0, 1, 1], [], []>} : vector<8x32xf32>, vector<32x32xf32>, vector<8x32xf32> -> vector<8x32xf32>
    %123 = arith.addf %121, %122 : vector<8x32xf32>
    %124 = arith.negf %114 : vector<8x32xf32>
    %125 = math.exp %124 : vector<8x32xf32>
    %cst_65 = arith.constant 1.000000e+00 : f32
    %126 = vector.broadcast %cst_65 : f32 to vector<8x32xf32>
    %127 = arith.addf %126, %125 : vector<8x32xf32>
    %128 = arith.divf %126, %127 : vector<8x32xf32>
    %129 = arith.negf %117 : vector<8x32xf32>
    %130 = math.exp %129 : vector<8x32xf32>
    %cst_66 = arith.constant 1.000000e+00 : f32
    %131 = vector.broadcast %cst_66 : f32 to vector<8x32xf32>
    %132 = arith.addf %131, %130 : vector<8x32xf32>
    %133 = arith.divf %131, %132 : vector<8x32xf32>
    %134 = math.tanh %120 : vector<8x32xf32>
    %135 = arith.negf %123 : vector<8x32xf32>
    %136 = math.exp %135 : vector<8x32xf32>
    %cst_67 = arith.constant 1.000000e+00 : f32
    %137 = vector.broadcast %cst_67 : f32 to vector<8x32xf32>
    %138 = arith.addf %137, %136 : vector<8x32xf32>
    %139 = arith.divf %137, %138 : vector<8x32xf32>
    %140 = arith.mulf %133, %108 : vector<8x32xf32>
    %141 = arith.mulf %128, %134 : vector<8x32xf32>
    %142 = arith.addf %140, %141 : vector<8x32xf32>
    %143 = math.tanh %142 : vector<8x32xf32>
    %144 = arith.mulf %139, %143 : vector<8x32xf32>
    %c16 = arith.constant 16 : index
    %c0_68 = arith.constant 0 : index
    %145 = vector.load %arg14[%c16, %c0_68] : memref<64x32xf32, #tpu.memory_space<vmem>>, vector<8x32xf32>
    tpu.vector_store %arg14[%c16, %c0_68], %144 {strides = array<i32>} : memref<64x32xf32, #tpu.memory_space<vmem>>, vector<8x32xf32>,
    %146 = vector.extract_strided_slice %14 {offsets = [24, 0], sizes = [8, 32], strides = [1, 1]} : vector<64x32xf32> to vector<8x32xf32>
    %cst_69 = arith.constant dense<0.000000e+00> : vector<8x32xf32>
    %147 = tpu.matmul %144, %37, %cst_69 {dimension_numbers = #tpu.dot_dimension_numbers<[1], [0], [0], [1], [0, 0, 1, 1], [], []>} : vector<8x32xf32>, vector<32x32xf32>, vector<8x32xf32> -> vector<8x32xf32>
    %148 = arith.addf %146, %147 : vector<8x32xf32>
    %149 = vector.extract_strided_slice %21 {offsets = [24, 0], sizes = [8, 32], strides = [1, 1]} : vector<64x32xf32> to vector<8x32xf32>
    %cst_70 = arith.constant dense<0.000000e+00> : vector<8x32xf32>
    %150 = tpu.matmul %144, %39, %cst_70 {dimension_numbers = #tpu.dot_dimension_numbers<[1], [0], [0], [1], [0, 0, 1, 1], [], []>} : vector<8x32xf32>, vector<32x32xf32>, vector<8x32xf32> -> vector<8x32xf32>
    %151 = arith.addf %149, %150 : vector<8x32xf32>
    %152 = vector.extract_strided_slice %28 {offsets = [24, 0], sizes = [8, 32], strides = [1, 1]} : vector<64x32xf32> to vector<8x32xf32>
    %cst_71 = arith.constant dense<0.000000e+00> : vector<8x32xf32>
    %153 = tpu.matmul %144, %41, %cst_71 {dimension_numbers = #tpu.dot_dimension_numbers<[1], [0], [0], [1], [0, 0, 1, 1], [], []>} : vector<8x32xf32>, vector<32x32xf32>, vector<8x32xf32> -> vector<8x32xf32>
    %154 = arith.addf %152, %153 : vector<8x32xf32>
    %155 = vector.extract_strided_slice %35 {offsets = [24, 0], sizes = [8, 32], strides = [1, 1]} : vector<64x32xf32> to vector<8x32xf32>
    %cst_72 = arith.constant dense<0.000000e+00> : vector<8x32xf32>
    %156 = tpu.matmul %144, %43, %cst_72 {dimension_numbers = #tpu.dot_dimension_numbers<[1], [0], [0], [1], [0, 0, 1, 1], [], []>} : vector<8x32xf32>, vector<32x32xf32>, vector<8x32xf32> -> vector<8x32xf32>
    %157 = arith.addf %155, %156 : vector<8x32xf32>
    %158 = arith.negf %148 : vector<8x32xf32>
    %159 = math.exp %158 : vector<8x32xf32>
    %cst_73 = arith.constant 1.000000e+00 : f32
    %160 = vector.broadcast %cst_73 : f32 to vector<8x32xf32>
    %161 = arith.addf %160, %159 : vector<8x32xf32>
    %162 = arith.divf %160, %161 : vector<8x32xf32>
    %163 = arith.negf %151 : vector<8x32xf32>
    %164 = math.exp %163 : vector<8x32xf32>
    %cst_74 = arith.constant 1.000000e+00 : f32
    %165 = vector.broadcast %cst_74 : f32 to vector<8x32xf32>
    %166 = arith.addf %165, %164 : vector<8x32xf32>
    %167 = arith.divf %165, %166 : vector<8x32xf32>
    %168 = math.tanh %154 : vector<8x32xf32>
    %169 = arith.negf %157 : vector<8x32xf32>
    %170 = math.exp %169 : vector<8x32xf32>
    %cst_75 = arith.constant 1.000000e+00 : f32
    %171 = vector.broadcast %cst_75 : f32 to vector<8x32xf32>
    %172 = arith.addf %171, %170 : vector<8x32xf32>
    %173 = arith.divf %171, %172 : vector<8x32xf32>
    %174 = arith.mulf %167, %142 : vector<8x32xf32>
    %175 = arith.mulf %162, %168 : vector<8x32xf32>
    %176 = arith.addf %174, %175 : vector<8x32xf32>
    %177 = math.tanh %176 : vector<8x32xf32>
    %178 = arith.mulf %173, %177 : vector<8x32xf32>
    %c24 = arith.constant 24 : index
    %c0_76 = arith.constant 0 : index
    %179 = vector.load %arg14[%c24, %c0_76] : memref<64x32xf32, #tpu.memory_space<vmem>>, vector<8x32xf32>
    tpu.vector_store %arg14[%c24, %c0_76], %178 {strides = array<i32>} : memref<64x32xf32, #tpu.memory_space<vmem>>, vector<8x32xf32>,
    %180 = vector.extract_strided_slice %14 {offsets = [32, 0], sizes = [8, 32], strides = [1, 1]} : vector<64x32xf32> to vector<8x32xf32>
    %cst_77 = arith.constant dense<0.000000e+00> : vector<8x32xf32>
    %181 = tpu.matmul %178, %37, %cst_77 {dimension_numbers = #tpu.dot_dimension_numbers<[1], [0], [0], [1], [0, 0, 1, 1], [], []>} : vector<8x32xf32>, vector<32x32xf32>, vector<8x32xf32> -> vector<8x32xf32>
    %182 = arith.addf %180, %181 : vector<8x32xf32>
    %183 = vector.extract_strided_slice %21 {offsets = [32, 0], sizes = [8, 32], strides = [1, 1]} : vector<64x32xf32> to vector<8x32xf32>
    %cst_78 = arith.constant dense<0.000000e+00> : vector<8x32xf32>
    %184 = tpu.matmul %178, %39, %cst_78 {dimension_numbers = #tpu.dot_dimension_numbers<[1], [0], [0], [1], [0, 0, 1, 1], [], []>} : vector<8x32xf32>, vector<32x32xf32>, vector<8x32xf32> -> vector<8x32xf32>
    %185 = arith.addf %183, %184 : vector<8x32xf32>
    %186 = vector.extract_strided_slice %28 {offsets = [32, 0], sizes = [8, 32], strides = [1, 1]} : vector<64x32xf32> to vector<8x32xf32>
    %cst_79 = arith.constant dense<0.000000e+00> : vector<8x32xf32>
    %187 = tpu.matmul %178, %41, %cst_79 {dimension_numbers = #tpu.dot_dimension_numbers<[1], [0], [0], [1], [0, 0, 1, 1], [], []>} : vector<8x32xf32>, vector<32x32xf32>, vector<8x32xf32> -> vector<8x32xf32>
    %188 = arith.addf %186, %187 : vector<8x32xf32>
    %189 = vector.extract_strided_slice %35 {offsets = [32, 0], sizes = [8, 32], strides = [1, 1]} : vector<64x32xf32> to vector<8x32xf32>
    %cst_80 = arith.constant dense<0.000000e+00> : vector<8x32xf32>
    %190 = tpu.matmul %178, %43, %cst_80 {dimension_numbers = #tpu.dot_dimension_numbers<[1], [0], [0], [1], [0, 0, 1, 1], [], []>} : vector<8x32xf32>, vector<32x32xf32>, vector<8x32xf32> -> vector<8x32xf32>
    %191 = arith.addf %189, %190 : vector<8x32xf32>
    %192 = arith.negf %182 : vector<8x32xf32>
    %193 = math.exp %192 : vector<8x32xf32>
    %cst_81 = arith.constant 1.000000e+00 : f32
    %194 = vector.broadcast %cst_81 : f32 to vector<8x32xf32>
    %195 = arith.addf %194, %193 : vector<8x32xf32>
    %196 = arith.divf %194, %195 : vector<8x32xf32>
    %197 = arith.negf %185 : vector<8x32xf32>
    %198 = math.exp %197 : vector<8x32xf32>
    %cst_82 = arith.constant 1.000000e+00 : f32
    %199 = vector.broadcast %cst_82 : f32 to vector<8x32xf32>
    %200 = arith.addf %199, %198 : vector<8x32xf32>
    %201 = arith.divf %199, %200 : vector<8x32xf32>
    %202 = math.tanh %188 : vector<8x32xf32>
    %203 = arith.negf %191 : vector<8x32xf32>
    %204 = math.exp %203 : vector<8x32xf32>
    %cst_83 = arith.constant 1.000000e+00 : f32
    %205 = vector.broadcast %cst_83 : f32 to vector<8x32xf32>
    %206 = arith.addf %205, %204 : vector<8x32xf32>
    %207 = arith.divf %205, %206 : vector<8x32xf32>
    %208 = arith.mulf %201, %176 : vector<8x32xf32>
    %209 = arith.mulf %196, %202 : vector<8x32xf32>
    %210 = arith.addf %208, %209 : vector<8x32xf32>
    %211 = math.tanh %210 : vector<8x32xf32>
    %212 = arith.mulf %207, %211 : vector<8x32xf32>
    %c32 = arith.constant 32 : index
    %c0_84 = arith.constant 0 : index
    %213 = vector.load %arg14[%c32, %c0_84] : memref<64x32xf32, #tpu.memory_space<vmem>>, vector<8x32xf32>
    tpu.vector_store %arg14[%c32, %c0_84], %212 {strides = array<i32>} : memref<64x32xf32, #tpu.memory_space<vmem>>, vector<8x32xf32>,
    %214 = vector.extract_strided_slice %14 {offsets = [40, 0], sizes = [8, 32], strides = [1, 1]} : vector<64x32xf32> to vector<8x32xf32>
    %cst_85 = arith.constant dense<0.000000e+00> : vector<8x32xf32>
    %215 = tpu.matmul %212, %37, %cst_85 {dimension_numbers = #tpu.dot_dimension_numbers<[1], [0], [0], [1], [0, 0, 1, 1], [], []>} : vector<8x32xf32>, vector<32x32xf32>, vector<8x32xf32> -> vector<8x32xf32>
    %216 = arith.addf %214, %215 : vector<8x32xf32>
    %217 = vector.extract_strided_slice %21 {offsets = [40, 0], sizes = [8, 32], strides = [1, 1]} : vector<64x32xf32> to vector<8x32xf32>
    %cst_86 = arith.constant dense<0.000000e+00> : vector<8x32xf32>
    %218 = tpu.matmul %212, %39, %cst_86 {dimension_numbers = #tpu.dot_dimension_numbers<[1], [0], [0], [1], [0, 0, 1, 1], [], []>} : vector<8x32xf32>, vector<32x32xf32>, vector<8x32xf32> -> vector<8x32xf32>
    %219 = arith.addf %217, %218 : vector<8x32xf32>
    %220 = vector.extract_strided_slice %28 {offsets = [40, 0], sizes = [8, 32], strides = [1, 1]} : vector<64x32xf32> to vector<8x32xf32>
    %cst_87 = arith.constant dense<0.000000e+00> : vector<8x32xf32>
    %221 = tpu.matmul %212, %41, %cst_87 {dimension_numbers = #tpu.dot_dimension_numbers<[1], [0], [0], [1], [0, 0, 1, 1], [], []>} : vector<8x32xf32>, vector<32x32xf32>, vector<8x32xf32> -> vector<8x32xf32>
    %222 = arith.addf %220, %221 : vector<8x32xf32>
    %223 = vector.extract_strided_slice %35 {offsets = [40, 0], sizes = [8, 32], strides = [1, 1]} : vector<64x32xf32> to vector<8x32xf32>
    %cst_88 = arith.constant dense<0.000000e+00> : vector<8x32xf32>
    %224 = tpu.matmul %212, %43, %cst_88 {dimension_numbers = #tpu.dot_dimension_numbers<[1], [0], [0], [1], [0, 0, 1, 1], [], []>} : vector<8x32xf32>, vector<32x32xf32>, vector<8x32xf32> -> vector<8x32xf32>
    %225 = arith.addf %223, %224 : vector<8x32xf32>
    %226 = arith.negf %216 : vector<8x32xf32>
    %227 = math.exp %226 : vector<8x32xf32>
    %cst_89 = arith.constant 1.000000e+00 : f32
    %228 = vector.broadcast %cst_89 : f32 to vector<8x32xf32>
    %229 = arith.addf %228, %227 : vector<8x32xf32>
    %230 = arith.divf %228, %229 : vector<8x32xf32>
    %231 = arith.negf %219 : vector<8x32xf32>
    %232 = math.exp %231 : vector<8x32xf32>
    %cst_90 = arith.constant 1.000000e+00 : f32
    %233 = vector.broadcast %cst_90 : f32 to vector<8x32xf32>
    %234 = arith.addf %233, %232 : vector<8x32xf32>
    %235 = arith.divf %233, %234 : vector<8x32xf32>
    %236 = math.tanh %222 : vector<8x32xf32>
    %237 = arith.negf %225 : vector<8x32xf32>
    %238 = math.exp %237 : vector<8x32xf32>
    %cst_91 = arith.constant 1.000000e+00 : f32
    %239 = vector.broadcast %cst_91 : f32 to vector<8x32xf32>
    %240 = arith.addf %239, %238 : vector<8x32xf32>
    %241 = arith.divf %239, %240 : vector<8x32xf32>
    %242 = arith.mulf %235, %210 : vector<8x32xf32>
    %243 = arith.mulf %230, %236 : vector<8x32xf32>
    %244 = arith.addf %242, %243 : vector<8x32xf32>
    %245 = math.tanh %244 : vector<8x32xf32>
    %246 = arith.mulf %241, %245 : vector<8x32xf32>
    %c40 = arith.constant 40 : index
    %c0_92 = arith.constant 0 : index
    %247 = vector.load %arg14[%c40, %c0_92] : memref<64x32xf32, #tpu.memory_space<vmem>>, vector<8x32xf32>
    tpu.vector_store %arg14[%c40, %c0_92], %246 {strides = array<i32>} : memref<64x32xf32, #tpu.memory_space<vmem>>, vector<8x32xf32>,
    %248 = vector.extract_strided_slice %14 {offsets = [48, 0], sizes = [8, 32], strides = [1, 1]} : vector<64x32xf32> to vector<8x32xf32>
    %cst_93 = arith.constant dense<0.000000e+00> : vector<8x32xf32>
    %249 = tpu.matmul %246, %37, %cst_93 {dimension_numbers = #tpu.dot_dimension_numbers<[1], [0], [0], [1], [0, 0, 1, 1], [], []>} : vector<8x32xf32>, vector<32x32xf32>, vector<8x32xf32> -> vector<8x32xf32>
    %250 = arith.addf %248, %249 : vector<8x32xf32>
    %251 = vector.extract_strided_slice %21 {offsets = [48, 0], sizes = [8, 32], strides = [1, 1]} : vector<64x32xf32> to vector<8x32xf32>
    %cst_94 = arith.constant dense<0.000000e+00> : vector<8x32xf32>
    %252 = tpu.matmul %246, %39, %cst_94 {dimension_numbers = #tpu.dot_dimension_numbers<[1], [0], [0], [1], [0, 0, 1, 1], [], []>} : vector<8x32xf32>, vector<32x32xf32>, vector<8x32xf32> -> vector<8x32xf32>
    %253 = arith.addf %251, %252 : vector<8x32xf32>
    %254 = vector.extract_strided_slice %28 {offsets = [48, 0], sizes = [8, 32], strides = [1, 1]} : vector<64x32xf32> to vector<8x32xf32>
    %cst_95 = arith.constant dense<0.000000e+00> : vector<8x32xf32>
    %255 = tpu.matmul %246, %41, %cst_95 {dimension_numbers = #tpu.dot_dimension_numbers<[1], [0], [0], [1], [0, 0, 1, 1], [], []>} : vector<8x32xf32>, vector<32x32xf32>, vector<8x32xf32> -> vector<8x32xf32>
    %256 = arith.addf %254, %255 : vector<8x32xf32>
    %257 = vector.extract_strided_slice %35 {offsets = [48, 0], sizes = [8, 32], strides = [1, 1]} : vector<64x32xf32> to vector<8x32xf32>
    %cst_96 = arith.constant dense<0.000000e+00> : vector<8x32xf32>
    %258 = tpu.matmul %246, %43, %cst_96 {dimension_numbers = #tpu.dot_dimension_numbers<[1], [0], [0], [1], [0, 0, 1, 1], [], []>} : vector<8x32xf32>, vector<32x32xf32>, vector<8x32xf32> -> vector<8x32xf32>
    %259 = arith.addf %257, %258 : vector<8x32xf32>
    %260 = arith.negf %250 : vector<8x32xf32>
    %261 = math.exp %260 : vector<8x32xf32>
    %cst_97 = arith.constant 1.000000e+00 : f32
    %262 = vector.broadcast %cst_97 : f32 to vector<8x32xf32>
    %263 = arith.addf %262, %261 : vector<8x32xf32>
    %264 = arith.divf %262, %263 : vector<8x32xf32>
    %265 = arith.negf %253 : vector<8x32xf32>
    %266 = math.exp %265 : vector<8x32xf32>
    %cst_98 = arith.constant 1.000000e+00 : f32
    %267 = vector.broadcast %cst_98 : f32 to vector<8x32xf32>
    %268 = arith.addf %267, %266 : vector<8x32xf32>
    %269 = arith.divf %267, %268 : vector<8x32xf32>
    %270 = math.tanh %256 : vector<8x32xf32>
    %271 = arith.negf %259 : vector<8x32xf32>
    %272 = math.exp %271 : vector<8x32xf32>
    %cst_99 = arith.constant 1.000000e+00 : f32
    %273 = vector.broadcast %cst_99 : f32 to vector<8x32xf32>
    %274 = arith.addf %273, %272 : vector<8x32xf32>
    %275 = arith.divf %273, %274 : vector<8x32xf32>
    %276 = arith.mulf %269, %244 : vector<8x32xf32>
    %277 = arith.mulf %264, %270 : vector<8x32xf32>
    %278 = arith.addf %276, %277 : vector<8x32xf32>
    %279 = math.tanh %278 : vector<8x32xf32>
    %280 = arith.mulf %275, %279 : vector<8x32xf32>
    %c48 = arith.constant 48 : index
    %c0_100 = arith.constant 0 : index
    %281 = vector.load %arg14[%c48, %c0_100] : memref<64x32xf32, #tpu.memory_space<vmem>>, vector<8x32xf32>
    tpu.vector_store %arg14[%c48, %c0_100], %280 {strides = array<i32>} : memref<64x32xf32, #tpu.memory_space<vmem>>, vector<8x32xf32>,
    %282 = vector.extract_strided_slice %14 {offsets = [56, 0], sizes = [8, 32], strides = [1, 1]} : vector<64x32xf32> to vector<8x32xf32>
    %cst_101 = arith.constant dense<0.000000e+00> : vector<8x32xf32>
    %283 = tpu.matmul %280, %37, %cst_101 {dimension_numbers = #tpu.dot_dimension_numbers<[1], [0], [0], [1], [0, 0, 1, 1], [], []>} : vector<8x32xf32>, vector<32x32xf32>, vector<8x32xf32> -> vector<8x32xf32>
    %284 = arith.addf %282, %283 : vector<8x32xf32>
    %285 = vector.extract_strided_slice %21 {offsets = [56, 0], sizes = [8, 32], strides = [1, 1]} : vector<64x32xf32> to vector<8x32xf32>
    %cst_102 = arith.constant dense<0.000000e+00> : vector<8x32xf32>
    %286 = tpu.matmul %280, %39, %cst_102 {dimension_numbers = #tpu.dot_dimension_numbers<[1], [0], [0], [1], [0, 0, 1, 1], [], []>} : vector<8x32xf32>, vector<32x32xf32>, vector<8x32xf32> -> vector<8x32xf32>
    %287 = arith.addf %285, %286 : vector<8x32xf32>
    %288 = vector.extract_strided_slice %28 {offsets = [56, 0], sizes = [8, 32], strides = [1, 1]} : vector<64x32xf32> to vector<8x32xf32>
    %cst_103 = arith.constant dense<0.000000e+00> : vector<8x32xf32>
    %289 = tpu.matmul %280, %41, %cst_103 {dimension_numbers = #tpu.dot_dimension_numbers<[1], [0], [0], [1], [0, 0, 1, 1], [], []>} : vector<8x32xf32>, vector<32x32xf32>, vector<8x32xf32> -> vector<8x32xf32>
    %290 = arith.addf %288, %289 : vector<8x32xf32>
    %291 = vector.extract_strided_slice %35 {offsets = [56, 0], sizes = [8, 32], strides = [1, 1]} : vector<64x32xf32> to vector<8x32xf32>
    %cst_104 = arith.constant dense<0.000000e+00> : vector<8x32xf32>
    %292 = tpu.matmul %280, %43, %cst_104 {dimension_numbers = #tpu.dot_dimension_numbers<[1], [0], [0], [1], [0, 0, 1, 1], [], []>} : vector<8x32xf32>, vector<32x32xf32>, vector<8x32xf32> -> vector<8x32xf32>
    %293 = arith.addf %291, %292 : vector<8x32xf32>
    %294 = arith.negf %284 : vector<8x32xf32>
    %295 = math.exp %294 : vector<8x32xf32>
    %cst_105 = arith.constant 1.000000e+00 : f32
    %296 = vector.broadcast %cst_105 : f32 to vector<8x32xf32>
    %297 = arith.addf %296, %295 : vector<8x32xf32>
    %298 = arith.divf %296, %297 : vector<8x32xf32>
    %299 = arith.negf %287 : vector<8x32xf32>
    %300 = math.exp %299 : vector<8x32xf32>
    %cst_106 = arith.constant 1.000000e+00 : f32
    %301 = vector.broadcast %cst_106 : f32 to vector<8x32xf32>
    %302 = arith.addf %301, %300 : vector<8x32xf32>
    %303 = arith.divf %301, %302 : vector<8x32xf32>
    %304 = math.tanh %290 : vector<8x32xf32>
    %305 = arith.negf %293 : vector<8x32xf32>
    %306 = math.exp %305 : vector<8x32xf32>
    %cst_107 = arith.constant 1.000000e+00 : f32
    %307 = vector.broadcast %cst_107 : f32 to vector<8x32xf32>
    %308 = arith.addf %307, %306 : vector<8x32xf32>
    %309 = arith.divf %307, %308 : vector<8x32xf32>
    %310 = arith.mulf %303, %278 : vector<8x32xf32>
    %311 = arith.mulf %298, %304 : vector<8x32xf32>
    %312 = arith.addf %310, %311 : vector<8x32xf32>
    %313 = math.tanh %312 : vector<8x32xf32>
    %314 = arith.mulf %309, %313 : vector<8x32xf32>
    %c56 = arith.constant 56 : index
    %c0_108 = arith.constant 0 : index
    %315 = vector.load %arg14[%c56, %c0_108] : memref<64x32xf32, #tpu.memory_space<vmem>>, vector<8x32xf32>
    tpu.vector_store %arg14[%c56, %c0_108], %314 {strides = array<i32>} : memref<64x32xf32, #tpu.memory_space<vmem>>, vector<8x32xf32>,
    %c0_109 = arith.constant 0 : index
    %c0_110 = arith.constant 0 : index
    %316 = vector.load %arg14[%c0_109, %c0_110] : memref<64x32xf32, #tpu.memory_space<vmem>>, vector<64x32xf32>
    %c0_111 = arith.constant 0 : index
    %c0_112 = arith.constant 0 : index
    %c0_113 = arith.constant 0 : index
    %317 = vector.load %arg10[%c0_111, %c0_112, %c0_113] : memref<3x64x32xf32, #tpu.memory_space<vmem>>, vector<1x64x32xf32>
    %318 = vector.shape_cast %317 : vector<1x64x32xf32> to vector<64x32xf32>
    %c0_114 = arith.constant 0 : index
    %c0_115 = arith.constant 0 : index
    %c0_116 = arith.constant 0 : index
    %319 = vector.load %arg6[%c0_114, %c0_115, %c0_116] : memref<3x32x32xf32, #tpu.memory_space<vmem>>, vector<1x32x32xf32>
    %320 = vector.shape_cast %319 : vector<1x32x32xf32> to vector<32x32xf32>
    %cst_117 = arith.constant dense<0.000000e+00> : vector<64x32xf32>
    %321 = tpu.matmul %318, %320, %cst_117 {dimension_numbers = #tpu.dot_dimension_numbers<[1], [0], [0], [1], [0, 0, 1, 1], [], []>} : vector<64x32xf32>, vector<32x32xf32>, vector<64x32xf32> -> vector<64x32xf32>
    %c0_118 = arith.constant 0 : index
    %c0_119 = arith.constant 0 : index
    %c0_120 = arith.constant 0 : index
    %322 = vector.load %arg7[%c0_118, %c0_119, %c0_120] : memref<3x1x32xf32, #tpu.memory_space<vmem>>, vector<1x1x32xf32>
    %323 = vector.shape_cast %322 : vector<1x1x32xf32> to vector<1x32xf32>
    %324 = vector.broadcast %323 : vector<1x32xf32> to vector<64x32xf32>
    %325 = arith.addf %321, %324 : vector<64x32xf32>
    %cst_121 = arith.constant 0.000000e+00 : f32
    %326 = vector.broadcast %cst_121 : f32 to vector<64x32xf32>
    %327 = arith.maximumf %325, %326 : vector<64x32xf32>
    %c0_122 = arith.constant 0 : index
    %c0_123 = arith.constant 0 : index
    %c0_124 = arith.constant 0 : index
    %328 = vector.load %arg8[%c0_122, %c0_123, %c0_124] : memref<3x32x32xf32, #tpu.memory_space<vmem>>, vector<1x32x32xf32>
    %329 = vector.shape_cast %328 : vector<1x32x32xf32> to vector<32x32xf32>
    %cst_125 = arith.constant dense<0.000000e+00> : vector<64x32xf32>
    %330 = tpu.matmul %327, %329, %cst_125 {dimension_numbers = #tpu.dot_dimension_numbers<[1], [0], [0], [1], [0, 0, 1, 1], [], []>} : vector<64x32xf32>, vector<32x32xf32>, vector<64x32xf32> -> vector<64x32xf32>
    %c0_126 = arith.constant 0 : index
    %c0_127 = arith.constant 0 : index
    %c0_128 = arith.constant 0 : index
    %331 = vector.load %arg9[%c0_126, %c0_127, %c0_128] : memref<3x1x32xf32, #tpu.memory_space<vmem>>, vector<1x1x32xf32>
    %332 = vector.shape_cast %331 : vector<1x1x32xf32> to vector<1x32xf32>
    %333 = vector.broadcast %332 : vector<1x32xf32> to vector<64x32xf32>
    %334 = arith.addf %330, %333 : vector<64x32xf32>
    %335 = arith.addf %316, %334 : vector<64x32xf32>
    %c4 = arith.constant 4 : index
    %c0_129 = arith.constant 0 : index
    %c0_130 = arith.constant 0 : index
    %336 = vector.load %arg3[%c4, %c0_129, %c0_130] : memref<12x32x32xf32, #tpu.memory_space<vmem>>, vector<1x32x32xf32>
    %337 = vector.shape_cast %336 : vector<1x32x32xf32> to vector<32x32xf32>
    %cst_131 = arith.constant dense<0.000000e+00> : vector<64x32xf32>
    %338 = tpu.matmul %335, %337, %cst_131 {dimension_numbers = #tpu.dot_dimension_numbers<[1], [0], [0], [1], [0, 0, 1, 1], [], []>} : vector<64x32xf32>, vector<32x32xf32>, vector<64x32xf32> -> vector<64x32xf32>
    %c4_132 = arith.constant 4 : index
    %c0_133 = arith.constant 0 : index
    %c0_134 = arith.constant 0 : index
    %339 = vector.load %arg5[%c4_132, %c0_133, %c0_134] : memref<12x1x32xf32, #tpu.memory_space<vmem>>, vector<1x1x32xf32>
    %340 = vector.shape_cast %339 : vector<1x1x32xf32> to vector<1x32xf32>
    %341 = vector.broadcast %340 : vector<1x32xf32> to vector<64x32xf32>
    %342 = arith.addf %338, %341 : vector<64x32xf32>
    %c5 = arith.constant 5 : index
    %c0_135 = arith.constant 0 : index
    %c0_136 = arith.constant 0 : index
    %343 = vector.load %arg3[%c5, %c0_135, %c0_136] : memref<12x32x32xf32, #tpu.memory_space<vmem>>, vector<1x32x32xf32>
    %344 = vector.shape_cast %343 : vector<1x32x32xf32> to vector<32x32xf32>
    %cst_137 = arith.constant dense<0.000000e+00> : vector<64x32xf32>
    %345 = tpu.matmul %335, %344, %cst_137 {dimension_numbers = #tpu.dot_dimension_numbers<[1], [0], [0], [1], [0, 0, 1, 1], [], []>} : vector<64x32xf32>, vector<32x32xf32>, vector<64x32xf32> -> vector<64x32xf32>
    %c5_138 = arith.constant 5 : index
    %c0_139 = arith.constant 0 : index
    %c0_140 = arith.constant 0 : index
    %346 = vector.load %arg5[%c5_138, %c0_139, %c0_140] : memref<12x1x32xf32, #tpu.memory_space<vmem>>, vector<1x1x32xf32>
    %347 = vector.shape_cast %346 : vector<1x1x32xf32> to vector<1x32xf32>
    %348 = vector.broadcast %347 : vector<1x32xf32> to vector<64x32xf32>
    %349 = arith.addf %345, %348 : vector<64x32xf32>
    %c6 = arith.constant 6 : index
    %c0_141 = arith.constant 0 : index
    %c0_142 = arith.constant 0 : index
    %350 = vector.load %arg3[%c6, %c0_141, %c0_142] : memref<12x32x32xf32, #tpu.memory_space<vmem>>, vector<1x32x32xf32>
    %351 = vector.shape_cast %350 : vector<1x32x32xf32> to vector<32x32xf32>
    %cst_143 = arith.constant dense<0.000000e+00> : vector<64x32xf32>
    %352 = tpu.matmul %335, %351, %cst_143 {dimension_numbers = #tpu.dot_dimension_numbers<[1], [0], [0], [1], [0, 0, 1, 1], [], []>} : vector<64x32xf32>, vector<32x32xf32>, vector<64x32xf32> -> vector<64x32xf32>
    %c6_144 = arith.constant 6 : index
    %c0_145 = arith.constant 0 : index
    %c0_146 = arith.constant 0 : index
    %353 = vector.load %arg5[%c6_144, %c0_145, %c0_146] : memref<12x1x32xf32, #tpu.memory_space<vmem>>, vector<1x1x32xf32>
    %354 = vector.shape_cast %353 : vector<1x1x32xf32> to vector<1x32xf32>
    %355 = vector.broadcast %354 : vector<1x32xf32> to vector<64x32xf32>
    %356 = arith.addf %352, %355 : vector<64x32xf32>
    %c7 = arith.constant 7 : index
    %c0_147 = arith.constant 0 : index
    %c0_148 = arith.constant 0 : index
    %357 = vector.load %arg3[%c7, %c0_147, %c0_148] : memref<12x32x32xf32, #tpu.memory_space<vmem>>, vector<1x32x32xf32>
    %358 = vector.shape_cast %357 : vector<1x32x32xf32> to vector<32x32xf32>
    %cst_149 = arith.constant dense<0.000000e+00> : vector<64x32xf32>
    %359 = tpu.matmul %335, %358, %cst_149 {dimension_numbers = #tpu.dot_dimension_numbers<[1], [0], [0], [1], [0, 0, 1, 1], [], []>} : vector<64x32xf32>, vector<32x32xf32>, vector<64x32xf32> -> vector<64x32xf32>
    %c7_150 = arith.constant 7 : index
    %c0_151 = arith.constant 0 : index
    %c0_152 = arith.constant 0 : index
    %360 = vector.load %arg5[%c7_150, %c0_151, %c0_152] : memref<12x1x32xf32, #tpu.memory_space<vmem>>, vector<1x1x32xf32>
    %361 = vector.shape_cast %360 : vector<1x1x32xf32> to vector<1x32xf32>
    %362 = vector.broadcast %361 : vector<1x32xf32> to vector<64x32xf32>
    %363 = arith.addf %359, %362 : vector<64x32xf32>
    %c4_153 = arith.constant 4 : index
    %c0_154 = arith.constant 0 : index
    %c0_155 = arith.constant 0 : index
    %364 = vector.load %arg4[%c4_153, %c0_154, %c0_155] : memref<12x32x32xf32, #tpu.memory_space<vmem>>, vector<1x32x32xf32>
    %365 = vector.shape_cast %364 : vector<1x32x32xf32> to vector<32x32xf32>
    %c5_156 = arith.constant 5 : index
    %c0_157 = arith.constant 0 : index
    %c0_158 = arith.constant 0 : index
    %366 = vector.load %arg4[%c5_156, %c0_157, %c0_158] : memref<12x32x32xf32, #tpu.memory_space<vmem>>, vector<1x32x32xf32>
    %367 = vector.shape_cast %366 : vector<1x32x32xf32> to vector<32x32xf32>
    %c6_159 = arith.constant 6 : index
    %c0_160 = arith.constant 0 : index
    %c0_161 = arith.constant 0 : index
    %368 = vector.load %arg4[%c6_159, %c0_160, %c0_161] : memref<12x32x32xf32, #tpu.memory_space<vmem>>, vector<1x32x32xf32>
    %369 = vector.shape_cast %368 : vector<1x32x32xf32> to vector<32x32xf32>
    %c7_162 = arith.constant 7 : index
    %c0_163 = arith.constant 0 : index
    %c0_164 = arith.constant 0 : index
    %370 = vector.load %arg4[%c7_162, %c0_163, %c0_164] : memref<12x32x32xf32, #tpu.memory_space<vmem>>, vector<1x32x32xf32>
    %371 = vector.shape_cast %370 : vector<1x32x32xf32> to vector<32x32xf32>
    %372 = vector.extract_strided_slice %342 {offsets = [0, 0], sizes = [8, 32], strides = [1, 1]} : vector<64x32xf32> to vector<8x32xf32>
    %cst_165 = arith.constant dense<0.000000e+00> : vector<8x32xf32>
    %373 = tpu.matmul %314, %365, %cst_165 {dimension_numbers = #tpu.dot_dimension_numbers<[1], [0], [0], [1], [0, 0, 1, 1], [], []>} : vector<8x32xf32>, vector<32x32xf32>, vector<8x32xf32> -> vector<8x32xf32>
    %374 = arith.addf %372, %373 : vector<8x32xf32>
    %375 = vector.extract_strided_slice %349 {offsets = [0, 0], sizes = [8, 32], strides = [1, 1]} : vector<64x32xf32> to vector<8x32xf32>
    %cst_166 = arith.constant dense<0.000000e+00> : vector<8x32xf32>
    %376 = tpu.matmul %314, %367, %cst_166 {dimension_numbers = #tpu.dot_dimension_numbers<[1], [0], [0], [1], [0, 0, 1, 1], [], []>} : vector<8x32xf32>, vector<32x32xf32>, vector<8x32xf32> -> vector<8x32xf32>
    %377 = arith.addf %375, %376 : vector<8x32xf32>
    %378 = vector.extract_strided_slice %356 {offsets = [0, 0], sizes = [8, 32], strides = [1, 1]} : vector<64x32xf32> to vector<8x32xf32>
    %cst_167 = arith.constant dense<0.000000e+00> : vector<8x32xf32>
    %379 = tpu.matmul %314, %369, %cst_167 {dimension_numbers = #tpu.dot_dimension_numbers<[1], [0], [0], [1], [0, 0, 1, 1], [], []>} : vector<8x32xf32>, vector<32x32xf32>, vector<8x32xf32> -> vector<8x32xf32>
    %380 = arith.addf %378, %379 : vector<8x32xf32>
    %381 = vector.extract_strided_slice %363 {offsets = [0, 0], sizes = [8, 32], strides = [1, 1]} : vector<64x32xf32> to vector<8x32xf32>
    %cst_168 = arith.constant dense<0.000000e+00> : vector<8x32xf32>
    %382 = tpu.matmul %314, %371, %cst_168 {dimension_numbers = #tpu.dot_dimension_numbers<[1], [0], [0], [1], [0, 0, 1, 1], [], []>} : vector<8x32xf32>, vector<32x32xf32>, vector<8x32xf32> -> vector<8x32xf32>
    %383 = arith.addf %381, %382 : vector<8x32xf32>
    %384 = arith.negf %374 : vector<8x32xf32>
    %385 = math.exp %384 : vector<8x32xf32>
    %cst_169 = arith.constant 1.000000e+00 : f32
    %386 = vector.broadcast %cst_169 : f32 to vector<8x32xf32>
    %387 = arith.addf %386, %385 : vector<8x32xf32>
    %388 = arith.divf %386, %387 : vector<8x32xf32>
    %389 = arith.negf %377 : vector<8x32xf32>
    %390 = math.exp %389 : vector<8x32xf32>
    %cst_170 = arith.constant 1.000000e+00 : f32
    %391 = vector.broadcast %cst_170 : f32 to vector<8x32xf32>
    %392 = arith.addf %391, %390 : vector<8x32xf32>
    %393 = arith.divf %391, %392 : vector<8x32xf32>
    %394 = math.tanh %380 : vector<8x32xf32>
    %395 = arith.negf %383 : vector<8x32xf32>
    %396 = math.exp %395 : vector<8x32xf32>
    %cst_171 = arith.constant 1.000000e+00 : f32
    %397 = vector.broadcast %cst_171 : f32 to vector<8x32xf32>
    %398 = arith.addf %397, %396 : vector<8x32xf32>
    %399 = arith.divf %397, %398 : vector<8x32xf32>
    %400 = arith.mulf %393, %312 : vector<8x32xf32>
    %401 = arith.mulf %388, %394 : vector<8x32xf32>
    %402 = arith.addf %400, %401 : vector<8x32xf32>
    %403 = math.tanh %402 : vector<8x32xf32>
    %404 = arith.mulf %399, %403 : vector<8x32xf32>
    %c0_172 = arith.constant 0 : index
    %c0_173 = arith.constant 0 : index
    %405 = vector.load %arg14[%c0_172, %c0_173] : memref<64x32xf32, #tpu.memory_space<vmem>>, vector<8x32xf32>
    tpu.vector_store %arg14[%c0_172, %c0_173], %404 {strides = array<i32>} : memref<64x32xf32, #tpu.memory_space<vmem>>, vector<8x32xf32>,
    %406 = vector.extract_strided_slice %342 {offsets = [8, 0], sizes = [8, 32], strides = [1, 1]} : vector<64x32xf32> to vector<8x32xf32>
    %cst_174 = arith.constant dense<0.000000e+00> : vector<8x32xf32>
    %407 = tpu.matmul %404, %365, %cst_174 {dimension_numbers = #tpu.dot_dimension_numbers<[1], [0], [0], [1], [0, 0, 1, 1], [], []>} : vector<8x32xf32>, vector<32x32xf32>, vector<8x32xf32> -> vector<8x32xf32>
    %408 = arith.addf %406, %407 : vector<8x32xf32>
    %409 = vector.extract_strided_slice %349 {offsets = [8, 0], sizes = [8, 32], strides = [1, 1]} : vector<64x32xf32> to vector<8x32xf32>
    %cst_175 = arith.constant dense<0.000000e+00> : vector<8x32xf32>
    %410 = tpu.matmul %404, %367, %cst_175 {dimension_numbers = #tpu.dot_dimension_numbers<[1], [0], [0], [1], [0, 0, 1, 1], [], []>} : vector<8x32xf32>, vector<32x32xf32>, vector<8x32xf32> -> vector<8x32xf32>
    %411 = arith.addf %409, %410 : vector<8x32xf32>
    %412 = vector.extract_strided_slice %356 {offsets = [8, 0], sizes = [8, 32], strides = [1, 1]} : vector<64x32xf32> to vector<8x32xf32>
    %cst_176 = arith.constant dense<0.000000e+00> : vector<8x32xf32>
    %413 = tpu.matmul %404, %369, %cst_176 {dimension_numbers = #tpu.dot_dimension_numbers<[1], [0], [0], [1], [0, 0, 1, 1], [], []>} : vector<8x32xf32>, vector<32x32xf32>, vector<8x32xf32> -> vector<8x32xf32>
    %414 = arith.addf %412, %413 : vector<8x32xf32>
    %415 = vector.extract_strided_slice %363 {offsets = [8, 0], sizes = [8, 32], strides = [1, 1]} : vector<64x32xf32> to vector<8x32xf32>
    %cst_177 = arith.constant dense<0.000000e+00> : vector<8x32xf32>
    %416 = tpu.matmul %404, %371, %cst_177 {dimension_numbers = #tpu.dot_dimension_numbers<[1], [0], [0], [1], [0, 0, 1, 1], [], []>} : vector<8x32xf32>, vector<32x32xf32>, vector<8x32xf32> -> vector<8x32xf32>
    %417 = arith.addf %415, %416 : vector<8x32xf32>
    %418 = arith.negf %408 : vector<8x32xf32>
    %419 = math.exp %418 : vector<8x32xf32>
    %cst_178 = arith.constant 1.000000e+00 : f32
    %420 = vector.broadcast %cst_178 : f32 to vector<8x32xf32>
    %421 = arith.addf %420, %419 : vector<8x32xf32>
    %422 = arith.divf %420, %421 : vector<8x32xf32>
    %423 = arith.negf %411 : vector<8x32xf32>
    %424 = math.exp %423 : vector<8x32xf32>
    %cst_179 = arith.constant 1.000000e+00 : f32
    %425 = vector.broadcast %cst_179 : f32 to vector<8x32xf32>
    %426 = arith.addf %425, %424 : vector<8x32xf32>
    %427 = arith.divf %425, %426 : vector<8x32xf32>
    %428 = math.tanh %414 : vector<8x32xf32>
    %429 = arith.negf %417 : vector<8x32xf32>
    %430 = math.exp %429 : vector<8x32xf32>
    %cst_180 = arith.constant 1.000000e+00 : f32
    %431 = vector.broadcast %cst_180 : f32 to vector<8x32xf32>
    %432 = arith.addf %431, %430 : vector<8x32xf32>
    %433 = arith.divf %431, %432 : vector<8x32xf32>
    %434 = arith.mulf %427, %402 : vector<8x32xf32>
    %435 = arith.mulf %422, %428 : vector<8x32xf32>
    %436 = arith.addf %434, %435 : vector<8x32xf32>
    %437 = math.tanh %436 : vector<8x32xf32>
    %438 = arith.mulf %433, %437 : vector<8x32xf32>
    %c8_181 = arith.constant 8 : index
    %c0_182 = arith.constant 0 : index
    %439 = vector.load %arg14[%c8_181, %c0_182] : memref<64x32xf32, #tpu.memory_space<vmem>>, vector<8x32xf32>
    tpu.vector_store %arg14[%c8_181, %c0_182], %438 {strides = array<i32>} : memref<64x32xf32, #tpu.memory_space<vmem>>, vector<8x32xf32>,
    %440 = vector.extract_strided_slice %342 {offsets = [16, 0], sizes = [8, 32], strides = [1, 1]} : vector<64x32xf32> to vector<8x32xf32>
    %cst_183 = arith.constant dense<0.000000e+00> : vector<8x32xf32>
    %441 = tpu.matmul %438, %365, %cst_183 {dimension_numbers = #tpu.dot_dimension_numbers<[1], [0], [0], [1], [0, 0, 1, 1], [], []>} : vector<8x32xf32>, vector<32x32xf32>, vector<8x32xf32> -> vector<8x32xf32>
    %442 = arith.addf %440, %441 : vector<8x32xf32>
    %443 = vector.extract_strided_slice %349 {offsets = [16, 0], sizes = [8, 32], strides = [1, 1]} : vector<64x32xf32> to vector<8x32xf32>
    %cst_184 = arith.constant dense<0.000000e+00> : vector<8x32xf32>
    %444 = tpu.matmul %438, %367, %cst_184 {dimension_numbers = #tpu.dot_dimension_numbers<[1], [0], [0], [1], [0, 0, 1, 1], [], []>} : vector<8x32xf32>, vector<32x32xf32>, vector<8x32xf32> -> vector<8x32xf32>
    %445 = arith.addf %443, %444 : vector<8x32xf32>
    %446 = vector.extract_strided_slice %356 {offsets = [16, 0], sizes = [8, 32], strides = [1, 1]} : vector<64x32xf32> to vector<8x32xf32>
    %cst_185 = arith.constant dense<0.000000e+00> : vector<8x32xf32>
    %447 = tpu.matmul %438, %369, %cst_185 {dimension_numbers = #tpu.dot_dimension_numbers<[1], [0], [0], [1], [0, 0, 1, 1], [], []>} : vector<8x32xf32>, vector<32x32xf32>, vector<8x32xf32> -> vector<8x32xf32>
    %448 = arith.addf %446, %447 : vector<8x32xf32>
    %449 = vector.extract_strided_slice %363 {offsets = [16, 0], sizes = [8, 32], strides = [1, 1]} : vector<64x32xf32> to vector<8x32xf32>
    %cst_186 = arith.constant dense<0.000000e+00> : vector<8x32xf32>
    %450 = tpu.matmul %438, %371, %cst_186 {dimension_numbers = #tpu.dot_dimension_numbers<[1], [0], [0], [1], [0, 0, 1, 1], [], []>} : vector<8x32xf32>, vector<32x32xf32>, vector<8x32xf32> -> vector<8x32xf32>
    %451 = arith.addf %449, %450 : vector<8x32xf32>
    %452 = arith.negf %442 : vector<8x32xf32>
    %453 = math.exp %452 : vector<8x32xf32>
    %cst_187 = arith.constant 1.000000e+00 : f32
    %454 = vector.broadcast %cst_187 : f32 to vector<8x32xf32>
    %455 = arith.addf %454, %453 : vector<8x32xf32>
    %456 = arith.divf %454, %455 : vector<8x32xf32>
    %457 = arith.negf %445 : vector<8x32xf32>
    %458 = math.exp %457 : vector<8x32xf32>
    %cst_188 = arith.constant 1.000000e+00 : f32
    %459 = vector.broadcast %cst_188 : f32 to vector<8x32xf32>
    %460 = arith.addf %459, %458 : vector<8x32xf32>
    %461 = arith.divf %459, %460 : vector<8x32xf32>
    %462 = math.tanh %448 : vector<8x32xf32>
    %463 = arith.negf %451 : vector<8x32xf32>
    %464 = math.exp %463 : vector<8x32xf32>
    %cst_189 = arith.constant 1.000000e+00 : f32
    %465 = vector.broadcast %cst_189 : f32 to vector<8x32xf32>
    %466 = arith.addf %465, %464 : vector<8x32xf32>
    %467 = arith.divf %465, %466 : vector<8x32xf32>
    %468 = arith.mulf %461, %436 : vector<8x32xf32>
    %469 = arith.mulf %456, %462 : vector<8x32xf32>
    %470 = arith.addf %468, %469 : vector<8x32xf32>
    %471 = math.tanh %470 : vector<8x32xf32>
    %472 = arith.mulf %467, %471 : vector<8x32xf32>
    %c16_190 = arith.constant 16 : index
    %c0_191 = arith.constant 0 : index
    %473 = vector.load %arg14[%c16_190, %c0_191] : memref<64x32xf32, #tpu.memory_space<vmem>>, vector<8x32xf32>
    tpu.vector_store %arg14[%c16_190, %c0_191], %472 {strides = array<i32>} : memref<64x32xf32, #tpu.memory_space<vmem>>, vector<8x32xf32>,
    %474 = vector.extract_strided_slice %342 {offsets = [24, 0], sizes = [8, 32], strides = [1, 1]} : vector<64x32xf32> to vector<8x32xf32>
    %cst_192 = arith.constant dense<0.000000e+00> : vector<8x32xf32>
    %475 = tpu.matmul %472, %365, %cst_192 {dimension_numbers = #tpu.dot_dimension_numbers<[1], [0], [0], [1], [0, 0, 1, 1], [], []>} : vector<8x32xf32>, vector<32x32xf32>, vector<8x32xf32> -> vector<8x32xf32>
    %476 = arith.addf %474, %475 : vector<8x32xf32>
    %477 = vector.extract_strided_slice %349 {offsets = [24, 0], sizes = [8, 32], strides = [1, 1]} : vector<64x32xf32> to vector<8x32xf32>
    %cst_193 = arith.constant dense<0.000000e+00> : vector<8x32xf32>
    %478 = tpu.matmul %472, %367, %cst_193 {dimension_numbers = #tpu.dot_dimension_numbers<[1], [0], [0], [1], [0, 0, 1, 1], [], []>} : vector<8x32xf32>, vector<32x32xf32>, vector<8x32xf32> -> vector<8x32xf32>
    %479 = arith.addf %477, %478 : vector<8x32xf32>
    %480 = vector.extract_strided_slice %356 {offsets = [24, 0], sizes = [8, 32], strides = [1, 1]} : vector<64x32xf32> to vector<8x32xf32>
    %cst_194 = arith.constant dense<0.000000e+00> : vector<8x32xf32>
    %481 = tpu.matmul %472, %369, %cst_194 {dimension_numbers = #tpu.dot_dimension_numbers<[1], [0], [0], [1], [0, 0, 1, 1], [], []>} : vector<8x32xf32>, vector<32x32xf32>, vector<8x32xf32> -> vector<8x32xf32>
    %482 = arith.addf %480, %481 : vector<8x32xf32>
    %483 = vector.extract_strided_slice %363 {offsets = [24, 0], sizes = [8, 32], strides = [1, 1]} : vector<64x32xf32> to vector<8x32xf32>
    %cst_195 = arith.constant dense<0.000000e+00> : vector<8x32xf32>
    %484 = tpu.matmul %472, %371, %cst_195 {dimension_numbers = #tpu.dot_dimension_numbers<[1], [0], [0], [1], [0, 0, 1, 1], [], []>} : vector<8x32xf32>, vector<32x32xf32>, vector<8x32xf32> -> vector<8x32xf32>
    %485 = arith.addf %483, %484 : vector<8x32xf32>
    %486 = arith.negf %476 : vector<8x32xf32>
    %487 = math.exp %486 : vector<8x32xf32>
    %cst_196 = arith.constant 1.000000e+00 : f32
    %488 = vector.broadcast %cst_196 : f32 to vector<8x32xf32>
    %489 = arith.addf %488, %487 : vector<8x32xf32>
    %490 = arith.divf %488, %489 : vector<8x32xf32>
    %491 = arith.negf %479 : vector<8x32xf32>
    %492 = math.exp %491 : vector<8x32xf32>
    %cst_197 = arith.constant 1.000000e+00 : f32
    %493 = vector.broadcast %cst_197 : f32 to vector<8x32xf32>
    %494 = arith.addf %493, %492 : vector<8x32xf32>
    %495 = arith.divf %493, %494 : vector<8x32xf32>
    %496 = math.tanh %482 : vector<8x32xf32>
    %497 = arith.negf %485 : vector<8x32xf32>
    %498 = math.exp %497 : vector<8x32xf32>
    %cst_198 = arith.constant 1.000000e+00 : f32
    %499 = vector.broadcast %cst_198 : f32 to vector<8x32xf32>
    %500 = arith.addf %499, %498 : vector<8x32xf32>
    %501 = arith.divf %499, %500 : vector<8x32xf32>
    %502 = arith.mulf %495, %470 : vector<8x32xf32>
    %503 = arith.mulf %490, %496 : vector<8x32xf32>
    %504 = arith.addf %502, %503 : vector<8x32xf32>
    %505 = math.tanh %504 : vector<8x32xf32>
    %506 = arith.mulf %501, %505 : vector<8x32xf32>
    %c24_199 = arith.constant 24 : index
    %c0_200 = arith.constant 0 : index
    %507 = vector.load %arg14[%c24_199, %c0_200] : memref<64x32xf32, #tpu.memory_space<vmem>>, vector<8x32xf32>
    tpu.vector_store %arg14[%c24_199, %c0_200], %506 {strides = array<i32>} : memref<64x32xf32, #tpu.memory_space<vmem>>, vector<8x32xf32>,
    %508 = vector.extract_strided_slice %342 {offsets = [32, 0], sizes = [8, 32], strides = [1, 1]} : vector<64x32xf32> to vector<8x32xf32>
    %cst_201 = arith.constant dense<0.000000e+00> : vector<8x32xf32>
    %509 = tpu.matmul %506, %365, %cst_201 {dimension_numbers = #tpu.dot_dimension_numbers<[1], [0], [0], [1], [0, 0, 1, 1], [], []>} : vector<8x32xf32>, vector<32x32xf32>, vector<8x32xf32> -> vector<8x32xf32>
    %510 = arith.addf %508, %509 : vector<8x32xf32>
    %511 = vector.extract_strided_slice %349 {offsets = [32, 0], sizes = [8, 32], strides = [1, 1]} : vector<64x32xf32> to vector<8x32xf32>
    %cst_202 = arith.constant dense<0.000000e+00> : vector<8x32xf32>
    %512 = tpu.matmul %506, %367, %cst_202 {dimension_numbers = #tpu.dot_dimension_numbers<[1], [0], [0], [1], [0, 0, 1, 1], [], []>} : vector<8x32xf32>, vector<32x32xf32>, vector<8x32xf32> -> vector<8x32xf32>
    %513 = arith.addf %511, %512 : vector<8x32xf32>
    %514 = vector.extract_strided_slice %356 {offsets = [32, 0], sizes = [8, 32], strides = [1, 1]} : vector<64x32xf32> to vector<8x32xf32>
    %cst_203 = arith.constant dense<0.000000e+00> : vector<8x32xf32>
    %515 = tpu.matmul %506, %369, %cst_203 {dimension_numbers = #tpu.dot_dimension_numbers<[1], [0], [0], [1], [0, 0, 1, 1], [], []>} : vector<8x32xf32>, vector<32x32xf32>, vector<8x32xf32> -> vector<8x32xf32>
    %516 = arith.addf %514, %515 : vector<8x32xf32>
    %517 = vector.extract_strided_slice %363 {offsets = [32, 0], sizes = [8, 32], strides = [1, 1]} : vector<64x32xf32> to vector<8x32xf32>
    %cst_204 = arith.constant dense<0.000000e+00> : vector<8x32xf32>
    %518 = tpu.matmul %506, %371, %cst_204 {dimension_numbers = #tpu.dot_dimension_numbers<[1], [0], [0], [1], [0, 0, 1, 1], [], []>} : vector<8x32xf32>, vector<32x32xf32>, vector<8x32xf32> -> vector<8x32xf32>
    %519 = arith.addf %517, %518 : vector<8x32xf32>
    %520 = arith.negf %510 : vector<8x32xf32>
    %521 = math.exp %520 : vector<8x32xf32>
    %cst_205 = arith.constant 1.000000e+00 : f32
    %522 = vector.broadcast %cst_205 : f32 to vector<8x32xf32>
    %523 = arith.addf %522, %521 : vector<8x32xf32>
    %524 = arith.divf %522, %523 : vector<8x32xf32>
    %525 = arith.negf %513 : vector<8x32xf32>
    %526 = math.exp %525 : vector<8x32xf32>
    %cst_206 = arith.constant 1.000000e+00 : f32
    %527 = vector.broadcast %cst_206 : f32 to vector<8x32xf32>
    %528 = arith.addf %527, %526 : vector<8x32xf32>
    %529 = arith.divf %527, %528 : vector<8x32xf32>
    %530 = math.tanh %516 : vector<8x32xf32>
    %531 = arith.negf %519 : vector<8x32xf32>
    %532 = math.exp %531 : vector<8x32xf32>
    %cst_207 = arith.constant 1.000000e+00 : f32
    %533 = vector.broadcast %cst_207 : f32 to vector<8x32xf32>
    %534 = arith.addf %533, %532 : vector<8x32xf32>
    %535 = arith.divf %533, %534 : vector<8x32xf32>
    %536 = arith.mulf %529, %504 : vector<8x32xf32>
    %537 = arith.mulf %524, %530 : vector<8x32xf32>
    %538 = arith.addf %536, %537 : vector<8x32xf32>
    %539 = math.tanh %538 : vector<8x32xf32>
    %540 = arith.mulf %535, %539 : vector<8x32xf32>
    %c32_208 = arith.constant 32 : index
    %c0_209 = arith.constant 0 : index
    %541 = vector.load %arg14[%c32_208, %c0_209] : memref<64x32xf32, #tpu.memory_space<vmem>>, vector<8x32xf32>
    tpu.vector_store %arg14[%c32_208, %c0_209], %540 {strides = array<i32>} : memref<64x32xf32, #tpu.memory_space<vmem>>, vector<8x32xf32>,
    %542 = vector.extract_strided_slice %342 {offsets = [40, 0], sizes = [8, 32], strides = [1, 1]} : vector<64x32xf32> to vector<8x32xf32>
    %cst_210 = arith.constant dense<0.000000e+00> : vector<8x32xf32>
    %543 = tpu.matmul %540, %365, %cst_210 {dimension_numbers = #tpu.dot_dimension_numbers<[1], [0], [0], [1], [0, 0, 1, 1], [], []>} : vector<8x32xf32>, vector<32x32xf32>, vector<8x32xf32> -> vector<8x32xf32>
    %544 = arith.addf %542, %543 : vector<8x32xf32>
    %545 = vector.extract_strided_slice %349 {offsets = [40, 0], sizes = [8, 32], strides = [1, 1]} : vector<64x32xf32> to vector<8x32xf32>
    %cst_211 = arith.constant dense<0.000000e+00> : vector<8x32xf32>
    %546 = tpu.matmul %540, %367, %cst_211 {dimension_numbers = #tpu.dot_dimension_numbers<[1], [0], [0], [1], [0, 0, 1, 1], [], []>} : vector<8x32xf32>, vector<32x32xf32>, vector<8x32xf32> -> vector<8x32xf32>
    %547 = arith.addf %545, %546 : vector<8x32xf32>
    %548 = vector.extract_strided_slice %356 {offsets = [40, 0], sizes = [8, 32], strides = [1, 1]} : vector<64x32xf32> to vector<8x32xf32>
    %cst_212 = arith.constant dense<0.000000e+00> : vector<8x32xf32>
    %549 = tpu.matmul %540, %369, %cst_212 {dimension_numbers = #tpu.dot_dimension_numbers<[1], [0], [0], [1], [0, 0, 1, 1], [], []>} : vector<8x32xf32>, vector<32x32xf32>, vector<8x32xf32> -> vector<8x32xf32>
    %550 = arith.addf %548, %549 : vector<8x32xf32>
    %551 = vector.extract_strided_slice %363 {offsets = [40, 0], sizes = [8, 32], strides = [1, 1]} : vector<64x32xf32> to vector<8x32xf32>
    %cst_213 = arith.constant dense<0.000000e+00> : vector<8x32xf32>
    %552 = tpu.matmul %540, %371, %cst_213 {dimension_numbers = #tpu.dot_dimension_numbers<[1], [0], [0], [1], [0, 0, 1, 1], [], []>} : vector<8x32xf32>, vector<32x32xf32>, vector<8x32xf32> -> vector<8x32xf32>
    %553 = arith.addf %551, %552 : vector<8x32xf32>
    %554 = arith.negf %544 : vector<8x32xf32>
    %555 = math.exp %554 : vector<8x32xf32>
    %cst_214 = arith.constant 1.000000e+00 : f32
    %556 = vector.broadcast %cst_214 : f32 to vector<8x32xf32>
    %557 = arith.addf %556, %555 : vector<8x32xf32>
    %558 = arith.divf %556, %557 : vector<8x32xf32>
    %559 = arith.negf %547 : vector<8x32xf32>
    %560 = math.exp %559 : vector<8x32xf32>
    %cst_215 = arith.constant 1.000000e+00 : f32
    %561 = vector.broadcast %cst_215 : f32 to vector<8x32xf32>
    %562 = arith.addf %561, %560 : vector<8x32xf32>
    %563 = arith.divf %561, %562 : vector<8x32xf32>
    %564 = math.tanh %550 : vector<8x32xf32>
    %565 = arith.negf %553 : vector<8x32xf32>
    %566 = math.exp %565 : vector<8x32xf32>
    %cst_216 = arith.constant 1.000000e+00 : f32
    %567 = vector.broadcast %cst_216 : f32 to vector<8x32xf32>
    %568 = arith.addf %567, %566 : vector<8x32xf32>
    %569 = arith.divf %567, %568 : vector<8x32xf32>
    %570 = arith.mulf %563, %538 : vector<8x32xf32>
    %571 = arith.mulf %558, %564 : vector<8x32xf32>
    %572 = arith.addf %570, %571 : vector<8x32xf32>
    %573 = math.tanh %572 : vector<8x32xf32>
    %574 = arith.mulf %569, %573 : vector<8x32xf32>
    %c40_217 = arith.constant 40 : index
    %c0_218 = arith.constant 0 : index
    %575 = vector.load %arg14[%c40_217, %c0_218] : memref<64x32xf32, #tpu.memory_space<vmem>>, vector<8x32xf32>
    tpu.vector_store %arg14[%c40_217, %c0_218], %574 {strides = array<i32>} : memref<64x32xf32, #tpu.memory_space<vmem>>, vector<8x32xf32>,
    %576 = vector.extract_strided_slice %342 {offsets = [48, 0], sizes = [8, 32], strides = [1, 1]} : vector<64x32xf32> to vector<8x32xf32>
    %cst_219 = arith.constant dense<0.000000e+00> : vector<8x32xf32>
    %577 = tpu.matmul %574, %365, %cst_219 {dimension_numbers = #tpu.dot_dimension_numbers<[1], [0], [0], [1], [0, 0, 1, 1], [], []>} : vector<8x32xf32>, vector<32x32xf32>, vector<8x32xf32> -> vector<8x32xf32>
    %578 = arith.addf %576, %577 : vector<8x32xf32>
    %579 = vector.extract_strided_slice %349 {offsets = [48, 0], sizes = [8, 32], strides = [1, 1]} : vector<64x32xf32> to vector<8x32xf32>
    %cst_220 = arith.constant dense<0.000000e+00> : vector<8x32xf32>
    %580 = tpu.matmul %574, %367, %cst_220 {dimension_numbers = #tpu.dot_dimension_numbers<[1], [0], [0], [1], [0, 0, 1, 1], [], []>} : vector<8x32xf32>, vector<32x32xf32>, vector<8x32xf32> -> vector<8x32xf32>
    %581 = arith.addf %579, %580 : vector<8x32xf32>
    %582 = vector.extract_strided_slice %356 {offsets = [48, 0], sizes = [8, 32], strides = [1, 1]} : vector<64x32xf32> to vector<8x32xf32>
    %cst_221 = arith.constant dense<0.000000e+00> : vector<8x32xf32>
    %583 = tpu.matmul %574, %369, %cst_221 {dimension_numbers = #tpu.dot_dimension_numbers<[1], [0], [0], [1], [0, 0, 1, 1], [], []>} : vector<8x32xf32>, vector<32x32xf32>, vector<8x32xf32> -> vector<8x32xf32>
    %584 = arith.addf %582, %583 : vector<8x32xf32>
    %585 = vector.extract_strided_slice %363 {offsets = [48, 0], sizes = [8, 32], strides = [1, 1]} : vector<64x32xf32> to vector<8x32xf32>
    %cst_222 = arith.constant dense<0.000000e+00> : vector<8x32xf32>
    %586 = tpu.matmul %574, %371, %cst_222 {dimension_numbers = #tpu.dot_dimension_numbers<[1], [0], [0], [1], [0, 0, 1, 1], [], []>} : vector<8x32xf32>, vector<32x32xf32>, vector<8x32xf32> -> vector<8x32xf32>
    %587 = arith.addf %585, %586 : vector<8x32xf32>
    %588 = arith.negf %578 : vector<8x32xf32>
    %589 = math.exp %588 : vector<8x32xf32>
    %cst_223 = arith.constant 1.000000e+00 : f32
    %590 = vector.broadcast %cst_223 : f32 to vector<8x32xf32>
    %591 = arith.addf %590, %589 : vector<8x32xf32>
    %592 = arith.divf %590, %591 : vector<8x32xf32>
    %593 = arith.negf %581 : vector<8x32xf32>
    %594 = math.exp %593 : vector<8x32xf32>
    %cst_224 = arith.constant 1.000000e+00 : f32
    %595 = vector.broadcast %cst_224 : f32 to vector<8x32xf32>
    %596 = arith.addf %595, %594 : vector<8x32xf32>
    %597 = arith.divf %595, %596 : vector<8x32xf32>
    %598 = math.tanh %584 : vector<8x32xf32>
    %599 = arith.negf %587 : vector<8x32xf32>
    %600 = math.exp %599 : vector<8x32xf32>
    %cst_225 = arith.constant 1.000000e+00 : f32
    %601 = vector.broadcast %cst_225 : f32 to vector<8x32xf32>
    %602 = arith.addf %601, %600 : vector<8x32xf32>
    %603 = arith.divf %601, %602 : vector<8x32xf32>
    %604 = arith.mulf %597, %572 : vector<8x32xf32>
    %605 = arith.mulf %592, %598 : vector<8x32xf32>
    %606 = arith.addf %604, %605 : vector<8x32xf32>
    %607 = math.tanh %606 : vector<8x32xf32>
    %608 = arith.mulf %603, %607 : vector<8x32xf32>
    %c48_226 = arith.constant 48 : index
    %c0_227 = arith.constant 0 : index
    %609 = vector.load %arg14[%c48_226, %c0_227] : memref<64x32xf32, #tpu.memory_space<vmem>>, vector<8x32xf32>
    tpu.vector_store %arg14[%c48_226, %c0_227], %608 {strides = array<i32>} : memref<64x32xf32, #tpu.memory_space<vmem>>, vector<8x32xf32>,
    %610 = vector.extract_strided_slice %342 {offsets = [56, 0], sizes = [8, 32], strides = [1, 1]} : vector<64x32xf32> to vector<8x32xf32>
    %cst_228 = arith.constant dense<0.000000e+00> : vector<8x32xf32>
    %611 = tpu.matmul %608, %365, %cst_228 {dimension_numbers = #tpu.dot_dimension_numbers<[1], [0], [0], [1], [0, 0, 1, 1], [], []>} : vector<8x32xf32>, vector<32x32xf32>, vector<8x32xf32> -> vector<8x32xf32>
    %612 = arith.addf %610, %611 : vector<8x32xf32>
    %613 = vector.extract_strided_slice %349 {offsets = [56, 0], sizes = [8, 32], strides = [1, 1]} : vector<64x32xf32> to vector<8x32xf32>
    %cst_229 = arith.constant dense<0.000000e+00> : vector<8x32xf32>
    %614 = tpu.matmul %608, %367, %cst_229 {dimension_numbers = #tpu.dot_dimension_numbers<[1], [0], [0], [1], [0, 0, 1, 1], [], []>} : vector<8x32xf32>, vector<32x32xf32>, vector<8x32xf32> -> vector<8x32xf32>
    %615 = arith.addf %613, %614 : vector<8x32xf32>
    %616 = vector.extract_strided_slice %356 {offsets = [56, 0], sizes = [8, 32], strides = [1, 1]} : vector<64x32xf32> to vector<8x32xf32>
    %cst_230 = arith.constant dense<0.000000e+00> : vector<8x32xf32>
    %617 = tpu.matmul %608, %369, %cst_230 {dimension_numbers = #tpu.dot_dimension_numbers<[1], [0], [0], [1], [0, 0, 1, 1], [], []>} : vector<8x32xf32>, vector<32x32xf32>, vector<8x32xf32> -> vector<8x32xf32>
    %618 = arith.addf %616, %617 : vector<8x32xf32>
    %619 = vector.extract_strided_slice %363 {offsets = [56, 0], sizes = [8, 32], strides = [1, 1]} : vector<64x32xf32> to vector<8x32xf32>
    %cst_231 = arith.constant dense<0.000000e+00> : vector<8x32xf32>
    %620 = tpu.matmul %608, %371, %cst_231 {dimension_numbers = #tpu.dot_dimension_numbers<[1], [0], [0], [1], [0, 0, 1, 1], [], []>} : vector<8x32xf32>, vector<32x32xf32>, vector<8x32xf32> -> vector<8x32xf32>
    %621 = arith.addf %619, %620 : vector<8x32xf32>
    %622 = arith.negf %612 : vector<8x32xf32>
    %623 = math.exp %622 : vector<8x32xf32>
    %cst_232 = arith.constant 1.000000e+00 : f32
    %624 = vector.broadcast %cst_232 : f32 to vector<8x32xf32>
    %625 = arith.addf %624, %623 : vector<8x32xf32>
    %626 = arith.divf %624, %625 : vector<8x32xf32>
    %627 = arith.negf %615 : vector<8x32xf32>
    %628 = math.exp %627 : vector<8x32xf32>
    %cst_233 = arith.constant 1.000000e+00 : f32
    %629 = vector.broadcast %cst_233 : f32 to vector<8x32xf32>
    %630 = arith.addf %629, %628 : vector<8x32xf32>
    %631 = arith.divf %629, %630 : vector<8x32xf32>
    %632 = math.tanh %618 : vector<8x32xf32>
    %633 = arith.negf %621 : vector<8x32xf32>
    %634 = math.exp %633 : vector<8x32xf32>
    %cst_234 = arith.constant 1.000000e+00 : f32
    %635 = vector.broadcast %cst_234 : f32 to vector<8x32xf32>
    %636 = arith.addf %635, %634 : vector<8x32xf32>
    %637 = arith.divf %635, %636 : vector<8x32xf32>
    %638 = arith.mulf %631, %606 : vector<8x32xf32>
    %639 = arith.mulf %626, %632 : vector<8x32xf32>
    %640 = arith.addf %638, %639 : vector<8x32xf32>
    %641 = math.tanh %640 : vector<8x32xf32>
    %642 = arith.mulf %637, %641 : vector<8x32xf32>
    %c56_235 = arith.constant 56 : index
    %c0_236 = arith.constant 0 : index
    %643 = vector.load %arg14[%c56_235, %c0_236] : memref<64x32xf32, #tpu.memory_space<vmem>>, vector<8x32xf32>
    tpu.vector_store %arg14[%c56_235, %c0_236], %642 {strides = array<i32>} : memref<64x32xf32, #tpu.memory_space<vmem>>, vector<8x32xf32>,
    %c0_237 = arith.constant 0 : index
    %c0_238 = arith.constant 0 : index
    %644 = vector.load %arg14[%c0_237, %c0_238] : memref<64x32xf32, #tpu.memory_space<vmem>>, vector<64x32xf32>
    %c1_239 = arith.constant 1 : index
    %c0_240 = arith.constant 0 : index
    %c0_241 = arith.constant 0 : index
    %645 = vector.load %arg10[%c1_239, %c0_240, %c0_241] : memref<3x64x32xf32, #tpu.memory_space<vmem>>, vector<1x64x32xf32>
    %646 = vector.shape_cast %645 : vector<1x64x32xf32> to vector<64x32xf32>
    %c1_242 = arith.constant 1 : index
    %c0_243 = arith.constant 0 : index
    %c0_244 = arith.constant 0 : index
    %647 = vector.load %arg6[%c1_242, %c0_243, %c0_244] : memref<3x32x32xf32, #tpu.memory_space<vmem>>, vector<1x32x32xf32>
    %648 = vector.shape_cast %647 : vector<1x32x32xf32> to vector<32x32xf32>
    %cst_245 = arith.constant dense<0.000000e+00> : vector<64x32xf32>
    %649 = tpu.matmul %646, %648, %cst_245 {dimension_numbers = #tpu.dot_dimension_numbers<[1], [0], [0], [1], [0, 0, 1, 1], [], []>} : vector<64x32xf32>, vector<32x32xf32>, vector<64x32xf32> -> vector<64x32xf32>
    %c1_246 = arith.constant 1 : index
    %c0_247 = arith.constant 0 : index
    %c0_248 = arith.constant 0 : index
    %650 = vector.load %arg7[%c1_246, %c0_247, %c0_248] : memref<3x1x32xf32, #tpu.memory_space<vmem>>, vector<1x1x32xf32>
    %651 = vector.shape_cast %650 : vector<1x1x32xf32> to vector<1x32xf32>
    %652 = vector.broadcast %651 : vector<1x32xf32> to vector<64x32xf32>
    %653 = arith.addf %649, %652 : vector<64x32xf32>
    %cst_249 = arith.constant 0.000000e+00 : f32
    %654 = vector.broadcast %cst_249 : f32 to vector<64x32xf32>
    %655 = arith.maximumf %653, %654 : vector<64x32xf32>
    %c1_250 = arith.constant 1 : index
    %c0_251 = arith.constant 0 : index
    %c0_252 = arith.constant 0 : index
    %656 = vector.load %arg8[%c1_250, %c0_251, %c0_252] : memref<3x32x32xf32, #tpu.memory_space<vmem>>, vector<1x32x32xf32>
    %657 = vector.shape_cast %656 : vector<1x32x32xf32> to vector<32x32xf32>
    %cst_253 = arith.constant dense<0.000000e+00> : vector<64x32xf32>
    %658 = tpu.matmul %655, %657, %cst_253 {dimension_numbers = #tpu.dot_dimension_numbers<[1], [0], [0], [1], [0, 0, 1, 1], [], []>} : vector<64x32xf32>, vector<32x32xf32>, vector<64x32xf32> -> vector<64x32xf32>
    %c1_254 = arith.constant 1 : index
    %c0_255 = arith.constant 0 : index
    %c0_256 = arith.constant 0 : index
    %659 = vector.load %arg9[%c1_254, %c0_255, %c0_256] : memref<3x1x32xf32, #tpu.memory_space<vmem>>, vector<1x1x32xf32>
    %660 = vector.shape_cast %659 : vector<1x1x32xf32> to vector<1x32xf32>
    %661 = vector.broadcast %660 : vector<1x32xf32> to vector<64x32xf32>
    %662 = arith.addf %658, %661 : vector<64x32xf32>
    %663 = arith.addf %644, %662 : vector<64x32xf32>
    %c8_257 = arith.constant 8 : index
    %c0_258 = arith.constant 0 : index
    %c0_259 = arith.constant 0 : index
    %664 = vector.load %arg3[%c8_257, %c0_258, %c0_259] : memref<12x32x32xf32, #tpu.memory_space<vmem>>, vector<1x32x32xf32>
    %665 = vector.shape_cast %664 : vector<1x32x32xf32> to vector<32x32xf32>
    %cst_260 = arith.constant dense<0.000000e+00> : vector<64x32xf32>
    %666 = tpu.matmul %663, %665, %cst_260 {dimension_numbers = #tpu.dot_dimension_numbers<[1], [0], [0], [1], [0, 0, 1, 1], [], []>} : vector<64x32xf32>, vector<32x32xf32>, vector<64x32xf32> -> vector<64x32xf32>
    %c8_261 = arith.constant 8 : index
    %c0_262 = arith.constant 0 : index
    %c0_263 = arith.constant 0 : index
    %667 = vector.load %arg5[%c8_261, %c0_262, %c0_263] : memref<12x1x32xf32, #tpu.memory_space<vmem>>, vector<1x1x32xf32>
    %668 = vector.shape_cast %667 : vector<1x1x32xf32> to vector<1x32xf32>
    %669 = vector.broadcast %668 : vector<1x32xf32> to vector<64x32xf32>
    %670 = arith.addf %666, %669 : vector<64x32xf32>
    %c9 = arith.constant 9 : index
    %c0_264 = arith.constant 0 : index
    %c0_265 = arith.constant 0 : index
    %671 = vector.load %arg3[%c9, %c0_264, %c0_265] : memref<12x32x32xf32, #tpu.memory_space<vmem>>, vector<1x32x32xf32>
    %672 = vector.shape_cast %671 : vector<1x32x32xf32> to vector<32x32xf32>
    %cst_266 = arith.constant dense<0.000000e+00> : vector<64x32xf32>
    %673 = tpu.matmul %663, %672, %cst_266 {dimension_numbers = #tpu.dot_dimension_numbers<[1], [0], [0], [1], [0, 0, 1, 1], [], []>} : vector<64x32xf32>, vector<32x32xf32>, vector<64x32xf32> -> vector<64x32xf32>
    %c9_267 = arith.constant 9 : index
    %c0_268 = arith.constant 0 : index
    %c0_269 = arith.constant 0 : index
    %674 = vector.load %arg5[%c9_267, %c0_268, %c0_269] : memref<12x1x32xf32, #tpu.memory_space<vmem>>, vector<1x1x32xf32>
    %675 = vector.shape_cast %674 : vector<1x1x32xf32> to vector<1x32xf32>
    %676 = vector.broadcast %675 : vector<1x32xf32> to vector<64x32xf32>
    %677 = arith.addf %673, %676 : vector<64x32xf32>
    %c10 = arith.constant 10 : index
    %c0_270 = arith.constant 0 : index
    %c0_271 = arith.constant 0 : index
    %678 = vector.load %arg3[%c10, %c0_270, %c0_271] : memref<12x32x32xf32, #tpu.memory_space<vmem>>, vector<1x32x32xf32>
    %679 = vector.shape_cast %678 : vector<1x32x32xf32> to vector<32x32xf32>
    %cst_272 = arith.constant dense<0.000000e+00> : vector<64x32xf32>
    %680 = tpu.matmul %663, %679, %cst_272 {dimension_numbers = #tpu.dot_dimension_numbers<[1], [0], [0], [1], [0, 0, 1, 1], [], []>} : vector<64x32xf32>, vector<32x32xf32>, vector<64x32xf32> -> vector<64x32xf32>
    %c10_273 = arith.constant 10 : index
    %c0_274 = arith.constant 0 : index
    %c0_275 = arith.constant 0 : index
    %681 = vector.load %arg5[%c10_273, %c0_274, %c0_275] : memref<12x1x32xf32, #tpu.memory_space<vmem>>, vector<1x1x32xf32>
    %682 = vector.shape_cast %681 : vector<1x1x32xf32> to vector<1x32xf32>
    %683 = vector.broadcast %682 : vector<1x32xf32> to vector<64x32xf32>
    %684 = arith.addf %680, %683 : vector<64x32xf32>
    %c11 = arith.constant 11 : index
    %c0_276 = arith.constant 0 : index
    %c0_277 = arith.constant 0 : index
    %685 = vector.load %arg3[%c11, %c0_276, %c0_277] : memref<12x32x32xf32, #tpu.memory_space<vmem>>, vector<1x32x32xf32>
    %686 = vector.shape_cast %685 : vector<1x32x32xf32> to vector<32x32xf32>
    %cst_278 = arith.constant dense<0.000000e+00> : vector<64x32xf32>
    %687 = tpu.matmul %663, %686, %cst_278 {dimension_numbers = #tpu.dot_dimension_numbers<[1], [0], [0], [1], [0, 0, 1, 1], [], []>} : vector<64x32xf32>, vector<32x32xf32>, vector<64x32xf32> -> vector<64x32xf32>
    %c11_279 = arith.constant 11 : index
    %c0_280 = arith.constant 0 : index
    %c0_281 = arith.constant 0 : index
    %688 = vector.load %arg5[%c11_279, %c0_280, %c0_281] : memref<12x1x32xf32, #tpu.memory_space<vmem>>, vector<1x1x32xf32>
    %689 = vector.shape_cast %688 : vector<1x1x32xf32> to vector<1x32xf32>
    %690 = vector.broadcast %689 : vector<1x32xf32> to vector<64x32xf32>
    %691 = arith.addf %687, %690 : vector<64x32xf32>
    %c8_282 = arith.constant 8 : index
    %c0_283 = arith.constant 0 : index
    %c0_284 = arith.constant 0 : index
    %692 = vector.load %arg4[%c8_282, %c0_283, %c0_284] : memref<12x32x32xf32, #tpu.memory_space<vmem>>, vector<1x32x32xf32>
    %693 = vector.shape_cast %692 : vector<1x32x32xf32> to vector<32x32xf32>
    %c9_285 = arith.constant 9 : index
    %c0_286 = arith.constant 0 : index
    %c0_287 = arith.constant 0 : index
    %694 = vector.load %arg4[%c9_285, %c0_286, %c0_287] : memref<12x32x32xf32, #tpu.memory_space<vmem>>, vector<1x32x32xf32>
    %695 = vector.shape_cast %694 : vector<1x32x32xf32> to vector<32x32xf32>
    %c10_288 = arith.constant 10 : index
    %c0_289 = arith.constant 0 : index
    %c0_290 = arith.constant 0 : index
    %696 = vector.load %arg4[%c10_288, %c0_289, %c0_290] : memref<12x32x32xf32, #tpu.memory_space<vmem>>, vector<1x32x32xf32>
    %697 = vector.shape_cast %696 : vector<1x32x32xf32> to vector<32x32xf32>
    %c11_291 = arith.constant 11 : index
    %c0_292 = arith.constant 0 : index
    %c0_293 = arith.constant 0 : index
    %698 = vector.load %arg4[%c11_291, %c0_292, %c0_293] : memref<12x32x32xf32, #tpu.memory_space<vmem>>, vector<1x32x32xf32>
    %699 = vector.shape_cast %698 : vector<1x32x32xf32> to vector<32x32xf32>
    %700 = vector.extract_strided_slice %670 {offsets = [0, 0], sizes = [8, 32], strides = [1, 1]} : vector<64x32xf32> to vector<8x32xf32>
    %cst_294 = arith.constant dense<0.000000e+00> : vector<8x32xf32>
    %701 = tpu.matmul %642, %693, %cst_294 {dimension_numbers = #tpu.dot_dimension_numbers<[1], [0], [0], [1], [0, 0, 1, 1], [], []>} : vector<8x32xf32>, vector<32x32xf32>, vector<8x32xf32> -> vector<8x32xf32>
    %702 = arith.addf %700, %701 : vector<8x32xf32>
    %703 = vector.extract_strided_slice %677 {offsets = [0, 0], sizes = [8, 32], strides = [1, 1]} : vector<64x32xf32> to vector<8x32xf32>
    %cst_295 = arith.constant dense<0.000000e+00> : vector<8x32xf32>
    %704 = tpu.matmul %642, %695, %cst_295 {dimension_numbers = #tpu.dot_dimension_numbers<[1], [0], [0], [1], [0, 0, 1, 1], [], []>} : vector<8x32xf32>, vector<32x32xf32>, vector<8x32xf32> -> vector<8x32xf32>
    %705 = arith.addf %703, %704 : vector<8x32xf32>
    %706 = vector.extract_strided_slice %684 {offsets = [0, 0], sizes = [8, 32], strides = [1, 1]} : vector<64x32xf32> to vector<8x32xf32>
    %cst_296 = arith.constant dense<0.000000e+00> : vector<8x32xf32>
    %707 = tpu.matmul %642, %697, %cst_296 {dimension_numbers = #tpu.dot_dimension_numbers<[1], [0], [0], [1], [0, 0, 1, 1], [], []>} : vector<8x32xf32>, vector<32x32xf32>, vector<8x32xf32> -> vector<8x32xf32>
    %708 = arith.addf %706, %707 : vector<8x32xf32>
    %709 = vector.extract_strided_slice %691 {offsets = [0, 0], sizes = [8, 32], strides = [1, 1]} : vector<64x32xf32> to vector<8x32xf32>
    %cst_297 = arith.constant dense<0.000000e+00> : vector<8x32xf32>
    %710 = tpu.matmul %642, %699, %cst_297 {dimension_numbers = #tpu.dot_dimension_numbers<[1], [0], [0], [1], [0, 0, 1, 1], [], []>} : vector<8x32xf32>, vector<32x32xf32>, vector<8x32xf32> -> vector<8x32xf32>
    %711 = arith.addf %709, %710 : vector<8x32xf32>
    %712 = arith.negf %702 : vector<8x32xf32>
    %713 = math.exp %712 : vector<8x32xf32>
    %cst_298 = arith.constant 1.000000e+00 : f32
    %714 = vector.broadcast %cst_298 : f32 to vector<8x32xf32>
    %715 = arith.addf %714, %713 : vector<8x32xf32>
    %716 = arith.divf %714, %715 : vector<8x32xf32>
    %717 = arith.negf %705 : vector<8x32xf32>
    %718 = math.exp %717 : vector<8x32xf32>
    %cst_299 = arith.constant 1.000000e+00 : f32
    %719 = vector.broadcast %cst_299 : f32 to vector<8x32xf32>
    %720 = arith.addf %719, %718 : vector<8x32xf32>
    %721 = arith.divf %719, %720 : vector<8x32xf32>
    %722 = math.tanh %708 : vector<8x32xf32>
    %723 = arith.negf %711 : vector<8x32xf32>
    %724 = math.exp %723 : vector<8x32xf32>
    %cst_300 = arith.constant 1.000000e+00 : f32
    %725 = vector.broadcast %cst_300 : f32 to vector<8x32xf32>
    %726 = arith.addf %725, %724 : vector<8x32xf32>
    %727 = arith.divf %725, %726 : vector<8x32xf32>
    %728 = arith.mulf %721, %640 : vector<8x32xf32>
    %729 = arith.mulf %716, %722 : vector<8x32xf32>
    %730 = arith.addf %728, %729 : vector<8x32xf32>
    %731 = math.tanh %730 : vector<8x32xf32>
    %732 = arith.mulf %727, %731 : vector<8x32xf32>
    %c0_301 = arith.constant 0 : index
    %c0_302 = arith.constant 0 : index
    %733 = vector.load %arg14[%c0_301, %c0_302] : memref<64x32xf32, #tpu.memory_space<vmem>>, vector<8x32xf32>
    tpu.vector_store %arg14[%c0_301, %c0_302], %732 {strides = array<i32>} : memref<64x32xf32, #tpu.memory_space<vmem>>, vector<8x32xf32>,
    %734 = vector.extract_strided_slice %670 {offsets = [8, 0], sizes = [8, 32], strides = [1, 1]} : vector<64x32xf32> to vector<8x32xf32>
    %cst_303 = arith.constant dense<0.000000e+00> : vector<8x32xf32>
    %735 = tpu.matmul %732, %693, %cst_303 {dimension_numbers = #tpu.dot_dimension_numbers<[1], [0], [0], [1], [0, 0, 1, 1], [], []>} : vector<8x32xf32>, vector<32x32xf32>, vector<8x32xf32> -> vector<8x32xf32>
    %736 = arith.addf %734, %735 : vector<8x32xf32>
    %737 = vector.extract_strided_slice %677 {offsets = [8, 0], sizes = [8, 32], strides = [1, 1]} : vector<64x32xf32> to vector<8x32xf32>
    %cst_304 = arith.constant dense<0.000000e+00> : vector<8x32xf32>
    %738 = tpu.matmul %732, %695, %cst_304 {dimension_numbers = #tpu.dot_dimension_numbers<[1], [0], [0], [1], [0, 0, 1, 1], [], []>} : vector<8x32xf32>, vector<32x32xf32>, vector<8x32xf32> -> vector<8x32xf32>
    %739 = arith.addf %737, %738 : vector<8x32xf32>
    %740 = vector.extract_strided_slice %684 {offsets = [8, 0], sizes = [8, 32], strides = [1, 1]} : vector<64x32xf32> to vector<8x32xf32>
    %cst_305 = arith.constant dense<0.000000e+00> : vector<8x32xf32>
    %741 = tpu.matmul %732, %697, %cst_305 {dimension_numbers = #tpu.dot_dimension_numbers<[1], [0], [0], [1], [0, 0, 1, 1], [], []>} : vector<8x32xf32>, vector<32x32xf32>, vector<8x32xf32> -> vector<8x32xf32>
    %742 = arith.addf %740, %741 : vector<8x32xf32>
    %743 = vector.extract_strided_slice %691 {offsets = [8, 0], sizes = [8, 32], strides = [1, 1]} : vector<64x32xf32> to vector<8x32xf32>
    %cst_306 = arith.constant dense<0.000000e+00> : vector<8x32xf32>
    %744 = tpu.matmul %732, %699, %cst_306 {dimension_numbers = #tpu.dot_dimension_numbers<[1], [0], [0], [1], [0, 0, 1, 1], [], []>} : vector<8x32xf32>, vector<32x32xf32>, vector<8x32xf32> -> vector<8x32xf32>
    %745 = arith.addf %743, %744 : vector<8x32xf32>
    %746 = arith.negf %736 : vector<8x32xf32>
    %747 = math.exp %746 : vector<8x32xf32>
    %cst_307 = arith.constant 1.000000e+00 : f32
    %748 = vector.broadcast %cst_307 : f32 to vector<8x32xf32>
    %749 = arith.addf %748, %747 : vector<8x32xf32>
    %750 = arith.divf %748, %749 : vector<8x32xf32>
    %751 = arith.negf %739 : vector<8x32xf32>
    %752 = math.exp %751 : vector<8x32xf32>
    %cst_308 = arith.constant 1.000000e+00 : f32
    %753 = vector.broadcast %cst_308 : f32 to vector<8x32xf32>
    %754 = arith.addf %753, %752 : vector<8x32xf32>
    %755 = arith.divf %753, %754 : vector<8x32xf32>
    %756 = math.tanh %742 : vector<8x32xf32>
    %757 = arith.negf %745 : vector<8x32xf32>
    %758 = math.exp %757 : vector<8x32xf32>
    %cst_309 = arith.constant 1.000000e+00 : f32
    %759 = vector.broadcast %cst_309 : f32 to vector<8x32xf32>
    %760 = arith.addf %759, %758 : vector<8x32xf32>
    %761 = arith.divf %759, %760 : vector<8x32xf32>
    %762 = arith.mulf %755, %730 : vector<8x32xf32>
    %763 = arith.mulf %750, %756 : vector<8x32xf32>
    %764 = arith.addf %762, %763 : vector<8x32xf32>
    %765 = math.tanh %764 : vector<8x32xf32>
    %766 = arith.mulf %761, %765 : vector<8x32xf32>
    %c8_310 = arith.constant 8 : index
    %c0_311 = arith.constant 0 : index
    %767 = vector.load %arg14[%c8_310, %c0_311] : memref<64x32xf32, #tpu.memory_space<vmem>>, vector<8x32xf32>
    tpu.vector_store %arg14[%c8_310, %c0_311], %766 {strides = array<i32>} : memref<64x32xf32, #tpu.memory_space<vmem>>, vector<8x32xf32>,
    %768 = vector.extract_strided_slice %670 {offsets = [16, 0], sizes = [8, 32], strides = [1, 1]} : vector<64x32xf32> to vector<8x32xf32>
    %cst_312 = arith.constant dense<0.000000e+00> : vector<8x32xf32>
    %769 = tpu.matmul %766, %693, %cst_312 {dimension_numbers = #tpu.dot_dimension_numbers<[1], [0], [0], [1], [0, 0, 1, 1], [], []>} : vector<8x32xf32>, vector<32x32xf32>, vector<8x32xf32> -> vector<8x32xf32>
    %770 = arith.addf %768, %769 : vector<8x32xf32>
    %771 = vector.extract_strided_slice %677 {offsets = [16, 0], sizes = [8, 32], strides = [1, 1]} : vector<64x32xf32> to vector<8x32xf32>
    %cst_313 = arith.constant dense<0.000000e+00> : vector<8x32xf32>
    %772 = tpu.matmul %766, %695, %cst_313 {dimension_numbers = #tpu.dot_dimension_numbers<[1], [0], [0], [1], [0, 0, 1, 1], [], []>} : vector<8x32xf32>, vector<32x32xf32>, vector<8x32xf32> -> vector<8x32xf32>
    %773 = arith.addf %771, %772 : vector<8x32xf32>
    %774 = vector.extract_strided_slice %684 {offsets = [16, 0], sizes = [8, 32], strides = [1, 1]} : vector<64x32xf32> to vector<8x32xf32>
    %cst_314 = arith.constant dense<0.000000e+00> : vector<8x32xf32>
    %775 = tpu.matmul %766, %697, %cst_314 {dimension_numbers = #tpu.dot_dimension_numbers<[1], [0], [0], [1], [0, 0, 1, 1], [], []>} : vector<8x32xf32>, vector<32x32xf32>, vector<8x32xf32> -> vector<8x32xf32>
    %776 = arith.addf %774, %775 : vector<8x32xf32>
    %777 = vector.extract_strided_slice %691 {offsets = [16, 0], sizes = [8, 32], strides = [1, 1]} : vector<64x32xf32> to vector<8x32xf32>
    %cst_315 = arith.constant dense<0.000000e+00> : vector<8x32xf32>
    %778 = tpu.matmul %766, %699, %cst_315 {dimension_numbers = #tpu.dot_dimension_numbers<[1], [0], [0], [1], [0, 0, 1, 1], [], []>} : vector<8x32xf32>, vector<32x32xf32>, vector<8x32xf32> -> vector<8x32xf32>
    %779 = arith.addf %777, %778 : vector<8x32xf32>
    %780 = arith.negf %770 : vector<8x32xf32>
    %781 = math.exp %780 : vector<8x32xf32>
    %cst_316 = arith.constant 1.000000e+00 : f32
    %782 = vector.broadcast %cst_316 : f32 to vector<8x32xf32>
    %783 = arith.addf %782, %781 : vector<8x32xf32>
    %784 = arith.divf %782, %783 : vector<8x32xf32>
    %785 = arith.negf %773 : vector<8x32xf32>
    %786 = math.exp %785 : vector<8x32xf32>
    %cst_317 = arith.constant 1.000000e+00 : f32
    %787 = vector.broadcast %cst_317 : f32 to vector<8x32xf32>
    %788 = arith.addf %787, %786 : vector<8x32xf32>
    %789 = arith.divf %787, %788 : vector<8x32xf32>
    %790 = math.tanh %776 : vector<8x32xf32>
    %791 = arith.negf %779 : vector<8x32xf32>
    %792 = math.exp %791 : vector<8x32xf32>
    %cst_318 = arith.constant 1.000000e+00 : f32
    %793 = vector.broadcast %cst_318 : f32 to vector<8x32xf32>
    %794 = arith.addf %793, %792 : vector<8x32xf32>
    %795 = arith.divf %793, %794 : vector<8x32xf32>
    %796 = arith.mulf %789, %764 : vector<8x32xf32>
    %797 = arith.mulf %784, %790 : vector<8x32xf32>
    %798 = arith.addf %796, %797 : vector<8x32xf32>
    %799 = math.tanh %798 : vector<8x32xf32>
    %800 = arith.mulf %795, %799 : vector<8x32xf32>
    %c16_319 = arith.constant 16 : index
    %c0_320 = arith.constant 0 : index
    %801 = vector.load %arg14[%c16_319, %c0_320] : memref<64x32xf32, #tpu.memory_space<vmem>>, vector<8x32xf32>
    tpu.vector_store %arg14[%c16_319, %c0_320], %800 {strides = array<i32>} : memref<64x32xf32, #tpu.memory_space<vmem>>, vector<8x32xf32>,
    %802 = vector.extract_strided_slice %670 {offsets = [24, 0], sizes = [8, 32], strides = [1, 1]} : vector<64x32xf32> to vector<8x32xf32>
    %cst_321 = arith.constant dense<0.000000e+00> : vector<8x32xf32>
    %803 = tpu.matmul %800, %693, %cst_321 {dimension_numbers = #tpu.dot_dimension_numbers<[1], [0], [0], [1], [0, 0, 1, 1], [], []>} : vector<8x32xf32>, vector<32x32xf32>, vector<8x32xf32> -> vector<8x32xf32>
    %804 = arith.addf %802, %803 : vector<8x32xf32>
    %805 = vector.extract_strided_slice %677 {offsets = [24, 0], sizes = [8, 32], strides = [1, 1]} : vector<64x32xf32> to vector<8x32xf32>
    %cst_322 = arith.constant dense<0.000000e+00> : vector<8x32xf32>
    %806 = tpu.matmul %800, %695, %cst_322 {dimension_numbers = #tpu.dot_dimension_numbers<[1], [0], [0], [1], [0, 0, 1, 1], [], []>} : vector<8x32xf32>, vector<32x32xf32>, vector<8x32xf32> -> vector<8x32xf32>
    %807 = arith.addf %805, %806 : vector<8x32xf32>
    %808 = vector.extract_strided_slice %684 {offsets = [24, 0], sizes = [8, 32], strides = [1, 1]} : vector<64x32xf32> to vector<8x32xf32>
    %cst_323 = arith.constant dense<0.000000e+00> : vector<8x32xf32>
    %809 = tpu.matmul %800, %697, %cst_323 {dimension_numbers = #tpu.dot_dimension_numbers<[1], [0], [0], [1], [0, 0, 1, 1], [], []>} : vector<8x32xf32>, vector<32x32xf32>, vector<8x32xf32> -> vector<8x32xf32>
    %810 = arith.addf %808, %809 : vector<8x32xf32>
    %811 = vector.extract_strided_slice %691 {offsets = [24, 0], sizes = [8, 32], strides = [1, 1]} : vector<64x32xf32> to vector<8x32xf32>
    %cst_324 = arith.constant dense<0.000000e+00> : vector<8x32xf32>
    %812 = tpu.matmul %800, %699, %cst_324 {dimension_numbers = #tpu.dot_dimension_numbers<[1], [0], [0], [1], [0, 0, 1, 1], [], []>} : vector<8x32xf32>, vector<32x32xf32>, vector<8x32xf32> -> vector<8x32xf32>
    %813 = arith.addf %811, %812 : vector<8x32xf32>
    %814 = arith.negf %804 : vector<8x32xf32>
    %815 = math.exp %814 : vector<8x32xf32>
    %cst_325 = arith.constant 1.000000e+00 : f32
    %816 = vector.broadcast %cst_325 : f32 to vector<8x32xf32>
    %817 = arith.addf %816, %815 : vector<8x32xf32>
    %818 = arith.divf %816, %817 : vector<8x32xf32>
    %819 = arith.negf %807 : vector<8x32xf32>
    %820 = math.exp %819 : vector<8x32xf32>
    %cst_326 = arith.constant 1.000000e+00 : f32
    %821 = vector.broadcast %cst_326 : f32 to vector<8x32xf32>
    %822 = arith.addf %821, %820 : vector<8x32xf32>
    %823 = arith.divf %821, %822 : vector<8x32xf32>
    %824 = math.tanh %810 : vector<8x32xf32>
    %825 = arith.negf %813 : vector<8x32xf32>
    %826 = math.exp %825 : vector<8x32xf32>
    %cst_327 = arith.constant 1.000000e+00 : f32
    %827 = vector.broadcast %cst_327 : f32 to vector<8x32xf32>
    %828 = arith.addf %827, %826 : vector<8x32xf32>
    %829 = arith.divf %827, %828 : vector<8x32xf32>
    %830 = arith.mulf %823, %798 : vector<8x32xf32>
    %831 = arith.mulf %818, %824 : vector<8x32xf32>
    %832 = arith.addf %830, %831 : vector<8x32xf32>
    %833 = math.tanh %832 : vector<8x32xf32>
    %834 = arith.mulf %829, %833 : vector<8x32xf32>
    %c24_328 = arith.constant 24 : index
    %c0_329 = arith.constant 0 : index
    %835 = vector.load %arg14[%c24_328, %c0_329] : memref<64x32xf32, #tpu.memory_space<vmem>>, vector<8x32xf32>
    tpu.vector_store %arg14[%c24_328, %c0_329], %834 {strides = array<i32>} : memref<64x32xf32, #tpu.memory_space<vmem>>, vector<8x32xf32>,
    %836 = vector.extract_strided_slice %670 {offsets = [32, 0], sizes = [8, 32], strides = [1, 1]} : vector<64x32xf32> to vector<8x32xf32>
    %cst_330 = arith.constant dense<0.000000e+00> : vector<8x32xf32>
    %837 = tpu.matmul %834, %693, %cst_330 {dimension_numbers = #tpu.dot_dimension_numbers<[1], [0], [0], [1], [0, 0, 1, 1], [], []>} : vector<8x32xf32>, vector<32x32xf32>, vector<8x32xf32> -> vector<8x32xf32>
    %838 = arith.addf %836, %837 : vector<8x32xf32>
    %839 = vector.extract_strided_slice %677 {offsets = [32, 0], sizes = [8, 32], strides = [1, 1]} : vector<64x32xf32> to vector<8x32xf32>
    %cst_331 = arith.constant dense<0.000000e+00> : vector<8x32xf32>
    %840 = tpu.matmul %834, %695, %cst_331 {dimension_numbers = #tpu.dot_dimension_numbers<[1], [0], [0], [1], [0, 0, 1, 1], [], []>} : vector<8x32xf32>, vector<32x32xf32>, vector<8x32xf32> -> vector<8x32xf32>
    %841 = arith.addf %839, %840 : vector<8x32xf32>
    %842 = vector.extract_strided_slice %684 {offsets = [32, 0], sizes = [8, 32], strides = [1, 1]} : vector<64x32xf32> to vector<8x32xf32>
    %cst_332 = arith.constant dense<0.000000e+00> : vector<8x32xf32>
    %843 = tpu.matmul %834, %697, %cst_332 {dimension_numbers = #tpu.dot_dimension_numbers<[1], [0], [0], [1], [0, 0, 1, 1], [], []>} : vector<8x32xf32>, vector<32x32xf32>, vector<8x32xf32> -> vector<8x32xf32>
    %844 = arith.addf %842, %843 : vector<8x32xf32>
    %845 = vector.extract_strided_slice %691 {offsets = [32, 0], sizes = [8, 32], strides = [1, 1]} : vector<64x32xf32> to vector<8x32xf32>
    %cst_333 = arith.constant dense<0.000000e+00> : vector<8x32xf32>
    %846 = tpu.matmul %834, %699, %cst_333 {dimension_numbers = #tpu.dot_dimension_numbers<[1], [0], [0], [1], [0, 0, 1, 1], [], []>} : vector<8x32xf32>, vector<32x32xf32>, vector<8x32xf32> -> vector<8x32xf32>
    %847 = arith.addf %845, %846 : vector<8x32xf32>
    %848 = arith.negf %838 : vector<8x32xf32>
    %849 = math.exp %848 : vector<8x32xf32>
    %cst_334 = arith.constant 1.000000e+00 : f32
    %850 = vector.broadcast %cst_334 : f32 to vector<8x32xf32>
    %851 = arith.addf %850, %849 : vector<8x32xf32>
    %852 = arith.divf %850, %851 : vector<8x32xf32>
    %853 = arith.negf %841 : vector<8x32xf32>
    %854 = math.exp %853 : vector<8x32xf32>
    %cst_335 = arith.constant 1.000000e+00 : f32
    %855 = vector.broadcast %cst_335 : f32 to vector<8x32xf32>
    %856 = arith.addf %855, %854 : vector<8x32xf32>
    %857 = arith.divf %855, %856 : vector<8x32xf32>
    %858 = math.tanh %844 : vector<8x32xf32>
    %859 = arith.negf %847 : vector<8x32xf32>
    %860 = math.exp %859 : vector<8x32xf32>
    %cst_336 = arith.constant 1.000000e+00 : f32
    %861 = vector.broadcast %cst_336 : f32 to vector<8x32xf32>
    %862 = arith.addf %861, %860 : vector<8x32xf32>
    %863 = arith.divf %861, %862 : vector<8x32xf32>
    %864 = arith.mulf %857, %832 : vector<8x32xf32>
    %865 = arith.mulf %852, %858 : vector<8x32xf32>
    %866 = arith.addf %864, %865 : vector<8x32xf32>
    %867 = math.tanh %866 : vector<8x32xf32>
    %868 = arith.mulf %863, %867 : vector<8x32xf32>
    %c32_337 = arith.constant 32 : index
    %c0_338 = arith.constant 0 : index
    %869 = vector.load %arg14[%c32_337, %c0_338] : memref<64x32xf32, #tpu.memory_space<vmem>>, vector<8x32xf32>
    tpu.vector_store %arg14[%c32_337, %c0_338], %868 {strides = array<i32>} : memref<64x32xf32, #tpu.memory_space<vmem>>, vector<8x32xf32>,
    %870 = vector.extract_strided_slice %670 {offsets = [40, 0], sizes = [8, 32], strides = [1, 1]} : vector<64x32xf32> to vector<8x32xf32>
    %cst_339 = arith.constant dense<0.000000e+00> : vector<8x32xf32>
    %871 = tpu.matmul %868, %693, %cst_339 {dimension_numbers = #tpu.dot_dimension_numbers<[1], [0], [0], [1], [0, 0, 1, 1], [], []>} : vector<8x32xf32>, vector<32x32xf32>, vector<8x32xf32> -> vector<8x32xf32>
    %872 = arith.addf %870, %871 : vector<8x32xf32>
    %873 = vector.extract_strided_slice %677 {offsets = [40, 0], sizes = [8, 32], strides = [1, 1]} : vector<64x32xf32> to vector<8x32xf32>
    %cst_340 = arith.constant dense<0.000000e+00> : vector<8x32xf32>
    %874 = tpu.matmul %868, %695, %cst_340 {dimension_numbers = #tpu.dot_dimension_numbers<[1], [0], [0], [1], [0, 0, 1, 1], [], []>} : vector<8x32xf32>, vector<32x32xf32>, vector<8x32xf32> -> vector<8x32xf32>
    %875 = arith.addf %873, %874 : vector<8x32xf32>
    %876 = vector.extract_strided_slice %684 {offsets = [40, 0], sizes = [8, 32], strides = [1, 1]} : vector<64x32xf32> to vector<8x32xf32>
    %cst_341 = arith.constant dense<0.000000e+00> : vector<8x32xf32>
    %877 = tpu.matmul %868, %697, %cst_341 {dimension_numbers = #tpu.dot_dimension_numbers<[1], [0], [0], [1], [0, 0, 1, 1], [], []>} : vector<8x32xf32>, vector<32x32xf32>, vector<8x32xf32> -> vector<8x32xf32>
    %878 = arith.addf %876, %877 : vector<8x32xf32>
    %879 = vector.extract_strided_slice %691 {offsets = [40, 0], sizes = [8, 32], strides = [1, 1]} : vector<64x32xf32> to vector<8x32xf32>
    %cst_342 = arith.constant dense<0.000000e+00> : vector<8x32xf32>
    %880 = tpu.matmul %868, %699, %cst_342 {dimension_numbers = #tpu.dot_dimension_numbers<[1], [0], [0], [1], [0, 0, 1, 1], [], []>} : vector<8x32xf32>, vector<32x32xf32>, vector<8x32xf32> -> vector<8x32xf32>
    %881 = arith.addf %879, %880 : vector<8x32xf32>
    %882 = arith.negf %872 : vector<8x32xf32>
    %883 = math.exp %882 : vector<8x32xf32>
    %cst_343 = arith.constant 1.000000e+00 : f32
    %884 = vector.broadcast %cst_343 : f32 to vector<8x32xf32>
    %885 = arith.addf %884, %883 : vector<8x32xf32>
    %886 = arith.divf %884, %885 : vector<8x32xf32>
    %887 = arith.negf %875 : vector<8x32xf32>
    %888 = math.exp %887 : vector<8x32xf32>
    %cst_344 = arith.constant 1.000000e+00 : f32
    %889 = vector.broadcast %cst_344 : f32 to vector<8x32xf32>
    %890 = arith.addf %889, %888 : vector<8x32xf32>
    %891 = arith.divf %889, %890 : vector<8x32xf32>
    %892 = math.tanh %878 : vector<8x32xf32>
    %893 = arith.negf %881 : vector<8x32xf32>
    %894 = math.exp %893 : vector<8x32xf32>
    %cst_345 = arith.constant 1.000000e+00 : f32
    %895 = vector.broadcast %cst_345 : f32 to vector<8x32xf32>
    %896 = arith.addf %895, %894 : vector<8x32xf32>
    %897 = arith.divf %895, %896 : vector<8x32xf32>
    %898 = arith.mulf %891, %866 : vector<8x32xf32>
    %899 = arith.mulf %886, %892 : vector<8x32xf32>
    %900 = arith.addf %898, %899 : vector<8x32xf32>
    %901 = math.tanh %900 : vector<8x32xf32>
    %902 = arith.mulf %897, %901 : vector<8x32xf32>
    %c40_346 = arith.constant 40 : index
    %c0_347 = arith.constant 0 : index
    %903 = vector.load %arg14[%c40_346, %c0_347] : memref<64x32xf32, #tpu.memory_space<vmem>>, vector<8x32xf32>
    tpu.vector_store %arg14[%c40_346, %c0_347], %902 {strides = array<i32>} : memref<64x32xf32, #tpu.memory_space<vmem>>, vector<8x32xf32>,
    %904 = vector.extract_strided_slice %670 {offsets = [48, 0], sizes = [8, 32], strides = [1, 1]} : vector<64x32xf32> to vector<8x32xf32>
    %cst_348 = arith.constant dense<0.000000e+00> : vector<8x32xf32>
    %905 = tpu.matmul %902, %693, %cst_348 {dimension_numbers = #tpu.dot_dimension_numbers<[1], [0], [0], [1], [0, 0, 1, 1], [], []>} : vector<8x32xf32>, vector<32x32xf32>, vector<8x32xf32> -> vector<8x32xf32>
    %906 = arith.addf %904, %905 : vector<8x32xf32>
    %907 = vector.extract_strided_slice %677 {offsets = [48, 0], sizes = [8, 32], strides = [1, 1]} : vector<64x32xf32> to vector<8x32xf32>
    %cst_349 = arith.constant dense<0.000000e+00> : vector<8x32xf32>
    %908 = tpu.matmul %902, %695, %cst_349 {dimension_numbers = #tpu.dot_dimension_numbers<[1], [0], [0], [1], [0, 0, 1, 1], [], []>} : vector<8x32xf32>, vector<32x32xf32>, vector<8x32xf32> -> vector<8x32xf32>
    %909 = arith.addf %907, %908 : vector<8x32xf32>
    %910 = vector.extract_strided_slice %684 {offsets = [48, 0], sizes = [8, 32], strides = [1, 1]} : vector<64x32xf32> to vector<8x32xf32>
    %cst_350 = arith.constant dense<0.000000e+00> : vector<8x32xf32>
    %911 = tpu.matmul %902, %697, %cst_350 {dimension_numbers = #tpu.dot_dimension_numbers<[1], [0], [0], [1], [0, 0, 1, 1], [], []>} : vector<8x32xf32>, vector<32x32xf32>, vector<8x32xf32> -> vector<8x32xf32>
    %912 = arith.addf %910, %911 : vector<8x32xf32>
    %913 = vector.extract_strided_slice %691 {offsets = [48, 0], sizes = [8, 32], strides = [1, 1]} : vector<64x32xf32> to vector<8x32xf32>
    %cst_351 = arith.constant dense<0.000000e+00> : vector<8x32xf32>
    %914 = tpu.matmul %902, %699, %cst_351 {dimension_numbers = #tpu.dot_dimension_numbers<[1], [0], [0], [1], [0, 0, 1, 1], [], []>} : vector<8x32xf32>, vector<32x32xf32>, vector<8x32xf32> -> vector<8x32xf32>
    %915 = arith.addf %913, %914 : vector<8x32xf32>
    %916 = arith.negf %906 : vector<8x32xf32>
    %917 = math.exp %916 : vector<8x32xf32>
    %cst_352 = arith.constant 1.000000e+00 : f32
    %918 = vector.broadcast %cst_352 : f32 to vector<8x32xf32>
    %919 = arith.addf %918, %917 : vector<8x32xf32>
    %920 = arith.divf %918, %919 : vector<8x32xf32>
    %921 = arith.negf %909 : vector<8x32xf32>
    %922 = math.exp %921 : vector<8x32xf32>
    %cst_353 = arith.constant 1.000000e+00 : f32
    %923 = vector.broadcast %cst_353 : f32 to vector<8x32xf32>
    %924 = arith.addf %923, %922 : vector<8x32xf32>
    %925 = arith.divf %923, %924 : vector<8x32xf32>
    %926 = math.tanh %912 : vector<8x32xf32>
    %927 = arith.negf %915 : vector<8x32xf32>
    %928 = math.exp %927 : vector<8x32xf32>
    %cst_354 = arith.constant 1.000000e+00 : f32
    %929 = vector.broadcast %cst_354 : f32 to vector<8x32xf32>
    %930 = arith.addf %929, %928 : vector<8x32xf32>
    %931 = arith.divf %929, %930 : vector<8x32xf32>
    %932 = arith.mulf %925, %900 : vector<8x32xf32>
    %933 = arith.mulf %920, %926 : vector<8x32xf32>
    %934 = arith.addf %932, %933 : vector<8x32xf32>
    %935 = math.tanh %934 : vector<8x32xf32>
    %936 = arith.mulf %931, %935 : vector<8x32xf32>
    %c48_355 = arith.constant 48 : index
    %c0_356 = arith.constant 0 : index
    %937 = vector.load %arg14[%c48_355, %c0_356] : memref<64x32xf32, #tpu.memory_space<vmem>>, vector<8x32xf32>
    tpu.vector_store %arg14[%c48_355, %c0_356], %936 {strides = array<i32>} : memref<64x32xf32, #tpu.memory_space<vmem>>, vector<8x32xf32>,
    %938 = vector.extract_strided_slice %670 {offsets = [56, 0], sizes = [8, 32], strides = [1, 1]} : vector<64x32xf32> to vector<8x32xf32>
    %cst_357 = arith.constant dense<0.000000e+00> : vector<8x32xf32>
    %939 = tpu.matmul %936, %693, %cst_357 {dimension_numbers = #tpu.dot_dimension_numbers<[1], [0], [0], [1], [0, 0, 1, 1], [], []>} : vector<8x32xf32>, vector<32x32xf32>, vector<8x32xf32> -> vector<8x32xf32>
    %940 = arith.addf %938, %939 : vector<8x32xf32>
    %941 = vector.extract_strided_slice %677 {offsets = [56, 0], sizes = [8, 32], strides = [1, 1]} : vector<64x32xf32> to vector<8x32xf32>
    %cst_358 = arith.constant dense<0.000000e+00> : vector<8x32xf32>
    %942 = tpu.matmul %936, %695, %cst_358 {dimension_numbers = #tpu.dot_dimension_numbers<[1], [0], [0], [1], [0, 0, 1, 1], [], []>} : vector<8x32xf32>, vector<32x32xf32>, vector<8x32xf32> -> vector<8x32xf32>
    %943 = arith.addf %941, %942 : vector<8x32xf32>
    %944 = vector.extract_strided_slice %684 {offsets = [56, 0], sizes = [8, 32], strides = [1, 1]} : vector<64x32xf32> to vector<8x32xf32>
    %cst_359 = arith.constant dense<0.000000e+00> : vector<8x32xf32>
    %945 = tpu.matmul %936, %697, %cst_359 {dimension_numbers = #tpu.dot_dimension_numbers<[1], [0], [0], [1], [0, 0, 1, 1], [], []>} : vector<8x32xf32>, vector<32x32xf32>, vector<8x32xf32> -> vector<8x32xf32>
    %946 = arith.addf %944, %945 : vector<8x32xf32>
    %947 = vector.extract_strided_slice %691 {offsets = [56, 0], sizes = [8, 32], strides = [1, 1]} : vector<64x32xf32> to vector<8x32xf32>
    %cst_360 = arith.constant dense<0.000000e+00> : vector<8x32xf32>
    %948 = tpu.matmul %936, %699, %cst_360 {dimension_numbers = #tpu.dot_dimension_numbers<[1], [0], [0], [1], [0, 0, 1, 1], [], []>} : vector<8x32xf32>, vector<32x32xf32>, vector<8x32xf32> -> vector<8x32xf32>
    %949 = arith.addf %947, %948 : vector<8x32xf32>
    %950 = arith.negf %940 : vector<8x32xf32>
    %951 = math.exp %950 : vector<8x32xf32>
    %cst_361 = arith.constant 1.000000e+00 : f32
    %952 = vector.broadcast %cst_361 : f32 to vector<8x32xf32>
    %953 = arith.addf %952, %951 : vector<8x32xf32>
    %954 = arith.divf %952, %953 : vector<8x32xf32>
    %955 = arith.negf %943 : vector<8x32xf32>
    %956 = math.exp %955 : vector<8x32xf32>
    %cst_362 = arith.constant 1.000000e+00 : f32
    %957 = vector.broadcast %cst_362 : f32 to vector<8x32xf32>
    %958 = arith.addf %957, %956 : vector<8x32xf32>
    %959 = arith.divf %957, %958 : vector<8x32xf32>
    %960 = math.tanh %946 : vector<8x32xf32>
    %961 = arith.negf %949 : vector<8x32xf32>
    %962 = math.exp %961 : vector<8x32xf32>
    %cst_363 = arith.constant 1.000000e+00 : f32
    %963 = vector.broadcast %cst_363 : f32 to vector<8x32xf32>
    %964 = arith.addf %963, %962 : vector<8x32xf32>
    %965 = arith.divf %963, %964 : vector<8x32xf32>
    %966 = arith.mulf %959, %934 : vector<8x32xf32>
    %967 = arith.mulf %954, %960 : vector<8x32xf32>
    %968 = arith.addf %966, %967 : vector<8x32xf32>
    %969 = math.tanh %968 : vector<8x32xf32>
    %970 = arith.mulf %965, %969 : vector<8x32xf32>
    %c56_364 = arith.constant 56 : index
    %c0_365 = arith.constant 0 : index
    %971 = vector.load %arg14[%c56_364, %c0_365] : memref<64x32xf32, #tpu.memory_space<vmem>>, vector<8x32xf32>
    tpu.vector_store %arg14[%c56_364, %c0_365], %970 {strides = array<i32>} : memref<64x32xf32, #tpu.memory_space<vmem>>, vector<8x32xf32>,
    %c0_366 = arith.constant 0 : index
    %c0_367 = arith.constant 0 : index
    %972 = vector.load %arg14[%c0_366, %c0_367] : memref<64x32xf32, #tpu.memory_space<vmem>>, vector<64x32xf32>
    %c2_368 = arith.constant 2 : index
    %c0_369 = arith.constant 0 : index
    %c0_370 = arith.constant 0 : index
    %973 = vector.load %arg10[%c2_368, %c0_369, %c0_370] : memref<3x64x32xf32, #tpu.memory_space<vmem>>, vector<1x64x32xf32>
    %974 = vector.shape_cast %973 : vector<1x64x32xf32> to vector<64x32xf32>
    %c2_371 = arith.constant 2 : index
    %c0_372 = arith.constant 0 : index
    %c0_373 = arith.constant 0 : index
    %975 = vector.load %arg6[%c2_371, %c0_372, %c0_373] : memref<3x32x32xf32, #tpu.memory_space<vmem>>, vector<1x32x32xf32>
    %976 = vector.shape_cast %975 : vector<1x32x32xf32> to vector<32x32xf32>
    %cst_374 = arith.constant dense<0.000000e+00> : vector<64x32xf32>
    %977 = tpu.matmul %974, %976, %cst_374 {dimension_numbers = #tpu.dot_dimension_numbers<[1], [0], [0], [1], [0, 0, 1, 1], [], []>} : vector<64x32xf32>, vector<32x32xf32>, vector<64x32xf32> -> vector<64x32xf32>
    %c2_375 = arith.constant 2 : index
    %c0_376 = arith.constant 0 : index
    %c0_377 = arith.constant 0 : index
    %978 = vector.load %arg7[%c2_375, %c0_376, %c0_377] : memref<3x1x32xf32, #tpu.memory_space<vmem>>, vector<1x1x32xf32>
    %979 = vector.shape_cast %978 : vector<1x1x32xf32> to vector<1x32xf32>
    %980 = vector.broadcast %979 : vector<1x32xf32> to vector<64x32xf32>
    %981 = arith.addf %977, %980 : vector<64x32xf32>
    %cst_378 = arith.constant 0.000000e+00 : f32
    %982 = vector.broadcast %cst_378 : f32 to vector<64x32xf32>
    %983 = arith.maximumf %981, %982 : vector<64x32xf32>
    %c2_379 = arith.constant 2 : index
    %c0_380 = arith.constant 0 : index
    %c0_381 = arith.constant 0 : index
    %984 = vector.load %arg8[%c2_379, %c0_380, %c0_381] : memref<3x32x32xf32, #tpu.memory_space<vmem>>, vector<1x32x32xf32>
    %985 = vector.shape_cast %984 : vector<1x32x32xf32> to vector<32x32xf32>
    %cst_382 = arith.constant dense<0.000000e+00> : vector<64x32xf32>
    %986 = tpu.matmul %983, %985, %cst_382 {dimension_numbers = #tpu.dot_dimension_numbers<[1], [0], [0], [1], [0, 0, 1, 1], [], []>} : vector<64x32xf32>, vector<32x32xf32>, vector<64x32xf32> -> vector<64x32xf32>
    %c2_383 = arith.constant 2 : index
    %c0_384 = arith.constant 0 : index
    %c0_385 = arith.constant 0 : index
    %987 = vector.load %arg9[%c2_383, %c0_384, %c0_385] : memref<3x1x32xf32, #tpu.memory_space<vmem>>, vector<1x1x32xf32>
    %988 = vector.shape_cast %987 : vector<1x1x32xf32> to vector<1x32xf32>
    %989 = vector.broadcast %988 : vector<1x32xf32> to vector<64x32xf32>
    %990 = arith.addf %986, %989 : vector<64x32xf32>
    %991 = arith.addf %972, %990 : vector<64x32xf32>
    %c0_386 = arith.constant 0 : index
    %c0_387 = arith.constant 0 : index
    %992 = vector.load %arg11[%c0_386, %c0_387] : memref<32x128xf32, #tpu.memory_space<vmem>>, vector<32x128xf32>
    %cst_388 = arith.constant dense<0.000000e+00> : vector<64x128xf32>
    %993 = tpu.matmul %991, %992, %cst_388 {dimension_numbers = #tpu.dot_dimension_numbers<[1], [0], [0], [1], [0, 0, 1, 1], [], []>} : vector<64x32xf32>, vector<32x128xf32>, vector<64x128xf32> -> vector<64x128xf32>
    %c0_389 = arith.constant 0 : index
    %c0_390 = arith.constant 0 : index
    %994 = vector.load %arg12[%c0_389, %c0_390] : memref<1x128xf32, #tpu.memory_space<vmem>>, vector<1x128xf32>
    %995 = vector.broadcast %994 : vector<1x128xf32> to vector<64x128xf32>
    %996 = arith.addf %993, %995 : vector<64x128xf32>
    %997 = arith.negf %996 : vector<64x128xf32>
    %998 = math.exp %997 : vector<64x128xf32>
    %cst_391 = arith.constant 1.000000e+00 : f32
    %999 = vector.broadcast %cst_391 : f32 to vector<64x128xf32>
    %1000 = arith.addf %999, %998 : vector<64x128xf32>
    %1001 = arith.divf %999, %1000 : vector<64x128xf32>
    %c0_392 = arith.constant 0 : index
    %c0_393 = arith.constant 0 : index
    %1002 = vector.load %arg13[%c0_392, %c0_393] : memref<64x128xf32, #tpu.memory_space<vmem>>, vector<64x128xf32>
    tpu.vector_store %arg13[%c0_392, %c0_393], %1001 {strides = array<i32>} : memref<64x128xf32, #tpu.memory_space<vmem>>, vector<64x128xf32>,
    return
  }
}

</mosaic_0001>

<bundles_post_ra>
// kernel: tpu_custom_call.1
= control target key start
LH: loop header
LB: loop body
LE: loop exit
PB: predicated region body
PF: predicated region fallthrough
CT: control target
= control target key end

     0   :  { %18 = vsyncpa [#allocation4], 0  ;;  %s7991_s0 = inlined_call_operand.vmem [shape: f32[64,32], index: 0, kind: input, shape index: {}]   ;;  %s7992_s1 = inlined_call_operand.vmem [shape: f32[32,32], index: 1, kind: input, shape index: {}]   ;;  %s7993_s2 = inlined_call_operand.vmem [shape: f32[1,32], index: 2, kind: input, shape index: {}]   ;;  %s7994_s3 = inlined_call_operand.hbm [shape: f32[12,32,32], index: 3, kind: input, shape index: {}]   ;;  %s7995_s4 = inlined_call_operand.hbm [shape: f32[12,32,32], index: 4, kind: input, shape index: {}]   ;;  %s7996_s5 = inlined_call_operand.vmem [shape: f32[12,1,32], index: 5, kind: input, shape index: {}]   ;;  %s7997_s6 = inlined_call_operand.vmem [shape: f32[3,32,32], index: 6, kind: input, shape index: {}]   ;;  %s7998_s7 = inlined_call_operand.vmem [shape: f32[3,1,32], index: 7, kind: input, shape index: {}]   ;;  %s7999_s8 = inlined_call_operand.vmem [shape: f32[3,32,32], index: 8, kind: input, shape index: {}]   ;;  %s8000_s9 = inlined_call_operand.vmem [shape: f32[3,1,32], index: 9, kind: input, shape index: {}]   ;;  %s8001_s10 = inlined_call_operand.vmem [shape: f32[3,64,32], index: 10, kind: input, shape index: {}]   ;;  %s8002_s11 = inlined_call_operand.vmem [shape: f32[32,128], index: 11, kind: input, shape index: {}]   ;;  %s8003_s12 = inlined_call_operand.vmem [shape: f32[1,128], index: 12, kind: input, shape index: {}]   ;;  %s8004_s13 = inlined_call_operand.hbm [shape: f32[64,128], index: 13, kind: output, shape index: {}]  }
   0x1   :  { %19 = vsyncpa [#allocation7], 0 }
   0x2   :  { %20 = vsyncpa [#allocation5], 0  ;;  %s31_s27 = sshll.u32 %s7994_s3, 4  ;;  %s6286_s28 = smov [#allocation3]   ;;  %s32_s27 = int_to_ptr.hbm [resolvable:$true] %s31_s27 }
   0x3   :  { %s33_s29 = sshll.u32 %s6286_s28, 4  ;;  %s44_s15 = sshll.u32 %s7995_s4, 4  ;;  %s34_s29 = int_to_ptr.vmem [resolvable:$true] %s33_s29  ;;  %s45_s15 = int_to_ptr.hbm [resolvable:$true] %s44_s15 }
   0x4   :  { %s6287_s16 = smov 128   ;;  %s6288_s17 = smov 8  }
   0x5   :  { %39 = dma.hbm_to_vmem [thread:$0]  %s32_s27, 6144, %s34_s29, [#allocation4], %s6287_s16, %s6287_s16, %s6288_s17  }
   0x6   :  { %s6289_s18 = smov [#allocation6]  }
   0x7   :  { %s46_s19 = sshll.u32 %s6289_s18, 4  ;;  %s47_s19 = int_to_ptr.vmem [resolvable:$true] %s46_s19 }
   0x8   :  { %52 = dma.hbm_to_vmem [thread:$0]  %s45_s15, 6144, %s47_s19, [#allocation7], %s6287_s16, %s6287_s16, %s6288_s17  }
   0x9   :  { %6280 = dma.done.wait [#allocation4], 6144  }
   0xa   :  { %6281 = vsyncadd [#allocation4], 4294961152 }
   0xb   :  { %6282 = dma.done.wait [#allocation7], 6144  }
   0xc   :  { %6283 = vsyncadd [#allocation7], 4294961152  ;;  %v88_v0 = vld [vmem:[%s7992_s1 + $0x18] sm:$0xff]  ;;  %v87_v1 = vld [vmem:[%s7992_s1 + $0x10] sm:$0xff]  ;;  %vm93_vm0 = vcmask 261120   ;;  %v6290_v60 = vmov 0.0  }
   0xd   :  { %130 = vmatpush.msra.mxu0 %v88_v0  ;;  %5700 = vmatpush.msra.mxu3 %v88_v0  ;;  %v86_v2 = vld [vmem:[%s7992_s1 + $0x8] sm:$0xff]  ;;  %v85_v3 = vld [vmem:[%s7992_s1] sm:$0xff]  ;;  %v83_v5 = vld [vmem:[%s7991_s0 + $0x30] sm:$0xff]  ;;  %s5307_s23 = sshll.u32 %s8004_s13, 4  ;;  %s5308_s23 = int_to_ptr.hbm [resolvable:$true] %s5307_s23 }
   0xe   :  { %v77_v4 = vld [vmem:[%s7991_s0] sm:$0xff]  ;;  %v78_v6 = vld [vmem:[%s7991_s0 + $0x8] sm:$0xff]  ;;  %v84_v7 = vld [vmem:[%s7991_s0 + $0x38] sm:$0xff] }
   0xf   :  { %131 = vmatpush.msra.mxu0 %v87_v1  ;;  %5701 = vmatpush.msra.mxu3 %v87_v1  ;;  %v162_v8 = vld [vmem:[#allocation3 + $0x18] sm:$0xff]  ;;  %v161_v11 = vld [vmem:[#allocation3 + $0x10] sm:$0xff]  ;;  %v81_v16 = vld [vmem:[%s7991_s0 + $0x20] sm:$0xff] }
  0x10   :  { %v236_v9 = vld [vmem:[#allocation3 + $0x38] sm:$0xff]  ;;  %203 = vmatpush.msra.mxu1 %v162_v8  ;;  %v235_v12 = vld [vmem:[#allocation3 + $0x30] sm:$0xff]  ;;  %v82_v17 = vld [vmem:[%s7991_s0 + $0x28] sm:$0xff] }
  0x11   :  { %132 = vmatpush.msra.mxu0 %v86_v2  ;;  %5702 = vmatpush.msra.mxu3 %v86_v2  ;;  %v338_v10 = vld [vmem:[#allocation3 + $0x78] sm:$0xff]  ;;  %v337_v13 = vld [vmem:[#allocation3 + $0x70] sm:$0xff]  ;;  %v160_v18 = vld [vmem:[#allocation3 + $0x8] sm:$0xff] }
  0x12   :  { %254 = vmatpush.msra.mxu2 %v236_v9  ;;  %204 = vmatpush.msra.mxu1 %v161_v11  ;;  %v79_v14 = vld [vmem:[%s7991_s0 + $0x10] sm:$0xff]  ;;  %v80_v15 = vld [vmem:[%s7991_s0 + $0x18] sm:$0xff]  ;;  %v234_v19 = vld [vmem:[#allocation3 + $0x28] sm:$0xff] }
  0x13   :  { %133 = vmatpush.msra.mxu0 %v85_v3  ;;  %5703 = vmatpush.msra.mxu3 %v85_v3  ;;  %v336_v20 = vld [vmem:[#allocation3 + $0x68] sm:$0xff]  ;;  %v159_v21 = vld [vmem:[#allocation3] sm:$0xff]  ;;  %v6432_v27 = vld [vmem:[#allocation6 + $0x38] sm:$0xff] }
  0x14   :  { %5321 = vmatmul.msk.f32.vlgmr.msra.gmra.mxu0 %vm93_vm0, %v77_v4  ;;  %5327 = vmatmul.msk.f32.vlgmr.msra.gmra.mxu3 %vm93_vm0, %v83_v5  ;;  %v233_v22 = vld [vmem:[#allocation3 + $0x20] sm:$0xff]  ;;  %v287_v30 = vld [vmem:[#allocation3 + $0x58] sm:$0xff]  ;;  %v286_v33 = vld [vmem:[#allocation3 + $0x50] sm:$0xff] }
  0x15   :  { %5704 = vmatpush.msrb.mxu3 %v162_v8  ;;  %356 = vmatpush.msrb.mxu0 %v338_v10  ;;  %v335_v23 = vld [vmem:[#allocation3 + $0x60] sm:$0xff]  ;;  %v6443_v34 = vld [vmem:[#allocation6 + $0x18] sm:$0xff]  ;;  %v285_v35 = vld [vmem:[#allocation3 + $0x48] sm:$0xff] }
  0x16   :  { %255 = vmatpush.msra.mxu2 %v235_v12  ;;  %205 = vmatpush.msra.mxu1 %v160_v18  ;;  %v6421_v24 = vld [vmem:[%s7993_s2] ss:$0 sm:$0xff]  ;;  %v6452_v36 = vld [vmem:[#allocation6 + $0x10] sm:$0xff]  ;;  %v6456_v38 = vld [vmem:[#allocation6 + $0x8] sm:$0xff] }
  0x17   :  { %5705 = vmatpush.msrb.mxu3 %v161_v11  ;;  %357 = vmatpush.msrb.mxu0 %v337_v13  ;;  %v6454_v37 = vld [vmem:[#allocation6 + $0x30] sm:$0xff]  ;;  %v284_v39 = vld [vmem:[#allocation3 + $0x40] sm:$0xff]  ;;  %v6460_v40 = vld [vmem:[#allocation6 + $0x28] sm:$0xff] }
  0x18   :  { %256 = vmatpush.msra.mxu2 %v234_v19  ;;  %206 = vmatpush.msra.mxu1 %v159_v21  ;;  %v6472_v45 = vld [vmem:[#allocation6] sm:$0xff]  ;;  %v6481_v47 = vld [vmem:[#allocation6 + $0x78] sm:$0xff]  ;;  %v6483_v48 = vld [vmem:[#allocation6 + $0x70] sm:$0xff] }
  0x19   :  { %358 = vmatpush.msrb.mxu0 %v336_v20  ;;  %5706 = vmatpush.msrb.mxu3 %v160_v18  ;;  %v6474_v46 = vld [vmem:[#allocation6 + $0x20] sm:$0xff]  ;;  %v6488_v49 = vld [vmem:[#allocation6 + $0x68] sm:$0xff]  ;;  %v6491_v50 = vld [vmem:[#allocation6 + $0x58] sm:$0xff] }
  0x1a   :  { %257 = vmatpush.msra.mxu2 %v233_v22  ;;  %419 = vmatpush.msrb.mxu1 %v6443_v34  ;;  %v6501_v53 = vld [vmem:[#allocation6 + $0x50] sm:$0xff]  ;;  %v6504_v54 = vld [vmem:[#allocation6 + $0x60] sm:$0xff]  ;;  %v6524_v59 = vld [vmem:[#allocation6 + $0x48] sm:$0xff] }
  0x1b   :  { %359 = vmatpush.msrb.mxu0 %v335_v23  ;;  %5707 = vmatpush.msrb.mxu3 %v159_v21  ;;  %v6540_v61 = vld [vmem:[#allocation6 + $0x40] sm:$0xff] }
  0x1c   :  { %5322 = vmatmul.msk.f32.gmra.mxu0 %vm93_vm0, %v78_v6  ;;  %5328 = vmatmul.msk.f32.gmra.mxu3 %vm93_vm0, %v84_v7 }
  0x1d   :  { %5708 = vmatpush.msra.mxu3 %v236_v9  ;;  %440 = vmatpush.msrb.mxu2 %v6432_v27 }
  0x1e   :  { %420 = vmatpush.msrb.mxu1 %v6452_v36  ;;  %1325 = vmatpush.msra.mxu0 %v6443_v34 }
  0x1f   :  { %5709 = vmatpush.msra.mxu3 %v235_v12  ;;  %441 = vmatpush.msrb.mxu2 %v6454_v37 }
  0x20   :  { %421 = vmatpush.msrb.mxu1 %v6456_v38  ;;  %1326 = vmatpush.msra.mxu0 %v6452_v36 }
  0x21   :  { %5710 = vmatpush.msra.mxu3 %v234_v19  ;;  %442 = vmatpush.msrb.mxu2 %v6460_v40  ;;  %v6607_v19 = vld [vmem:[%s7996_s5] ss:$0 sm:$0xff] }
  0x22   :  { %422 = vmatpush.msrb.mxu1 %v6472_v45  ;;  %1327 = vmatpush.msra.mxu0 %v6456_v38 }
  0x23   :  { %5711 = vmatpush.msra.mxu3 %v233_v22  ;;  %443 = vmatpush.msrb.mxu2 %v6474_v46 }
  0x24   :  { %5323 = vmatmul.msk.f32.gmra.mxu0 %vm93_vm0, %v79_v14 }
  0x25   :  { %1328 = vmatpush.msra.mxu0 %v6472_v45 }
  0x2c   :  { %5324 = vmatmul.msk.f32.gmra.mxu0 %vm93_vm0, %v80_v15 }
  0x34   :  { %5325 = vmatmul.msk.f32.gmra.mxu0 %vm93_vm0, %v81_v16 }
  0x3c   :  { %5326 = vmatmul.msk.f32.gmra.mxu0 %vm93_vm0, %v82_v17  ;;  %v6602_v17 = vld [vmem:[%s7996_s5 + $0x1] ss:$0 sm:$0xff] }
  0x91   :  { %v135_v25 = vpop.f32.mrf.mxu0 }
  0x92   :  { %v6424_v26 = vadd.f32 %v6421_v24, %v135_v25 }
  0x94   :  { %5329 = vmatmul.msk.f32.vlgmr.msra.gmra.mxu1 %vm93_vm0, %v6424_v26  ;;  %5338 = vmatmul.msk.f32.vlgmr.msra.gmra.mxu2 %vm93_vm0, %v6424_v26 }
  0x95   :  { %5356 = vmatmul.msk.f32.vlgmr.msrb.gmra.mxu0 %vm93_vm0, %v6424_v26  ;;  %570 = vmatpush.msra.mxu2 %v6443_v34 }
  0x96   :  { %482 = vmatpush.msra.mxu1 %v6481_v47  ;;  %1476 = vmatpush.msrb.mxu0 %v6443_v34 }
  0x97   :  { %v153_v28 = vpop.f32.mrf.mxu3  ;;  %571 = vmatpush.msra.mxu2 %v6452_v36 }
  0x98   :  { %v6436_v29 = vadd.f32 %v6421_v24, %v153_v28  ;;  %483 = vmatpush.msra.mxu1 %v6483_v48  ;;  %1477 = vmatpush.msrb.mxu0 %v6452_v36  ;;  %v6616_v28 = vld [vmem:[%s7996_s5 + $0x3] ss:$0 sm:$0xff] }
  0x99   :  { %v138_v31 = vpop.f32.mrf.mxu0  ;;  %572 = vmatpush.msra.mxu2 %v6456_v38 }
  0x9a   :  { %v6439_v32 = vadd.f32 %v6421_v24, %v138_v31  ;;  %5335 = vmatmul.msk.f32.vlgmr.msrb.gmra.mxu3 %vm93_vm0, %v6436_v29  ;;  %484 = vmatpush.msra.mxu1 %v6488_v49 }
  0x9b   :  { %305 = vmatpush.msrb.mxu3 %v287_v30  ;;  %573 = vmatpush.msra.mxu2 %v6472_v45 }
  0x9c   :  { %5330 = vmatmul.msk.f32.gmra.mxu1 %vm93_vm0, %v6439_v32  ;;  %5339 = vmatmul.msk.f32.gmra.mxu2 %vm93_vm0, %v6439_v32 }
  0x9d   :  { %5357 = vmatmul.msk.f32.gmra.mxu0 %vm93_vm0, %v6439_v32  ;;  %306 = vmatpush.msrb.mxu3 %v286_v33 }
  0x9e   :  { %485 = vmatpush.msra.mxu1 %v6504_v54  ;;  %1478 = vmatpush.msrb.mxu0 %v6456_v38 }
  0x9f   :  { %v156_v41 = vpop.f32.mrf.mxu3  ;;  %307 = vmatpush.msrb.mxu3 %v285_v35 }
  0xa0   :  { %v6464_v42 = vadd.f32 %v6421_v24, %v156_v41  ;;  %1479 = vmatpush.msrb.mxu0 %v6472_v45 }
  0xa1   :  { %v141_v43 = vpop.f32.mrf.mxu0  ;;  %308 = vmatpush.msrb.mxu3 %v284_v39 }
  0xa2   :  { %v142_v44 = vadd.f32 %v6421_v24, %v141_v43  ;;  %5336 = vmatmul.msk.f32.gmra.mxu3 %vm93_vm0, %v6464_v42 }
  0xa4   :  { %5331 = vmatmul.msk.f32.gmra.mxu1 %vm93_vm0, %v142_v44  ;;  %5340 = vmatmul.msk.f32.gmra.mxu2 %vm93_vm0, %v142_v44 }
  0xa5   :  { %5358 = vmatmul.msk.f32.gmra.mxu0 %vm93_vm0, %v142_v44 }
  0xa9   :  { %v144_v51 = vpop.f32.mrf.mxu0 }
  0xaa   :  { %v145_v52 = vadd.f32 %v6421_v24, %v144_v51  ;;  %5344 = vmatmul.msk.f32.vlgmr.msra.gmra.mxu3 %vm93_vm0, %v6436_v29 }
  0xab   :  { %461 = vmatpush.msra.mxu3 %v6491_v50 }
  0xac   :  { %5332 = vmatmul.msk.f32.gmra.mxu1 %vm93_vm0, %v145_v52  ;;  %5341 = vmatmul.msk.f32.gmra.mxu2 %vm93_vm0, %v145_v52 }
  0xad   :  { %5359 = vmatmul.msk.f32.gmra.mxu0 %vm93_vm0, %v145_v52  ;;  %462 = vmatpush.msra.mxu3 %v6501_v53 }
  0xaf   :  { %463 = vmatpush.msra.mxu3 %v6524_v59 }
  0xb1   :  { %v147_v55 = vpop.f32.mrf.mxu0  ;;  %464 = vmatpush.msra.mxu3 %v6540_v61 }
  0xb2   :  { %v148_v56 = vadd.f32 %v6421_v24, %v147_v55  ;;  %5345 = vmatmul.msk.f32.gmra.mxu3 %vm93_vm0, %v6464_v42 }
  0xb4   :  { %5333 = vmatmul.msk.f32.gmra.mxu1 %vm93_vm0, %v148_v56  ;;  %5342 = vmatmul.msk.f32.gmra.mxu2 %vm93_vm0, %v148_v56 }
  0xb5   :  { %5360 = vmatmul.msk.f32.gmra.mxu0 %vm93_vm0, %v148_v56 }
  0xb9   :  { %v150_v57 = vpop.f32.mrf.mxu0 }
  0xba   :  { %v151_v58 = vadd.f32 %v6421_v24, %v150_v57  ;;  %5347 = vmatmul.msk.f32.vlgmr.msrb.gmra.mxu3 %vm93_vm0, %v6424_v26 }
  0xbb   :  { %591 = vmatpush.msrb.mxu3 %v6432_v27 }
  0xbc   :  { %5334 = vmatmul.msk.f32.gmra.mxu1 %vm93_vm0, %v151_v58  ;;  %5343 = vmatmul.msk.f32.gmra.mxu2 %vm93_vm0, %v151_v58 }
  0xbd   :  { %5361 = vmatmul.msk.f32.gmra.mxu0 %vm93_vm0, %v151_v58  ;;  %592 = vmatpush.msrb.mxu3 %v6454_v37 }
  0xbf   :  { %593 = vmatpush.msrb.mxu3 %v6460_v40 }
  0xc1   :  { %594 = vmatpush.msrb.mxu3 %v6474_v46 }
  0xc2   :  { %5348 = vmatmul.msk.f32.gmra.mxu3 %vm93_vm0, %v6439_v32 }
  0xc4   :  { %423 = vmatmul.f32.vlgmr.msrb.gmra.mxu1 %v6290_v60  ;;  %444 = vmatmul.f32.vlgmr.msrb.gmra.mxu2 %v6290_v60 }
  0xc5   :  { %5362 = vmatmul.msk.f32.gmra.mxu0 %vm93_vm0, %v6436_v29  ;;  %612 = vmatpush.msrb.mxu1 %v6491_v50 }
  0xc6   :  { %633 = vmatpush.msrb.mxu2 %v6481_v47 }
  0xc7   :  { %613 = vmatpush.msrb.mxu1 %v6501_v53 }
  0xc8   :  { %634 = vmatpush.msrb.mxu2 %v6483_v48 }
  0xc9   :  { %614 = vmatpush.msrb.mxu1 %v6524_v59 }
  0xca   :  { %5349 = vmatmul.msk.f32.gmra.mxu3 %vm93_vm0, %v142_v44  ;;  %635 = vmatpush.msrb.mxu2 %v6488_v49 }
  0xcb   :  { %615 = vmatpush.msrb.mxu1 %v6540_v61 }
  0xcc   :  { %486 = vmatmul.f32.vlgmr.msra.gmra.mxu1 %v6290_v60  ;;  %636 = vmatpush.msrb.mxu2 %v6504_v54 }
  0xcd   :  { %5363 = vmatmul.msk.f32.gmra.mxu0 %vm93_vm0, %v6464_v42  ;;  %742 = vmatpush.msra.mxu1 %v6432_v27 }
  0xcf   :  { %743 = vmatpush.msra.mxu1 %v6454_v37 }
  0xd1   :  { %744 = vmatpush.msra.mxu1 %v6460_v40 }
  0xd2   :  { %5350 = vmatmul.msk.f32.gmra.mxu3 %vm93_vm0, %v145_v52 }
  0xd3   :  { %745 = vmatpush.msra.mxu1 %v6474_v46 }
  0xda   :  { %5351 = vmatmul.msk.f32.gmra.mxu3 %vm93_vm0, %v148_v56 }
  0xe2   :  { %5352 = vmatmul.msk.f32.gmra.mxu3 %vm93_vm0, %v151_v58 }
  0xea   :  { %5353 = vmatmul.msk.f32.gmra.mxu3 %vm93_vm0, %v6436_v29 }
  0xf2   :  { %5354 = vmatmul.msk.f32.gmra.mxu3 %vm93_vm0, %v6464_v42 }
  0xfa   :  { %465 = vmatmul.f32.vlgmr.msra.gmra.mxu3 %v6290_v60 }
  0xfb   :  { %721 = vmatpush.msra.mxu3 %v6443_v34 }
  0xfd   :  { %722 = vmatpush.msra.mxu3 %v6452_v36 }
  0xff   :  { %723 = vmatpush.msra.mxu3 %v6456_v38 }
 0x101   :  { %724 = vmatpush.msra.mxu3 %v6472_v45 }
 0x111   :  { %v208_v62 = vpop.f32.mrf.mxu1 }
 0x112   :  { %v209_v22 = vadd.f32 %v6607_v19, %v208_v62  ;;  %v361_v30 = vpop.f32.mrf.mxu0 }
 0x113   :  { %v362_v32 = vadd.f32 %v6616_v28, %v361_v30 }
 0x117   :  { %v259_v63 = vpop.f32.mrf.mxu2 }
 0x118   :  { %v260_v20 = vadd.f32 %v6602_v17, %v259_v63 }
 0x119   :  { %v6571_v2 = vpop.f32.mrf.mxu1 }
 0x11d   :  { %v6567_v0 = vpop.f32.mrf.mxu3 }
 0x11f   :  { %v6569_v1 = vpop.f32.mrf.mxu2 }
 0x121   :  { %v6577_v5 = vpop.f32.mrf.mxu1 }
 0x125   :  { %v6573_v3 = vpop.f32.mrf.mxu3 }
 0x126   :  { %8005 = vst [vmem:[#allocation12_spill] sm:$0xff] %v6573_v3 }
 0x127   :  { %v6575_v4 = vpop.f32.mrf.mxu2 }
 0x129   :  { %v6583_v8 = vpop.f32.mrf.mxu1 }
 0x12d   :  { %v6579_v6 = vpop.f32.mrf.mxu3 }
 0x12f   :  { %v6581_v7 = vpop.f32.mrf.mxu2 }
 0x131   :  { %v6589_v12 = vpop.f32.mrf.mxu1 }
 0x135   :  { %v6585_v9 = vpop.f32.mrf.mxu3 }
 0x136   :  { %8006 = vst [vmem:[#allocation13_spill] sm:$0xff] %v6585_v9 }
 0x137   :  { %v6587_v10 = vpop.f32.mrf.mxu2 }
 0x139   :  { %v6595_v15 = vpop.f32.mrf.mxu1 }
 0x13d   :  { %v310_v11 = vpop.f32.mrf.mxu3 }
 0x13f   :  { %v6593_v14 = vpop.f32.mrf.mxu2 }
 0x141   :  { %v424_v21 = vpop.f32.mrf.mxu1 }
 0x142   :  { %v427_v24 = vadd.f32 %v424_v21, %v209_v22  ;;  %v6630_v21 = vld [vmem:[%s7996_s5 + $0x2] ss:$0 sm:$0xff] }
 0x144   :  { %v5364_v29 = vmul.f32 -1.442695, %v427_v24 }
 0x145   :  { %v6591_v13 = vpop.f32.mrf.mxu3 }
 0x147   :  { %v445_v18 = vpop.f32.mrf.mxu2 }
 0x148   :  { %v448_v23 = vadd.f32 %v445_v18, %v260_v20 }
 0x149   :  { %v487_v31 = vpop.f32.mrf.mxu1 }
 0x14a   :  { %v5365_v26 = vmul.f32 -1.442695, %v448_v23  ;;  %v490_v35 = vadd.f32 %v487_v31, %v362_v32 }
 0x14c   :  { %5738 = vpow2.f32 %v5365_v26  ;;  %v5366_v42 = vmul.f32 -1.442695, %v490_v35  ;;  %v311_v26 = vadd.f32 %v6630_v21, %v310_v11 }
 0x14d   :  { %v6597_v16 = vpop.f32.mrf.mxu3  ;;  %5740 = vpow2.f32 %v5364_v29 }
 0x14e   :  { %5742 = vpow2.f32 %v5366_v42 }
 0x152   :  { %v5739_v39 = vpop.eup %5738 }
 0x153   :  { %v5741_v41 = vpop.eup %5740  ;;  %v513_v43 = vadd.f32 1.0, %v5739_v39 }
 0x154   :  { %v494_v51 = vadd.f32 1.0, %v5741_v41  ;;  %v5743_v52 = vpop.eup %5742 }
 0x155   :  { %v6611_v25 = vpop.f32.mrf.mxu3  ;;  %5744 = vrcp.f32 %v513_v43  ;;  %v533_v60 = vadd.f32 1.0, %v5743_v52  ;;  %v525_v31 = vand.u32 2147483648, %v513_v43  ;;  %vm519_vm2 = vweird.f32 %v513_v43 }
 0x156   :  { %5746 = vrcp.f32 %v494_v51  ;;  %v523_v41 = vand.u32 2147483647, %v513_v43  ;;  %v506_v42 = vand.u32 2147483648, %v494_v51  ;;  %vm500_vm5 = vweird.f32 %v494_v51 }
 0x157   :  { %5748 = vrcp.f32 %v533_v60  ;;  %v504_v52 = vand.u32 2147483647, %v494_v51  ;;  %vm539_vm10 = vweird.f32 %v533_v60 }
 0x158   :  { %vm524_vm7 = vcmp.eq.f32.partialorder %v523_v41, 8.507059e+37 }
 0x159   :  { %vm505_vm8 = vcmp.eq.f32.partialorder %v504_v52, 8.507059e+37  ;;  %v364_v52 = vpop.f32.mrf.mxu0 }
 0x15b   :  { %v5745_v56 = vpop.eup %5744 }
 0x15c   :  { %v5747_v57 = vpop.eup %5746  ;;  %v515_v58 = vmul.f32 %v5745_v56, %v513_v43  ;;  %vm520_vm1 = vweird.f32 %v5745_v56 }
 0x15d   :  { %v6619_v33 = vpop.f32.mrf.mxu3  ;;  %v496_v62 = vmul.f32 %v5747_v57, %v494_v51  ;;  %v5749_v23 = vpop.eup %5748  ;;  %vm501_vm3 = vweird.f32 %v5747_v57  ;;  %vm521_vm4 = vmor %vm519_vm2, %vm520_vm1  ;;  %v543_v51 = vand.u32 2147483647, %v533_v60 }
 0x15e   :  { %v516_v63 = vsub.f32 1.0, %v515_v58  ;;  %v535_v32 = vmul.f32 %v5749_v23, %v533_v60  ;;  %vm502_vm6 = vmor %vm500_vm5, %vm501_vm3  ;;  %vm540_vm9 = vweird.f32 %v5749_v23 }
 0x15f   :  { %v497_v20 = vsub.f32 1.0, %v496_v62  ;;  %v526_v62 = vor.u32 1.1754944e-38, %v525_v31  ;;  %vm541_vm11 = vmor %vm539_vm10, %vm540_vm9  ;;  %vm544_vm12 = vcmp.eq.f32.partialorder %v543_v51, 8.507059e+37 }
 0x160   :  { %v517_v22 = vmul.f32 %v5745_v56, %v516_v63  ;;  %v536_v63 = vsub.f32 1.0, %v535_v32 }
 0x161   :  { %v498_v24 = vmul.f32 %v5747_v57, %v497_v20  ;;  %v507_v20 = vor.u32 1.1754944e-38, %v506_v42 }
 0x162   :  { %v518_v30 = vadd.f32 %v5745_v56, %v517_v22 }
 0x163   :  { %v499_v39 = vadd.f32 %v5747_v57, %v498_v24 }
 0x164   :  { %v522_v58 = vsel %vm521_vm4, %v5745_v56, %v518_v30 }
 0x165   :  { %v6621_v44 = vpop.f32.mrf.mxu3  ;;  %v503_v11 = vsel %vm502_vm6, %v5747_v57, %v499_v39  ;;  %v527_v22 = vsel %vm524_vm7, %v526_v62, %v522_v58  ;;  %v365_v58 = vadd.f32 %v6616_v28, %v364_v52 }
 0x166   :  { %v549_v24 = vmul.f32 0.0, %v527_v22 }
 0x16d   :  { %v6623_v55 = vpop.f32.mrf.mxu3 }
 0x175   :  { %v6625_v18 = vpop.f32.mrf.mxu3 }
 0x176   :  { %8007 = vst [vmem:[#allocation14_spill] sm:$0xff] %v6625_v18 }
 0x17d   :  { %v466_v29 = vpop.f32.mrf.mxu3 }
 0x17e   :  { %v469_v35 = vadd.f32 %v466_v29, %v311_v26  ;;  %v537_v26 = vmul.f32 %v5749_v23, %v536_v63  ;;  %v508_v29 = vsel %vm505_vm8, %v507_v20, %v503_v11 }
 0x180   :  { %5750 = vtanh.f32 %v469_v35  ;;  %v538_v3 = vadd.f32 %v5749_v23, %v537_v26  ;;  %v545_v35 = vand.u32 2147483648, %v533_v60 }
 0x182   :  { %v542_v56 = vsel %vm541_vm11, %v5749_v23, %v538_v3  ;;  %v546_v57 = vor.u32 1.1754944e-38, %v545_v35  ;;  %v212_v3 = vadd.f32 %v6607_v19, %v6571_v2 }
 0x184   :  { %v547_v31 = vsel %vm544_vm12, %v546_v57, %v542_v56 }
 0x186   :  { %v5751_v18 = vpop.eup %5750 }
 0x187   :  { %v550_v9 = vmul.f32 %v5751_v18, %v508_v29  ;;  %v314_v29 = vadd.f32 %v6630_v21, %v6591_v13 }
 0x189   :  { %v6633_v43 = vadd.f32 %v550_v9, %v549_v24  ;;  %v263_v9 = vadd.f32 %v6602_v17, %v6569_v1 }
 0x18b   :  { %5752 = vtanh.f32 %v6633_v43 }
 0x191   :  { %v5753_v30 = vpop.eup %5752 }
 0x192   :  { %v553_v32 = vmul.f32 %v5753_v30, %v547_v31 }
 0x194   :  { %554 = vst.msk [vmem:[#allocation2] sm:$0xff] %vm93_vm0, %v553_v32  ;;  %5367 = vmatmul.msk.f32.vlgmr.msra.gmra.mxu2 %vm93_vm0, %v553_v32  ;;  %5368 = vmatmul.msk.f32.vlgmr.msrb.gmra.mxu3 %vm93_vm0, %v553_v32 }
 0x195   :  { %5369 = vmatmul.msk.f32.vlgmr.msrb.gmra.mxu1 %vm93_vm0, %v553_v32  ;;  %763 = vmatpush.msra.mxu2 %v6491_v50 }
 0x196   :  { %784 = vmatpush.msrb.mxu3 %v6481_v47  ;;  %872 = vmatpush.msrb.mxu1 %v6443_v34 }
 0x197   :  { %764 = vmatpush.msra.mxu2 %v6501_v53 }
 0x198   :  { %785 = vmatpush.msrb.mxu3 %v6483_v48  ;;  %873 = vmatpush.msrb.mxu1 %v6452_v36 }
 0x199   :  { %765 = vmatpush.msra.mxu2 %v6524_v59 }
 0x19a   :  { %786 = vmatpush.msrb.mxu3 %v6488_v49  ;;  %874 = vmatpush.msrb.mxu1 %v6456_v38 }
 0x19b   :  { %766 = vmatpush.msra.mxu2 %v6540_v61 }
 0x19c   :  { %5370 = vmatmul.msk.f32.vlgmr.msrb.gmra.mxu2 %vm93_vm0, %v553_v32  ;;  %787 = vmatpush.msrb.mxu3 %v6504_v54 }
 0x19d   :  { %893 = vmatpush.msrb.mxu2 %v6432_v27  ;;  %875 = vmatpush.msrb.mxu1 %v6472_v45 }
 0x19f   :  { %894 = vmatpush.msrb.mxu2 %v6454_v37 }
 0x1a1   :  { %895 = vmatpush.msrb.mxu2 %v6460_v40 }
 0x1a3   :  { %896 = vmatpush.msrb.mxu2 %v6474_v46 }
 0x212   :  { %v617_v1 = vpop.f32.mrf.mxu1 }
 0x213   :  { %v620_v51 = vadd.f32 %v617_v1, %v314_v29 }
 0x217   :  { %v575_v60 = vpop.f32.mrf.mxu2  ;;  %v596_v18 = vpop.f32.mrf.mxu3 }
 0x218   :  { %v578_v23 = vadd.f32 %v575_v60, %v212_v3  ;;  %v599_v39 = vadd.f32 %v596_v18, %v263_v9 }
 0x21a   :  { %v5371_v41 = vmul.f32 -1.442695, %v578_v23  ;;  %v5372_v42 = vmul.f32 -1.442695, %v599_v39 }
 0x21c   :  { %5754 = vpow2.f32 %v5371_v41 }
 0x21d   :  { %5756 = vpow2.f32 %v5372_v42 }
 0x21f   :  { %v638_v62 = vpop.f32.mrf.mxu2 }
 0x220   :  { %v641_v63 = vadd.f32 %v638_v62, %v365_v58 }
 0x222   :  { %v5755_v11 = vpop.eup %5754  ;;  %v5373_v20 = vmul.f32 -1.442695, %v641_v63 }
 0x223   :  { %v5757_v22 = vpop.eup %5756  ;;  %v645_v2 = vadd.f32 1.0, %v5755_v11 }
 0x224   :  { %v664_v26 = vadd.f32 1.0, %v5757_v22  ;;  %5758 = vpow2.f32 %v5373_v20 }
 0x225   :  { %5760 = vrcp.f32 %v645_v2  ;;  %v657_v3 = vand.u32 2147483648, %v645_v2  ;;  %v655_v18 = vand.u32 2147483647, %v645_v2  ;;  %vm651_vm15 = vweird.f32 %v645_v2 }
 0x226   :  { %5762 = vrcp.f32 %v664_v26  ;;  %v676_v23 = vand.u32 2147483648, %v664_v26  ;;  %v674_v41 = vand.u32 2147483647, %v664_v26  ;;  %vm670_vm2 = vweird.f32 %v664_v26 }
 0x227   :  { %v658_v52 = vor.u32 1.1754944e-38, %v657_v3  ;;  %vm656_vm3 = vcmp.eq.f32.partialorder %v655_v18, 8.507059e+37 }
 0x228   :  { %v677_v63 = vor.u32 1.1754944e-38, %v676_v23  ;;  %vm675_vm5 = vcmp.eq.f32.partialorder %v674_v41, 8.507059e+37  ;;  %v215_v41 = vadd.f32 %v6607_v19, %v6577_v5 }
 0x22a   :  { %v5759_v24 = vpop.eup %5758 }
 0x22b   :  { %v5761_v35 = vpop.eup %5760  ;;  %v684_v56 = vadd.f32 1.0, %v5759_v24 }
 0x22c   :  { %v5763_v57 = vpop.eup %5762  ;;  %v647_v30 = vmul.f32 %v5761_v35, %v645_v2  ;;  %vm652_vm13 = vweird.f32 %v5761_v35 }
 0x22d   :  { %v666_v31 = vmul.f32 %v5763_v57, %v664_v26  ;;  %5764 = vrcp.f32 %v684_v56  ;;  %vm671_vm14 = vweird.f32 %v5763_v57  ;;  %vm653_vm1 = vmor %vm651_vm15, %vm652_vm13  ;;  %v696_v26 = vand.u32 2147483648, %v684_v56 }
 0x22e   :  { %v648_v32 = vsub.f32 1.0, %v647_v30  ;;  %5766 = vtanh.f32 %v620_v51  ;;  %vm672_vm4 = vmor %vm670_vm2, %vm671_vm14  ;;  %vm690_vm7 = vweird.f32 %v684_v56 }
 0x22f   :  { %v667_v9 = vsub.f32 1.0, %v666_v31 }
 0x230   :  { %v649_v60 = vmul.f32 %v5761_v35, %v648_v32 }
 0x231   :  { %v668_v39 = vmul.f32 %v5763_v57, %v667_v9  ;;  %v697_v9 = vor.u32 1.1754944e-38, %v696_v26 }
 0x232   :  { %v650_v13 = vadd.f32 %v5761_v35, %v649_v60 }
 0x233   :  { %v5765_v42 = vpop.eup %5764  ;;  %v669_v58 = vadd.f32 %v5763_v57, %v668_v39 }
 0x234   :  { %v654_v62 = vsel %vm653_vm1, %v5761_v35, %v650_v13  ;;  %v686_v11 = vmul.f32 %v5765_v42, %v684_v56  ;;  %v5767_v20 = vpop.eup %5766  ;;  %vm691_vm6 = vweird.f32 %v5765_v42  ;;  %v694_v35 = vand.u32 2147483647, %v684_v56 }
 0x235   :  { %v659_v22 = vsel %vm656_vm3, %v658_v52, %v654_v62  ;;  %v673_v1 = vsel %vm672_vm4, %v5763_v57, %v669_v58  ;;  %vm692_vm8 = vmor %vm690_vm7, %vm691_vm6  ;;  %v367_v62 = vpop.f32.mrf.mxu0 }
 0x236   :  { %v701_v29 = vmul.f32 %v5767_v20, %v659_v22  ;;  %v678_v24 = vsel %vm675_vm5, %v677_v63, %v673_v1  ;;  %v687_v51 = vsub.f32 1.0, %v686_v11  ;;  %vm695_vm9 = vcmp.eq.f32.partialorder %v694_v35, 8.507059e+37 }
 0x237   :  { %v700_v30 = vmul.f32 %v678_v24, %v6633_v43  ;;  %v266_v43 = vadd.f32 %v6602_v17, %v6575_v4  ;;  %v368_v11 = vadd.f32 %v6616_v28, %v367_v62 }
 0x238   :  { %v688_v2 = vmul.f32 %v5765_v42, %v687_v51 }
 0x239   :  { %v6665_v31 = vadd.f32 %v701_v29, %v700_v30 }
 0x23a   :  { %v689_v32 = vadd.f32 %v5765_v42, %v688_v2  ;;  %v317_v2 = vadd.f32 %v6630_v21, %v6597_v16 }
 0x23b   :  { %5768 = vtanh.f32 %v6665_v31 }
 0x23c   :  { %v693_v3 = vsel %vm692_vm8, %v5765_v42, %v689_v32 }
 0x23d   :  { %v698_v60 = vsel %vm695_vm9, %v697_v9, %v693_v3 }
 0x241   :  { %v5769_v57 = vpop.eup %5768 }
 0x242   :  { %v704_v18 = vmul.f32 %v5769_v57, %v698_v60 }
 0x244   :  { %705 = vst.msk [vmem:[#allocation2 + $0x8] sm:$0xff] %vm93_vm0, %v704_v18  ;;  %5374 = vmatmul.msk.f32.vlgmr.msra.gmra.mxu3 %vm93_vm0, %v704_v18  ;;  %5375 = vmatmul.msk.f32.vlgmr.msra.gmra.mxu1 %vm93_vm0, %v704_v18 }
 0x245   :  { %5376 = vmatmul.msk.f32.vlgmr.msra.gmra.mxu2 %vm93_vm0, %v704_v18  ;;  %914 = vmatpush.msra.mxu3 %v6491_v50 }
 0x246   :  { %935 = vmatpush.msra.mxu1 %v6481_v47  ;;  %1023 = vmatpush.msra.mxu2 %v6443_v34 }
 0x247   :  { %915 = vmatpush.msra.mxu3 %v6501_v53 }
 0x248   :  { %936 = vmatpush.msra.mxu1 %v6483_v48  ;;  %1024 = vmatpush.msra.mxu2 %v6452_v36 }
 0x249   :  { %916 = vmatpush.msra.mxu3 %v6524_v59 }
 0x24a   :  { %937 = vmatpush.msra.mxu1 %v6488_v49  ;;  %1025 = vmatpush.msra.mxu2 %v6456_v38 }
 0x24b   :  { %917 = vmatpush.msra.mxu3 %v6540_v61 }
 0x24c   :  { %5377 = vmatmul.msk.f32.vlgmr.msrb.gmra.mxu3 %vm93_vm0, %v704_v18  ;;  %938 = vmatpush.msra.mxu1 %v6504_v54 }
 0x24d   :  { %1044 = vmatpush.msrb.mxu3 %v6432_v27  ;;  %1026 = vmatpush.msra.mxu2 %v6472_v45 }
 0x24f   :  { %1045 = vmatpush.msrb.mxu3 %v6454_v37 }
 0x251   :  { %1046 = vmatpush.msrb.mxu3 %v6460_v40 }
 0x253   :  { %1047 = vmatpush.msrb.mxu3 %v6474_v46 }
 0x2c1   :  { %v747_v56 = vpop.f32.mrf.mxu1 }
 0x2c2   :  { %v750_v23 = vadd.f32 %v747_v56, %v266_v43 }
 0x2c4   :  { %v5379_v39 = vmul.f32 -1.442695, %v750_v23 }
 0x2c6   :  { %5770 = vpow2.f32 %v5379_v39 }
 0x2c7   :  { %v726_v13 = vpop.f32.mrf.mxu3 }
 0x2c8   :  { %v729_v42 = vadd.f32 %v726_v13, %v215_v41  ;;  %v768_v30 = vpop.f32.mrf.mxu2 }
 0x2c9   :  { %v771_v3 = vadd.f32 %v768_v30, %v317_v2 }
 0x2ca   :  { %v5378_v52 = vmul.f32 -1.442695, %v729_v42 }
 0x2cc   :  { %v5771_v58 = vpop.eup %5770  ;;  %5772 = vpow2.f32 %v5378_v52 }
 0x2cd   :  { %v815_v63 = vadd.f32 1.0, %v5771_v58 }
 0x2cf   :  { %5774 = vrcp.f32 %v815_v63  ;;  %v789_v20 = vpop.f32.mrf.mxu3  ;;  %v827_v18 = vand.u32 2147483648, %v815_v63  ;;  %vm821_vm11 = vweird.f32 %v815_v63  ;;  %v825_v56 = vand.u32 2147483647, %v815_v63 }
 0x2d0   :  { %v792_v22 = vadd.f32 %v789_v20, %v368_v11 }
 0x2d1   :  { %v828_v13 = vor.u32 1.1754944e-38, %v827_v18  ;;  %vm826_vm15 = vcmp.eq.f32.partialorder %v825_v56, 8.507059e+37 }
 0x2d2   :  { %v5773_v4 = vpop.eup %5772  ;;  %v5380_v1 = vmul.f32 -1.442695, %v792_v22 }
 0x2d3   :  { %v796_v29 = vadd.f32 1.0, %v5773_v4 }
 0x2d4   :  { %5776 = vpow2.f32 %v5380_v1 }
 0x2d5   :  { %v5775_v24 = vpop.eup %5774  ;;  %5778 = vrcp.f32 %v796_v29  ;;  %v808_v23 = vand.u32 2147483648, %v796_v29  ;;  %v806_v41 = vand.u32 2147483647, %v796_v29  ;;  %vm802_vm14 = vweird.f32 %v796_v29 }
 0x2d6   :  { %v817_v5 = vmul.f32 %v5775_v24, %v815_v63  ;;  %vm822_vm10 = vweird.f32 %v5775_v24 }
 0x2d7   :  { %vm823_vm12 = vmor %vm821_vm11, %vm822_vm10  ;;  %v809_v58 = vor.u32 1.1754944e-38, %v808_v23  ;;  %vm807_vm2 = vcmp.eq.f32.partialorder %v806_v41, 8.507059e+37 }
 0x2d8   :  { %v818_v51 = vsub.f32 1.0, %v817_v5 }
 0x2da   :  { %v5777_v32 = vpop.eup %5776  ;;  %v819_v26 = vmul.f32 %v5775_v24, %v818_v51 }
 0x2db   :  { %v5779_v35 = vpop.eup %5778  ;;  %v835_v9 = vadd.f32 1.0, %v5777_v32 }
 0x2dc   :  { %v798_v57 = vmul.f32 %v5779_v35, %v796_v29  ;;  %v820_v60 = vadd.f32 %v5775_v24, %v819_v26  ;;  %vm803_vm13 = vweird.f32 %v5779_v35 }
 0x2dd   :  { %5780 = vrcp.f32 %v835_v9  ;;  %vm804_vm1 = vmor %vm802_vm14, %vm803_vm13  ;;  %v847_v29 = vand.u32 2147483648, %v835_v9  ;;  %vm841_vm4 = vweird.f32 %v835_v9  ;;  %v845_v2 = vand.u32 2147483647, %v835_v9 }
 0x2de   :  { %v799_v43 = vsub.f32 1.0, %v798_v57  ;;  %5782 = vtanh.f32 %v771_v3  ;;  %v824_v16 = vsel %vm823_vm12, %v5775_v24, %v820_v60  ;;  %v370_v60 = vpop.f32.mrf.mxu0 }
 0x2df   :  { %v829_v62 = vsel %vm826_vm15, %v828_v13, %v824_v16  ;;  %v848_v26 = vor.u32 1.1754944e-38, %v847_v29  ;;  %vm846_vm6 = vcmp.eq.f32.partialorder %v845_v2, 8.507059e+37 }
 0x2e0   :  { %v800_v39 = vmul.f32 %v5779_v35, %v799_v43  ;;  %v851_v4 = vmul.f32 %v829_v62, %v6665_v31 }
 0x2e2   :  { %v801_v42 = vadd.f32 %v5779_v35, %v800_v39 }
 0x2e3   :  { %v5781_v52 = vpop.eup %5780 }
 0x2e4   :  { %v805_v11 = vsel %vm804_vm1, %v5779_v35, %v801_v42  ;;  %v837_v20 = vmul.f32 %v5781_v52, %v835_v9  ;;  %v5783_v22 = vpop.eup %5782  ;;  %vm842_vm3 = vweird.f32 %v5781_v52  ;;  %v269_v9 = vadd.f32 %v6602_v17, %v6581_v7 }
 0x2e5   :  { %v810_v63 = vsel %vm807_vm2, %v809_v58, %v805_v11  ;;  %vm843_vm5 = vmor %vm841_vm4, %vm842_vm3  ;;  %v320_v7 = vadd.f32 %v6630_v21, %v6611_v25 }
 0x2e6   :  { %v852_v1 = vmul.f32 %v5783_v22, %v810_v63  ;;  %v838_v5 = vsub.f32 1.0, %v837_v20 }
 0x2e8   :  { %v6697_v51 = vadd.f32 %v852_v1, %v851_v4  ;;  %v839_v24 = vmul.f32 %v5781_v52, %v838_v5 }
 0x2ea   :  { %5784 = vtanh.f32 %v6697_v51  ;;  %v840_v30 = vadd.f32 %v5781_v52, %v839_v24 }
 0x2ec   :  { %v844_v32 = vsel %vm843_vm5, %v5781_v52, %v840_v30 }
 0x2ed   :  { %v849_v3 = vsel %vm846_vm6, %v848_v26, %v844_v32 }
 0x2f0   :  { %v5785_v35 = vpop.eup %5784 }
 0x2f1   :  { %v855_v57 = vmul.f32 %v5785_v35, %v849_v3 }
 0x2f3   :  { %856 = vst.msk [vmem:[#allocation2 + $0x10] sm:$0xff] %vm93_vm0, %v855_v57  ;;  %5381 = vmatmul.msk.f32.vlgmr.msrb.gmra.mxu1 %vm93_vm0, %v855_v57  ;;  %5382 = vmatmul.msk.f32.vlgmr.msrb.gmra.mxu2 %vm93_vm0, %v855_v57 }
 0x2f4   :  { %5383 = vmatmul.msk.f32.vlgmr.msra.gmra.mxu3 %vm93_vm0, %v855_v57  ;;  %1065 = vmatpush.msrb.mxu1 %v6491_v50 }
 0x2f5   :  { %1086 = vmatpush.msrb.mxu2 %v6481_v47  ;;  %1174 = vmatpush.msra.mxu3 %v6443_v34  ;;  %v218_v34 = vadd.f32 %v6607_v19, %v6583_v8 }
 0x2f6   :  { %1066 = vmatpush.msrb.mxu1 %v6501_v53 }
 0x2f7   :  { %1087 = vmatpush.msrb.mxu2 %v6483_v48  ;;  %1175 = vmatpush.msra.mxu3 %v6452_v36 }
 0x2f8   :  { %1067 = vmatpush.msrb.mxu1 %v6524_v59 }
 0x2f9   :  { %1088 = vmatpush.msrb.mxu2 %v6488_v49  ;;  %1176 = vmatpush.msra.mxu3 %v6456_v38 }
 0x2fa   :  { %1068 = vmatpush.msrb.mxu1 %v6540_v61 }
 0x2fb   :  { %5384 = vmatmul.msk.f32.vlgmr.msra.gmra.mxu1 %vm93_vm0, %v855_v57  ;;  %1089 = vmatpush.msrb.mxu2 %v6504_v54 }
 0x2fc   :  { %1195 = vmatpush.msra.mxu1 %v6432_v27  ;;  %1177 = vmatpush.msra.mxu3 %v6472_v45  ;;  %v371_v45 = vadd.f32 %v6616_v28, %v370_v60 }
 0x2fe   :  { %1196 = vmatpush.msra.mxu1 %v6454_v37 }
 0x300   :  { %1197 = vmatpush.msra.mxu1 %v6460_v40 }
 0x302   :  { %1198 = vmatpush.msra.mxu1 %v6474_v46 }
 0x370   :  { %v877_v36 = vpop.f32.mrf.mxu1 }
 0x371   :  { %v880_v38 = vadd.f32 %v877_v36, %v218_v34 }
 0x373   :  { %v5385_v31 = vmul.f32 -1.442695, %v880_v38 }
 0x375   :  { %5786 = vpow2.f32 %v5385_v31 }
 0x376   :  { %v898_v27 = vpop.f32.mrf.mxu2 }
 0x377   :  { %v901_v18 = vadd.f32 %v898_v27, %v269_v9  ;;  %v919_v41 = vpop.f32.mrf.mxu3 }
 0x378   :  { %v940_v37 = vpop.f32.mrf.mxu1  ;;  %v922_v52 = vadd.f32 %v919_v41, %v320_v7  ;;  %v6743_v7 = vld [vmem:[#allocation6 + $0x30] sm:$0xff] }
 0x379   :  { %v5386_v43 = vmul.f32 -1.442695, %v901_v18  ;;  %v943_v40 = vadd.f32 %v940_v37, %v371_v45 }
 0x37b   :  { %v5787_v56 = vpop.eup %5786  ;;  %5788 = vpow2.f32 %v5386_v43  ;;  %v5387_v23 = vmul.f32 -1.442695, %v943_v40 }
 0x37c   :  { %v947_v39 = vadd.f32 1.0, %v5787_v56 }
 0x37d   :  { %5790 = vpow2.f32 %v5387_v23 }
 0x37e   :  { %5792 = vrcp.f32 %v947_v39  ;;  %v959_v20 = vand.u32 2147483648, %v947_v39  ;;  %v957_v63 = vand.u32 2147483647, %v947_v39  ;;  %vm953_vm8 = vweird.f32 %v947_v39 }
 0x380   :  { %v960_v25 = vor.u32 1.1754944e-38, %v959_v20  ;;  %vm958_vm10 = vcmp.eq.f32.partialorder %v957_v63, 8.507059e+37 }
 0x381   :  { %v5789_v8 = vpop.eup %5788 }
 0x382   :  { %v966_v16 = vadd.f32 1.0, %v5789_v8 }
 0x383   :  { %v5791_v13 = vpop.eup %5790 }
 0x384   :  { %v5793_v42 = vpop.eup %5792  ;;  %5794 = vrcp.f32 %v966_v16  ;;  %v986_v62 = vadd.f32 1.0, %v5791_v13  ;;  %v978_v32 = vand.u32 2147483648, %v966_v16  ;;  %v976_v57 = vand.u32 2147483647, %v966_v16 }
 0x385   :  { %v949_v58 = vmul.f32 %v5793_v42, %v947_v39  ;;  %vm954_vm7 = vweird.f32 %v5793_v42  ;;  %vm972_vm12 = vweird.f32 %v966_v16 }
 0x386   :  { %5796 = vrcp.f32 %v986_v62  ;;  %vm955_vm9 = vmor %vm953_vm8, %vm954_vm7  ;;  %v979_v31 = vor.u32 1.1754944e-38, %v978_v32  ;;  %vm977_vm14 = vcmp.eq.f32.partialorder %v976_v57, 8.507059e+37  ;;  %v998_v43 = vand.u32 2147483648, %v986_v62 }
 0x387   :  { %v950_v11 = vsub.f32 1.0, %v949_v58  ;;  %5798 = vtanh.f32 %v922_v52  ;;  %vm992_vm1 = vweird.f32 %v986_v62  ;;  %v996_v40 = vand.u32 2147483647, %v986_v62 }
 0x388   :  { %v999_v23 = vor.u32 1.1754944e-38, %v998_v43 }
 0x389   :  { %v951_v22 = vmul.f32 %v5793_v42, %v950_v11  ;;  %vm997_vm3 = vcmp.eq.f32.partialorder %v996_v40, 8.507059e+37 }
 0x38a   :  { %v5795_v4 = vpop.eup %5794 }
 0x38b   :  { %v968_v1 = vmul.f32 %v5795_v4, %v966_v16  ;;  %v952_v5 = vadd.f32 %v5793_v42, %v951_v22  ;;  %vm973_vm11 = vweird.f32 %v5795_v4  ;;  %v6748_v16 = vld [vmem:[#allocation6 + $0x28] sm:$0xff]  ;;  %v323_v22 = vadd.f32 %v6630_v21, %v6619_v33 }
 0x38c   :  { %v5797_v24 = vpop.eup %5796  ;;  %vm974_vm13 = vmor %vm972_vm12, %vm973_vm11 }
 0x38d   :  { %v969_v29 = vsub.f32 1.0, %v968_v1  ;;  %v956_v30 = vsel %vm955_vm9, %v5793_v42, %v952_v5  ;;  %v5799_v2 = vpop.eup %5798  ;;  %v988_v35 = vmul.f32 %v5797_v24, %v986_v62  ;;  %vm993_vm15 = vweird.f32 %v5797_v24 }
 0x38e   :  { %v961_v26 = vsel %vm958_vm10, %v960_v25, %v956_v30  ;;  %vm994_vm2 = vmor %vm992_vm1, %vm993_vm15 }
 0x38f   :  { %v970_v3 = vmul.f32 %v5795_v4, %v969_v29  ;;  %v1003_v34 = vmul.f32 %v5799_v2, %v961_v26  ;;  %v989_v36 = vsub.f32 1.0, %v988_v35 }
 0x391   :  { %v971_v38 = vadd.f32 %v5795_v4, %v970_v3  ;;  %v990_v27 = vmul.f32 %v5797_v24, %v989_v36 }
 0x393   :  { %v975_v9 = vsel %vm974_vm13, %v5795_v4, %v971_v38  ;;  %v991_v37 = vadd.f32 %v5797_v24, %v990_v27 }
 0x394   :  { %v980_v60 = vsel %vm977_vm14, %v979_v31, %v975_v9 }
 0x395   :  { %v1002_v45 = vmul.f32 %v980_v60, %v6697_v51  ;;  %v995_v56 = vsel %vm994_vm2, %v5797_v24, %v991_v37  ;;  %v6738_v51 = vld [vmem:[#allocation6 + $0x38] sm:$0xff] }
 0x396   :  { %v1000_v8 = vsel %vm997_vm3, %v999_v23, %v995_v56 }
 0x397   :  { %v6729_v18 = vadd.f32 %v1003_v34, %v1002_v45 }
 0x399   :  { %5800 = vtanh.f32 %v6729_v18 }
 0x39f   :  { %v5801_v39 = vpop.eup %5800 }
 0x3a0   :  { %v1006_v41 = vmul.f32 %v5801_v39, %v1000_v8 }
 0x3a2   :  { %1007 = vst.msk [vmem:[#allocation2 + $0x18] sm:$0xff] %vm93_vm0, %v1006_v41  ;;  %5388 = vmatmul.msk.f32.vlgmr.msra.gmra.mxu2 %vm93_vm0, %v1006_v41  ;;  %5389 = vmatmul.msk.f32.vlgmr.msrb.gmra.mxu3 %vm93_vm0, %v1006_v41 }
 0x3a3   :  { %5390 = vmatmul.msk.f32.vlgmr.msrb.gmra.mxu1 %vm93_vm0, %v1006_v41  ;;  %1216 = vmatpush.msra.mxu2 %v6491_v50 }
 0x3a4   :  { %1237 = vmatpush.msrb.mxu3 %v6481_v47  ;;  %1346 = vmatpush.msrb.mxu1 %v6738_v51  ;;  %v221_v47 = vadd.f32 %v6607_v19, %v6589_v12 }
 0x3a5   :  { %1217 = vmatpush.msra.mxu2 %v6501_v53 }
 0x3a6   :  { %1238 = vmatpush.msrb.mxu3 %v6483_v48  ;;  %1347 = vmatpush.msrb.mxu1 %v6743_v7  ;;  %v272_v48 = vadd.f32 %v6602_v17, %v6587_v10 }
 0x3a7   :  { %1218 = vmatpush.msra.mxu2 %v6524_v59 }
 0x3a8   :  { %1239 = vmatpush.msrb.mxu3 %v6488_v49  ;;  %1348 = vmatpush.msrb.mxu1 %v6748_v16 }
 0x3a9   :  { %1219 = vmatpush.msra.mxu2 %v6540_v61 }
 0x3aa   :  { %5391 = vmatmul.msk.f32.vlgmr.msrb.gmra.mxu2 %vm93_vm0, %v1006_v41  ;;  %1240 = vmatpush.msrb.mxu3 %v6504_v54 }
 0x3ab   :  { %1367 = vmatpush.msrb.mxu2 %v6491_v50  ;;  %1349 = vmatpush.msrb.mxu1 %v6474_v46  ;;  %v373_v46 = vpop.f32.mrf.mxu0 }
 0x3ad   :  { %1368 = vmatpush.msrb.mxu2 %v6501_v53  ;;  %v374_v53 = vadd.f32 %v6616_v28, %v373_v46  ;;  %v6158_v46 = vld [vmem:[#allocation6 + $0x58] sm:$0xff] }
 0x3af   :  { %1369 = vmatpush.msrb.mxu2 %v6524_v59 }
 0x3b1   :  { %1370 = vmatpush.msrb.mxu2 %v6540_v61 }
 0x420   :  { %v1070_v10 = vpop.f32.mrf.mxu1 }
 0x421   :  { %v1073_v1 = vadd.f32 %v1070_v10, %v323_v22  ;;  %v224_v10 = vadd.f32 %v6607_v19, %v6595_v15 }
 0x425   :  { %v1028_v49 = vpop.f32.mrf.mxu2  ;;  %v1049_v13 = vpop.f32.mrf.mxu3 }
 0x426   :  { %v1031_v42 = vadd.f32 %v1028_v49, %v221_v47  ;;  %v1052_v54 = vadd.f32 %v1049_v13, %v272_v48 }
 0x428   :  { %v5392_v52 = vmul.f32 -1.442695, %v1031_v42  ;;  %v5393_v50 = vmul.f32 -1.442695, %v1052_v54 }
 0x42a   :  { %5802 = vpow2.f32 %v5392_v52 }
 0x42b   :  { %5804 = vpow2.f32 %v5393_v50 }
 0x42d   :  { %v1091_v59 = vpop.f32.mrf.mxu2 }
 0x42e   :  { %v1094_v58 = vadd.f32 %v1091_v59, %v374_v53  ;;  %v6159_v53 = vld [vmem:[#allocation6 + $0x70] sm:$0xff] }
 0x42f   :  { %v6160_v59 = vld [vmem:[#allocation6 + $0x50] sm:$0xff] }
 0x430   :  { %v5803_v61 = vpop.eup %5802  ;;  %v5394_v62 = vmul.f32 -1.442695, %v1094_v58  ;;  %v6161_v58 = vld [vmem:[#allocation6 + $0x68] sm:$0xff] }
 0x431   :  { %v5805_v11 = vpop.eup %5804  ;;  %v1098_v12 = vadd.f32 1.0, %v5803_v61  ;;  %v6162_v61 = vld [vmem:[#allocation6 + $0x48] sm:$0xff] }
 0x432   :  { %v1117_v20 = vadd.f32 1.0, %v5805_v11  ;;  %5806 = vpow2.f32 %v5394_v62  ;;  %v6163_v62 = vld [vmem:[#allocation6 + $0x60] sm:$0xff] }
 0x433   :  { %5808 = vrcp.f32 %v1098_v12  ;;  %v1110_v2 = vand.u32 2147483648, %v1098_v12  ;;  %v1108_v35 = vand.u32 2147483647, %v1098_v12  ;;  %vm1104_vm6 = vweird.f32 %v1098_v12  ;;  %v6164_v11 = vld [vmem:[#allocation6 + $0x20] sm:$0xff] }
 0x434   :  { %5810 = vrcp.f32 %v1117_v20  ;;  %v1129_v3 = vand.u32 2147483648, %v1117_v20  ;;  %v1127_v34 = vand.u32 2147483647, %v1117_v20  ;;  %vm1123_vm8 = vweird.f32 %v1117_v20 }
 0x435   :  { %v1111_v38 = vor.u32 1.1754944e-38, %v1110_v2  ;;  %vm1109_vm9 = vcmp.eq.f32.partialorder %v1108_v35, 8.507059e+37  ;;  %v326_v35 = vadd.f32 %v6630_v21, %v6621_v44 }
 0x436   :  { %v1130_v60 = vor.u32 1.1754944e-38, %v1129_v3  ;;  %vm1128_vm11 = vcmp.eq.f32.partialorder %v1127_v34, 8.507059e+37 }
 0x438   :  { %v5807_v63 = vpop.eup %5806 }
 0x439   :  { %v5809_v4 = vpop.eup %5808  ;;  %v1137_v5 = vadd.f32 1.0, %v5807_v63 }
 0x43a   :  { %v5811_v25 = vpop.eup %5810  ;;  %v1100_v24 = vmul.f32 %v5809_v4, %v1098_v12  ;;  %vm1105_vm4 = vweird.f32 %v5809_v4 }
 0x43b   :  { %v1119_v29 = vmul.f32 %v5811_v25, %v1117_v20  ;;  %5812 = vrcp.f32 %v1137_v5  ;;  %vm1124_vm5 = vweird.f32 %v5811_v25  ;;  %vm1106_vm7 = vmor %vm1104_vm6, %vm1105_vm4  ;;  %v1149_v48 = vand.u32 2147483648, %v1137_v5 }
 0x43c   :  { %v1101_v30 = vsub.f32 1.0, %v1100_v24  ;;  %5814 = vtanh.f32 %v1073_v1  ;;  %vm1125_vm10 = vmor %vm1123_vm8, %vm1124_vm5  ;;  %vm1143_vm13 = vweird.f32 %v1137_v5  ;;  %v1147_v49 = vand.u32 2147483647, %v1137_v5 }
 0x43d   :  { %v1120_v32 = vsub.f32 1.0, %v1119_v29  ;;  %v1150_v42 = vor.u32 1.1754944e-38, %v1149_v48 }
 0x43e   :  { %v1102_v26 = vmul.f32 %v5809_v4, %v1101_v30  ;;  %vm1148_vm15 = vcmp.eq.f32.partialorder %v1147_v49, 8.507059e+37 }
 0x43f   :  { %v1121_v57 = vmul.f32 %v5811_v25, %v1120_v32 }
 0x440   :  { %v1103_v33 = vadd.f32 %v5809_v4, %v1102_v26 }
 0x441   :  { %v5813_v36 = vpop.eup %5812  ;;  %v1122_v31 = vadd.f32 %v5811_v25, %v1121_v57 }
 0x442   :  { %v1107_v9 = vsel %vm1106_vm7, %v5809_v4, %v1103_v33  ;;  %v1139_v27 = vmul.f32 %v5813_v36, %v1137_v5  ;;  %v5815_v45 = vpop.eup %5814  ;;  %vm1144_vm12 = vweird.f32 %v5813_v36  ;;  %v376_v5 = vpop.f32.mrf.mxu0 }
 0x443   :  { %v1112_v37 = vsel %vm1109_vm9, %v1111_v38, %v1107_v9  ;;  %v1126_v43 = vsel %vm1125_vm10, %v5811_v25, %v1122_v31  ;;  %vm1145_vm14 = vmor %vm1143_vm13, %vm1144_vm12  ;;  %v377_v24 = vadd.f32 %v6616_v28, %v376_v5  ;;  %v6813_v5 = vld [vmem:[%s7996_s5 + $0x3] ss:$0 sm:$0xff] }
 0x444   :  { %v1154_v40 = vmul.f32 %v5815_v45, %v1112_v37  ;;  %v1131_v56 = vsel %vm1128_vm11, %v1130_v60, %v1126_v43  ;;  %v1140_v23 = vsub.f32 1.0, %v1139_v27 }
 0x445   :  { %v1153_v39 = vmul.f32 %v1131_v56, %v6729_v18  ;;  %v6157_v18 = vld [vmem:[#allocation6 + $0x78] sm:$0xff] }
 0x446   :  { %v1141_v8 = vmul.f32 %v5813_v36, %v1140_v23 }
 0x447   :  { %v6767_v41 = vadd.f32 %v1154_v40, %v1153_v39 }
 0x448   :  { %v1142_v47 = vadd.f32 %v5813_v36, %v1141_v8 }
 0x449   :  { %5816 = vtanh.f32 %v6767_v41 }
 0x44a   :  { %v1146_v13 = vsel %vm1145_vm14, %v5813_v36, %v1142_v47 }
 0x44b   :  { %v1151_v52 = vsel %vm1148_vm15, %v1150_v42, %v1146_v13 }
 0x44f   :  { %v5817_v54 = vpop.eup %5816 }
 0x450   :  { %v1157_v50 = vmul.f32 %v5817_v54, %v1151_v52 }
 0x452   :  { %1158 = vst.msk [vmem:[#allocation2 + $0x20] sm:$0xff] %vm93_vm0, %v1157_v50  ;;  %5395 = vmatmul.msk.f32.vlgmr.msra.gmra.mxu3 %vm93_vm0, %v1157_v50  ;;  %5396 = vmatmul.msk.f32.vlgmr.msra.gmra.mxu1 %vm93_vm0, %v1157_v50 }
 0x453   :  { %5397 = vmatmul.msk.f32.vlgmr.msra.gmra.mxu2 %vm93_vm0, %v1157_v50  ;;  %1388 = vmatpush.msra.mxu3 %v6157_v18 }
 0x454   :  { %1497 = vmatpush.msra.mxu1 %v6738_v51  ;;  %1518 = vmatpush.msra.mxu2 %v6158_v46  ;;  %v6165_v51 = vld [vmem:[#allocation6 + $0x40] sm:$0xff] }
 0x455   :  { %1389 = vmatpush.msra.mxu3 %v6159_v53 }
 0x456   :  { %1498 = vmatpush.msra.mxu1 %v6743_v7  ;;  %1519 = vmatpush.msra.mxu2 %v6160_v59  ;;  %v275_v7 = vadd.f32 %v6602_v17, %v6593_v14 }
 0x457   :  { %1390 = vmatpush.msra.mxu3 %v6161_v58 }
 0x458   :  { %1499 = vmatpush.msra.mxu1 %v6748_v16  ;;  %1520 = vmatpush.msra.mxu2 %v6162_v61 }
 0x459   :  { %1391 = vmatpush.msra.mxu3 %v6163_v62 }
 0x45a   :  { %5398 = vmatmul.msk.f32.vlgmr.msrb.gmra.mxu3 %vm93_vm0, %v1157_v50  ;;  %1500 = vmatpush.msra.mxu1 %v6164_v11 }
 0x45b   :  { %1539 = vmatpush.msrb.mxu3 %v6157_v18  ;;  %1521 = vmatpush.msra.mxu2 %v6165_v51  ;;  %v6799_v51 = vld [vmem:[%s7996_s5] ss:$0 sm:$0xff] }
 0x45d   :  { %1540 = vmatpush.msrb.mxu3 %v6159_v53 }
 0x45f   :  { %1541 = vmatpush.msrb.mxu3 %v6161_v58 }
 0x461   :  { %1542 = vmatpush.msrb.mxu3 %v6163_v62 }
 0x4cf   :  { %v1200_v12 = vpop.f32.mrf.mxu1 }
 0x4d0   :  { %v1203_v20 = vadd.f32 %v1200_v12, %v275_v7  ;;  %v227_v7 = vadd.f32 %v6799_v51, %v6567_v0  ;;  %v6806_v12 = vld [vmem:[%s7996_s5 + $0x1] ss:$0 sm:$0xff] }
 0x4d2   :  { %v5400_v16 = vmul.f32 -1.442695, %v1203_v20  ;;  %v278_v20 = vadd.f32 %v6806_v12, %v6579_v6 }
 0x4d4   :  { %5818 = vpow2.f32 %v5400_v16 }
 0x4d5   :  { %v1179_v22 = vpop.f32.mrf.mxu3 }
 0x4d6   :  { %v1182_v63 = vadd.f32 %v1179_v22, %v224_v10  ;;  %v1221_v26 = vpop.f32.mrf.mxu2 }
 0x4d7   :  { %v1224_v33 = vadd.f32 %v1221_v26, %v326_v35  ;;  %v6828_v35 = vld [vmem:[%s7996_s5 + $0x2] ss:$0 sm:$0xff] }
 0x4d8   :  { %v5399_v4 = vmul.f32 -1.442695, %v1182_v63 }
 0x4da   :  { %v5819_v1 = vpop.eup %5818  ;;  %5820 = vpow2.f32 %v5399_v4 }
 0x4db   :  { %v1268_v25 = vadd.f32 1.0, %v5819_v1 }
 0x4dd   :  { %5822 = vrcp.f32 %v1268_v25  ;;  %v1242_v29 = vpop.f32.mrf.mxu3  ;;  %v1280_v31 = vand.u32 2147483648, %v1268_v25  ;;  %vm1274_vm2 = vweird.f32 %v1268_v25  ;;  %v1278_v60 = vand.u32 2147483647, %v1268_v25 }
 0x4de   :  { %v1245_v30 = vadd.f32 %v1242_v29, %v377_v24 }
 0x4df   :  { %v1281_v21 = vor.u32 1.1754944e-38, %v1280_v31  ;;  %vm1279_vm6 = vcmp.eq.f32.partialorder %v1278_v60, 8.507059e+37 }
 0x4e0   :  { %v5821_v14 = vpop.eup %5820  ;;  %v5401_v17 = vmul.f32 -1.442695, %v1245_v30 }
 0x4e1   :  { %v1249_v2 = vadd.f32 1.0, %v5821_v14 }
 0x4e2   :  { %5824 = vpow2.f32 %v5401_v17 }
 0x4e3   :  { %v5823_v32 = vpop.eup %5822  ;;  %5826 = vrcp.f32 %v1249_v2  ;;  %v1261_v27 = vand.u32 2147483648, %v1249_v2  ;;  %v1259_v37 = vand.u32 2147483647, %v1249_v2  ;;  %vm1255_vm5 = vweird.f32 %v1249_v2 }
 0x4e4   :  { %v1270_v15 = vmul.f32 %v5823_v32, %v1268_v25  ;;  %vm1275_vm1 = vweird.f32 %v5823_v32 }
 0x4e5   :  { %vm1276_vm3 = vmor %vm1274_vm2, %vm1275_vm1  ;;  %v1262_v56 = vor.u32 1.1754944e-38, %v1261_v27  ;;  %vm1260_vm8 = vcmp.eq.f32.partialorder %v1259_v37, 8.507059e+37 }
 0x4e6   :  { %v1271_v19 = vsub.f32 1.0, %v1270_v15  ;;  %v1629_v15 = vld [vmem:[%s7997_s6 + $0x8] sm:$0xff] }
 0x4e8   :  { %v5825_v3 = vpop.eup %5824  ;;  %v1272_v57 = vmul.f32 %v5823_v32, %v1271_v19 }
 0x4e9   :  { %v5827_v34 = vpop.eup %5826  ;;  %v1288_v28 = vadd.f32 1.0, %v5825_v3  ;;  %v329_v3 = vadd.f32 %v6828_v35, %v6623_v55 }
 0x4ea   :  { %v1251_v36 = vmul.f32 %v5827_v34, %v1249_v2  ;;  %v1273_v38 = vadd.f32 %v5823_v32, %v1272_v57  ;;  %vm1256_vm4 = vweird.f32 %v5827_v34  ;;  %v1631_v2 = vld [vmem:[%s7997_s6 + $0x18] sm:$0xff]  ;;  %v1628_v57 = vld [vmem:[%s7997_s6] sm:$0xff] }
 0x4eb   :  { %5828 = vrcp.f32 %v1288_v28  ;;  %vm1257_vm7 = vmor %vm1255_vm5, %vm1256_vm4  ;;  %v1300_v50 = vand.u32 2147483648, %v1288_v28  ;;  %vm1294_vm10 = vweird.f32 %v1288_v28  ;;  %v1298_v46 = vand.u32 2147483647, %v1288_v28 }
 0x4ec   :  { %v1252_v9 = vsub.f32 1.0, %v1251_v36  ;;  %5830 = vtanh.f32 %v1224_v33  ;;  %v1277_v44 = vsel %vm1276_vm3, %v5823_v32, %v1273_v38  ;;  %v1630_v32 = vld [vmem:[%s7997_s6 + $0x10] sm:$0xff] }
 0x4ed   :  { %v1282_v23 = vsel %vm1279_vm6, %v1281_v21, %v1277_v44  ;;  %v1301_v59 = vor.u32 1.1754944e-38, %v1300_v50  ;;  %vm1299_vm12 = vcmp.eq.f32.partialorder %v1298_v46, 8.507059e+37 }
 0x4ee   :  { %v1253_v45 = vmul.f32 %v5827_v34, %v1252_v9  ;;  %v1304_v49 = vmul.f32 %v1282_v23, %v6767_v41  ;;  %v379_v41 = vpop.f32.mrf.mxu0 }
 0x4ef   :  { %v380_v0 = vadd.f32 %v6813_v5, %v379_v41 }
 0x4f0   :  { %v1254_v43 = vadd.f32 %v5827_v34, %v1253_v45 }
 0x4f1   :  { %v5829_v40 = vpop.eup %5828 }
 0x4f2   :  { %v1258_v39 = vsel %vm1257_vm7, %v5827_v34, %v1254_v43  ;;  %v1290_v8 = vmul.f32 %v5829_v40, %v1288_v28  ;;  %v5831_v47 = vpop.eup %5830  ;;  %vm1295_vm9 = vweird.f32 %v5829_v40 }
 0x4f3   :  { %v1263_v48 = vsel %vm1260_vm8, %v1262_v56, %v1258_v39  ;;  %vm1296_vm11 = vmor %vm1294_vm10, %vm1295_vm9 }
 0x4f4   :  { %v1305_v13 = vmul.f32 %v5831_v47, %v1263_v48  ;;  %v1291_v42 = vsub.f32 1.0, %v1290_v8 }
 0x4f6   :  { %v6786_v54 = vadd.f32 %v1305_v13, %v1304_v49  ;;  %v1292_v52 = vmul.f32 %v5829_v40, %v1291_v42  ;;  %v6794_v11 = vpop.f32.mrf.mxu0 }
 0x4f8   :  { %5832 = vtanh.f32 %v6786_v54  ;;  %v1293_v18 = vadd.f32 %v5829_v40, %v1292_v52 }
 0x4fa   :  { %v1297_v53 = vsel %vm1296_vm11, %v5829_v40, %v1293_v18 }
 0x4fb   :  { %v1302_v61 = vsel %vm1299_vm12, %v1301_v59, %v1297_v53 }
 0x4fe   :  { %v5833_v58 = vpop.eup %5832 }
 0x4ff   :  { %v1308_v62 = vmul.f32 %v5833_v58, %v1302_v61 }
 0x501   :  { %1309 = vst.msk [vmem:[#allocation2 + $0x28] sm:$0xff] %vm93_vm0, %v1308_v62  ;;  %5402 = vmatmul.msk.f32.vlgmr.msra.gmra.mxu0 %vm93_vm0, %v1308_v62  ;;  %5403 = vmatmul.msk.f32.vlgmr.msrb.gmra.mxu1 %vm93_vm0, %v1308_v62 }
 0x502   :  { %5404 = vmatmul.msk.f32.vlgmr.msrb.gmra.mxu2 %vm93_vm0, %v1308_v62  ;;  %5405 = vmatmul.msk.f32.vlgmr.msra.gmra.mxu3 %vm93_vm0, %v1308_v62 }
 0x503   :  { %1672 = vmatpush.msra.mxu0 %v1631_v2  ;;  %v8009_v2 = vld [vmem:[#allocation13_spill] sm:$0xff] }
 0x505   :  { %1673 = vmatpush.msra.mxu0 %v1630_v32  ;;  %v281_v32 = vadd.f32 %v6806_v12, %v8009_v2 }
 0x507   :  { %1674 = vmatpush.msra.mxu0 %v1629_v15 }
 0x509   :  { %1675 = vmatpush.msra.mxu0 %v1628_v57 }
 0x57e   :  { %v1330_v16 = vpop.f32.mrf.mxu0  ;;  %v1351_v10 = vpop.f32.mrf.mxu1 }
 0x57f   :  { %v1333_v22 = vadd.f32 %v1330_v16, %v227_v7  ;;  %v1354_v63 = vadd.f32 %v1351_v10, %v278_v20  ;;  %v1621_v10 = vld [vmem:[%s8001_s10 + $0x8] sm:$0xff] }
 0x581   :  { %v5406_v4 = vmul.f32 -1.442695, %v1333_v22  ;;  %v5407_v1 = vmul.f32 -1.442695, %v1354_v63  ;;  %v1622_v22 = vld [vmem:[%s8001_s10 + $0x10] sm:$0xff]  ;;  %v1623_v63 = vld [vmem:[%s8001_s10 + $0x18] sm:$0xff] }
 0x583   :  { %5834 = vpow2.f32 %v5406_v4  ;;  %v1624_v4 = vld [vmem:[%s8001_s10 + $0x20] sm:$0xff] }
 0x584   :  { %5836 = vpow2.f32 %v5407_v1  ;;  %v1625_v1 = vld [vmem:[%s8001_s10 + $0x28] sm:$0xff] }
 0x585   :  { %v1393_v25 = vpop.f32.mrf.mxu3  ;;  %v1372_v19 = vpop.f32.mrf.mxu2 }
 0x586   :  { %v1396_v24 = vadd.f32 %v1393_v25, %v380_v0  ;;  %v1375_v28 = vadd.f32 %v1372_v19, %v329_v3  ;;  %v1626_v0 = vld [vmem:[%s8001_s10 + $0x30] sm:$0xff]  ;;  %v1627_v25 = vld [vmem:[%s8001_s10 + $0x38] sm:$0xff] }
 0x588   :  { %v5408_v29 = vmul.f32 -1.442695, %v1396_v24  ;;  %v1712_v24 = vld [vmem:[%s7999_s8 + $0x18] sm:$0xff] }
 0x589   :  { %v5835_v30 = vpop.eup %5834  ;;  %1753 = vmatpush.msrb.mxu1 %v1712_v24 }
 0x58a   :  { %v5837_v6 = vpop.eup %5836  ;;  %v1400_v14 = vadd.f32 1.0, %v5835_v30  ;;  %5838 = vpow2.f32 %v5408_v29  ;;  %v1711_v29 = vld [vmem:[%s7999_s8 + $0x10] sm:$0xff]  ;;  %v1710_v30 = vld [vmem:[%s7999_s8 + $0x8] sm:$0xff] }
 0x58b   :  { %v1419_v17 = vadd.f32 1.0, %v5837_v6  ;;  %1754 = vmatpush.msrb.mxu1 %v1711_v29  ;;  %v1709_v6 = vld [vmem:[%s7999_s8] sm:$0xff] }
 0x58c   :  { %5840 = vrcp.f32 %v1400_v14  ;;  %v1412_v27 = vand.u32 2147483648, %v1400_v14  ;;  %v1410_v55 = vand.u32 2147483647, %v1400_v14  ;;  %vm1406_vm15 = vweird.f32 %v1400_v14 }
 0x58d   :  { %5842 = vrcp.f32 %v1419_v17  ;;  %v1431_v45 = vand.u32 2147483648, %v1419_v17  ;;  %v1429_v21 = vand.u32 2147483647, %v1419_v17  ;;  %vm1425_vm1 = vweird.f32 %v1419_v17  ;;  %1755 = vmatpush.msrb.mxu1 %v1710_v30 }
 0x58e   :  { %v1413_v56 = vor.u32 1.1754944e-38, %v1412_v27  ;;  %vm1411_vm4 = vcmp.eq.f32.partialorder %v1410_v55, 8.507059e+37 }
 0x58f   :  { %v1432_v8 = vor.u32 1.1754944e-38, %v1431_v45  ;;  %vm1430_vm5 = vcmp.eq.f32.partialorder %v1429_v21, 8.507059e+37  ;;  %1756 = vmatpush.msrb.mxu1 %v1709_v6  ;;  %v8010_v21 = vld [vmem:[#allocation14_spill] sm:$0xff] }
 0x590   :  { %v5839_v26 = vpop.eup %5838 }
 0x591   :  { %v1439_v34 = vadd.f32 1.0, %v5839_v26 }
 0x592   :  { %v5841_v33 = vpop.eup %5840 }
 0x593   :  { %v5843_v36 = vpop.eup %5842  ;;  %v1402_v38 = vmul.f32 %v5841_v33, %v1400_v14  ;;  %5844 = vrcp.f32 %v1439_v34  ;;  %vm1407_vm13 = vweird.f32 %v5841_v33  ;;  %v1451_v58 = vand.u32 2147483648, %v1439_v34  ;;  %v8008_v14 = vld [vmem:[#allocation12_spill] sm:$0xff] }
 0x594   :  { %v1421_v31 = vmul.f32 %v5843_v36, %v1419_v17  ;;  %5846 = vtanh.f32 %v1375_v28  ;;  %vm1426_vm14 = vweird.f32 %v5843_v36  ;;  %vm1408_vm2 = vmor %vm1406_vm15, %vm1407_vm13  ;;  %vm1445_vm7 = vweird.f32 %v1439_v34 }
 0x595   :  { %v1403_v9 = vsub.f32 1.0, %v1402_v38  ;;  %vm1427_vm3 = vmor %vm1425_vm1, %vm1426_vm14  ;;  %v1449_v61 = vand.u32 2147483647, %v1439_v34  ;;  %v1452_v41 = vor.u32 1.1754944e-38, %v1451_v58  ;;  %v230_v17 = vadd.f32 %v6799_v51, %v8008_v14 }
 0x596   :  { %v1422_v60 = vsub.f32 1.0, %v1421_v31  ;;  %v383_v28 = vadd.f32 %v6813_v5, %v6794_v11 }
 0x597   :  { %v1404_v37 = vmul.f32 %v5841_v33, %v1403_v9  ;;  %vm1450_vm9 = vcmp.eq.f32.partialorder %v1449_v61, 8.507059e+37 }
 0x598   :  { %v1423_v44 = vmul.f32 %v5843_v36, %v1422_v60 }
 0x599   :  { %v5845_v43 = vpop.eup %5844  ;;  %v1405_v40 = vadd.f32 %v5841_v33, %v1404_v37 }
 0x59a   :  { %v1424_v23 = vadd.f32 %v5843_v36, %v1423_v44  ;;  %v1441_v39 = vmul.f32 %v5845_v43, %v1439_v34  ;;  %v5847_v48 = vpop.eup %5846  ;;  %vm1446_vm6 = vweird.f32 %v5845_v43 }
 0x59b   :  { %v1409_v47 = vsel %vm1408_vm2, %v5841_v33, %v1405_v40  ;;  %vm1447_vm8 = vmor %vm1445_vm7, %vm1446_vm6  ;;  %v6895_v33 = vld [vmem:[%s7998_s7] ss:$0 sm:$0xff] }
 0x59c   :  { %v1414_v49 = vsel %vm1411_vm4, %v1413_v56, %v1409_v47  ;;  %v1428_v13 = vsel %vm1427_vm3, %v5843_v36, %v1424_v23  ;;  %v1442_v42 = vsub.f32 1.0, %v1441_v39 }
 0x59d   :  { %v1433_v52 = vsel %vm1430_vm5, %v1432_v8, %v1428_v13  ;;  %v1456_v50 = vmul.f32 %v5847_v48, %v1414_v49 }
 0x59e   :  { %v1455_v18 = vmul.f32 %v1433_v52, %v6786_v54  ;;  %v1443_v46 = vmul.f32 %v5845_v43, %v1442_v42  ;;  %v1620_v54 = vld [vmem:[%s8001_s10] sm:$0xff] }
 0x5a0   :  { %v6836_v53 = vadd.f32 %v1456_v50, %v1455_v18  ;;  %v1444_v59 = vadd.f32 %v5845_v43, %v1443_v46 }
 0x5a2   :  { %5848 = vtanh.f32 %v6836_v53  ;;  %v1448_v62 = vsel %vm1447_vm8, %v5845_v43, %v1444_v59  ;;  %v332_v43 = vadd.f32 %v6828_v35, %v8010_v21 }
 0x5a3   :  { %v1453_v20 = vsel %vm1450_vm9, %v1452_v41, %v1448_v62 }
 0x5a8   :  { %v5849_v7 = vpop.eup %5848 }
 0x5a9   :  { %v1459_v16 = vmul.f32 %v5849_v7, %v1453_v20 }
 0x5ab   :  { %1460 = vst.msk [vmem:[#allocation2 + $0x30] sm:$0xff] %vm93_vm0, %v1459_v16  ;;  %5409 = vmatmul.msk.f32.vlgmr.msrb.gmra.mxu0 %vm93_vm0, %v1459_v16  ;;  %5410 = vmatmul.msk.f32.vlgmr.msra.gmra.mxu1 %vm93_vm0, %v1459_v16 }
 0x5ac   :  { %5411 = vmatmul.msk.f32.vlgmr.msra.gmra.mxu2 %vm93_vm0, %v1459_v16  ;;  %5412 = vmatmul.msk.f32.vlgmr.msrb.gmra.mxu3 %vm93_vm0, %v1459_v16 }
 0x5b3   :  { %5416 = vmatmul.msk.f32.vlgmr.msra.gmra.mxu0 %vm93_vm0, %v1620_v54 }
 0x5bb   :  { %5417 = vmatmul.msk.f32.gmra.mxu0 %vm93_vm0, %v1621_v10 }
 0x5c3   :  { %5418 = vmatmul.msk.f32.gmra.mxu0 %vm93_vm0, %v1622_v22 }
 0x5cb   :  { %5419 = vmatmul.msk.f32.gmra.mxu0 %vm93_vm0, %v1623_v63 }
 0x5d3   :  { %5420 = vmatmul.msk.f32.gmra.mxu0 %vm93_vm0, %v1624_v4 }
 0x5db   :  { %5421 = vmatmul.msk.f32.gmra.mxu0 %vm93_vm0, %v1625_v1 }
 0x5e3   :  { %5422 = vmatmul.msk.f32.gmra.mxu0 %vm93_vm0, %v1626_v0 }
 0x5eb   :  { %5423 = vmatmul.msk.f32.gmra.mxu0 %vm93_vm0, %v1627_v25 }
 0x628   :  { %v1481_v15 = vpop.f32.mrf.mxu0  ;;  %v1502_v19 = vpop.f32.mrf.mxu1 }
 0x629   :  { %v1484_v26 = vadd.f32 %v1481_v15, %v230_v17  ;;  %v1505_v3 = vadd.f32 %v1502_v19, %v281_v32  ;;  %v1794_v19 = vld [vmem:[#allocation3 + $0x98] sm:$0xff]  ;;  %v1616_v32 = vld [vmem:[#allocation2 + $0x20] sm:$0xff] }
 0x62a   :  { %1836 = vmatpush.msrb.mxu2 %v1794_v19  ;;  %v7008_v19 = vld [vmem:[#allocation6 + $0xf8] sm:$0xff] }
 0x62b   :  { %v5413_v57 = vmul.f32 -1.442695, %v1484_v26  ;;  %v5414_v34 = vmul.f32 -1.442695, %v1505_v3  ;;  %v1869_v26 = vld [vmem:[#allocation3 + $0xb8] sm:$0xff] }
 0x62c   :  { %v1920_v3 = vld [vmem:[#allocation3 + $0xd8] sm:$0xff]  ;;  %1887 = vmatpush.msra.mxu3 %v1869_v26  ;;  %v7012_v26 = vld [vmem:[#allocation6 + $0xd0] sm:$0xff] }
 0x62d   :  { %5850 = vpow2.f32 %v5413_v57  ;;  %v1971_v57 = vld [vmem:[#allocation3 + $0xf8] sm:$0xff]  ;;  %1938 = vmatpush.msrb.mxu0 %v1920_v3  ;;  %v7014_v3 = vld [vmem:[#allocation6 + $0xf0] sm:$0xff] }
 0x62e   :  { %5852 = vpow2.f32 %v5414_v34  ;;  %v1793_v34 = vld [vmem:[#allocation3 + $0x90] sm:$0xff]  ;;  %1989 = vmatpush.msra.mxu1 %v1971_v57 }
 0x62f   :  { %v1544_v51 = vpop.f32.mrf.mxu3  ;;  %v1523_v44 = vpop.f32.mrf.mxu2  ;;  %1837 = vmatpush.msrb.mxu2 %v1793_v34  ;;  %v7018_v34 = vld [vmem:[#allocation6 + $0xc8] sm:$0xff] }
 0x630   :  { %v1547_v36 = vadd.f32 %v1544_v51, %v383_v28  ;;  %v1677_v38 = vpop.f32.mrf.mxu0  ;;  %v1526_v39 = vadd.f32 %v1523_v44, %v332_v43  ;;  %v1868_v28 = vld [vmem:[#allocation3 + $0xb0] sm:$0xff] }
 0x631   :  { %v1678_v12 = vadd.f32 %v6895_v33, %v1677_v38  ;;  %1888 = vmatpush.msra.mxu3 %v1868_v28  ;;  %v7020_v28 = vld [vmem:[#allocation6 + $0xe8] sm:$0xff] }
 0x632   :  { %v5415_v31 = vmul.f32 -1.442695, %v1547_v36 }
 0x633   :  { %v5851_v9 = vpop.eup %5850  ;;  %v1701_v60 = vmax.f32 %v1678_v12, 0.0 }
 0x634   :  { %v5853_v27 = vpop.eup %5852  ;;  %v1551_v45 = vadd.f32 1.0, %v5851_v9  ;;  %5854 = vpow2.f32 %v5415_v31 }
 0x635   :  { %v1570_v37 = vadd.f32 1.0, %v5853_v27  ;;  %5424 = vmatmul.msk.f32.vlgmr.msrb.gmra.mxu1 %vm93_vm0, %v1701_v60 }
 0x636   :  { %5856 = vrcp.f32 %v1551_v45  ;;  %v1561_v42 = vand.u32 2147483647, %v1551_v45  ;;  %v1563_v52 = vand.u32 2147483648, %v1551_v45  ;;  %vm1557_vm12 = vweird.f32 %v1551_v45 }
 0x637   :  { %5858 = vrcp.f32 %v1570_v37  ;;  %v1582_v18 = vand.u32 2147483648, %v1570_v37  ;;  %v1580_v58 = vand.u32 2147483647, %v1570_v37  ;;  %vm1576_vm13 = vweird.f32 %v1570_v37 }
 0x638   :  { %v1680_v55 = vpop.f32.mrf.mxu0  ;;  %v1564_v7 = vor.u32 1.1754944e-38, %v1563_v52  ;;  %vm1562_vm1 = vcmp.eq.f32.partialorder %v1561_v42, 8.507059e+37  ;;  %v1917_v42 = vld [vmem:[#allocation3 + $0xc0] sm:$0xff] }
 0x639   :  { %v1681_v11 = vadd.f32 %v6895_v33, %v1680_v55  ;;  %v1583_v54 = vor.u32 1.1754944e-38, %v1582_v18  ;;  %vm1581_vm2 = vcmp.eq.f32.partialorder %v1580_v58, 8.507059e+37  ;;  %v1968_v52 = vld [vmem:[#allocation3 + $0xe0] sm:$0xff]  ;;  %v6946_v18 = vld [vmem:[#allocation6 + $0x90] sm:$0xff] }
 0x63a   :  { %v5855_v5 = vpop.eup %5854 }
 0x63b   :  { %v6904_v40 = vadd.f32 1.0, %v5855_v5  ;;  %v1702_v56 = vmax.f32 %v1681_v11, 0.0 }
 0x63c   :  { %v5857_v23 = vpop.eup %5856 }
 0x63d   :  { %v5859_v8 = vpop.eup %5858  ;;  %v1553_v47 = vmul.f32 %v5857_v23, %v1551_v45  ;;  %5860 = vrcp.f32 %v6904_v40  ;;  %5425 = vmatmul.msk.f32.gmra.mxu1 %vm93_vm0, %v1702_v56  ;;  %vm1558_vm10 = vweird.f32 %v5857_v23  ;;  %vm1596_vm4 = vweird.f32 %v6904_v40  ;;  %v1919_v56 = vld [vmem:[#allocation3 + $0xd0] sm:$0xff] }
 0x63e   :  { %v1572_v48 = vmul.f32 %v5859_v8, %v1570_v37  ;;  %5862 = vtanh.f32 %v1526_v39  ;;  %vm1577_vm11 = vweird.f32 %v5859_v8  ;;  %vm1559_vm14 = vmor %vm1557_vm12, %vm1558_vm10  ;;  %v1602_v15 = vand.u32 2147483648, %v6904_v40  ;;  %1939 = vmatpush.msrb.mxu0 %v1919_v56  ;;  %v1792_v39 = vld [vmem:[#allocation3 + $0x88] sm:$0xff] }
 0x63f   :  { %v1554_v49 = vsub.f32 1.0, %v1553_v47  ;;  %vm1578_vm15 = vmor %vm1576_vm13, %vm1577_vm11  ;;  %v1918_v47 = vld [vmem:[#allocation3 + $0xc8] sm:$0xff]  ;;  %1838 = vmatpush.msrb.mxu2 %v1792_v39 }
 0x640   :  { %v1573_v13 = vsub.f32 1.0, %v1572_v48  ;;  %v1683_v50 = vpop.f32.mrf.mxu0  ;;  %v1603_v36 = vor.u32 1.1754944e-38, %v1602_v15  ;;  %v1969_v48 = vld [vmem:[#allocation3 + $0xe8] sm:$0xff]  ;;  %1940 = vmatpush.msrb.mxu0 %v1918_v47 }
 0x641   :  { %v1555_v35 = vmul.f32 %v5857_v23, %v1554_v49  ;;  %v1684_v46 = vadd.f32 %v6895_v33, %v1683_v50  ;;  %v1791_v49 = vld [vmem:[#allocation3 + $0x80] sm:$0xff]  ;;  %v6940_v50 = vld [vmem:[#allocation6 + $0xb8] sm:$0xff] }
 0x642   :  { %v1574_v59 = vmul.f32 %v5859_v8, %v1573_v13  ;;  %v1866_v13 = vld [vmem:[#allocation3 + $0xa0] sm:$0xff]  ;;  %1839 = vmatpush.msrb.mxu2 %v1791_v49  ;;  %1941 = vmatpush.msrb.mxu0 %v1917_v42 }
 0x643   :  { %v5861_v61 = vpop.eup %5860  ;;  %v1556_v62 = vadd.f32 %v5857_v23, %v1555_v35  ;;  %v1703_v41 = vmax.f32 %v1684_v46, 0.0  ;;  %v6948_v35 = vld [vmem:[#allocation6 + $0xb0] sm:$0xff]  ;;  %v6957_v46 = vld [vmem:[%s8000_s9] ss:$0 sm:$0xff] }
 0x644   :  { %v1575_v20 = vadd.f32 %v5859_v8, %v1574_v59  ;;  %v1592_v16 = vmul.f32 %v5861_v61, %v6904_v40  ;;  %v5863_v22 = vpop.eup %5862  ;;  %vm1597_vm3 = vweird.f32 %v5861_v61 }
 0x645   :  { %v1560_v10 = vsel %vm1559_vm14, %v5857_v23, %v1556_v62  ;;  %5426 = vmatmul.msk.f32.gmra.mxu1 %vm93_vm0, %v1703_v41  ;;  %vm6917_vm5 = vmor %vm1596_vm4, %vm1597_vm3  ;;  %v1970_v23 = vld [vmem:[#allocation3 + $0xf0] sm:$0xff]  ;;  %v6964_v41 = vld [vmem:[#allocation6 + $0x88] sm:$0xff] }
 0x646   :  { %v1565_v63 = vsel %vm1562_vm1, %v1564_v7, %v1560_v10  ;;  %v1579_v4 = vsel %vm1578_vm15, %v5859_v8, %v1575_v20  ;;  %v1593_v1 = vsub.f32 1.0, %v1592_v16  ;;  %1990 = vmatpush.msra.mxu1 %v1970_v23  ;;  %v1867_v8 = vld [vmem:[#allocation3 + $0xa8] sm:$0xff] }
 0x647   :  { %v1584_v0 = vsel %vm1581_vm2, %v1583_v54, %v1579_v4  ;;  %v1607_v25 = vmul.f32 %v5863_v22, %v1565_v63  ;;  %1889 = vmatpush.msra.mxu3 %v1867_v8  ;;  %v6966_v7 = vld [vmem:[#allocation6 + $0xa8] sm:$0xff]  ;;  %v1614_v4 = vld [vmem:[#allocation2 + $0x10] sm:$0xff] }
 0x648   :  { %v1606_v24 = vmul.f32 %v1584_v0, %v6836_v53  ;;  %v1594_v29 = vmul.f32 %v5861_v61, %v1593_v1  ;;  %v1686_v30 = vpop.f32.mrf.mxu0  ;;  %v1600_v53 = vand.u32 2147483647, %v6904_v40  ;;  %1991 = vmatpush.msra.mxu1 %v1969_v48  ;;  %v1613_v54 = vld [vmem:[#allocation2 + $0x8] sm:$0xff]  ;;  %v6982_v0 = vld [vmem:[#allocation6 + $0x80] sm:$0xff] }
 0x649   :  { %v1687_v6 = vadd.f32 %v6895_v33, %v1686_v30  ;;  %1890 = vmatpush.msra.mxu3 %v1866_v13  ;;  %v1615_v30 = vld [vmem:[#allocation2 + $0x18] sm:$0xff] }
 0x64a   :  { %v6913_v14 = vadd.f32 %v1607_v25, %v1606_v24  ;;  %v1595_v17 = vadd.f32 %v5861_v61, %v1594_v29  ;;  %vm1601_vm6 = vcmp.eq.f32.partialorder %v1600_v53, 8.507059e+37  ;;  %1992 = vmatpush.msra.mxu1 %v1968_v52  ;;  %v6984_v25 = vld [vmem:[#allocation6 + $0xa0] sm:$0xff]  ;;  %v7006_v53 = vld [vmem:[#allocation6 + $0xd8] sm:$0xff] }
 0x64b   :  { %v1704_v2 = vmax.f32 %v1687_v6, 0.0  ;;  %2074 = vmatpush.msrb.mxu3 %v6940_v50 }
 0x64c   :  { %5864 = vtanh.f32 %v6913_v14  ;;  %v1599_v51 = vsel %vm6917_vm5, %v5861_v61, %v1595_v17  ;;  %2678 = vmatpush.msrb.mxu1 %v6940_v50  ;;  %v1612_v61 = vld [vmem:[#allocation2] sm:$0xff] }
 0x64d   :  { %5427 = vmatmul.msk.f32.gmra.mxu1 %vm93_vm0, %v1704_v2  ;;  %v1604_v9 = vsel %vm1601_vm6, %v1603_v36, %v1599_v51  ;;  %2075 = vmatpush.msrb.mxu3 %v6948_v35  ;;  %v1617_v36 = vld [vmem:[#allocation2 + $0x28] sm:$0xff] }
 0x64e   :  { %2679 = vmatpush.msrb.mxu1 %v6948_v35 }
 0x64f   :  { %2076 = vmatpush.msrb.mxu3 %v6966_v7 }
 0x650   :  { %v1689_v38 = vpop.f32.mrf.mxu0  ;;  %2680 = vmatpush.msrb.mxu1 %v6966_v7 }
 0x651   :  { %v1690_v12 = vadd.f32 %v6895_v33, %v1689_v38  ;;  %2077 = vmatpush.msrb.mxu3 %v6984_v25 }
 0x652   :  { %v5865_v31 = vpop.eup %5864  ;;  %2681 = vmatpush.msrb.mxu1 %v6984_v25 }
 0x653   :  { %v6927_v60 = vmul.f32 %v5865_v31, %v1604_v9  ;;  %v1705_v27 = vmax.f32 %v1690_v12, 0.0  ;;  %v7027_v12 = vld [vmem:[#allocation6 + $0xc0] sm:$0xff] }
 0x654   :  { %v7029_v31 = vld [vmem:[#allocation6 + $0xe0] sm:$0xff] }
 0x655   :  { %1611 = vst.msk [vmem:[#allocation2 + $0x38] sm:$0xff] %vm93_vm0, %v6927_v60  ;;  %5428 = vmatmul.msk.f32.gmra.mxu1 %vm93_vm0, %v1705_v27 }
 0x658   :  { %v1692_v45 = vpop.f32.mrf.mxu0 }
 0x659   :  { %v1693_v37 = vadd.f32 %v6895_v33, %v1692_v45  ;;  %v1618_v45 = vld [vmem:[#allocation2 + $0x30] sm:$0xff] }
 0x65b   :  { %v1706_v55 = vmax.f32 %v1693_v37, 0.0 }
 0x65d   :  { %5429 = vmatmul.msk.f32.gmra.mxu1 %vm93_vm0, %v1706_v55 }
 0x660   :  { %v1695_v44 = vpop.f32.mrf.mxu0 }
 0x661   :  { %v1696_v11 = vadd.f32 %v6895_v33, %v1695_v44 }
 0x663   :  { %v1707_v5 = vmax.f32 %v1696_v11, 0.0  ;;  %v1619_v11 = vld [vmem:[#allocation2 + $0x38] sm:$0xff] }
 0x665   :  { %5430 = vmatmul.msk.f32.gmra.mxu1 %vm93_vm0, %v1707_v5 }
 0x668   :  { %v1698_v21 = vpop.f32.mrf.mxu0 }
 0x669   :  { %v1699_v43 = vadd.f32 %v6895_v33, %v1698_v21  ;;  %v6938_v33 = vld [vmem:[#allocation6 + $0x98] sm:$0xff] }
 0x66a   :  { %2053 = vmatpush.msra.mxu2 %v6938_v33  ;;  %2657 = vmatpush.msra.mxu0 %v6938_v33 }
 0x66b   :  { %v1708_v40 = vmax.f32 %v1699_v43, 0.0 }
 0x66c   :  { %2054 = vmatpush.msra.mxu2 %v6946_v18  ;;  %2658 = vmatpush.msra.mxu0 %v6946_v18 }
 0x66d   :  { %5431 = vmatmul.msk.f32.gmra.mxu1 %vm93_vm0, %v1708_v40 }
 0x66e   :  { %2055 = vmatpush.msra.mxu2 %v6964_v41  ;;  %2659 = vmatpush.msra.mxu0 %v6964_v41 }
 0x670   :  { %2056 = vmatpush.msra.mxu2 %v6982_v0  ;;  %2660 = vmatpush.msra.mxu0 %v6982_v0 }
 0x6b2   :  { %v1758_v59 = vpop.f32.mrf.mxu1 }
 0x6b3   :  { %v1759_v58 = vadd.f32 %v6957_v46, %v1758_v59 }
 0x6b5   :  { %v1782_v62 = vadd.f32 %v1759_v58, %v1612_v61  ;;  %v7102_v58 = vld [vmem:[%s7996_s5 + $0x4] ss:$0 sm:$0xff]  ;;  %v7107_v61 = vld [vmem:[%s7996_s5 + $0x5] ss:$0 sm:$0xff] }
 0x6b7   :  { %5433 = vmatmul.msk.f32.vlgmr.msrb.gmra.mxu2 %vm93_vm0, %v1782_v62  ;;  %5442 = vmatmul.msk.f32.vlgmr.msra.gmra.mxu3 %vm93_vm0, %v1782_v62 }
 0x6b8   :  { %5451 = vmatmul.msk.f32.vlgmr.msrb.gmra.mxu0 %vm93_vm0, %v1782_v62  ;;  %5460 = vmatmul.msk.f32.vlgmr.msra.gmra.mxu1 %vm93_vm0, %v1782_v62 }
 0x6b9   :  { %2808 = vmatpush.msrb.mxu0 %v6938_v33  ;;  %2829 = vmatpush.msra.mxu1 %v6940_v50 }
 0x6ba   :  { %v1761_v20 = vpop.f32.mrf.mxu1  ;;  %2095 = vmatpush.msrb.mxu2 %v7006_v53  ;;  %2116 = vmatpush.msra.mxu3 %v7008_v19 }
 0x6bb   :  { %v1762_v16 = vadd.f32 %v6957_v46, %v1761_v20  ;;  %2809 = vmatpush.msrb.mxu0 %v6946_v18  ;;  %2830 = vmatpush.msra.mxu1 %v6948_v35 }
 0x6bc   :  { %2096 = vmatpush.msrb.mxu2 %v7012_v26  ;;  %2117 = vmatpush.msra.mxu3 %v7014_v3 }
 0x6bd   :  { %v1783_v10 = vadd.f32 %v1762_v16, %v1613_v54  ;;  %2810 = vmatpush.msrb.mxu0 %v6964_v41  ;;  %2831 = vmatpush.msra.mxu1 %v6966_v7 }
 0x6be   :  { %2097 = vmatpush.msrb.mxu2 %v7018_v34  ;;  %2118 = vmatpush.msra.mxu3 %v7020_v28 }
 0x6bf   :  { %5434 = vmatmul.msk.f32.gmra.mxu2 %vm93_vm0, %v1783_v10  ;;  %5443 = vmatmul.msk.f32.gmra.mxu3 %vm93_vm0, %v1783_v10 }
 0x6c0   :  { %5452 = vmatmul.msk.f32.gmra.mxu0 %vm93_vm0, %v1783_v10  ;;  %5461 = vmatmul.msk.f32.gmra.mxu1 %vm93_vm0, %v1783_v10 }
 0x6c1   :  { %2811 = vmatpush.msrb.mxu0 %v6982_v0  ;;  %2832 = vmatpush.msra.mxu1 %v6984_v25 }
 0x6c2   :  { %v1764_v22 = vpop.f32.mrf.mxu1  ;;  %2098 = vmatpush.msrb.mxu2 %v7027_v12  ;;  %2119 = vmatpush.msra.mxu3 %v7029_v31 }
 0x6c3   :  { %v1765_v63 = vadd.f32 %v6957_v46, %v1764_v22 }
 0x6c5   :  { %v1784_v1 = vadd.f32 %v1765_v63, %v1614_v4  ;;  %v7114_v63 = vld [vmem:[%s7996_s5 + $0x7] ss:$0 sm:$0xff] }
 0x6c7   :  { %5435 = vmatmul.msk.f32.gmra.mxu2 %vm93_vm0, %v1784_v1  ;;  %5444 = vmatmul.msk.f32.gmra.mxu3 %vm93_vm0, %v1784_v1 }
 0x6c8   :  { %5453 = vmatmul.msk.f32.gmra.mxu0 %vm93_vm0, %v1784_v1  ;;  %5462 = vmatmul.msk.f32.gmra.mxu1 %vm93_vm0, %v1784_v1 }
 0x6ca   :  { %v1767_v24 = vpop.f32.mrf.mxu1 }
 0x6cb   :  { %v1768_v29 = vadd.f32 %v6957_v46, %v1767_v24 }
 0x6cd   :  { %v1785_v6 = vadd.f32 %v1768_v29, %v1615_v30 }
 0x6cf   :  { %5436 = vmatmul.msk.f32.gmra.mxu2 %vm93_vm0, %v1785_v6  ;;  %5445 = vmatmul.msk.f32.gmra.mxu3 %vm93_vm0, %v1785_v6 }
 0x6d0   :  { %5454 = vmatmul.msk.f32.gmra.mxu0 %vm93_vm0, %v1785_v6  ;;  %5463 = vmatmul.msk.f32.gmra.mxu1 %vm93_vm0, %v1785_v6 }
 0x6d2   :  { %v1770_v17 = vpop.f32.mrf.mxu1 }
 0x6d3   :  { %v1771_v2 = vadd.f32 %v6957_v46, %v1770_v17 }
 0x6d5   :  { %v1786_v15 = vadd.f32 %v1771_v2, %v1616_v32 }
 0x6d7   :  { %5437 = vmatmul.msk.f32.gmra.mxu2 %vm93_vm0, %v1786_v15  ;;  %5446 = vmatmul.msk.f32.gmra.mxu3 %vm93_vm0, %v1786_v15 }
 0x6d8   :  { %5455 = vmatmul.msk.f32.gmra.mxu0 %vm93_vm0, %v1786_v15  ;;  %5464 = vmatmul.msk.f32.gmra.mxu1 %vm93_vm0, %v1786_v15 }
 0x6da   :  { %v1773_v57 = vpop.f32.mrf.mxu1 }
 0x6db   :  { %v1774_v51 = vadd.f32 %v6957_v46, %v1773_v57 }
 0x6dd   :  { %v1787_v38 = vadd.f32 %v1774_v51, %v1617_v36  ;;  %v7120_v51 = vld [vmem:[%s7996_s5 + $0x6] ss:$0 sm:$0xff] }
 0x6df   :  { %5438 = vmatmul.msk.f32.gmra.mxu2 %vm93_vm0, %v1787_v38  ;;  %5447 = vmatmul.msk.f32.gmra.mxu3 %vm93_vm0, %v1787_v38 }
 0x6e0   :  { %5456 = vmatmul.msk.f32.gmra.mxu0 %vm93_vm0, %v1787_v38  ;;  %5465 = vmatmul.msk.f32.gmra.mxu1 %vm93_vm0, %v1787_v38 }
 0x6e2   :  { %v1776_v9 = vpop.f32.mrf.mxu1 }
 0x6e3   :  { %v1777_v27 = vadd.f32 %v6957_v46, %v1776_v9 }
 0x6e5   :  { %v1788_v37 = vadd.f32 %v1777_v27, %v1618_v45 }
 0x6e7   :  { %5439 = vmatmul.msk.f32.gmra.mxu2 %vm93_vm0, %v1788_v37  ;;  %5448 = vmatmul.msk.f32.gmra.mxu3 %vm93_vm0, %v1788_v37 }
 0x6e8   :  { %5457 = vmatmul.msk.f32.gmra.mxu0 %vm93_vm0, %v1788_v37  ;;  %5466 = vmatmul.msk.f32.gmra.mxu1 %vm93_vm0, %v1788_v37 }
 0x6ea   :  { %v1779_v55 = vpop.f32.mrf.mxu1 }
 0x6eb   :  { %v1780_v44 = vadd.f32 %v6957_v46, %v1779_v55 }
 0x6ed   :  { %v1789_v5 = vadd.f32 %v1780_v44, %v1619_v11 }
 0x6ef   :  { %5440 = vmatmul.msk.f32.gmra.mxu2 %vm93_vm0, %v1789_v5  ;;  %5449 = vmatmul.msk.f32.gmra.mxu3 %vm93_vm0, %v1789_v5 }
 0x6f0   :  { %5458 = vmatmul.msk.f32.gmra.mxu0 %vm93_vm0, %v1789_v5  ;;  %5467 = vmatmul.msk.f32.gmra.mxu1 %vm93_vm0, %v1789_v5 }
 0x6f7   :  { %5468 = vmatmul.msk.f32.vlgmr.msra.gmra.mxu2 %vm93_vm0, %v6927_v60  ;;  %5469 = vmatmul.msk.f32.vlgmr.msrb.gmra.mxu3 %vm93_vm0, %v6927_v60 }
 0x6f8   :  { %2204 = vmatpush.msra.mxu2 %v6938_v33  ;;  %2225 = vmatpush.msrb.mxu3 %v6940_v50 }
 0x6fa   :  { %2205 = vmatpush.msra.mxu2 %v6946_v18  ;;  %2226 = vmatpush.msrb.mxu3 %v6948_v35 }
 0x6fc   :  { %2206 = vmatpush.msra.mxu2 %v6964_v41  ;;  %2227 = vmatpush.msrb.mxu3 %v6966_v7 }
 0x6fe   :  { %2207 = vmatpush.msra.mxu2 %v6982_v0  ;;  %2228 = vmatpush.msrb.mxu3 %v6984_v25 }
 0x6ff   :  { %5470 = vmatmul.msk.f32.vlgmr.msrb.gmra.mxu2 %vm93_vm0, %v6927_v60  ;;  %5471 = vmatmul.msk.f32.vlgmr.msra.gmra.mxu3 %vm93_vm0, %v6927_v60 }
 0x700   :  { %2246 = vmatpush.msrb.mxu2 %v7006_v53  ;;  %2267 = vmatpush.msra.mxu3 %v7008_v19 }
 0x702   :  { %2247 = vmatpush.msrb.mxu2 %v7012_v26  ;;  %2268 = vmatpush.msra.mxu3 %v7014_v3 }
 0x704   :  { %2248 = vmatpush.msrb.mxu2 %v7018_v34  ;;  %2269 = vmatpush.msra.mxu3 %v7020_v28 }
 0x706   :  { %2249 = vmatpush.msrb.mxu2 %v7027_v12  ;;  %2270 = vmatpush.msra.mxu3 %v7029_v31 }
 0x735   :  { %v1994_v24 = vpop.f32.mrf.mxu1  ;;  %v1943_v36 = vpop.f32.mrf.mxu0 }
 0x736   :  { %v1995_v29 = vadd.f32 %v7114_v63, %v1994_v24  ;;  %v1944_v9 = vadd.f32 %v7120_v51, %v1943_v36 }
 0x73a   :  { %v1841_v21 = vpop.f32.mrf.mxu2  ;;  %v1892_v43 = vpop.f32.mrf.mxu3 }
 0x73b   :  { %v1842_v62 = vadd.f32 %v7102_v58, %v1841_v21  ;;  %v1893_v20 = vadd.f32 %v7107_v61, %v1892_v43 }
 0x742   :  { %v7071_v40 = vpop.f32.mrf.mxu2  ;;  %v7073_v60 = vpop.f32.mrf.mxu3 }
 0x74a   :  { %v7075_v56 = vpop.f32.mrf.mxu2  ;;  %v7077_v23 = vpop.f32.mrf.mxu3 }
 0x752   :  { %v7079_v39 = vpop.f32.mrf.mxu2  ;;  %v7081_v8 = vpop.f32.mrf.mxu3 }
 0x75a   :  { %v7083_v47 = vpop.f32.mrf.mxu2  ;;  %v7085_v48 = vpop.f32.mrf.mxu3 }
 0x762   :  { %v7087_v49 = vpop.f32.mrf.mxu2  ;;  %v7089_v13 = vpop.f32.mrf.mxu3 }
 0x76a   :  { %v7091_v42 = vpop.f32.mrf.mxu2  ;;  %v7093_v52 = vpop.f32.mrf.mxu3 }
 0x772   :  { %v7095_v46 = vpop.f32.mrf.mxu2  ;;  %v7097_v59 = vpop.f32.mrf.mxu3 }
 0x77a   :  { %v2058_v16 = vpop.f32.mrf.mxu2  ;;  %v2079_v54 = vpop.f32.mrf.mxu3 }
 0x77b   :  { %v2061_v10 = vadd.f32 %v2058_v16, %v1842_v62  ;;  %v2082_v22 = vadd.f32 %v2079_v54, %v1893_v20 }
 0x77d   :  { %v5472_v4 = vmul.f32 -1.442695, %v2061_v10  ;;  %v5473_v1 = vmul.f32 -1.442695, %v2082_v22 }
 0x77f   :  { %5866 = vpow2.f32 %v5472_v4 }
 0x780   :  { %5868 = vpow2.f32 %v5473_v1 }
 0x782   :  { %v2121_v30 = vpop.f32.mrf.mxu3  ;;  %v2100_v38 = vpop.f32.mrf.mxu2 }
 0x783   :  { %v2124_v6 = vadd.f32 %v2121_v30, %v1995_v29  ;;  %v2103_v37 = vadd.f32 %v2100_v38, %v1944_v9 }
 0x785   :  { %v5867_v17 = vpop.eup %5866  ;;  %v5474_v2 = vmul.f32 -1.442695, %v2124_v6 }
 0x786   :  { %v5869_v32 = vpop.eup %5868  ;;  %v2128_v15 = vadd.f32 1.0, %v5867_v17 }
 0x787   :  { %v2147_v57 = vadd.f32 1.0, %v5869_v32  ;;  %5870 = vpow2.f32 %v5474_v2 }
 0x788   :  { %5872 = vrcp.f32 %v2128_v15  ;;  %v2140_v62 = vand.u32 2147483648, %v2128_v15  ;;  %v2138_v54 = vand.u32 2147483647, %v2128_v15  ;;  %vm2134_vm9 = vweird.f32 %v2128_v15 }
 0x789   :  { %5874 = vrcp.f32 %v2147_v57  ;;  %v2159_v20 = vand.u32 2147483648, %v2147_v57  ;;  %v2157_v22 = vand.u32 2147483647, %v2147_v57  ;;  %vm2153_vm10 = vweird.f32 %v2147_v57 }
 0x78a   :  { %v2141_v24 = vor.u32 1.1754944e-38, %v2140_v62  ;;  %vm2139_vm13 = vcmp.eq.f32.partialorder %v2138_v54, 8.507059e+37 }
 0x78b   :  { %v2160_v30 = vor.u32 1.1754944e-38, %v2159_v20  ;;  %vm2158_vm14 = vcmp.eq.f32.partialorder %v2157_v22, 8.507059e+37 }
 0x78d   :  { %v5871_v27 = vpop.eup %5870 }
 0x78e   :  { %v5873_v45 = vpop.eup %5872  ;;  %v2167_v55 = vadd.f32 1.0, %v5871_v27 }
 0x78f   :  { %v5875_v44 = vpop.eup %5874  ;;  %v2130_v11 = vmul.f32 %v5873_v45, %v2128_v15  ;;  %vm2135_vm7 = vweird.f32 %v5873_v45 }
 0x790   :  { %v2149_v5 = vmul.f32 %v5875_v44, %v2147_v57  ;;  %5876 = vrcp.f32 %v2167_v55  ;;  %vm2154_vm8 = vweird.f32 %v5875_v44  ;;  %vm2136_vm11 = vmor %vm2134_vm9, %vm2135_vm7  ;;  %vm2173_vm1 = vweird.f32 %v2167_v55 }
 0x791   :  { %v2131_v21 = vsub.f32 1.0, %v2130_v11  ;;  %5878 = vtanh.f32 %v2103_v37  ;;  %vm2155_vm12 = vmor %vm2153_vm10, %vm2154_vm8 }
 0x792   :  { %v2150_v43 = vsub.f32 1.0, %v2149_v5  ;;  %v2179_v5 = vand.u32 2147483648, %v2167_v55 }
 0x793   :  { %v2132_v16 = vmul.f32 %v5873_v45, %v2131_v21 }
 0x794   :  { %v2151_v10 = vmul.f32 %v5875_v44, %v2150_v43  ;;  %v2180_v43 = vor.u32 1.1754944e-38, %v2179_v5 }
 0x795   :  { %v2133_v4 = vadd.f32 %v5873_v45, %v2132_v16 }
 0x796   :  { %v5877_v1 = vpop.eup %5876  ;;  %v2152_v29 = vadd.f32 %v5875_v44, %v2151_v10 }
 0x797   :  { %v2137_v6 = vsel %vm2136_vm11, %v5873_v45, %v2133_v4  ;;  %v2169_v17 = vmul.f32 %v5877_v1, %v2167_v55  ;;  %v5879_v2 = vpop.eup %5878  ;;  %vm2174_vm15 = vweird.f32 %v5877_v1  ;;  %v2177_v45 = vand.u32 2147483647, %v2167_v55 }
 0x798   :  { %v2142_v32 = vsel %vm2139_vm13, %v2141_v24, %v2137_v6  ;;  %v2156_v36 = vsel %vm2155_vm12, %v5875_v44, %v2152_v29  ;;  %vm2175_vm2 = vmor %vm2173_vm1, %vm2174_vm15  ;;  %v1896_v55 = vadd.f32 %v7107_v61, %v7073_v60  ;;  %v1997_v24 = vpop.f32.mrf.mxu1  ;;  %v1946_v60 = vpop.f32.mrf.mxu0 }
 0x799   :  { %v2161_v38 = vsel %vm2158_vm14, %v2160_v30, %v2156_v36  ;;  %v2184_v9 = vmul.f32 %v5879_v2, %v2142_v32  ;;  %v2170_v27 = vsub.f32 1.0, %v2169_v17  ;;  %vm2178_vm3 = vcmp.eq.f32.partialorder %v2177_v45, 8.507059e+37 }
 0x79a   :  { %v2183_v37 = vmul.f32 %v2161_v38, %v6913_v14  ;;  %v1845_v14 = vadd.f32 %v7102_v58, %v7071_v40  ;;  %v1998_v29 = vadd.f32 %v7114_v63, %v1997_v24 }
 0x79b   :  { %v2171_v15 = vmul.f32 %v5877_v1, %v2170_v27 }
 0x79c   :  { %v7124_v11 = vadd.f32 %v2184_v9, %v2183_v37  ;;  %v1947_v9 = vadd.f32 %v7120_v51, %v1946_v60 }
 0x79d   :  { %v2172_v57 = vadd.f32 %v5877_v1, %v2171_v15 }
 0x79e   :  { %5880 = vtanh.f32 %v7124_v11 }
 0x79f   :  { %v2176_v21 = vsel %vm2175_vm2, %v5877_v1, %v2172_v57 }
 0x7a0   :  { %v2181_v62 = vsel %vm2178_vm3, %v2180_v43, %v2176_v21 }
 0x7a4   :  { %v5881_v44 = vpop.eup %5880 }
 0x7a5   :  { %v2187_v20 = vmul.f32 %v5881_v44, %v2181_v62 }
 0x7a7   :  { %2188 = vst.msk [vmem:[#allocation2] sm:$0xff] %vm93_vm0, %v2187_v20  ;;  %5475 = vmatmul.msk.f32.vlgmr.msra.gmra.mxu2 %vm93_vm0, %v2187_v20  ;;  %5476 = vmatmul.msk.f32.vlgmr.msrb.gmra.mxu3 %vm93_vm0, %v2187_v20 }
 0x7a8   :  { %2355 = vmatpush.msra.mxu2 %v6938_v33  ;;  %2376 = vmatpush.msrb.mxu3 %v6940_v50 }
 0x7aa   :  { %2356 = vmatpush.msra.mxu2 %v6946_v18  ;;  %2377 = vmatpush.msrb.mxu3 %v6948_v35 }
 0x7ac   :  { %2357 = vmatpush.msra.mxu2 %v6964_v41  ;;  %2378 = vmatpush.msrb.mxu3 %v6966_v7 }
 0x7ae   :  { %2358 = vmatpush.msra.mxu2 %v6982_v0  ;;  %2379 = vmatpush.msrb.mxu3 %v6984_v25 }
 0x7af   :  { %5477 = vmatmul.msk.f32.vlgmr.msrb.gmra.mxu2 %vm93_vm0, %v2187_v20  ;;  %5478 = vmatmul.msk.f32.vlgmr.msra.gmra.mxu3 %vm93_vm0, %v2187_v20 }
 0x7b0   :  { %2397 = vmatpush.msrb.mxu2 %v7006_v53  ;;  %2418 = vmatpush.msra.mxu3 %v7008_v19 }
 0x7b2   :  { %2398 = vmatpush.msrb.mxu2 %v7012_v26  ;;  %2419 = vmatpush.msra.mxu3 %v7014_v3 }
 0x7b4   :  { %2399 = vmatpush.msrb.mxu2 %v7018_v34  ;;  %2420 = vmatpush.msra.mxu3 %v7020_v28 }
 0x7b6   :  { %2400 = vmatpush.msrb.mxu2 %v7027_v12  ;;  %2421 = vmatpush.msra.mxu3 %v7029_v31 }
 0x82a   :  { %v2209_v16 = vpop.f32.mrf.mxu2  ;;  %v2230_v54 = vpop.f32.mrf.mxu3 }
 0x82b   :  { %v2212_v10 = vadd.f32 %v2209_v16, %v1845_v14  ;;  %v2233_v22 = vadd.f32 %v2230_v54, %v1896_v55 }
 0x82d   :  { %v5479_v4 = vmul.f32 -1.442695, %v2212_v10  ;;  %v5480_v1 = vmul.f32 -1.442695, %v2233_v22 }
 0x82f   :  { %5882 = vpow2.f32 %v5479_v4 }
 0x830   :  { %5884 = vpow2.f32 %v5480_v1 }
 0x832   :  { %v2272_v30 = vpop.f32.mrf.mxu3  ;;  %v2251_v38 = vpop.f32.mrf.mxu2 }
 0x833   :  { %v2275_v6 = vadd.f32 %v2272_v30, %v1998_v29  ;;  %v2254_v15 = vadd.f32 %v2251_v38, %v1947_v9 }
 0x835   :  { %v5883_v17 = vpop.eup %5882  ;;  %v5481_v2 = vmul.f32 -1.442695, %v2275_v6 }
 0x836   :  { %v5885_v32 = vpop.eup %5884  ;;  %v2279_v40 = vadd.f32 1.0, %v5883_v17 }
 0x837   :  { %v2298_v36 = vadd.f32 1.0, %v5885_v32  ;;  %5886 = vpow2.f32 %v5481_v2 }
 0x838   :  { %5888 = vrcp.f32 %v2279_v40  ;;  %v2291_v62 = vand.u32 2147483648, %v2279_v40  ;;  %v2289_v55 = vand.u32 2147483647, %v2279_v40  ;;  %vm2285_vm6 = vweird.f32 %v2279_v40 }
 0x839   :  { %5890 = vrcp.f32 %v2298_v36  ;;  %v2310_v20 = vand.u32 2147483648, %v2298_v36  ;;  %v2308_v54 = vand.u32 2147483647, %v2298_v36  ;;  %vm2304_vm7 = vweird.f32 %v2298_v36 }
 0x83a   :  { %v2292_v4 = vor.u32 1.1754944e-38, %v2291_v62  ;;  %vm2290_vm10 = vcmp.eq.f32.partialorder %v2289_v55, 8.507059e+37  ;;  %v2000_v62 = vpop.f32.mrf.mxu1 }
 0x83b   :  { %v2311_v24 = vor.u32 1.1754944e-38, %v2310_v20  ;;  %vm2309_vm11 = vcmp.eq.f32.partialorder %v2308_v54, 8.507059e+37  ;;  %v2001_v20 = vadd.f32 %v7114_v63, %v2000_v62 }
 0x83d   :  { %v5887_v27 = vpop.eup %5886 }
 0x83e   :  { %v5889_v37 = vpop.eup %5888  ;;  %v2318_v57 = vadd.f32 1.0, %v5887_v27 }
 0x83f   :  { %v5891_v5 = vpop.eup %5890  ;;  %v2281_v45 = vmul.f32 %v5889_v37, %v2279_v40  ;;  %vm2286_vm4 = vweird.f32 %v5889_v37 }
 0x840   :  { %v2300_v21 = vmul.f32 %v5891_v5, %v2298_v36  ;;  %5892 = vrcp.f32 %v2318_v57  ;;  %vm2305_vm5 = vweird.f32 %v5891_v5  ;;  %vm2287_vm8 = vmor %vm2285_vm6, %vm2286_vm4  ;;  %vm2324_vm13 = vweird.f32 %v2318_v57 }
 0x841   :  { %v2282_v43 = vsub.f32 1.0, %v2281_v45  ;;  %5894 = vtanh.f32 %v2254_v15  ;;  %vm2306_vm9 = vmor %vm2304_vm7, %vm2305_vm5  ;;  %v2330_v15 = vand.u32 2147483648, %v2318_v57 }
 0x842   :  { %v2301_v44 = vsub.f32 1.0, %v2300_v21 }
 0x843   :  { %v2283_v14 = vmul.f32 %v5889_v37, %v2282_v43  ;;  %v2331_v21 = vor.u32 1.1754944e-38, %v2330_v15 }
 0x844   :  { %v2302_v16 = vmul.f32 %v5891_v5, %v2301_v44 }
 0x845   :  { %v2284_v10 = vadd.f32 %v5889_v37, %v2283_v14 }
 0x846   :  { %v5893_v22 = vpop.eup %5892  ;;  %v2303_v1 = vadd.f32 %v5891_v5, %v2302_v16 }
 0x847   :  { %v2288_v29 = vsel %vm2287_vm8, %v5889_v37, %v2284_v10  ;;  %v2320_v30 = vmul.f32 %v5893_v22, %v2318_v57  ;;  %v5895_v6 = vpop.eup %5894  ;;  %vm2325_vm12 = vweird.f32 %v5893_v22  ;;  %v2328_v37 = vand.u32 2147483647, %v2318_v57 }
 0x848   :  { %v2293_v17 = vsel %vm2290_vm10, %v2292_v4, %v2288_v29  ;;  %v2307_v2 = vsel %vm2306_vm9, %v5891_v5, %v2303_v1  ;;  %vm2326_vm14 = vmor %vm2324_vm13, %vm2325_vm12 }
 0x849   :  { %v2312_v32 = vsel %vm2309_vm11, %v2311_v24, %v2307_v2  ;;  %v2335_v60 = vmul.f32 %v5895_v6, %v2293_v17  ;;  %v2321_v38 = vsub.f32 1.0, %v2320_v30  ;;  %vm2329_vm15 = vcmp.eq.f32.partialorder %v2328_v37, 8.507059e+37 }
 0x84a   :  { %v2334_v9 = vmul.f32 %v2312_v32, %v7124_v11 }
 0x84b   :  { %v2322_v40 = vmul.f32 %v5893_v22, %v2321_v38 }
 0x84c   :  { %v7155_v27 = vadd.f32 %v2335_v60, %v2334_v9 }
 0x84d   :  { %v2323_v36 = vadd.f32 %v5893_v22, %v2322_v40 }
 0x84e   :  { %5896 = vtanh.f32 %v7155_v27 }
 0x84f   :  { %v2327_v45 = vsel %vm2326_vm14, %v5893_v22, %v2323_v36 }
 0x850   :  { %v2332_v43 = vsel %vm2329_vm15, %v2331_v21, %v2327_v45 }
 0x854   :  { %v5897_v5 = vpop.eup %5896 }
 0x855   :  { %v2338_v44 = vmul.f32 %v5897_v5, %v2332_v43 }
 0x857   :  { %2339 = vst.msk [vmem:[#allocation2 + $0x8] sm:$0xff] %vm93_vm0, %v2338_v44  ;;  %5482 = vmatmul.msk.f32.vlgmr.msra.gmra.mxu2 %vm93_vm0, %v2338_v44  ;;  %5483 = vmatmul.msk.f32.vlgmr.msrb.gmra.mxu3 %vm93_vm0, %v2338_v44 }
 0x858   :  { %2506 = vmatpush.msra.mxu2 %v6938_v33  ;;  %2527 = vmatpush.msrb.mxu3 %v6940_v50  ;;  %v1848_v33 = vadd.f32 %v7102_v58, %v7075_v56  ;;  %v1899_v50 = vadd.f32 %v7107_v61, %v7077_v23  ;;  %v1949_v23 = vpop.f32.mrf.mxu0 }
 0x859   :  { %v1950_v1 = vadd.f32 %v7120_v51, %v1949_v23 }
 0x85a   :  { %2507 = vmatpush.msra.mxu2 %v6946_v18  ;;  %2528 = vmatpush.msrb.mxu3 %v6948_v35 }
 0x85c   :  { %2508 = vmatpush.msra.mxu2 %v6964_v41  ;;  %2529 = vmatpush.msrb.mxu3 %v6966_v7 }
 0x85e   :  { %2509 = vmatpush.msra.mxu2 %v6982_v0  ;;  %2530 = vmatpush.msrb.mxu3 %v6984_v25 }
 0x85f   :  { %5484 = vmatmul.msk.f32.vlgmr.msrb.gmra.mxu2 %vm93_vm0, %v2338_v44  ;;  %5485 = vmatmul.msk.f32.vlgmr.msra.gmra.mxu3 %vm93_vm0, %v2338_v44 }
 0x860   :  { %2548 = vmatpush.msrb.mxu2 %v7006_v53  ;;  %2569 = vmatpush.msra.mxu3 %v7008_v19 }
 0x862   :  { %2549 = vmatpush.msrb.mxu2 %v7012_v26  ;;  %2570 = vmatpush.msra.mxu3 %v7014_v3 }
 0x864   :  { %2550 = vmatpush.msrb.mxu2 %v7018_v34  ;;  %2571 = vmatpush.msra.mxu3 %v7020_v28 }
 0x866   :  { %2551 = vmatpush.msrb.mxu2 %v7027_v12  ;;  %2572 = vmatpush.msra.mxu3 %v7029_v31 }
 0x8da   :  { %v2360_v18 = vpop.f32.mrf.mxu2  ;;  %v2381_v35 = vpop.f32.mrf.mxu3 }
 0x8db   :  { %v2363_v41 = vadd.f32 %v2360_v18, %v1848_v33  ;;  %v2384_v7 = vadd.f32 %v2381_v35, %v1899_v50 }
 0x8dd   :  { %v5486_v11 = vmul.f32 -1.442695, %v2363_v41  ;;  %v5487_v57 = vmul.f32 -1.442695, %v2384_v7 }
 0x8df   :  { %5898 = vpow2.f32 %v5486_v11 }
 0x8e0   :  { %5900 = vpow2.f32 %v5487_v57 }
 0x8e2   :  { %v2423_v14 = vpop.f32.mrf.mxu3  ;;  %v2402_v4 = vpop.f32.mrf.mxu2 }
 0x8e3   :  { %v2426_v55 = vadd.f32 %v2423_v14, %v2001_v20  ;;  %v2405_v30 = vadd.f32 %v2402_v4, %v1950_v1 }
 0x8e5   :  { %v5899_v16 = vpop.eup %5898  ;;  %v5488_v54 = vmul.f32 -1.442695, %v2426_v55 }
 0x8e6   :  { %v5901_v10 = vpop.eup %5900  ;;  %v2430_v56 = vadd.f32 1.0, %v5899_v16 }
 0x8e7   :  { %v2449_v22 = vadd.f32 1.0, %v5901_v10  ;;  %5902 = vpow2.f32 %v5488_v54 }
 0x8e8   :  { %5904 = vrcp.f32 %v2430_v56  ;;  %v2442_v9 = vand.u32 2147483648, %v2430_v56  ;;  %v2440_v15 = vand.u32 2147483647, %v2430_v56  ;;  %vm2436_vm3 = vweird.f32 %v2430_v56 }
 0x8e9   :  { %5906 = vrcp.f32 %v2449_v22  ;;  %v2461_v40 = vand.u32 2147483648, %v2449_v22  ;;  %v2459_v45 = vand.u32 2147483647, %v2449_v22  ;;  %vm2455_vm4 = vweird.f32 %v2449_v22 }
 0x8ea   :  { %v2443_v43 = vor.u32 1.1754944e-38, %v2442_v9  ;;  %vm2441_vm7 = vcmp.eq.f32.partialorder %v2440_v15, 8.507059e+37 }
 0x8eb   :  { %v2462_v33 = vor.u32 1.1754944e-38, %v2461_v40  ;;  %vm2460_vm8 = vcmp.eq.f32.partialorder %v2459_v45, 8.507059e+37 }
 0x8ed   :  { %v5903_v24 = vpop.eup %5902 }
 0x8ee   :  { %v5905_v29 = vpop.eup %5904  ;;  %v2469_v6 = vadd.f32 1.0, %v5903_v24  ;;  %v1902_v24 = vadd.f32 %v7107_v61, %v7081_v8  ;;  %v1952_v8 = vpop.f32.mrf.mxu0 }
 0x8ef   :  { %v5907_v17 = vpop.eup %5906  ;;  %v2432_v2 = vmul.f32 %v5905_v29, %v2430_v56  ;;  %vm2437_vm1 = vweird.f32 %v5905_v29 }
 0x8f0   :  { %v2451_v32 = vmul.f32 %v5907_v17, %v2449_v22  ;;  %5908 = vrcp.f32 %v2469_v6  ;;  %vm2456_vm2 = vweird.f32 %v5907_v17  ;;  %vm2438_vm5 = vmor %vm2436_vm3, %vm2437_vm1  ;;  %v2481_v54 = vand.u32 2147483648, %v2469_v6 }
 0x8f1   :  { %v2433_v60 = vsub.f32 1.0, %v2432_v2  ;;  %5910 = vtanh.f32 %v2405_v30  ;;  %vm2457_vm6 = vmor %vm2455_vm4, %vm2456_vm2  ;;  %vm2475_vm10 = vweird.f32 %v2469_v6  ;;  %v2479_v10 = vand.u32 2147483647, %v2469_v6 }
 0x8f2   :  { %v2452_v38 = vsub.f32 1.0, %v2451_v32  ;;  %v2482_v22 = vor.u32 1.1754944e-38, %v2481_v54 }
 0x8f3   :  { %v2434_v36 = vmul.f32 %v5905_v29, %v2433_v60  ;;  %vm2480_vm12 = vcmp.eq.f32.partialorder %v2479_v10, 8.507059e+37  ;;  %v2003_v60 = vpop.f32.mrf.mxu1 }
 0x8f4   :  { %v2453_v37 = vmul.f32 %v5907_v17, %v2452_v38  ;;  %v2004_v38 = vadd.f32 %v7114_v63, %v2003_v60 }
 0x8f5   :  { %v2435_v21 = vadd.f32 %v5905_v29, %v2434_v36 }
 0x8f6   :  { %v5909_v5 = vpop.eup %5908  ;;  %v2454_v44 = vadd.f32 %v5907_v17, %v2453_v37 }
 0x8f7   :  { %v2439_v50 = vsel %vm2438_vm5, %v5905_v29, %v2435_v21  ;;  %v2471_v18 = vmul.f32 %v5909_v5, %v2469_v6  ;;  %v5911_v35 = vpop.eup %5910  ;;  %vm2476_vm9 = vweird.f32 %v5909_v5 }
 0x8f8   :  { %v2444_v41 = vsel %vm2441_vm7, %v2443_v43, %v2439_v50  ;;  %v2458_v7 = vsel %vm2457_vm6, %v5907_v17, %v2454_v44  ;;  %vm2477_vm11 = vmor %vm2475_vm10, %vm2476_vm9 }
 0x8f9   :  { %v2463_v11 = vsel %vm2460_vm8, %v2462_v33, %v2458_v7  ;;  %v2486_v57 = vmul.f32 %v5911_v35, %v2444_v41  ;;  %v2472_v62 = vsub.f32 1.0, %v2471_v18 }
 0x8fa   :  { %v2485_v20 = vmul.f32 %v2463_v11, %v7155_v27  ;;  %v1851_v27 = vadd.f32 %v7102_v58, %v7079_v39 }
 0x8fb   :  { %v2473_v14 = vmul.f32 %v5909_v5, %v2472_v62 }
 0x8fc   :  { %v7186_v55 = vadd.f32 %v2486_v57, %v2485_v20 }
 0x8fd   :  { %v2474_v16 = vadd.f32 %v5909_v5, %v2473_v14 }
 0x8fe   :  { %5912 = vtanh.f32 %v7186_v55 }
 0x8ff   :  { %v2478_v56 = vsel %vm2477_vm11, %v5909_v5, %v2474_v16  ;;  %v1953_v5 = vadd.f32 %v7120_v51, %v1952_v8 }
 0x900   :  { %v2483_v4 = vsel %vm2480_vm12, %v2482_v22, %v2478_v56 }
 0x904   :  { %v5913_v23 = vpop.eup %5912 }
 0x905   :  { %v2489_v1 = vmul.f32 %v5913_v23, %v2483_v4 }
 0x907   :  { %2490 = vst.msk [vmem:[#allocation2 + $0x10] sm:$0xff] %vm93_vm0, %v2489_v1  ;;  %5489 = vmatmul.msk.f32.vlgmr.msra.gmra.mxu2 %vm93_vm0, %v2489_v1  ;;  %5490 = vmatmul.msk.f32.vlgmr.msrb.gmra.mxu3 %vm93_vm0, %v2489_v1 }
 0x908   :  { %2699 = vmatpush.msra.mxu2 %v7006_v53  ;;  %2720 = vmatpush.msrb.mxu3 %v7008_v19 }
 0x90a   :  { %2700 = vmatpush.msra.mxu2 %v7012_v26  ;;  %2721 = vmatpush.msrb.mxu3 %v7014_v3 }
 0x90c   :  { %2701 = vmatpush.msra.mxu2 %v7018_v34  ;;  %2722 = vmatpush.msrb.mxu3 %v7020_v28 }
 0x90e   :  { %2702 = vmatpush.msra.mxu2 %v7027_v12  ;;  %2723 = vmatpush.msrb.mxu3 %v7029_v31 }
 0x90f   :  { %5491 = vmatmul.msk.f32.vlgmr.msrb.gmra.mxu2 %vm93_vm0, %v2489_v1  ;;  %5492 = vmatmul.msk.f32.vlgmr.msra.gmra.mxu3 %vm93_vm0, %v2489_v1 }
 0x910   :  { %2850 = vmatpush.msrb.mxu2 %v7006_v53  ;;  %2871 = vmatpush.msra.mxu3 %v7008_v19 }
 0x912   :  { %2851 = vmatpush.msrb.mxu2 %v7012_v26  ;;  %2872 = vmatpush.msra.mxu3 %v7014_v3 }
 0x914   :  { %2852 = vmatpush.msrb.mxu2 %v7018_v34  ;;  %2873 = vmatpush.msra.mxu3 %v7020_v28 }
 0x916   :  { %2853 = vmatpush.msrb.mxu2 %v7027_v12  ;;  %2874 = vmatpush.msra.mxu3 %v7029_v31 }
 0x98a   :  { %v2511_v29 = vpop.f32.mrf.mxu2  ;;  %v2532_v30 = vpop.f32.mrf.mxu3 }
 0x98b   :  { %v2514_v6 = vadd.f32 %v2511_v29, %v1851_v27  ;;  %v2535_v17 = vadd.f32 %v2532_v30, %v1902_v24 }
 0x98d   :  { %v5493_v2 = vmul.f32 -1.442695, %v2514_v6  ;;  %v5494_v32 = vmul.f32 -1.442695, %v2535_v17 }
 0x98f   :  { %5914 = vpow2.f32 %v5493_v2 }
 0x990   :  { %5916 = vpow2.f32 %v5494_v32 }
 0x992   :  { %v2574_v9 = vpop.f32.mrf.mxu3  ;;  %v2553_v21 = vpop.f32.mrf.mxu2 }
 0x993   :  { %v2577_v40 = vadd.f32 %v2574_v9, %v2004_v38  ;;  %v2556_v33 = vadd.f32 %v2553_v21, %v1953_v5  ;;  %v7228_v21 = vld [vmem:[#allocation6 + $0xb8] sm:$0xff]  ;;  %v7233_v5 = vld [vmem:[#allocation6 + $0x90] sm:$0xff] }
 0x995   :  { %v5915_v36 = vpop.eup %5914  ;;  %v5495_v15 = vmul.f32 -1.442695, %v2577_v40 }
 0x996   :  { %v5917_v37 = vpop.eup %5916  ;;  %v2581_v39 = vadd.f32 1.0, %v5915_v36 }
 0x997   :  { %v2600_v45 = vadd.f32 1.0, %v5917_v37  ;;  %5918 = vpow2.f32 %v5495_v15 }
 0x998   :  { %5920 = vrcp.f32 %v2581_v39  ;;  %v2593_v57 = vand.u32 2147483648, %v2581_v39  ;;  %v2591_v14 = vand.u32 2147483647, %v2581_v39  ;;  %vm2587_vm15 = vweird.f32 %v2581_v39 }
 0x999   :  { %5922 = vrcp.f32 %v2600_v45  ;;  %v2612_v62 = vand.u32 2147483648, %v2600_v45  ;;  %v2610_v54 = vand.u32 2147483647, %v2600_v45  ;;  %vm2606_vm1 = vweird.f32 %v2600_v45 }
 0x99a   :  { %v2594_v22 = vor.u32 1.1754944e-38, %v2593_v57  ;;  %vm2592_vm4 = vcmp.eq.f32.partialorder %v2591_v14, 8.507059e+37 }
 0x99b   :  { %v2613_v4 = vor.u32 1.1754944e-38, %v2612_v62  ;;  %vm2611_vm5 = vcmp.eq.f32.partialorder %v2610_v54, 8.507059e+37 }
 0x99d   :  { %v5919_v43 = vpop.eup %5918 }
 0x99e   :  { %v5921_v44 = vpop.eup %5920  ;;  %v2620_v50 = vadd.f32 1.0, %v5919_v43  ;;  %v7236_v43 = vld [vmem:[#allocation6 + $0xb0] sm:$0xff] }
 0x99f   :  { %v5923_v18 = vpop.eup %5922  ;;  %v2583_v35 = vmul.f32 %v5921_v44, %v2581_v39  ;;  %vm2588_vm13 = vweird.f32 %v5921_v44 }
 0x9a0   :  { %v2602_v41 = vmul.f32 %v5923_v18, %v2600_v45  ;;  %5924 = vrcp.f32 %v2620_v50  ;;  %vm2607_vm14 = vweird.f32 %v5923_v18  ;;  %vm2589_vm2 = vmor %vm2587_vm15, %vm2588_vm13  ;;  %v2632_v40 = vand.u32 2147483648, %v2620_v50 }
 0x9a1   :  { %v2584_v7 = vsub.f32 1.0, %v2583_v35  ;;  %5926 = vtanh.f32 %v2556_v33  ;;  %vm2608_vm3 = vmor %vm2606_vm1, %vm2607_vm14  ;;  %vm2626_vm7 = vweird.f32 %v2620_v50  ;;  %v2630_v36 = vand.u32 2147483647, %v2620_v50  ;;  %v7244_v33 = vld [vmem:[#allocation6 + $0xa8] sm:$0xff] }
 0x9a2   :  { %v2603_v11 = vsub.f32 1.0, %v2602_v41  ;;  %v2633_v37 = vor.u32 1.1754944e-38, %v2632_v40 }
 0x9a3   :  { %v2585_v20 = vmul.f32 %v5921_v44, %v2584_v7  ;;  %vm2631_vm9 = vcmp.eq.f32.partialorder %v2630_v36, 8.507059e+37 }
 0x9a4   :  { %v2604_v16 = vmul.f32 %v5923_v18, %v2603_v11 }
 0x9a5   :  { %v2586_v10 = vadd.f32 %v5921_v44, %v2585_v20 }
 0x9a6   :  { %v5925_v56 = vpop.eup %5924  ;;  %v2605_v23 = vadd.f32 %v5923_v18, %v2604_v16 }
 0x9a7   :  { %v2590_v1 = vsel %vm2589_vm2, %v5921_v44, %v2586_v10  ;;  %v2622_v27 = vmul.f32 %v5925_v56, %v2620_v50  ;;  %v5927_v24 = vpop.eup %5926  ;;  %vm2627_vm6 = vweird.f32 %v5925_v56  ;;  %v7241_v44 = vld [vmem:[#allocation6 + $0x88] sm:$0xff] }
 0x9a8   :  { %v2595_v29 = vsel %vm2592_vm4, %v2594_v22, %v2590_v1  ;;  %v2609_v30 = vsel %vm2608_vm3, %v5923_v18, %v2605_v23  ;;  %vm2628_vm8 = vmor %vm2626_vm7, %vm2627_vm6 }
 0x9a9   :  { %v2614_v6 = vsel %vm2611_vm5, %v2613_v4, %v2609_v30  ;;  %v2637_v17 = vmul.f32 %v5927_v24, %v2595_v29  ;;  %v2623_v2 = vsub.f32 1.0, %v2622_v27 }
 0x9aa   :  { %v2636_v32 = vmul.f32 %v2614_v6, %v7186_v55  ;;  %v7225_v55 = vld [vmem:[#allocation6 + $0x98] sm:$0xff] }
 0x9ab   :  { %v2624_v60 = vmul.f32 %v5925_v56, %v2623_v2 }
 0x9ac   :  { %v7217_v38 = vadd.f32 %v2637_v17, %v2636_v32 }
 0x9ad   :  { %v2625_v9 = vadd.f32 %v5925_v56, %v2624_v60 }
 0x9ae   :  { %5928 = vtanh.f32 %v7217_v38 }
 0x9af   :  { %v2629_v15 = vsel %vm2628_vm8, %v5925_v56, %v2625_v9 }
 0x9b0   :  { %v2634_v45 = vsel %vm2631_vm9, %v2633_v37, %v2629_v15 }
 0x9b4   :  { %v5929_v39 = vpop.eup %5928 }
 0x9b5   :  { %v2640_v8 = vmul.f32 %v5929_v39, %v2634_v45 }
 0x9b7   :  { %2641 = vst.msk [vmem:[#allocation2 + $0x18] sm:$0xff] %vm93_vm0, %v2640_v8  ;;  %5496 = vmatmul.msk.f32.vlgmr.msra.gmra.mxu0 %vm93_vm0, %v2640_v8  ;;  %5497 = vmatmul.msk.f32.vlgmr.msrb.gmra.mxu1 %vm93_vm0, %v2640_v8 }
 0x9b8   :  { %5498 = vmatmul.msk.f32.vlgmr.msra.gmra.mxu2 %vm93_vm0, %v2640_v8  ;;  %5499 = vmatmul.msk.f32.vlgmr.msrb.gmra.mxu3 %vm93_vm0, %v2640_v8 }
 0x9b9   :  { %2959 = vmatpush.msra.mxu0 %v7225_v55  ;;  %2980 = vmatpush.msrb.mxu1 %v7228_v21 }
 0x9ba   :  { %3001 = vmatpush.msra.mxu2 %v7006_v53  ;;  %3022 = vmatpush.msrb.mxu3 %v7008_v19  ;;  %v1955_v53 = vpop.f32.mrf.mxu0  ;;  %v2006_v19 = vpop.f32.mrf.mxu1 }
 0x9bb   :  { %2960 = vmatpush.msra.mxu0 %v7233_v5  ;;  %2981 = vmatpush.msrb.mxu1 %v7236_v43  ;;  %v2007_v57 = vadd.f32 %v7114_v63, %v2006_v19  ;;  %v1956_v22 = vadd.f32 %v7120_v51, %v1955_v53 }
 0x9bc   :  { %3002 = vmatpush.msra.mxu2 %v7012_v26  ;;  %3023 = vmatpush.msrb.mxu3 %v7014_v3 }
 0x9bd   :  { %2961 = vmatpush.msra.mxu0 %v7241_v44  ;;  %2982 = vmatpush.msrb.mxu1 %v7244_v33 }
 0x9be   :  { %3003 = vmatpush.msra.mxu2 %v7018_v34  ;;  %3024 = vmatpush.msrb.mxu3 %v7020_v28 }
 0x9bf   :  { %2962 = vmatpush.msra.mxu0 %v6982_v0  ;;  %2983 = vmatpush.msrb.mxu1 %v6984_v25  ;;  %v1854_v0 = vadd.f32 %v7102_v58, %v7083_v47  ;;  %v1905_v25 = vadd.f32 %v7107_v61, %v7085_v48 }
 0x9c0   :  { %3004 = vmatpush.msra.mxu2 %v7027_v12  ;;  %3025 = vmatpush.msrb.mxu3 %v7029_v31 }
 0x9c2   :  { %v7253_v26 = vpop.f32.mrf.mxu0  ;;  %v7255_v3 = vpop.f32.mrf.mxu1 }
 0x9ca   :  { %v7257_v50 = vpop.f32.mrf.mxu0  ;;  %v7259_v18 = vpop.f32.mrf.mxu1 }
 0x9d2   :  { %v7261_v34 = vpop.f32.mrf.mxu0  ;;  %v7263_v28 = vpop.f32.mrf.mxu1 }
 0xa34   :  { %v2662_v12 = vpop.f32.mrf.mxu0  ;;  %v2683_v31 = vpop.f32.mrf.mxu1 }
 0xa35   :  { %v2665_v35 = vadd.f32 %v2662_v12, %v1854_v0  ;;  %v2686_v41 = vadd.f32 %v2683_v31, %v1905_v25 }
 0xa37   :  { %v5500_v7 = vmul.f32 -1.442695, %v2665_v35  ;;  %v5501_v11 = vmul.f32 -1.442695, %v2686_v41 }
 0xa39   :  { %5930 = vpow2.f32 %v5500_v7 }
 0xa3a   :  { %5932 = vpow2.f32 %v5501_v11 }
 0xa3b   :  { %v2725_v62 = vpop.f32.mrf.mxu3  ;;  %v2704_v48 = vpop.f32.mrf.mxu2 }
 0xa3c   :  { %v2728_v20 = vadd.f32 %v2725_v62, %v2007_v57  ;;  %v2707_v1 = vadd.f32 %v2704_v48, %v1956_v22  ;;  %v6177_v48 = vld [vmem:[#allocation6 + $0xf8] sm:$0xff]  ;;  %v6179_v22 = vld [vmem:[#allocation6 + $0xf0] sm:$0xff] }
 0xa3e   :  { %v5502_v14 = vmul.f32 -1.442695, %v2728_v20 }
 0xa3f   :  { %v5931_v16 = vpop.eup %5930 }
 0xa40   :  { %v5933_v54 = vpop.eup %5932  ;;  %v2732_v10 = vadd.f32 1.0, %v5931_v16  ;;  %5934 = vpow2.f32 %v5502_v14 }
 0xa41   :  { %v2751_v47 = vadd.f32 1.0, %v5933_v54 }
 0xa42   :  { %5936 = vrcp.f32 %v2732_v10  ;;  %v2744_v17 = vand.u32 2147483648, %v2732_v10  ;;  %v2742_v60 = vand.u32 2147483647, %v2732_v10  ;;  %vm2738_vm12 = vweird.f32 %v2732_v10 }
 0xa43   :  { %5938 = vrcp.f32 %v2751_v47  ;;  %v2763_v2 = vand.u32 2147483648, %v2751_v47  ;;  %v2761_v40 = vand.u32 2147483647, %v2751_v47  ;;  %vm2757_vm13 = vweird.f32 %v2751_v47 }
 0xa44   :  { %v2745_v37 = vor.u32 1.1754944e-38, %v2744_v17  ;;  %vm2743_vm1 = vcmp.eq.f32.partialorder %v2742_v60, 8.507059e+37  ;;  %v2010_v17 = vadd.f32 %v7114_v63, %v7255_v3 }
 0xa45   :  { %v2764_v8 = vor.u32 1.1754944e-38, %v2763_v2  ;;  %vm2762_vm2 = vcmp.eq.f32.partialorder %v2761_v40, 8.507059e+37 }
 0xa46   :  { %v5935_v56 = vpop.eup %5934 }
 0xa47   :  { %v2771_v23 = vadd.f32 1.0, %v5935_v56  ;;  %v6178_v56 = vld [vmem:[#allocation6 + $0xd0] sm:$0xff] }
 0xa48   :  { %v5937_v4 = vpop.eup %5936 }
 0xa49   :  { %v5939_v27 = vpop.eup %5938  ;;  %v2734_v24 = vmul.f32 %v5937_v4, %v2732_v10  ;;  %5940 = vrcp.f32 %v2771_v23  ;;  %vm2739_vm10 = vweird.f32 %v5937_v4  ;;  %v2783_v62 = vand.u32 2147483648, %v2771_v23 }
 0xa4a   :  { %v2753_v29 = vmul.f32 %v5939_v27, %v2751_v47  ;;  %5942 = vtanh.f32 %v2707_v1  ;;  %vm2758_vm11 = vweird.f32 %v5939_v27  ;;  %vm2740_vm14 = vmor %vm2738_vm12, %vm2739_vm10  ;;  %vm2777_vm4 = vweird.f32 %v2771_v23  ;;  %v6184_v1 = vld [vmem:[#allocation6 + $0xc0] sm:$0xff] }
 0xa4b   :  { %v2735_v30 = vsub.f32 1.0, %v2734_v24  ;;  %vm2759_vm15 = vmor %vm2757_vm13, %vm2758_vm11  ;;  %v2781_v20 = vand.u32 2147483647, %v2771_v23  ;;  %v2784_v16 = vor.u32 1.1754944e-38, %v2783_v62 }
 0xa4c   :  { %v2754_v6 = vsub.f32 1.0, %v2753_v29 }
 0xa4d   :  { %v2736_v32 = vmul.f32 %v5937_v4, %v2735_v30  ;;  %vm2782_vm6 = vcmp.eq.f32.partialorder %v2781_v20, 8.507059e+37 }
 0xa4e   :  { %v2755_v9 = vmul.f32 %v5939_v27, %v2754_v6 }
 0xa4f   :  { %v5941_v36 = vpop.eup %5940  ;;  %v2737_v15 = vadd.f32 %v5937_v4, %v2736_v32 }
 0xa50   :  { %v2756_v39 = vadd.f32 %v5939_v27, %v2755_v9  ;;  %v2773_v45 = vmul.f32 %v5941_v36, %v2771_v23  ;;  %v5943_v19 = vpop.eup %5942  ;;  %vm2778_vm3 = vweird.f32 %v5941_v36  ;;  %v6180_v23 = vld [vmem:[#allocation6 + $0xc8] sm:$0xff] }
 0xa51   :  { %v2741_v53 = vsel %vm2740_vm14, %v5937_v4, %v2737_v15  ;;  %vm2779_vm5 = vmor %vm2777_vm4, %vm2778_vm3  ;;  %v6183_v4 = vld [vmem:[#allocation6 + $0xa0] sm:$0xff] }
 0xa52   :  { %v2746_v0 = vsel %vm2743_vm1, %v2745_v37, %v2741_v53  ;;  %v2760_v25 = vsel %vm2759_vm15, %v5939_v27, %v2756_v39  ;;  %v2774_v12 = vsub.f32 1.0, %v2773_v45 }
 0xa53   :  { %v2765_v31 = vsel %vm2762_vm2, %v2764_v8, %v2760_v25  ;;  %v2788_v35 = vmul.f32 %v5943_v19, %v2746_v0 }
 0xa54   :  { %v2787_v41 = vmul.f32 %v2765_v31, %v7217_v38  ;;  %v2775_v7 = vmul.f32 %v5941_v36, %v2774_v12  ;;  %v6176_v38 = vld [vmem:[#allocation6 + $0xd8] sm:$0xff] }
 0xa56   :  { %v7272_v11 = vadd.f32 %v2788_v35, %v2787_v41  ;;  %v2776_v57 = vadd.f32 %v5941_v36, %v2775_v7 }
 0xa58   :  { %5944 = vtanh.f32 %v7272_v11  ;;  %v2780_v14 = vsel %vm2779_vm5, %v5941_v36, %v2776_v57  ;;  %v1959_v36 = vadd.f32 %v7120_v51, %v7253_v26 }
 0xa59   :  { %v2785_v10 = vsel %vm2782_vm6, %v2784_v16, %v2780_v14 }
 0xa5e   :  { %v5945_v54 = vpop.eup %5944 }
 0xa5f   :  { %v2791_v47 = vmul.f32 %v5945_v54, %v2785_v10 }
 0xa61   :  { %2792 = vst.msk [vmem:[#allocation2 + $0x20] sm:$0xff] %vm93_vm0, %v2791_v47  ;;  %5503 = vmatmul.msk.f32.vlgmr.msrb.gmra.mxu0 %vm93_vm0, %v2791_v47  ;;  %5504 = vmatmul.msk.f32.vlgmr.msra.gmra.mxu1 %vm93_vm0, %v2791_v47 }
 0xa62   :  { %5505 = vmatmul.msk.f32.vlgmr.msrb.gmra.mxu2 %vm93_vm0, %v2791_v47  ;;  %5506 = vmatmul.msk.f32.vlgmr.msra.gmra.mxu3 %vm93_vm0, %v2791_v47 }
 0xa63   :  { %3110 = vmatpush.msrb.mxu0 %v7225_v55  ;;  %3131 = vmatpush.msra.mxu1 %v7228_v21  ;;  %v6181_v55 = vld [vmem:[#allocation6 + $0xe8] sm:$0xff]  ;;  %v6182_v21 = vld [vmem:[#allocation6 + $0x80] sm:$0xff] }
 0xa64   :  { %3152 = vmatpush.msrb.mxu2 %v6176_v38  ;;  %3173 = vmatpush.msra.mxu3 %v6177_v48 }
 0xa65   :  { %3111 = vmatpush.msrb.mxu0 %v7233_v5  ;;  %3132 = vmatpush.msra.mxu1 %v7236_v43  ;;  %v6185_v5 = vld [vmem:[#allocation6 + $0xe0] sm:$0xff]  ;;  %v1857_v43 = vadd.f32 %v7102_v58, %v7087_v49 }
 0xa66   :  { %3153 = vmatpush.msrb.mxu2 %v6178_v56  ;;  %3174 = vmatpush.msra.mxu3 %v6179_v22 }
 0xa67   :  { %3112 = vmatpush.msrb.mxu0 %v7241_v44  ;;  %3133 = vmatpush.msra.mxu1 %v7244_v33  ;;  %v1908_v44 = vadd.f32 %v7107_v61, %v7089_v13 }
 0xa68   :  { %3154 = vmatpush.msrb.mxu2 %v6180_v23  ;;  %3175 = vmatpush.msra.mxu3 %v6181_v55 }
 0xa69   :  { %3113 = vmatpush.msrb.mxu0 %v6182_v21  ;;  %3134 = vmatpush.msra.mxu1 %v6183_v4 }
 0xa6a   :  { %3155 = vmatpush.msrb.mxu2 %v6184_v1  ;;  %3176 = vmatpush.msra.mxu3 %v6185_v5 }
 0xade   :  { %v2813_v27 = vpop.f32.mrf.mxu0  ;;  %v2834_v33 = vpop.f32.mrf.mxu1 }
 0xadf   :  { %v2816_v24 = vadd.f32 %v2813_v27, %v1857_v43  ;;  %v2837_v29 = vadd.f32 %v2834_v33, %v1908_v44  ;;  %v7313_v33 = vld [vmem:[%s7996_s5 + $0x5] ss:$0 sm:$0xff] }
 0xae1   :  { %v5507_v30 = vmul.f32 -1.442695, %v2816_v24  ;;  %v5508_v6 = vmul.f32 -1.442695, %v2837_v29  ;;  %v1911_v24 = vadd.f32 %v7313_v33, %v7093_v52 }
 0xae3   :  { %5946 = vpow2.f32 %v5507_v30 }
 0xae4   :  { %5948 = vpow2.f32 %v5508_v6 }
 0xae5   :  { %v2876_v2 = vpop.f32.mrf.mxu3  ;;  %v2855_v13 = vpop.f32.mrf.mxu2 }
 0xae6   :  { %v2879_v32 = vadd.f32 %v2876_v2, %v2010_v17  ;;  %v2858_v39 = vadd.f32 %v2855_v13, %v1959_v36  ;;  %v5535_v36 = vld [vmem:[%s7997_s6 + $0x38] sm:$0xff] }
 0xae8   :  { %v5509_v60 = vmul.f32 -1.442695, %v2879_v32 }
 0xae9   :  { %v5947_v9 = vpop.eup %5946 }
 0xaea   :  { %v5949_v40 = vpop.eup %5948  ;;  %v2883_v49 = vadd.f32 1.0, %v5947_v9  ;;  %5950 = vpow2.f32 %v5509_v60  ;;  %v7320_v60 = vld [vmem:[%s7996_s5 + $0x7] ss:$0 sm:$0xff] }
 0xaeb   :  { %v2902_v58 = vadd.f32 1.0, %v5949_v40 }
 0xaec   :  { %5952 = vrcp.f32 %v2883_v49  ;;  %v2895_v19 = vand.u32 2147483648, %v2883_v49  ;;  %v2893_v12 = vand.u32 2147483647, %v2883_v49  ;;  %vm2889_vm9 = vweird.f32 %v2883_v49 }
 0xaed   :  { %5954 = vrcp.f32 %v2902_v58  ;;  %v2914_v0 = vand.u32 2147483648, %v2902_v58  ;;  %v2912_v35 = vand.u32 2147483647, %v2902_v58  ;;  %vm2908_vm10 = vweird.f32 %v2902_v58 }
 0xaee   :  { %v2896_v26 = vor.u32 1.1754944e-38, %v2895_v19  ;;  %vm2894_vm13 = vcmp.eq.f32.partialorder %v2893_v12, 8.507059e+37 }
 0xaef   :  { %v2915_v62 = vor.u32 1.1754944e-38, %v2914_v0  ;;  %vm2913_vm14 = vcmp.eq.f32.partialorder %v2912_v35, 8.507059e+37 }
 0xaf0   :  { %v5951_v61 = vpop.eup %5950 }
 0xaf1   :  { %v2922_v15 = vadd.f32 1.0, %v5951_v61 }
 0xaf2   :  { %v5953_v37 = vpop.eup %5952 }
 0xaf3   :  { %v5955_v63 = vpop.eup %5954  ;;  %v2885_v3 = vmul.f32 %v5953_v37, %v2883_v49  ;;  %5956 = vrcp.f32 %v2922_v15  ;;  %vm2890_vm7 = vweird.f32 %v5953_v37  ;;  %v2934_v55 = vand.u32 2147483648, %v2922_v15 }
 0xaf4   :  { %v2904_v45 = vmul.f32 %v5955_v63, %v2902_v58  ;;  %5958 = vtanh.f32 %v2858_v39  ;;  %vm2909_vm8 = vweird.f32 %v5955_v63  ;;  %vm2891_vm11 = vmor %vm2889_vm9, %vm2890_vm7  ;;  %vm2928_vm1 = vweird.f32 %v2922_v15 }
 0xaf5   :  { %v2886_v8 = vsub.f32 1.0, %v2885_v3  ;;  %vm2910_vm12 = vmor %vm2908_vm10, %vm2909_vm8  ;;  %v2932_v21 = vand.u32 2147483647, %v2922_v15  ;;  %v2935_v1 = vor.u32 1.1754944e-38, %v2934_v55 }
 0xaf6   :  { %v2905_v53 = vsub.f32 1.0, %v2904_v45  ;;  %v5532_v45 = vld [vmem:[%s7997_s6 + $0x20] sm:$0xff] }
 0xaf7   :  { %v2887_v25 = vmul.f32 %v5953_v37, %v2886_v8  ;;  %vm2933_vm3 = vcmp.eq.f32.partialorder %v2932_v21, 8.507059e+37 }
 0xaf8   :  { %v2906_v31 = vmul.f32 %v5955_v63, %v2905_v53 }
 0xaf9   :  { %v5957_v41 = vpop.eup %5956  ;;  %v2888_v51 = vadd.f32 %v5953_v37, %v2887_v25 }
 0xafa   :  { %v2907_v7 = vadd.f32 %v5955_v63, %v2906_v31  ;;  %v2924_v57 = vmul.f32 %v5957_v41, %v2922_v15  ;;  %v5959_v14 = vpop.eup %5958  ;;  %vm2929_vm15 = vweird.f32 %v5957_v41  ;;  %v5534_v15 = vld [vmem:[%s7997_s6 + $0x30] sm:$0xff] }
 0xafb   :  { %v2892_v20 = vsel %vm2891_vm11, %v5953_v37, %v2888_v51  ;;  %vm2930_vm2 = vmor %vm2928_vm1, %vm2929_vm15 }
 0xafc   :  { %v2897_v16 = vsel %vm2894_vm13, %v2896_v26, %v2892_v20  ;;  %v2911_v54 = vsel %vm2910_vm12, %v5955_v63, %v2907_v7  ;;  %v2925_v10 = vsub.f32 1.0, %v2924_v57  ;;  %v7336_v63 = vld [vmem:[%s7996_s5 + $0x6] ss:$0 sm:$0xff] }
 0xafd   :  { %v2916_v47 = vsel %vm2913_vm14, %v2915_v62, %v2911_v54  ;;  %v2939_v38 = vmul.f32 %v5959_v14, %v2897_v16  ;;  %v1962_v3 = vadd.f32 %v7336_v63, %v7257_v50 }
 0xafe   :  { %v2938_v48 = vmul.f32 %v2916_v47, %v7272_v11  ;;  %v2926_v56 = vmul.f32 %v5957_v41, %v2925_v10  ;;  %v7306_v11 = vld [vmem:[%s7996_s5 + $0x4] ss:$0 sm:$0xff] }
 0xaff   :  { %v1860_v27 = vadd.f32 %v7306_v11, %v7091_v42  ;;  %v2013_v42 = vadd.f32 %v7320_v60, %v7259_v18  ;;  %v5533_v18 = vld [vmem:[%s7997_s6 + $0x28] sm:$0xff] }
 0xb00   :  { %v7295_v22 = vadd.f32 %v2939_v38, %v2938_v48  ;;  %v2927_v23 = vadd.f32 %v5957_v41, %v2926_v56 }
 0xb02   :  { %5960 = vtanh.f32 %v7295_v22  ;;  %v2931_v4 = vsel %vm2930_vm2, %v5957_v41, %v2927_v23 }
 0xb03   :  { %v2936_v43 = vsel %vm2933_vm3, %v2935_v1, %v2931_v4 }
 0xb08   :  { %v5961_v5 = vpop.eup %5960 }
 0xb09   :  { %v2942_v44 = vmul.f32 %v5961_v5, %v2936_v43 }
 0xb0b   :  { %2943 = vst.msk [vmem:[#allocation2 + $0x28] sm:$0xff] %vm93_vm0, %v2942_v44  ;;  %5510 = vmatmul.msk.f32.vlgmr.msra.gmra.mxu0 %vm93_vm0, %v2942_v44  ;;  %5511 = vmatmul.msk.f32.vlgmr.msrb.gmra.mxu1 %vm93_vm0, %v2942_v44 }
 0xb0c   :  { %5512 = vmatmul.msk.f32.vlgmr.msra.gmra.mxu2 %vm93_vm0, %v2942_v44  ;;  %5513 = vmatmul.msk.f32.vlgmr.msrb.gmra.mxu3 %vm93_vm0, %v2942_v44 }
 0xb0d   :  { %3309 = vmatpush.msra.mxu0 %v5535_v36  ;;  %v5545_v36 = vld [vmem:[%s7999_s8 + $0x20] sm:$0xff] }
 0xb0f   :  { %3310 = vmatpush.msra.mxu0 %v5534_v15  ;;  %v1863_v15 = vadd.f32 %v7306_v11, %v7095_v46 }
 0xb11   :  { %3311 = vmatpush.msra.mxu0 %v5533_v18  ;;  %v1914_v18 = vadd.f32 %v7313_v33, %v7097_v59 }
 0xb13   :  { %3312 = vmatpush.msra.mxu0 %v5532_v45 }
 0xb88   :  { %v2964_v29 = vpop.f32.mrf.mxu0  ;;  %v2985_v30 = vpop.f32.mrf.mxu1 }
 0xb89   :  { %v2967_v6 = vadd.f32 %v2964_v29, %v1860_v27  ;;  %v2988_v17 = vadd.f32 %v2985_v30, %v1911_v24 }
 0xb8b   :  { %v5514_v2 = vmul.f32 -1.442695, %v2967_v6  ;;  %v5515_v32 = vmul.f32 -1.442695, %v2988_v17 }
 0xb8d   :  { %5962 = vpow2.f32 %v5514_v2  ;;  %v5525_v2 = vld [vmem:[%s8001_s10 + $0x48] sm:$0xff] }
 0xb8e   :  { %5964 = vpow2.f32 %v5515_v32  ;;  %v5526_v32 = vld [vmem:[%s8001_s10 + $0x50] sm:$0xff] }
 0xb8f   :  { %v3027_v9 = vpop.f32.mrf.mxu3  ;;  %v3006_v37 = vpop.f32.mrf.mxu2 }
 0xb90   :  { %v3030_v40 = vadd.f32 %v3027_v9, %v2013_v42  ;;  %v3009_v19 = vadd.f32 %v3006_v37, %v1962_v3  ;;  %v5527_v42 = vld [vmem:[%s8001_s10 + $0x58] sm:$0xff]  ;;  %v5528_v9 = vld [vmem:[%s8001_s10 + $0x60] sm:$0xff] }
 0xb92   :  { %v5516_v49 = vmul.f32 -1.442695, %v3030_v40  ;;  %v5529_v40 = vld [vmem:[%s8001_s10 + $0x68] sm:$0xff] }
 0xb93   :  { %v5963_v52 = vpop.eup %5962 }
 0xb94   :  { %v5965_v58 = vpop.eup %5964  ;;  %v3034_v13 = vadd.f32 1.0, %v5963_v52  ;;  %5966 = vpow2.f32 %v5516_v49  ;;  %v5530_v49 = vld [vmem:[%s8001_s10 + $0x70] sm:$0xff]  ;;  %v5531_v52 = vld [vmem:[%s8001_s10 + $0x78] sm:$0xff] }
 0xb95   :  { %v3053_v61 = vadd.f32 1.0, %v5965_v58  ;;  %v5548_v58 = vld [vmem:[%s7999_s8 + $0x38] sm:$0xff] }
 0xb96   :  { %5968 = vrcp.f32 %v3034_v13  ;;  %v3046_v41 = vand.u32 2147483648, %v3034_v13  ;;  %v3044_v50 = vand.u32 2147483647, %v3034_v13  ;;  %vm3040_vm6 = vweird.f32 %v3034_v13  ;;  %3392 = vmatpush.msrb.mxu1 %v5548_v58 }
 0xb97   :  { %5970 = vrcp.f32 %v3053_v61  ;;  %v3065_v51 = vand.u32 2147483648, %v3053_v61  ;;  %v3063_v57 = vand.u32 2147483647, %v3053_v61  ;;  %vm3059_vm7 = vweird.f32 %v3053_v61 }
 0xb98   :  { %v3047_v14 = vor.u32 1.1754944e-38, %v3046_v41  ;;  %vm3045_vm10 = vcmp.eq.f32.partialorder %v3044_v50, 8.507059e+37 }
 0xb99   :  { %v3066_v10 = vor.u32 1.1754944e-38, %v3065_v51  ;;  %vm3064_vm11 = vcmp.eq.f32.partialorder %v3063_v57, 8.507059e+37 }
 0xb9a   :  { %v5967_v39 = vpop.eup %5966 }
 0xb9b   :  { %v3073_v8 = vadd.f32 1.0, %v5967_v39 }
 0xb9c   :  { %v5969_v53 = vpop.eup %5968 }
 0xb9d   :  { %v5971_v0 = vpop.eup %5970  ;;  %v3036_v25 = vmul.f32 %v5969_v53, %v3034_v13  ;;  %5972 = vrcp.f32 %v3073_v8  ;;  %vm3041_vm4 = vweird.f32 %v5969_v53  ;;  %v3085_v44 = vand.u32 2147483648, %v3073_v8  ;;  %v5547_v13 = vld [vmem:[%s7999_s8 + $0x30] sm:$0xff] }
 0xb9e   :  { %v3055_v12 = vmul.f32 %v5971_v0, %v3053_v61  ;;  %5974 = vtanh.f32 %v3009_v19  ;;  %vm3060_vm5 = vweird.f32 %v5971_v0  ;;  %vm3042_vm8 = vmor %vm3040_vm6, %vm3041_vm4  ;;  %vm3079_vm13 = vweird.f32 %v3073_v8  ;;  %3393 = vmatpush.msrb.mxu1 %v5547_v13  ;;  %v5546_v61 = vld [vmem:[%s7999_s8 + $0x28] sm:$0xff]  ;;  %v7403_v19 = vld [vmem:[%s7998_s7 + $0x1] ss:$0 sm:$0xff] }
 0xb9f   :  { %v3037_v31 = vsub.f32 1.0, %v3036_v25  ;;  %vm3061_vm9 = vmor %vm3059_vm7, %vm3060_vm5  ;;  %v3083_v27 = vand.u32 2147483647, %v3073_v8  ;;  %v3086_v29 = vor.u32 1.1754944e-38, %v3085_v44 }
 0xba0   :  { %v3056_v35 = vsub.f32 1.0, %v3055_v12  ;;  %3394 = vmatpush.msrb.mxu1 %v5546_v61 }
 0xba1   :  { %v3038_v26 = vmul.f32 %v5969_v53, %v3037_v31  ;;  %vm3084_vm15 = vcmp.eq.f32.partialorder %v3083_v27, 8.507059e+37 }
 0xba2   :  { %v3057_v7 = vmul.f32 %v5971_v0, %v3056_v35  ;;  %3395 = vmatpush.msrb.mxu1 %v5545_v36 }
 0xba3   :  { %v5973_v62 = vpop.eup %5972  ;;  %v3039_v20 = vadd.f32 %v5969_v53, %v3038_v26 }
 0xba4   :  { %v3058_v16 = vadd.f32 %v5971_v0, %v3057_v7  ;;  %v3075_v54 = vmul.f32 %v5973_v62, %v3073_v8  ;;  %v5975_v38 = vpop.eup %5974  ;;  %vm3080_vm12 = vweird.f32 %v5973_v62  ;;  %v1965_v7 = vadd.f32 %v7336_v63, %v7261_v34 }
 0xba5   :  { %v3043_v47 = vsel %vm3042_vm8, %v5969_v53, %v3039_v20  ;;  %vm3081_vm14 = vmor %vm3079_vm13, %vm3080_vm12 }
 0xba6   :  { %v3048_v48 = vsel %vm3045_vm10, %v3047_v14, %v3043_v47  ;;  %v3062_v56 = vsel %vm3061_vm9, %v5971_v0, %v3058_v16  ;;  %v3076_v23 = vsub.f32 1.0, %v3075_v54  ;;  %v2016_v0 = vadd.f32 %v7320_v60, %v7263_v28 }
 0xba7   :  { %v3067_v55 = vsel %vm3064_vm11, %v3066_v10, %v3062_v56  ;;  %v3090_v21 = vmul.f32 %v5975_v38, %v3048_v48 }
 0xba8   :  { %v3089_v4 = vmul.f32 %v3067_v55, %v7295_v22  ;;  %v3077_v1 = vmul.f32 %v5973_v62, %v3076_v23  ;;  %v5524_v22 = vld [vmem:[%s8001_s10 + $0x40] sm:$0xff] }
 0xbaa   :  { %v7344_v5 = vadd.f32 %v3090_v21, %v3089_v4  ;;  %v3078_v43 = vadd.f32 %v5973_v62, %v3077_v1 }
 0xbac   :  { %5976 = vtanh.f32 %v7344_v5  ;;  %v3082_v24 = vsel %vm3081_vm14, %v5973_v62, %v3078_v43 }
 0xbad   :  { %v3087_v6 = vsel %vm3084_vm15, %v3086_v29, %v3082_v24 }
 0xbb2   :  { %v5977_v30 = vpop.eup %5976 }
 0xbb3   :  { %v3093_v17 = vmul.f32 %v5977_v30, %v3087_v6 }
 0xbb5   :  { %3094 = vst.msk [vmem:[#allocation2 + $0x30] sm:$0xff] %vm93_vm0, %v3093_v17  ;;  %5517 = vmatmul.msk.f32.vlgmr.msrb.gmra.mxu0 %vm93_vm0, %v3093_v17  ;;  %5518 = vmatmul.msk.f32.vlgmr.msra.gmra.mxu1 %vm93_vm0, %v3093_v17 }
 0xbb6   :  { %5519 = vmatmul.msk.f32.vlgmr.msrb.gmra.mxu2 %vm93_vm0, %v3093_v17  ;;  %5520 = vmatmul.msk.f32.vlgmr.msra.gmra.mxu3 %vm93_vm0, %v3093_v17 }
 0xbbd   :  { %5537 = vmatmul.msk.f32.vlgmr.msra.gmra.mxu0 %vm93_vm0, %v5524_v22 }
 0xbc5   :  { %5538 = vmatmul.msk.f32.gmra.mxu0 %vm93_vm0, %v5525_v2 }
 0xbcd   :  { %5539 = vmatmul.msk.f32.gmra.mxu0 %vm93_vm0, %v5526_v32 }
 0xbd5   :  { %5540 = vmatmul.msk.f32.gmra.mxu0 %vm93_vm0, %v5527_v42 }
 0xbdd   :  { %5541 = vmatmul.msk.f32.gmra.mxu0 %vm93_vm0, %v5528_v9 }
 0xbe5   :  { %5542 = vmatmul.msk.f32.gmra.mxu0 %vm93_vm0, %v5529_v40 }
 0xbed   :  { %5543 = vmatmul.msk.f32.gmra.mxu0 %vm93_vm0, %v5530_v49 }
 0xbf5   :  { %5544 = vmatmul.msk.f32.gmra.mxu0 %vm93_vm0, %v5531_v52 }
 0xc32   :  { %v3115_v37 = vpop.f32.mrf.mxu0  ;;  %v3136_v39 = vpop.f32.mrf.mxu1 }
 0xc33   :  { %v3118_v3 = vadd.f32 %v3115_v37, %v1863_v15  ;;  %v3139_v45 = vadd.f32 %v3136_v39, %v1914_v18  ;;  %v3433_v37 = vld [vmem:[#allocation3 + $0x118] sm:$0xff]  ;;  %v3250_v15 = vld [vmem:[#allocation2 + $0x20] sm:$0xff] }
 0xc34   :  { %v3508_v39 = vld [vmem:[#allocation3 + $0x138] sm:$0xff]  ;;  %3475 = vmatpush.msra.mxu2 %v3433_v37 }
 0xc35   :  { %v5521_v8 = vmul.f32 -1.442695, %v3118_v3  ;;  %v5522_v53 = vmul.f32 -1.442695, %v3139_v45  ;;  %v3559_v3 = vld [vmem:[#allocation3 + $0x158] sm:$0xff]  ;;  %3526 = vmatpush.msrb.mxu3 %v3508_v39  ;;  %v7520_v39 = vld [vmem:[#allocation6 + $0x150] sm:$0xff] }
 0xc36   :  { %v3610_v45 = vld [vmem:[#allocation3 + $0x178] sm:$0xff]  ;;  %3577 = vmatpush.msrb.mxu0 %v3559_v3  ;;  %v7522_v3 = vld [vmem:[#allocation6 + $0x170] sm:$0xff] }
 0xc37   :  { %5978 = vpow2.f32 %v5521_v8  ;;  %v3432_v8 = vld [vmem:[#allocation3 + $0x110] sm:$0xff]  ;;  %3628 = vmatpush.msra.mxu1 %v3610_v45  ;;  %v7516_v37 = vld [vmem:[#allocation6 + $0x178] sm:$0xff] }
 0xc38   :  { %5980 = vpow2.f32 %v5522_v53  ;;  %v3507_v53 = vld [vmem:[#allocation3 + $0x130] sm:$0xff]  ;;  %3476 = vmatpush.msra.mxu2 %v3432_v8  ;;  %v7526_v8 = vld [vmem:[#allocation6 + $0x148] sm:$0xff] }
 0xc39   :  { %v3178_v46 = vpop.f32.mrf.mxu3  ;;  %v3157_v50 = vpop.f32.mrf.mxu2  ;;  %3527 = vmatpush.msrb.mxu3 %v3507_v53  ;;  %v7528_v53 = vld [vmem:[#allocation6 + $0x168] sm:$0xff] }
 0xc3a   :  { %v3181_v11 = vadd.f32 %v3178_v46, %v2016_v0  ;;  %v3314_v25 = vpop.f32.mrf.mxu0  ;;  %v3160_v14 = vadd.f32 %v3157_v50, %v1965_v7 }
 0xc3b   :  { %v3315_v59 = vadd.f32 %v7403_v19, %v3314_v25 }
 0xc3c   :  { %v5523_v33 = vmul.f32 -1.442695, %v3181_v11 }
 0xc3d   :  { %v5979_v12 = vpop.eup %5978  ;;  %v3338_v31 = vmax.f32 %v3315_v59, 0.0 }
 0xc3e   :  { %v5981_v35 = vpop.eup %5980  ;;  %v3185_v41 = vadd.f32 1.0, %v5979_v12  ;;  %5982 = vpow2.f32 %v5523_v33 }
 0xc3f   :  { %v3204_v51 = vadd.f32 1.0, %v5981_v35  ;;  %5550 = vmatmul.msk.f32.vlgmr.msrb.gmra.mxu1 %vm93_vm0, %v3338_v31 }
 0xc40   :  { %5984 = vrcp.f32 %v3185_v41  ;;  %v3195_v48 = vand.u32 2147483647, %v3185_v41  ;;  %v3197_v56 = vand.u32 2147483648, %v3185_v41  ;;  %vm3191_vm3 = vweird.f32 %v3185_v41 }
 0xc41   :  { %5986 = vrcp.f32 %v3204_v51  ;;  %v3216_v55 = vand.u32 2147483648, %v3204_v51  ;;  %v3214_v4 = vand.u32 2147483647, %v3204_v51  ;;  %vm3210_vm4 = vweird.f32 %v3204_v51 }
 0xc42   :  { %v3317_v26 = vpop.f32.mrf.mxu0  ;;  %v3198_v27 = vor.u32 1.1754944e-38, %v3197_v56  ;;  %vm3196_vm7 = vcmp.eq.f32.partialorder %v3195_v48, 8.507059e+37  ;;  %v3556_v48 = vld [vmem:[#allocation3 + $0x140] sm:$0xff] }
 0xc43   :  { %v3318_v28 = vadd.f32 %v7403_v19, %v3317_v26  ;;  %v3217_v30 = vor.u32 1.1754944e-38, %v3216_v55  ;;  %vm3215_vm8 = vcmp.eq.f32.partialorder %v3214_v4, 8.507059e+37  ;;  %v3607_v56 = vld [vmem:[#allocation3 + $0x160] sm:$0xff]  ;;  %v7454_v55 = vld [vmem:[#allocation6 + $0x110] sm:$0xff] }
 0xc44   :  { %v5983_v60 = vpop.eup %5982 }
 0xc45   :  { %v7412_v57 = vadd.f32 1.0, %v5983_v60  ;;  %v3339_v62 = vmax.f32 %v3318_v28, 0.0 }
 0xc46   :  { %v5985_v20 = vpop.eup %5984 }
 0xc47   :  { %v5987_v16 = vpop.eup %5986  ;;  %v3187_v54 = vmul.f32 %v5985_v20, %v3185_v41  ;;  %5988 = vrcp.f32 %v7412_v57  ;;  %5551 = vmatmul.msk.f32.gmra.mxu1 %vm93_vm0, %v3339_v62  ;;  %vm3192_vm1 = vweird.f32 %v5985_v20  ;;  %vm3230_vm10 = vweird.f32 %v7412_v57  ;;  %v3558_v62 = vld [vmem:[#allocation3 + $0x150] sm:$0xff] }
 0xc48   :  { %v3206_v10 = vmul.f32 %v5987_v16, %v3204_v51  ;;  %5990 = vtanh.f32 %v3160_v14  ;;  %vm3211_vm2 = vweird.f32 %v5987_v16  ;;  %vm3193_vm5 = vmor %vm3191_vm3, %vm3192_vm1  ;;  %v3236_v18 = vand.u32 2147483648, %v7412_v57  ;;  %3578 = vmatpush.msrb.mxu0 %v3558_v62  ;;  %v3431_v14 = vld [vmem:[#allocation3 + $0x108] sm:$0xff] }
 0xc49   :  { %v3188_v47 = vsub.f32 1.0, %v3187_v54  ;;  %vm3212_vm6 = vmor %vm3210_vm4, %vm3211_vm2  ;;  %v3557_v54 = vld [vmem:[#allocation3 + $0x148] sm:$0xff]  ;;  %3477 = vmatpush.msra.mxu2 %v3431_v14 }
 0xc4a   :  { %v3207_v38 = vsub.f32 1.0, %v3206_v10  ;;  %v3320_v23 = vpop.f32.mrf.mxu0  ;;  %v3237_v46 = vor.u32 1.1754944e-38, %v3236_v18  ;;  %v3608_v10 = vld [vmem:[#allocation3 + $0x168] sm:$0xff]  ;;  %3579 = vmatpush.msrb.mxu0 %v3557_v54 }
 0xc4b   :  { %v3189_v34 = vmul.f32 %v5985_v20, %v3188_v47  ;;  %v3321_v63 = vadd.f32 %v7403_v19, %v3320_v23  ;;  %v3430_v47 = vld [vmem:[#allocation3 + $0x100] sm:$0xff]  ;;  %v7448_v23 = vld [vmem:[#allocation6 + $0x138] sm:$0xff]  ;;  %v5734_v14 = vld [vmem:[%s7996_s5 + $0x9] ss:$0 sm:$0xff] }
 0xc4c   :  { %v3208_v21 = vmul.f32 %v5987_v16, %v3207_v38  ;;  %v3505_v38 = vld [vmem:[#allocation3 + $0x120] sm:$0xff]  ;;  %3478 = vmatpush.msra.mxu2 %v3430_v47  ;;  %3580 = vmatpush.msrb.mxu0 %v3556_v48 }
 0xc4d   :  { %v5989_v1 = vpop.eup %5988  ;;  %v3190_v43 = vadd.f32 %v5985_v20, %v3189_v34  ;;  %v3340_v44 = vmax.f32 %v3321_v63, 0.0  ;;  %v7456_v34 = vld [vmem:[#allocation6 + $0x130] sm:$0xff]  ;;  %v7465_v63 = vld [vmem:[%s8000_s9 + $0x1] ss:$0 sm:$0xff] }
 0xc4e   :  { %v3209_v24 = vadd.f32 %v5987_v16, %v3208_v21  ;;  %v3226_v29 = vmul.f32 %v5989_v1, %v7412_v57  ;;  %v5991_v17 = vpop.eup %5990  ;;  %vm3231_vm9 = vweird.f32 %v5989_v1 }
 0xc4f   :  { %v3194_v6 = vsel %vm3193_vm5, %v5985_v20, %v3190_v43  ;;  %5552 = vmatmul.msk.f32.gmra.mxu1 %vm93_vm0, %v3340_v44  ;;  %vm7425_vm11 = vmor %vm3230_vm10, %vm3231_vm9  ;;  %v3609_v20 = vld [vmem:[#allocation3 + $0x170] sm:$0xff]  ;;  %v7472_v44 = vld [vmem:[#allocation6 + $0x108] sm:$0xff] }
 0xc50   :  { %v3199_v22 = vsel %vm3196_vm7, %v3198_v27, %v3194_v6  ;;  %v3213_v2 = vsel %vm3212_vm6, %v5987_v16, %v3209_v24  ;;  %v3227_v32 = vsub.f32 1.0, %v3226_v29  ;;  %3629 = vmatpush.msra.mxu1 %v3609_v20  ;;  %v3506_v16 = vld [vmem:[#allocation3 + $0x128] sm:$0xff] }
 0xc51   :  { %v3218_v42 = vsel %vm3215_vm8, %v3217_v30, %v3213_v2  ;;  %v3241_v9 = vmul.f32 %v5991_v17, %v3199_v22  ;;  %3528 = vmatpush.msrb.mxu3 %v3506_v16  ;;  %v7474_v27 = vld [vmem:[#allocation6 + $0x128] sm:$0xff]  ;;  %v3248_v2 = vld [vmem:[#allocation2 + $0x10] sm:$0xff] }
 0xc52   :  { %v3240_v40 = vmul.f32 %v3218_v42, %v7344_v5  ;;  %v3228_v49 = vmul.f32 %v5989_v1, %v3227_v32  ;;  %v3323_v52 = vpop.f32.mrf.mxu0  ;;  %v3234_v5 = vand.u32 2147483647, %v7412_v57  ;;  %3630 = vmatpush.msra.mxu1 %v3608_v10  ;;  %v3247_v30 = vld [vmem:[#allocation2 + $0x8] sm:$0xff]  ;;  %v7490_v42 = vld [vmem:[#allocation6 + $0x100] sm:$0xff] }
 0xc53   :  { %v3324_v58 = vadd.f32 %v7403_v19, %v3323_v52  ;;  %3529 = vmatpush.msrb.mxu3 %v3505_v38  ;;  %v3249_v52 = vld [vmem:[#allocation2 + $0x18] sm:$0xff] }
 0xc54   :  { %v7421_v13 = vadd.f32 %v3241_v9, %v3240_v40  ;;  %v3229_v61 = vadd.f32 %v5989_v1, %v3228_v49  ;;  %vm3235_vm12 = vcmp.eq.f32.partialorder %v3234_v5, 8.507059e+37  ;;  %3631 = vmatpush.msra.mxu1 %v3607_v56  ;;  %v7492_v9 = vld [vmem:[#allocation6 + $0x120] sm:$0xff]  ;;  %v7514_v5 = vld [vmem:[#allocation6 + $0x158] sm:$0xff] }
 0xc55   :  { %v3341_v36 = vmax.f32 %v3324_v58, 0.0  ;;  %3713 = vmatpush.msra.mxu3 %v7448_v23 }
 0xc56   :  { %5992 = vtanh.f32 %v7421_v13  ;;  %v3233_v0 = vsel %vm7425_vm11, %v5989_v1, %v3229_v61  ;;  %4317 = vmatpush.msrb.mxu1 %v7448_v23  ;;  %v3246_v1 = vld [vmem:[#allocation2] sm:$0xff] }
 0xc57   :  { %5553 = vmatmul.msk.f32.gmra.mxu1 %vm93_vm0, %v3341_v36  ;;  %v3238_v33 = vsel %vm3235_vm12, %v3237_v46, %v3233_v0  ;;  %3714 = vmatpush.msra.mxu3 %v7456_v34  ;;  %v3251_v46 = vld [vmem:[#allocation2 + $0x28] sm:$0xff] }
 0xc58   :  { %4318 = vmatpush.msrb.mxu1 %v7456_v34 }
 0xc59   :  { %3715 = vmatpush.msra.mxu3 %v7474_v27 }
 0xc5a   :  { %v3326_v11 = vpop.f32.mrf.mxu0  ;;  %4319 = vmatpush.msrb.mxu1 %v7474_v27 }
 0xc5b   :  { %v3327_v25 = vadd.f32 %v7403_v19, %v3326_v11  ;;  %3716 = vmatpush.msra.mxu3 %v7492_v9 }
 0xc5c   :  { %v5993_v59 = vpop.eup %5992  ;;  %4320 = vmatpush.msrb.mxu1 %v7492_v9 }
 0xc5d   :  { %v7435_v12 = vmul.f32 %v5993_v59, %v3238_v33  ;;  %v3342_v31 = vmax.f32 %v3327_v25, 0.0  ;;  %v7535_v25 = vld [vmem:[#allocation6 + $0x140] sm:$0xff] }
 0xc5e   :  { %v7537_v59 = vld [vmem:[#allocation6 + $0x160] sm:$0xff] }
 0xc5f   :  { %3245 = vst.msk [vmem:[#allocation2 + $0x38] sm:$0xff] %vm93_vm0, %v7435_v12  ;;  %5554 = vmatmul.msk.f32.gmra.mxu1 %vm93_vm0, %v3342_v31 }
 0xc62   :  { %v3329_v35 = vpop.f32.mrf.mxu0 }
 0xc63   :  { %v3330_v41 = vadd.f32 %v7403_v19, %v3329_v35  ;;  %v3252_v35 = vld [vmem:[#allocation2 + $0x30] sm:$0xff] }
 0xc65   :  { %v3343_v51 = vmax.f32 %v3330_v41, 0.0 }
 0xc67   :  { %5555 = vmatmul.msk.f32.gmra.mxu1 %vm93_vm0, %v3343_v51 }
 0xc6a   :  { %v3332_v26 = vpop.f32.mrf.mxu0 }
 0xc6b   :  { %v3333_v50 = vadd.f32 %v7403_v19, %v3332_v26 }
 0xc6d   :  { %v3344_v28 = vmax.f32 %v3333_v50, 0.0  ;;  %v3253_v50 = vld [vmem:[#allocation2 + $0x38] sm:$0xff] }
 0xc6f   :  { %5556 = vmatmul.msk.f32.gmra.mxu1 %vm93_vm0, %v3344_v28 }
 0xc72   :  { %v3335_v60 = vpop.f32.mrf.mxu0 }
 0xc73   :  { %v3336_v7 = vadd.f32 %v7403_v19, %v3335_v60  ;;  %v7446_v19 = vld [vmem:[#allocation6 + $0x118] sm:$0xff] }
 0xc74   :  { %3692 = vmatpush.msrb.mxu2 %v7446_v19  ;;  %4296 = vmatpush.msra.mxu0 %v7446_v19 }
 0xc75   :  { %v3345_v57 = vmax.f32 %v3336_v7, 0.0 }
 0xc76   :  { %3693 = vmatpush.msrb.mxu2 %v7454_v55  ;;  %4297 = vmatpush.msra.mxu0 %v7454_v55 }
 0xc77   :  { %5557 = vmatmul.msk.f32.gmra.mxu1 %vm93_vm0, %v3345_v57 }
 0xc78   :  { %3694 = vmatpush.msrb.mxu2 %v7472_v44  ;;  %4298 = vmatpush.msra.mxu0 %v7472_v44 }
 0xc7a   :  { %3695 = vmatpush.msrb.mxu2 %v7490_v42  ;;  %4299 = vmatpush.msra.mxu0 %v7490_v42 }
 0xcbc   :  { %v3397_v21 = vpop.f32.mrf.mxu1 }
 0xcbd   :  { %v3398_v4 = vadd.f32 %v7465_v63, %v3397_v21 }
 0xcbf   :  { %v3421_v43 = vadd.f32 %v3398_v4, %v3246_v1 }
 0xcc1   :  { %5559 = vmatmul.msk.f32.vlgmr.msra.gmra.mxu2 %vm93_vm0, %v3421_v43  ;;  %5568 = vmatmul.msk.f32.vlgmr.msrb.gmra.mxu3 %vm93_vm0, %v3421_v43 }
 0xcc2   :  { %5577 = vmatmul.msk.f32.vlgmr.msrb.gmra.mxu0 %vm93_vm0, %v3421_v43  ;;  %5586 = vmatmul.msk.f32.vlgmr.msra.gmra.mxu1 %vm93_vm0, %v3421_v43 }
 0xcc3   :  { %4447 = vmatpush.msrb.mxu0 %v7446_v19  ;;  %4468 = vmatpush.msra.mxu1 %v7448_v23 }
 0xcc4   :  { %v3400_v24 = vpop.f32.mrf.mxu1  ;;  %3734 = vmatpush.msra.mxu2 %v7514_v5  ;;  %3755 = vmatpush.msrb.mxu3 %v7516_v37 }
 0xcc5   :  { %v3401_v29 = vadd.f32 %v7465_v63, %v3400_v24  ;;  %4448 = vmatpush.msrb.mxu0 %v7454_v55  ;;  %4469 = vmatpush.msra.mxu1 %v7456_v34 }
 0xcc6   :  { %3735 = vmatpush.msra.mxu2 %v7520_v39  ;;  %3756 = vmatpush.msrb.mxu3 %v7522_v3 }
 0xcc7   :  { %v3422_v6 = vadd.f32 %v3401_v29, %v3247_v30  ;;  %4449 = vmatpush.msrb.mxu0 %v7472_v44  ;;  %4470 = vmatpush.msra.mxu1 %v7474_v27 }
 0xcc8   :  { %3736 = vmatpush.msra.mxu2 %v7526_v8  ;;  %3757 = vmatpush.msrb.mxu3 %v7528_v53 }
 0xcc9   :  { %5560 = vmatmul.msk.f32.gmra.mxu2 %vm93_vm0, %v3422_v6  ;;  %5569 = vmatmul.msk.f32.gmra.mxu3 %vm93_vm0, %v3422_v6 }
 0xcca   :  { %5578 = vmatmul.msk.f32.gmra.mxu0 %vm93_vm0, %v3422_v6  ;;  %5587 = vmatmul.msk.f32.gmra.mxu1 %vm93_vm0, %v3422_v6  ;;  %v7615_v6 = vld [vmem:[%s7996_s5 + $0x8] ss:$0 sm:$0xff] }
 0xccb   :  { %4450 = vmatpush.msrb.mxu0 %v7490_v42  ;;  %4471 = vmatpush.msra.mxu1 %v7492_v9 }
 0xccc   :  { %v3403_v17 = vpop.f32.mrf.mxu1  ;;  %3737 = vmatpush.msra.mxu2 %v7535_v25  ;;  %3758 = vmatpush.msrb.mxu3 %v7537_v59 }
 0xccd   :  { %v3404_v22 = vadd.f32 %v7465_v63, %v3403_v17 }
 0xccf   :  { %v3423_v32 = vadd.f32 %v3404_v22, %v3248_v2 }
 0xcd1   :  { %5561 = vmatmul.msk.f32.gmra.mxu2 %vm93_vm0, %v3423_v32  ;;  %5570 = vmatmul.msk.f32.gmra.mxu3 %vm93_vm0, %v3423_v32 }
 0xcd2   :  { %5579 = vmatmul.msk.f32.gmra.mxu0 %vm93_vm0, %v3423_v32  ;;  %5588 = vmatmul.msk.f32.gmra.mxu1 %vm93_vm0, %v3423_v32 }
 0xcd4   :  { %v3406_v40 = vpop.f32.mrf.mxu1 }
 0xcd5   :  { %v3407_v49 = vadd.f32 %v7465_v63, %v3406_v40  ;;  %v7625_v40 = vld [vmem:[%s7996_s5 + $0xa] ss:$0 sm:$0xff] }
 0xcd7   :  { %v3424_v58 = vadd.f32 %v3407_v49, %v3249_v52  ;;  %v7630_v49 = vld [vmem:[%s7996_s5 + $0xb] ss:$0 sm:$0xff] }
 0xcd9   :  { %5562 = vmatmul.msk.f32.gmra.mxu2 %vm93_vm0, %v3424_v58  ;;  %5571 = vmatmul.msk.f32.gmra.mxu3 %vm93_vm0, %v3424_v58 }
 0xcda   :  { %5580 = vmatmul.msk.f32.gmra.mxu0 %vm93_vm0, %v3424_v58  ;;  %5589 = vmatmul.msk.f32.gmra.mxu1 %vm93_vm0, %v3424_v58 }
 0xcdc   :  { %v3409_v61 = vpop.f32.mrf.mxu1 }
 0xcdd   :  { %v3410_v36 = vadd.f32 %v7465_v63, %v3409_v61 }
 0xcdf   :  { %v3425_v18 = vadd.f32 %v3410_v36, %v3250_v15 }
 0xce1   :  { %5563 = vmatmul.msk.f32.gmra.mxu2 %vm93_vm0, %v3425_v18  ;;  %5572 = vmatmul.msk.f32.gmra.mxu3 %vm93_vm0, %v3425_v18 }
 0xce2   :  { %5581 = vmatmul.msk.f32.gmra.mxu0 %vm93_vm0, %v3425_v18  ;;  %5590 = vmatmul.msk.f32.gmra.mxu1 %vm93_vm0, %v3425_v18 }
 0xce4   :  { %v3412_v45 = vpop.f32.mrf.mxu1 }
 0xce5   :  { %v3413_v0 = vadd.f32 %v7465_v63, %v3412_v45 }
 0xce7   :  { %v3426_v11 = vadd.f32 %v3413_v0, %v3251_v46 }
 0xce9   :  { %5564 = vmatmul.msk.f32.gmra.mxu2 %vm93_vm0, %v3426_v11  ;;  %5573 = vmatmul.msk.f32.gmra.mxu3 %vm93_vm0, %v3426_v11 }
 0xcea   :  { %5582 = vmatmul.msk.f32.gmra.mxu0 %vm93_vm0, %v3426_v11  ;;  %5591 = vmatmul.msk.f32.gmra.mxu1 %vm93_vm0, %v3426_v11 }
 0xcec   :  { %v3415_v33 = vpop.f32.mrf.mxu1 }
 0xced   :  { %v3416_v31 = vadd.f32 %v7465_v63, %v3415_v33 }
 0xcef   :  { %v3427_v41 = vadd.f32 %v3416_v31, %v3252_v35 }
 0xcf1   :  { %5565 = vmatmul.msk.f32.gmra.mxu2 %vm93_vm0, %v3427_v41  ;;  %5574 = vmatmul.msk.f32.gmra.mxu3 %vm93_vm0, %v3427_v41 }
 0xcf2   :  { %5583 = vmatmul.msk.f32.gmra.mxu0 %vm93_vm0, %v3427_v41  ;;  %5592 = vmatmul.msk.f32.gmra.mxu1 %vm93_vm0, %v3427_v41 }
 0xcf4   :  { %v3418_v51 = vpop.f32.mrf.mxu1 }
 0xcf5   :  { %v3419_v26 = vadd.f32 %v7465_v63, %v3418_v51 }
 0xcf7   :  { %v3428_v28 = vadd.f32 %v3419_v26, %v3253_v50 }
 0xcf9   :  { %5566 = vmatmul.msk.f32.gmra.mxu2 %vm93_vm0, %v3428_v28  ;;  %5575 = vmatmul.msk.f32.gmra.mxu3 %vm93_vm0, %v3428_v28 }
 0xcfa   :  { %5584 = vmatmul.msk.f32.gmra.mxu0 %vm93_vm0, %v3428_v28  ;;  %5593 = vmatmul.msk.f32.gmra.mxu1 %vm93_vm0, %v3428_v28 }
 0xd01   :  { %5594 = vmatmul.msk.f32.vlgmr.msrb.gmra.mxu2 %vm93_vm0, %v7435_v12  ;;  %5595 = vmatmul.msk.f32.vlgmr.msra.gmra.mxu3 %vm93_vm0, %v7435_v12 }
 0xd02   :  { %3843 = vmatpush.msrb.mxu2 %v7446_v19  ;;  %3864 = vmatpush.msra.mxu3 %v7448_v23 }
 0xd04   :  { %3844 = vmatpush.msrb.mxu2 %v7454_v55  ;;  %3865 = vmatpush.msra.mxu3 %v7456_v34 }
 0xd06   :  { %3845 = vmatpush.msrb.mxu2 %v7472_v44  ;;  %3866 = vmatpush.msra.mxu3 %v7474_v27 }
 0xd08   :  { %3846 = vmatpush.msrb.mxu2 %v7490_v42  ;;  %3867 = vmatpush.msra.mxu3 %v7492_v9 }
 0xd09   :  { %5596 = vmatmul.msk.f32.vlgmr.msra.gmra.mxu2 %vm93_vm0, %v7435_v12  ;;  %5597 = vmatmul.msk.f32.vlgmr.msrb.gmra.mxu3 %vm93_vm0, %v7435_v12 }
 0xd0a   :  { %3885 = vmatpush.msra.mxu2 %v7514_v5  ;;  %3906 = vmatpush.msrb.mxu3 %v7516_v37 }
 0xd0c   :  { %3886 = vmatpush.msra.mxu2 %v7520_v39  ;;  %3907 = vmatpush.msrb.mxu3 %v7522_v3 }
 0xd0e   :  { %3887 = vmatpush.msra.mxu2 %v7526_v8  ;;  %3908 = vmatpush.msrb.mxu3 %v7528_v53 }
 0xd10   :  { %3888 = vmatpush.msra.mxu2 %v7535_v25  ;;  %3909 = vmatpush.msrb.mxu3 %v7537_v59 }
 0xd3f   :  { %v7579_v60 = vpop.f32.mrf.mxu0  ;;  %v3633_v7 = vpop.f32.mrf.mxu1 }
 0xd44   :  { %v3480_v12 = vpop.f32.mrf.mxu2  ;;  %v3531_v57 = vpop.f32.mrf.mxu3 }
 0xd47   :  { %v7581_v62 = vpop.f32.mrf.mxu0  ;;  %v7583_v20 = vpop.f32.mrf.mxu1 }
 0xd4c   :  { %v7588_v16 = vpop.f32.mrf.mxu2  ;;  %v3534_v54 = vpop.f32.mrf.mxu3 }
 0xd4d   :  { %v7590_v10 = vadd.f32 %v5734_v14, %v3534_v54 }
 0xd4f   :  { %v7592_v47 = vpop.f32.mrf.mxu0  ;;  %v7594_v38 = vpop.f32.mrf.mxu1 }
 0xd54   :  { %v7596_v48 = vpop.f32.mrf.mxu2  ;;  %v3537_v56 = vpop.f32.mrf.mxu3 }
 0xd55   :  { %v7598_v63 = vadd.f32 %v5734_v14, %v3537_v56 }
 0xd57   :  { %v7600_v21 = vpop.f32.mrf.mxu0  ;;  %v7602_v4 = vpop.f32.mrf.mxu1 }
 0xd5c   :  { %v7604_v1 = vpop.f32.mrf.mxu2  ;;  %v3540_v43 = vpop.f32.mrf.mxu3 }
 0xd5d   :  { %v7606_v24 = vadd.f32 %v5734_v14, %v3540_v43  ;;  %v3481_v43 = vadd.f32 %v7615_v6, %v3480_v12 }
 0xd5f   :  { %v7608_v29 = vpop.f32.mrf.mxu0  ;;  %v7610_v30 = vpop.f32.mrf.mxu1 }
 0xd64   :  { %v3492_v17 = vpop.f32.mrf.mxu2  ;;  %v3543_v22 = vpop.f32.mrf.mxu3 }
 0xd65   :  { %v7618_v2 = vadd.f32 %v7615_v6, %v3492_v17  ;;  %v7620_v32 = vadd.f32 %v5734_v14, %v3543_v22  ;;  %v3532_v17 = vadd.f32 %v5734_v14, %v3531_v57  ;;  %v3583_v57 = vadd.f32 %v7625_v40, %v7579_v60 }
 0xd67   :  { %v3597_v52 = vpop.f32.mrf.mxu0  ;;  %v3648_v58 = vpop.f32.mrf.mxu1 }
 0xd68   :  { %v7633_v61 = vadd.f32 %v7625_v40, %v3597_v52  ;;  %v7636_v36 = vadd.f32 %v7630_v49, %v3648_v58 }
 0xd6a   :  { %8015 = vst [vmem:[#allocation12_spill] sm:$0xff] %v7633_v61 }
 0xd6c   :  { %v3495_v15 = vpop.f32.mrf.mxu2  ;;  %v3546_v18 = vpop.f32.mrf.mxu3 }
 0xd6d   :  { %v7639_v45 = vadd.f32 %v7615_v6, %v3495_v15  ;;  %v7641_v0 = vadd.f32 %v5734_v14, %v3546_v18 }
 0xd6f   :  { %v3600_v46 = vpop.f32.mrf.mxu0  ;;  %v3651_v11 = vpop.f32.mrf.mxu1 }
 0xd70   :  { %v7644_v33 = vadd.f32 %v7625_v40, %v3600_v46  ;;  %v7647_v31 = vadd.f32 %v7630_v49, %v3651_v11  ;;  %v3634_v11 = vadd.f32 %v7630_v49, %v3633_v7 }
 0xd72   :  { %8016 = vst [vmem:[#allocation13_spill] sm:$0xff] %v7644_v33 }
 0xd73   :  { %8017 = vst [vmem:[#allocation14_spill] sm:$0xff] %v7647_v31 }
 0xd74   :  { %v3498_v35 = vpop.f32.mrf.mxu2  ;;  %v3549_v41 = vpop.f32.mrf.mxu3 }
 0xd75   :  { %v7650_v51 = vadd.f32 %v7615_v6, %v3498_v35  ;;  %v7652_v26 = vadd.f32 %v5734_v14, %v3549_v41 }
 0xd77   :  { %8018 = vst [vmem:[#allocation15_spill] sm:$0xff] %v7650_v51 }
 0xd78   :  { %8019 = vst [vmem:[#allocation16_spill] sm:$0xff] %v7652_v26 }
 0xd7c   :  { %v3501_v50 = vpop.f32.mrf.mxu2  ;;  %v3552_v28 = vpop.f32.mrf.mxu3 }
 0xd7d   :  { %v7655_v54 = vadd.f32 %v7615_v6, %v3501_v50  ;;  %v7657_v56 = vadd.f32 %v5734_v14, %v3552_v28 }
 0xd7f   :  { %8020 = vst [vmem:[#allocation17_spill] sm:$0xff] %v7655_v54 }
 0xd80   :  { %8021 = vst [vmem:[#allocation18_spill] sm:$0xff] %v7657_v56 }
 0xd84   :  { %v3697_v22 = vpop.f32.mrf.mxu2  ;;  %v3718_v52 = vpop.f32.mrf.mxu3 }
 0xd85   :  { %v3700_v58 = vadd.f32 %v3697_v22, %v3481_v43  ;;  %v3721_v15 = vadd.f32 %v3718_v52, %v3532_v17 }
 0xd87   :  { %v5598_v18 = vmul.f32 -1.442695, %v3700_v58  ;;  %v5599_v46 = vmul.f32 -1.442695, %v3721_v15 }
 0xd89   :  { %5994 = vpow2.f32 %v5598_v18 }
 0xd8a   :  { %5996 = vpow2.f32 %v5599_v46 }
 0xd8c   :  { %v3760_v35 = vpop.f32.mrf.mxu3  ;;  %v3739_v12 = vpop.f32.mrf.mxu2 }
 0xd8d   :  { %v3763_v41 = vadd.f32 %v3760_v35, %v3634_v11  ;;  %v3742_v17 = vadd.f32 %v3739_v12, %v3583_v57 }
 0xd8f   :  { %v5995_v33 = vpop.eup %5994  ;;  %v5600_v50 = vmul.f32 -1.442695, %v3763_v41 }
 0xd90   :  { %v5997_v54 = vpop.eup %5996  ;;  %v3767_v28 = vadd.f32 1.0, %v5995_v33 }
 0xd91   :  { %v3786_v56 = vadd.f32 1.0, %v5997_v54  ;;  %5998 = vpow2.f32 %v5600_v50 }
 0xd92   :  { %6000 = vrcp.f32 %v3767_v28  ;;  %v3779_v46 = vand.u32 2147483648, %v3767_v28  ;;  %v3777_v11 = vand.u32 2147483647, %v3767_v28  ;;  %vm3773_vm15 = vweird.f32 %v3767_v28 }
 0xd93   :  { %6002 = vrcp.f32 %v3786_v56  ;;  %v3798_v33 = vand.u32 2147483648, %v3786_v56  ;;  %v3796_v41 = vand.u32 2147483647, %v3786_v56  ;;  %vm3792_vm1 = vweird.f32 %v3786_v56 }
 0xd94   :  { %v3780_v12 = vor.u32 1.1754944e-38, %v3779_v46  ;;  %vm3778_vm4 = vcmp.eq.f32.partialorder %v3777_v11, 8.507059e+37 }
 0xd95   :  { %vm3797_vm5 = vcmp.eq.f32.partialorder %v3796_v41, 8.507059e+37 }
 0xd97   :  { %v5999_v14 = vpop.eup %5998 }
 0xd98   :  { %v6001_v43 = vpop.eup %6000  ;;  %v3806_v22 = vadd.f32 1.0, %v5999_v14  ;;  %v3799_v14 = vor.u32 1.1754944e-38, %v3798_v33 }
 0xd99   :  { %v6003_v52 = vpop.eup %6002  ;;  %v3769_v7 = vmul.f32 %v6001_v43, %v3767_v28  ;;  %vm3774_vm13 = vweird.f32 %v6001_v43 }
 0xd9a   :  { %v3788_v58 = vmul.f32 %v6003_v52, %v3786_v56  ;;  %6004 = vrcp.f32 %v3806_v22  ;;  %vm3793_vm14 = vweird.f32 %v6003_v52  ;;  %vm3775_vm2 = vmor %vm3773_vm15, %vm3774_vm13  ;;  %v3818_v46 = vand.u32 2147483648, %v3806_v22 }
 0xd9b   :  { %v3770_v15 = vsub.f32 1.0, %v3769_v7  ;;  %6006 = vtanh.f32 %v3742_v17  ;;  %vm3794_vm3 = vmor %vm3792_vm1, %vm3793_vm14  ;;  %vm3812_vm7 = vweird.f32 %v3806_v22 }
 0xd9c   :  { %v3789_v18 = vsub.f32 1.0, %v3788_v58  ;;  %v3819_v11 = vor.u32 1.1754944e-38, %v3818_v46 }
 0xd9d   :  { %v3771_v54 = vmul.f32 %v6001_v43, %v3770_v15 }
 0xd9e   :  { %v3790_v35 = vmul.f32 %v6003_v52, %v3789_v18 }
 0xd9f   :  { %v3772_v60 = vadd.f32 %v6001_v43, %v3771_v54 }
 0xda0   :  { %v6005_v50 = vpop.eup %6004  ;;  %v3791_v57 = vadd.f32 %v6003_v52, %v3790_v35 }
 0xda1   :  { %v3776_v7 = vsel %vm3775_vm2, %v6001_v43, %v3772_v60  ;;  %v3808_v58 = vmul.f32 %v6005_v50, %v3806_v22  ;;  %v6007_v17 = vpop.eup %6006  ;;  %vm3813_vm6 = vweird.f32 %v6005_v50  ;;  %v3816_v43 = vand.u32 2147483647, %v3806_v22 }
 0xda2   :  { %v3781_v31 = vsel %vm3778_vm4, %v3780_v12, %v3776_v7  ;;  %v3795_v15 = vsel %vm3794_vm3, %v6003_v52, %v3791_v57  ;;  %vm3814_vm8 = vmor %vm3812_vm7, %vm3813_vm6  ;;  %v3637_v12 = vadd.f32 %v7630_v49, %v7583_v20 }
 0xda3   :  { %v3800_v26 = vsel %vm3797_vm5, %v3799_v14, %v3795_v15  ;;  %v3823_v18 = vmul.f32 %v6007_v17, %v3781_v31  ;;  %v3809_v51 = vsub.f32 1.0, %v3808_v58  ;;  %vm3817_vm9 = vcmp.eq.f32.partialorder %v3816_v43, 8.507059e+37 }
 0xda4   :  { %v3822_v54 = vmul.f32 %v3800_v26, %v7421_v13  ;;  %v3484_v13 = vadd.f32 %v7615_v6, %v7588_v16 }
 0xda5   :  { %v3810_v28 = vmul.f32 %v6005_v50, %v3809_v51 }
 0xda6   :  { %v7664_v61 = vadd.f32 %v3823_v18, %v3822_v54 }
 0xda7   :  { %v3811_v56 = vadd.f32 %v6005_v50, %v3810_v28 }
 0xda8   :  { %6008 = vtanh.f32 %v7664_v61 }
 0xda9   :  { %v3815_v33 = vsel %vm3814_vm8, %v6005_v50, %v3811_v56 }
 0xdaa   :  { %v3820_v35 = vsel %vm3817_vm9, %v3819_v11, %v3815_v33 }
 0xdae   :  { %v6009_v52 = vpop.eup %6008 }
 0xdaf   :  { %v3826_v31 = vmul.f32 %v6009_v52, %v3820_v35 }
 0xdb1   :  { %3827 = vst.msk [vmem:[#allocation2] sm:$0xff] %vm93_vm0, %v3826_v31  ;;  %5601 = vmatmul.msk.f32.vlgmr.msrb.gmra.mxu2 %vm93_vm0, %v3826_v31  ;;  %5602 = vmatmul.msk.f32.vlgmr.msra.gmra.mxu3 %vm93_vm0, %v3826_v31 }
 0xdb2   :  { %3994 = vmatpush.msrb.mxu2 %v7446_v19  ;;  %4015 = vmatpush.msra.mxu3 %v7448_v23 }
 0xdb4   :  { %3995 = vmatpush.msrb.mxu2 %v7454_v55  ;;  %4016 = vmatpush.msra.mxu3 %v7456_v34 }
 0xdb6   :  { %3996 = vmatpush.msrb.mxu2 %v7472_v44  ;;  %4017 = vmatpush.msra.mxu3 %v7474_v27 }
 0xdb8   :  { %3997 = vmatpush.msrb.mxu2 %v7490_v42  ;;  %4018 = vmatpush.msra.mxu3 %v7492_v9 }
 0xdb9   :  { %5603 = vmatmul.msk.f32.vlgmr.msra.gmra.mxu2 %vm93_vm0, %v3826_v31  ;;  %5604 = vmatmul.msk.f32.vlgmr.msrb.gmra.mxu3 %vm93_vm0, %v3826_v31 }
 0xdba   :  { %4036 = vmatpush.msra.mxu2 %v7514_v5  ;;  %4057 = vmatpush.msrb.mxu3 %v7516_v37 }
 0xdbc   :  { %4037 = vmatpush.msra.mxu2 %v7520_v39  ;;  %4058 = vmatpush.msrb.mxu3 %v7522_v3 }
 0xdbe   :  { %4038 = vmatpush.msra.mxu2 %v7526_v8  ;;  %4059 = vmatpush.msrb.mxu3 %v7528_v53 }
 0xdc0   :  { %4039 = vmatpush.msra.mxu2 %v7535_v25  ;;  %4060 = vmatpush.msrb.mxu3 %v7537_v59 }
 0xe34   :  { %v3848_v51 = vpop.f32.mrf.mxu2  ;;  %v3869_v26 = vpop.f32.mrf.mxu3 }
 0xe35   :  { %v3851_v22 = vadd.f32 %v3848_v51, %v3484_v13  ;;  %v3872_v41 = vadd.f32 %v3869_v26, %v7590_v10  ;;  %v3586_v10 = vadd.f32 %v7625_v40, %v7581_v62 }
 0xe37   :  { %v5605_v60 = vmul.f32 -1.442695, %v3851_v22  ;;  %v5606_v50 = vmul.f32 -1.442695, %v3872_v41 }
 0xe39   :  { %6010 = vpow2.f32 %v5605_v60 }
 0xe3a   :  { %6012 = vpow2.f32 %v5606_v50 }
 0xe3c   :  { %v3911_v57 = vpop.f32.mrf.mxu3  ;;  %v3890_v16 = vpop.f32.mrf.mxu2 }
 0xe3d   :  { %v3914_v14 = vadd.f32 %v3911_v57, %v3637_v12  ;;  %v3893_v56 = vadd.f32 %v3890_v16, %v3586_v10 }
 0xe3f   :  { %v6011_v7 = vpop.eup %6010  ;;  %v5607_v58 = vmul.f32 -1.442695, %v3914_v14 }
 0xe40   :  { %v6013_v17 = vpop.eup %6012  ;;  %v3918_v15 = vadd.f32 1.0, %v6011_v7 }
 0xe41   :  { %v3937_v18 = vadd.f32 1.0, %v6013_v17  ;;  %6014 = vpow2.f32 %v5607_v58 }
 0xe42   :  { %6016 = vrcp.f32 %v3918_v15  ;;  %v3930_v35 = vand.u32 2147483648, %v3918_v15  ;;  %v3928_v51 = vand.u32 2147483647, %v3918_v15  ;;  %vm3924_vm12 = vweird.f32 %v3918_v15 }
 0xe43   :  { %6018 = vrcp.f32 %v3937_v18  ;;  %v3949_v31 = vand.u32 2147483648, %v3937_v18  ;;  %v3947_v22 = vand.u32 2147483647, %v3937_v18  ;;  %vm3943_vm13 = vweird.f32 %v3937_v18 }
 0xe44   :  { %v3931_v60 = vor.u32 1.1754944e-38, %v3930_v35  ;;  %vm3929_vm1 = vcmp.eq.f32.partialorder %v3928_v51, 8.507059e+37 }
 0xe45   :  { %v3950_v12 = vor.u32 1.1754944e-38, %v3949_v31  ;;  %vm3948_vm2 = vcmp.eq.f32.partialorder %v3947_v22, 8.507059e+37 }
 0xe47   :  { %v6015_v54 = vpop.eup %6014 }
 0xe48   :  { %v6017_v28 = vpop.eup %6016  ;;  %v3957_v46 = vadd.f32 1.0, %v6015_v54 }
 0xe49   :  { %v6019_v43 = vpop.eup %6018  ;;  %v3920_v20 = vmul.f32 %v6017_v28, %v3918_v15  ;;  %vm3925_vm10 = vweird.f32 %v6017_v28 }
 0xe4a   :  { %v3939_v33 = vmul.f32 %v6019_v43, %v3937_v18  ;;  %6020 = vrcp.f32 %v3957_v46  ;;  %vm3944_vm11 = vweird.f32 %v6019_v43  ;;  %vm3926_vm14 = vmor %vm3924_vm12, %vm3925_vm10  ;;  %vm3963_vm4 = vweird.f32 %v3957_v46 }
 0xe4b   :  { %v3921_v11 = vsub.f32 1.0, %v3920_v20  ;;  %6022 = vtanh.f32 %v3893_v56  ;;  %vm3945_vm15 = vmor %vm3943_vm13, %vm3944_vm11 }
 0xe4c   :  { %v3940_v52 = vsub.f32 1.0, %v3939_v33  ;;  %v3969_v33 = vand.u32 2147483648, %v3957_v46 }
 0xe4d   :  { %v3922_v13 = vmul.f32 %v6017_v28, %v3921_v11 }
 0xe4e   :  { %v3941_v26 = vmul.f32 %v6019_v43, %v3940_v52  ;;  %v3970_v52 = vor.u32 1.1754944e-38, %v3969_v33 }
 0xe4f   :  { %v3923_v62 = vadd.f32 %v6017_v28, %v3922_v13 }
 0xe50   :  { %v6021_v41 = vpop.eup %6020  ;;  %v3942_v50 = vadd.f32 %v6019_v43, %v3941_v26 }
 0xe51   :  { %v3927_v57 = vsel %vm3926_vm14, %v6017_v28, %v3923_v62  ;;  %v3959_v14 = vmul.f32 %v6021_v41, %v3957_v46  ;;  %v6023_v7 = vpop.eup %6022  ;;  %vm3964_vm3 = vweird.f32 %v6021_v41  ;;  %v3967_v28 = vand.u32 2147483647, %v3957_v46 }
 0xe52   :  { %v3932_v58 = vsel %vm3929_vm1, %v3931_v60, %v3927_v57  ;;  %v3946_v17 = vsel %vm3945_vm15, %v6019_v43, %v3942_v50  ;;  %vm3965_vm5 = vmor %vm3963_vm4, %vm3964_vm3 }
 0xe53   :  { %v3951_v16 = vsel %vm3948_vm2, %v3950_v12, %v3946_v17  ;;  %v3974_v10 = vmul.f32 %v6023_v7, %v3932_v58  ;;  %v3960_v54 = vsub.f32 1.0, %v3959_v14  ;;  %vm3968_vm6 = vcmp.eq.f32.partialorder %v3967_v28, 8.507059e+37 }
 0xe54   :  { %v3973_v56 = vmul.f32 %v3951_v16, %v7664_v61 }
 0xe55   :  { %v3961_v15 = vmul.f32 %v6021_v41, %v3960_v54 }
 0xe56   :  { %v7696_v20 = vadd.f32 %v3974_v10, %v3973_v56 }
 0xe57   :  { %v3962_v18 = vadd.f32 %v6021_v41, %v3961_v15 }
 0xe58   :  { %6024 = vtanh.f32 %v7696_v20 }
 0xe59   :  { %v3966_v11 = vsel %vm3965_vm5, %v6021_v41, %v3962_v18 }
 0xe5a   :  { %v3971_v35 = vsel %vm3968_vm6, %v3970_v52, %v3966_v11 }
 0xe5e   :  { %v6025_v43 = vpop.eup %6024 }
 0xe5f   :  { %v3977_v31 = vmul.f32 %v6025_v43, %v3971_v35 }
 0xe61   :  { %3978 = vst.msk [vmem:[#allocation2 + $0x8] sm:$0xff] %vm93_vm0, %v3977_v31  ;;  %5608 = vmatmul.msk.f32.vlgmr.msrb.gmra.mxu2 %vm93_vm0, %v3977_v31  ;;  %5609 = vmatmul.msk.f32.vlgmr.msra.gmra.mxu3 %vm93_vm0, %v3977_v31 }
 0xe62   :  { %4145 = vmatpush.msrb.mxu2 %v7446_v19  ;;  %4166 = vmatpush.msra.mxu3 %v7448_v23  ;;  %v3487_v19 = vadd.f32 %v7615_v6, %v7596_v48 }
 0xe64   :  { %4146 = vmatpush.msrb.mxu2 %v7454_v55  ;;  %4167 = vmatpush.msra.mxu3 %v7456_v34 }
 0xe66   :  { %4147 = vmatpush.msrb.mxu2 %v7472_v44  ;;  %4168 = vmatpush.msra.mxu3 %v7474_v27 }
 0xe68   :  { %4148 = vmatpush.msrb.mxu2 %v7490_v42  ;;  %4169 = vmatpush.msra.mxu3 %v7492_v9  ;;  %v3640_v9 = vadd.f32 %v7630_v49, %v7594_v38 }
 0xe69   :  { %5610 = vmatmul.msk.f32.vlgmr.msra.gmra.mxu2 %vm93_vm0, %v3977_v31  ;;  %5611 = vmatmul.msk.f32.vlgmr.msrb.gmra.mxu3 %vm93_vm0, %v3977_v31 }
 0xe6a   :  { %4187 = vmatpush.msra.mxu2 %v7514_v5  ;;  %4208 = vmatpush.msrb.mxu3 %v7516_v37 }
 0xe6c   :  { %4188 = vmatpush.msra.mxu2 %v7520_v39  ;;  %4209 = vmatpush.msrb.mxu3 %v7522_v3 }
 0xe6e   :  { %4189 = vmatpush.msra.mxu2 %v7526_v8  ;;  %4210 = vmatpush.msrb.mxu3 %v7528_v53 }
 0xe70   :  { %4190 = vmatpush.msra.mxu2 %v7535_v25  ;;  %4211 = vmatpush.msrb.mxu3 %v7537_v59 }
 0xee4   :  { %v3999_v23 = vpop.f32.mrf.mxu2  ;;  %v4020_v55 = vpop.f32.mrf.mxu3 }
 0xee5   :  { %v4002_v34 = vadd.f32 %v3999_v23, %v3487_v19  ;;  %v4023_v44 = vadd.f32 %v4020_v55, %v7598_v63  ;;  %v3589_v63 = vadd.f32 %v7625_v40, %v7592_v47 }
 0xee7   :  { %v5612_v27 = vmul.f32 -1.442695, %v4002_v34  ;;  %v5613_v42 = vmul.f32 -1.442695, %v4023_v44 }
 0xee9   :  { %6026 = vpow2.f32 %v5612_v27 }
 0xeea   :  { %6028 = vpow2.f32 %v5613_v42 }
 0xeec   :  { %v4062_v61 = vpop.f32.mrf.mxu3  ;;  %v4041_v48 = vpop.f32.mrf.mxu2 }
 0xeed   :  { %v4065_v46 = vadd.f32 %v4062_v61, %v3640_v9  ;;  %v4044_v50 = vadd.f32 %v4041_v48, %v3589_v63 }
 0xeef   :  { %v6027_v13 = vpop.eup %6026  ;;  %v5614_v51 = vmul.f32 -1.442695, %v4065_v46 }
 0xef0   :  { %v6029_v26 = vpop.eup %6028  ;;  %v4069_v22 = vadd.f32 1.0, %v6027_v13 }
 0xef1   :  { %v4088_v62 = vadd.f32 1.0, %v6029_v26  ;;  %6030 = vpow2.f32 %v5614_v51 }
 0xef2   :  { %6032 = vrcp.f32 %v4069_v22  ;;  %v4081_v17 = vand.u32 2147483648, %v4069_v22  ;;  %v4079_v54 = vand.u32 2147483647, %v4069_v22  ;;  %vm4075_vm9 = vweird.f32 %v4069_v22 }
 0xef3   :  { %6034 = vrcp.f32 %v4088_v62  ;;  %v4100_v16 = vand.u32 2147483648, %v4088_v62  ;;  %v4098_v15 = vand.u32 2147483647, %v4088_v62  ;;  %vm4094_vm10 = vweird.f32 %v4088_v62 }
 0xef4   :  { %v4082_v33 = vor.u32 1.1754944e-38, %v4081_v17  ;;  %vm4080_vm13 = vcmp.eq.f32.partialorder %v4079_v54, 8.507059e+37 }
 0xef5   :  { %v4101_v11 = vor.u32 1.1754944e-38, %v4100_v16  ;;  %vm4099_vm14 = vcmp.eq.f32.partialorder %v4098_v15, 8.507059e+37 }
 0xef7   :  { %v6031_v41 = vpop.eup %6030 }
 0xef8   :  { %v6033_v60 = vpop.eup %6032  ;;  %v4108_v12 = vadd.f32 1.0, %v6031_v41 }
 0xef9   :  { %v6035_v57 = vpop.eup %6034  ;;  %v4071_v38 = vmul.f32 %v6033_v60, %v4069_v22  ;;  %vm4076_vm7 = vweird.f32 %v6033_v60 }
 0xefa   :  { %v4090_v14 = vmul.f32 %v6035_v57, %v4088_v62  ;;  %6036 = vrcp.f32 %v4108_v12  ;;  %vm4095_vm8 = vweird.f32 %v6035_v57  ;;  %vm4077_vm11 = vmor %vm4075_vm9, %vm4076_vm7  ;;  %v4120_v61 = vand.u32 2147483648, %v4108_v12 }
 0xefb   :  { %v4072_v7 = vsub.f32 1.0, %v4071_v38  ;;  %6038 = vtanh.f32 %v4044_v50  ;;  %vm4096_vm12 = vmor %vm4094_vm10, %vm4095_vm8  ;;  %vm4114_vm1 = vweird.f32 %v4108_v12  ;;  %v4118_v46 = vand.u32 2147483647, %v4108_v12 }
 0xefc   :  { %v4091_v58 = vsub.f32 1.0, %v4090_v14  ;;  %v4121_v51 = vor.u32 1.1754944e-38, %v4120_v61 }
 0xefd   :  { %v4073_v10 = vmul.f32 %v6033_v60, %v4072_v7  ;;  %vm4119_vm3 = vcmp.eq.f32.partialorder %v4118_v46, 8.507059e+37 }
 0xefe   :  { %v4092_v56 = vmul.f32 %v6035_v57, %v4091_v58 }
 0xeff   :  { %v4074_v47 = vadd.f32 %v6033_v60, %v4073_v10 }
 0xf00   :  { %v6037_v18 = vpop.eup %6036  ;;  %v4093_v28 = vadd.f32 %v6035_v57, %v4092_v56 }
 0xf01   :  { %v4078_v52 = vsel %vm4077_vm11, %v6033_v60, %v4074_v47  ;;  %v4110_v43 = vmul.f32 %v6037_v18, %v4108_v12  ;;  %v6039_v35 = vpop.eup %6038  ;;  %vm4115_vm15 = vweird.f32 %v6037_v18 }
 0xf02   :  { %v4083_v31 = vsel %vm4080_vm13, %v4082_v33, %v4078_v52  ;;  %v4097_v19 = vsel %vm4096_vm12, %v6035_v57, %v4093_v28  ;;  %vm4116_vm2 = vmor %vm4114_vm1, %vm4115_vm15  ;;  %v3643_v57 = vadd.f32 %v7630_v49, %v7602_v4 }
 0xf03   :  { %v4102_v23 = vsel %vm4099_vm14, %v4101_v11, %v4097_v19  ;;  %v4125_v55 = vmul.f32 %v6039_v35, %v4083_v31  ;;  %v4111_v34 = vsub.f32 1.0, %v4110_v43 }
 0xf04   :  { %v4124_v44 = vmul.f32 %v4102_v23, %v7696_v20  ;;  %v3490_v20 = vadd.f32 %v7615_v6, %v7604_v1 }
 0xf05   :  { %v4112_v27 = vmul.f32 %v6037_v18, %v4111_v34 }
 0xf06   :  { %v7728_v42 = vadd.f32 %v4125_v55, %v4124_v44 }
 0xf07   :  { %v4113_v9 = vadd.f32 %v6037_v18, %v4112_v27 }
 0xf08   :  { %6040 = vtanh.f32 %v7728_v42 }
 0xf09   :  { %v4117_v13 = vsel %vm4116_vm2, %v6037_v18, %v4113_v9 }
 0xf0a   :  { %v4122_v22 = vsel %vm4119_vm3, %v4121_v51, %v4117_v13 }
 0xf0e   :  { %v6041_v26 = vpop.eup %6040 }
 0xf0f   :  { %v4128_v62 = vmul.f32 %v6041_v26, %v4122_v22 }
 0xf11   :  { %4129 = vst.msk [vmem:[#allocation2 + $0x10] sm:$0xff] %vm93_vm0, %v4128_v62  ;;  %5615 = vmatmul.msk.f32.vlgmr.msrb.gmra.mxu2 %vm93_vm0, %v4128_v62  ;;  %5616 = vmatmul.msk.f32.vlgmr.msra.gmra.mxu3 %vm93_vm0, %v4128_v62 }
 0xf12   :  { %4338 = vmatpush.msrb.mxu2 %v7514_v5  ;;  %4359 = vmatpush.msra.mxu3 %v7516_v37 }
 0xf14   :  { %4339 = vmatpush.msrb.mxu2 %v7520_v39  ;;  %4360 = vmatpush.msra.mxu3 %v7522_v3 }
 0xf16   :  { %4340 = vmatpush.msrb.mxu2 %v7526_v8  ;;  %4361 = vmatpush.msra.mxu3 %v7528_v53 }
 0xf18   :  { %4341 = vmatpush.msrb.mxu2 %v7535_v25  ;;  %4362 = vmatpush.msra.mxu3 %v7537_v59 }
 0xf19   :  { %5617 = vmatmul.msk.f32.vlgmr.msra.gmra.mxu2 %vm93_vm0, %v4128_v62  ;;  %5618 = vmatmul.msk.f32.vlgmr.msrb.gmra.mxu3 %vm93_vm0, %v4128_v62 }
 0xf1a   :  { %4489 = vmatpush.msra.mxu2 %v7514_v5  ;;  %4510 = vmatpush.msrb.mxu3 %v7516_v37 }
 0xf1c   :  { %4490 = vmatpush.msra.mxu2 %v7520_v39  ;;  %4511 = vmatpush.msrb.mxu3 %v7522_v3 }
 0xf1e   :  { %4491 = vmatpush.msra.mxu2 %v7526_v8  ;;  %4512 = vmatpush.msrb.mxu3 %v7528_v53 }
 0xf20   :  { %4492 = vmatpush.msra.mxu2 %v7535_v25  ;;  %4513 = vmatpush.msrb.mxu3 %v7537_v59 }
 0xf94   :  { %v4150_v48 = vpop.f32.mrf.mxu2  ;;  %v4171_v63 = vpop.f32.mrf.mxu3 }
 0xf95   :  { %v4153_v41 = vadd.f32 %v4150_v48, %v3490_v20  ;;  %v4174_v60 = vadd.f32 %v4171_v63, %v7606_v24  ;;  %v3592_v24 = vadd.f32 %v7625_v40, %v7600_v21 }
 0xf97   :  { %v5619_v50 = vmul.f32 -1.442695, %v4153_v41  ;;  %v5620_v12 = vmul.f32 -1.442695, %v4174_v60 }
 0xf99   :  { %6042 = vpow2.f32 %v5619_v50 }
 0xf9a   :  { %6044 = vpow2.f32 %v5620_v12 }
 0xf9c   :  { %v4213_v38 = vpop.f32.mrf.mxu3  ;;  %v4192_v1 = vpop.f32.mrf.mxu2 }
 0xf9d   :  { %v4216_v14 = vadd.f32 %v4213_v38, %v3643_v57  ;;  %v4195_v56 = vadd.f32 %v4192_v1, %v3592_v24 }
 0xf9f   :  { %v6043_v7 = vpop.eup %6042  ;;  %v5621_v58 = vmul.f32 -1.442695, %v4216_v14 }
 0xfa0   :  { %v6045_v17 = vpop.eup %6044  ;;  %v4220_v16 = vadd.f32 1.0, %v6043_v7  ;;  %v7771_v7 = vld [vmem:[#allocation6 + $0x138] sm:$0xff] }
 0xfa1   :  { %v4239_v10 = vadd.f32 1.0, %v6045_v17  ;;  %6046 = vpow2.f32 %v5621_v58  ;;  %v7776_v58 = vld [vmem:[#allocation6 + $0x110] sm:$0xff] }
 0xfa2   :  { %6048 = vrcp.f32 %v4220_v16  ;;  %v4232_v11 = vand.u32 2147483648, %v4220_v16  ;;  %v4230_v35 = vand.u32 2147483647, %v4220_v16  ;;  %vm4226_vm6 = vweird.f32 %v4220_v16  ;;  %v7779_v17 = vld [vmem:[#allocation6 + $0x130] sm:$0xff] }
 0xfa3   :  { %6050 = vrcp.f32 %v4239_v10  ;;  %v4251_v52 = vand.u32 2147483648, %v4239_v10  ;;  %v4249_v19 = vand.u32 2147483647, %v4239_v10  ;;  %vm4245_vm7 = vweird.f32 %v4239_v10 }
 0xfa4   :  { %v4233_v55 = vor.u32 1.1754944e-38, %v4232_v11  ;;  %vm4231_vm10 = vcmp.eq.f32.partialorder %v4230_v35, 8.507059e+37 }
 0xfa5   :  { %v4252_v44 = vor.u32 1.1754944e-38, %v4251_v52  ;;  %vm4250_vm11 = vcmp.eq.f32.partialorder %v4249_v19, 8.507059e+37 }
 0xfa7   :  { %v6047_v6 = vpop.eup %6046 }
 0xfa8   :  { %v6049_v54 = vpop.eup %6048  ;;  %v4259_v15 = vadd.f32 1.0, %v6047_v6 }
 0xfa9   :  { %v6051_v47 = vpop.eup %6050  ;;  %v4222_v4 = vmul.f32 %v6049_v54, %v4220_v16  ;;  %vm4227_vm4 = vweird.f32 %v6049_v54  ;;  %v7784_v16 = vld [vmem:[#allocation6 + $0x108] sm:$0xff] }
 0xfaa   :  { %v4241_v18 = vmul.f32 %v6051_v47, %v4239_v10  ;;  %6052 = vrcp.f32 %v4259_v15  ;;  %vm4246_vm5 = vweird.f32 %v6051_v47  ;;  %vm4228_vm8 = vmor %vm4226_vm6, %vm4227_vm4  ;;  %v4271_v41 = vand.u32 2147483648, %v4259_v15  ;;  %v7787_v10 = vld [vmem:[#allocation6 + $0x128] sm:$0xff] }
 0xfab   :  { %v4223_v33 = vsub.f32 1.0, %v4222_v4  ;;  %6054 = vtanh.f32 %v4195_v56  ;;  %vm4247_vm9 = vmor %vm4245_vm7, %vm4246_vm5  ;;  %vm4265_vm13 = vweird.f32 %v4259_v15  ;;  %v4269_v60 = vand.u32 2147483647, %v4259_v15 }
 0xfac   :  { %v4242_v28 = vsub.f32 1.0, %v4241_v18  ;;  %v4272_v12 = vor.u32 1.1754944e-38, %v4271_v41  ;;  %v3646_v56 = vadd.f32 %v7630_v49, %v7610_v30 }
 0xfad   :  { %v4224_v43 = vmul.f32 %v6049_v54, %v4223_v33  ;;  %vm4270_vm15 = vcmp.eq.f32.partialorder %v4269_v60, 8.507059e+37 }
 0xfae   :  { %v4243_v31 = vmul.f32 %v6051_v47, %v4242_v28 }
 0xfaf   :  { %v4225_v21 = vadd.f32 %v6049_v54, %v4224_v43 }
 0xfb0   :  { %v6053_v23 = vpop.eup %6052  ;;  %v4244_v34 = vadd.f32 %v6051_v47, %v4243_v31 }
 0xfb1   :  { %v4229_v27 = vsel %vm4228_vm8, %v6049_v54, %v4225_v21  ;;  %v4261_v9 = vmul.f32 %v6053_v23, %v4259_v15  ;;  %v6055_v61 = vpop.eup %6054  ;;  %vm4266_vm12 = vweird.f32 %v6053_v23 }
 0xfb2   :  { %v4234_v46 = vsel %vm4231_vm10, %v4233_v55, %v4229_v27  ;;  %v4248_v13 = vsel %vm4247_vm9, %v6051_v47, %v4244_v34  ;;  %vm4267_vm14 = vmor %vm4265_vm13, %vm4266_vm12 }
 0xfb3   :  { %v4253_v51 = vsel %vm4250_vm11, %v4252_v44, %v4248_v13  ;;  %v4276_v26 = vmul.f32 %v6055_v61, %v4234_v46  ;;  %v4262_v22 = vsub.f32 1.0, %v4261_v9 }
 0xfb4   :  { %v4275_v62 = vmul.f32 %v4253_v51, %v7728_v42  ;;  %v7768_v42 = vld [vmem:[#allocation6 + $0x118] sm:$0xff] }
 0xfb5   :  { %v4263_v20 = vmul.f32 %v6053_v23, %v4262_v22 }
 0xfb6   :  { %v7760_v48 = vadd.f32 %v4276_v26, %v4275_v62 }
 0xfb7   :  { %v4264_v63 = vadd.f32 %v6053_v23, %v4263_v20 }
 0xfb8   :  { %6056 = vtanh.f32 %v7760_v48 }
 0xfb9   :  { %v4268_v50 = vsel %vm4267_vm14, %v6053_v23, %v4264_v63 }
 0xfba   :  { %v4273_v38 = vsel %vm4270_vm15, %v4272_v12, %v4268_v50 }
 0xfbe   :  { %v6057_v57 = vpop.eup %6056 }
 0xfbf   :  { %v4279_v14 = vmul.f32 %v6057_v57, %v4273_v38 }
 0xfc1   :  { %4280 = vst.msk [vmem:[#allocation2 + $0x18] sm:$0xff] %vm93_vm0, %v4279_v14  ;;  %5622 = vmatmul.msk.f32.vlgmr.msra.gmra.mxu0 %vm93_vm0, %v4279_v14  ;;  %5623 = vmatmul.msk.f32.vlgmr.msrb.gmra.mxu1 %vm93_vm0, %v4279_v14 }
 0xfc2   :  { %5624 = vmatmul.msk.f32.vlgmr.msrb.gmra.mxu2 %vm93_vm0, %v4279_v14  ;;  %5625 = vmatmul.msk.f32.vlgmr.msra.gmra.mxu3 %vm93_vm0, %v4279_v14 }
 0xfc3   :  { %4598 = vmatpush.msra.mxu0 %v7768_v42  ;;  %4619 = vmatpush.msrb.mxu1 %v7771_v7 }
 0xfc4   :  { %4640 = vmatpush.msrb.mxu2 %v7514_v5  ;;  %4661 = vmatpush.msra.mxu3 %v7516_v37  ;;  %v7792_v5 = vld [vmem:[#allocation6 + $0x100] sm:$0xff] }
 0xfc5   :  { %4599 = vmatpush.msra.mxu0 %v7776_v58  ;;  %4620 = vmatpush.msrb.mxu1 %v7779_v17  ;;  %v7795_v37 = vld [vmem:[#allocation6 + $0x120] sm:$0xff] }
 0xfc6   :  { %4641 = vmatpush.msrb.mxu2 %v7520_v39  ;;  %4662 = vmatpush.msra.mxu3 %v7522_v3  ;;  %v7800_v39 = vpop.f32.mrf.mxu0  ;;  %v7802_v3 = vpop.f32.mrf.mxu1 }
 0xfc7   :  { %4600 = vmatpush.msra.mxu0 %v7784_v16  ;;  %4621 = vmatpush.msrb.mxu1 %v7787_v10 }
 0xfc8   :  { %4642 = vmatpush.msrb.mxu2 %v7526_v8  ;;  %4663 = vmatpush.msra.mxu3 %v7528_v53 }
 0xfc9   :  { %4601 = vmatpush.msra.mxu0 %v7792_v5  ;;  %4622 = vmatpush.msrb.mxu1 %v7795_v37 }
 0xfca   :  { %4643 = vmatpush.msrb.mxu2 %v7535_v25  ;;  %4664 = vmatpush.msra.mxu3 %v7537_v59 }
0x103e   :  { %v4301_v1 = vpop.f32.mrf.mxu0  ;;  %v4322_v8 = vpop.f32.mrf.mxu1 }
0x103f   :  { %v4304_v53 = vadd.f32 %v4301_v1, %v7618_v2  ;;  %v4325_v24 = vadd.f32 %v4322_v8, %v7620_v32  ;;  %v3595_v32 = vadd.f32 %v7625_v40, %v7608_v29 }
0x1041   :  { %v5626_v6 = vmul.f32 -1.442695, %v4304_v53  ;;  %v5627_v54 = vmul.f32 -1.442695, %v4325_v24 }
0x1043   :  { %6058 = vpow2.f32 %v5626_v6 }
0x1044   :  { %6060 = vpow2.f32 %v5627_v54  ;;  %v6199_v54 = vld [vmem:[#allocation6 + $0x178] sm:$0xff] }
0x1045   :  { %v4364_v25 = vpop.f32.mrf.mxu3  ;;  %v4343_v2 = vpop.f32.mrf.mxu2 }
0x1046   :  { %v4367_v15 = vadd.f32 %v4364_v25, %v3646_v56  ;;  %v4346_v43 = vadd.f32 %v4343_v2, %v3595_v32  ;;  %v6200_v56 = vld [vmem:[#allocation6 + $0x150] sm:$0xff] }
0x1047   :  { %v6201_v25 = vld [vmem:[#allocation6 + $0x170] sm:$0xff] }
0x1048   :  { %v5628_v59 = vmul.f32 -1.442695, %v4367_v15  ;;  %v6202_v15 = vld [vmem:[#allocation6 + $0x148] sm:$0xff] }
0x1049   :  { %v6059_v47 = vpop.eup %6058 }
0x104a   :  { %v6061_v4 = vpop.eup %6060  ;;  %v4371_v18 = vadd.f32 1.0, %v6059_v47  ;;  %6062 = vpow2.f32 %v5628_v59 }
0x104b   :  { %v4390_v33 = vadd.f32 1.0, %v6061_v4 }
0x104c   :  { %6064 = vrcp.f32 %v4371_v18  ;;  %v4383_v21 = vand.u32 2147483648, %v4371_v18  ;;  %v4381_v34 = vand.u32 2147483647, %v4371_v18  ;;  %vm4377_vm3 = vweird.f32 %v4371_v18 }
0x104d   :  { %6066 = vrcp.f32 %v4390_v33  ;;  %v4402_v23 = vand.u32 2147483648, %v4390_v33  ;;  %v4400_v27 = vand.u32 2147483647, %v4390_v33  ;;  %vm4396_vm4 = vweird.f32 %v4390_v33 }
0x104e   :  { %v4384_v40 = vor.u32 1.1754944e-38, %v4383_v21  ;;  %vm4382_vm7 = vcmp.eq.f32.partialorder %v4381_v34, 8.507059e+37 }
0x104f   :  { %v4403_v13 = vor.u32 1.1754944e-38, %v4402_v23  ;;  %vm4401_vm8 = vcmp.eq.f32.partialorder %v4400_v27, 8.507059e+37 }
0x1050   :  { %v6063_v28 = vpop.eup %6062 }
0x1051   :  { %v4410_v11 = vadd.f32 1.0, %v6063_v28 }
0x1052   :  { %v6065_v52 = vpop.eup %6064 }
0x1053   :  { %v6067_v30 = vpop.eup %6066  ;;  %v4373_v49 = vmul.f32 %v6065_v52, %v4371_v18  ;;  %6068 = vrcp.f32 %v4410_v11  ;;  %vm4378_vm1 = vweird.f32 %v6065_v52  ;;  %v4422_v38 = vand.u32 2147483648, %v4410_v11 }
0x1054   :  { %v4392_v35 = vmul.f32 %v6067_v30, %v4390_v33  ;;  %6070 = vtanh.f32 %v4346_v43  ;;  %vm4397_vm2 = vweird.f32 %v6067_v30  ;;  %vm4379_vm5 = vmor %vm4377_vm3, %vm4378_vm1  ;;  %vm4416_vm10 = vweird.f32 %v4410_v11 }
0x1055   :  { %v4374_v31 = vsub.f32 1.0, %v4373_v49  ;;  %vm4398_vm6 = vmor %vm4396_vm4, %vm4397_vm2  ;;  %v4420_v14 = vand.u32 2147483647, %v4410_v11  ;;  %v4423_v8 = vor.u32 1.1754944e-38, %v4422_v38 }
0x1056   :  { %v4393_v19 = vsub.f32 1.0, %v4392_v35 }
0x1057   :  { %v4375_v55 = vmul.f32 %v6065_v52, %v4374_v31  ;;  %vm4421_vm12 = vcmp.eq.f32.partialorder %v4420_v14, 8.507059e+37 }
0x1058   :  { %v4394_v44 = vmul.f32 %v6067_v30, %v4393_v19 }
0x1059   :  { %v6069_v9 = vpop.eup %6068  ;;  %v4376_v29 = vadd.f32 %v6065_v52, %v4375_v55 }
0x105a   :  { %v4395_v61 = vadd.f32 %v6067_v30, %v4394_v44  ;;  %v4412_v46 = vmul.f32 %v6069_v9, %v4410_v11  ;;  %v6071_v26 = vpop.eup %6070  ;;  %vm4417_vm9 = vweird.f32 %v6069_v9 }
0x105b   :  { %v4380_v51 = vsel %vm4379_vm5, %v6065_v52, %v4376_v29  ;;  %vm4418_vm11 = vmor %vm4416_vm10, %vm4417_vm9 }
0x105c   :  { %v4385_v22 = vsel %vm4382_vm7, %v4384_v40, %v4380_v51  ;;  %v4399_v62 = vsel %vm4398_vm6, %v6067_v30, %v4395_v61  ;;  %v4413_v20 = vsub.f32 1.0, %v4412_v46 }
0x105d   :  { %v4404_v63 = vsel %vm4401_vm8, %v4403_v13, %v4399_v62  ;;  %v4427_v41 = vmul.f32 %v6071_v26, %v4385_v22 }
0x105e   :  { %v4426_v60 = vmul.f32 %v4404_v63, %v7760_v48  ;;  %v4414_v50 = vmul.f32 %v6069_v9, %v4413_v20  ;;  %v6198_v48 = vld [vmem:[#allocation6 + $0x158] sm:$0xff] }
0x1060   :  { %v7811_v12 = vadd.f32 %v4427_v41, %v4426_v60  ;;  %v4415_v57 = vadd.f32 %v6069_v9, %v4414_v50 }
0x1062   :  { %6072 = vtanh.f32 %v7811_v12  ;;  %v4419_v1 = vsel %vm4418_vm11, %v6069_v9, %v4415_v57 }
0x1063   :  { %v4424_v24 = vsel %vm4421_vm12, %v4423_v8, %v4419_v1 }
0x1068   :  { %v6073_v53 = vpop.eup %6072 }
0x1069   :  { %v4430_v6 = vmul.f32 %v6073_v53, %v4424_v24 }
0x106b   :  { %4431 = vst.msk [vmem:[#allocation2 + $0x20] sm:$0xff] %vm93_vm0, %v4430_v6  ;;  %5629 = vmatmul.msk.f32.vlgmr.msrb.gmra.mxu0 %vm93_vm0, %v4430_v6  ;;  %5630 = vmatmul.msk.f32.vlgmr.msra.gmra.mxu1 %vm93_vm0, %v4430_v6 }
0x106c   :  { %5631 = vmatmul.msk.f32.vlgmr.msra.gmra.mxu2 %vm93_vm0, %v4430_v6  ;;  %5632 = vmatmul.msk.f32.vlgmr.msrb.gmra.mxu3 %vm93_vm0, %v4430_v6 }
0x106d   :  { %4749 = vmatpush.msrb.mxu0 %v7768_v42  ;;  %4770 = vmatpush.msra.mxu1 %v7771_v7  ;;  %v6203_v42 = vld [vmem:[#allocation6 + $0x168] sm:$0xff]  ;;  %v6204_v7 = vld [vmem:[#allocation6 + $0x140] sm:$0xff] }
0x106e   :  { %4791 = vmatpush.msra.mxu2 %v6198_v48  ;;  %4812 = vmatpush.msrb.mxu3 %v6199_v54 }
0x106f   :  { %4750 = vmatpush.msrb.mxu0 %v7776_v58  ;;  %4771 = vmatpush.msra.mxu1 %v7779_v17  ;;  %v6205_v58 = vld [vmem:[#allocation6 + $0x160] sm:$0xff] }
0x1070   :  { %4792 = vmatpush.msra.mxu2 %v6200_v56  ;;  %4813 = vmatpush.msrb.mxu3 %v6201_v25  ;;  %v8023_v56 = vld [vmem:[#allocation15_spill] sm:$0xff] }
0x1071   :  { %4751 = vmatpush.msrb.mxu0 %v7784_v16  ;;  %4772 = vmatpush.msra.mxu1 %v7787_v10 }
0x1072   :  { %4793 = vmatpush.msra.mxu2 %v6202_v15  ;;  %4814 = vmatpush.msrb.mxu3 %v6203_v42  ;;  %v8024_v15 = vld [vmem:[#allocation16_spill] sm:$0xff] }
0x1073   :  { %4752 = vmatpush.msrb.mxu0 %v7792_v5  ;;  %4773 = vmatpush.msra.mxu1 %v7795_v37 }
0x1074   :  { %4794 = vmatpush.msra.mxu2 %v6204_v7  ;;  %4815 = vmatpush.msrb.mxu3 %v6205_v58 }
0x10e8   :  { %v4452_v17 = vpop.f32.mrf.mxu0  ;;  %v4473_v59 = vpop.f32.mrf.mxu1 }
0x10e9   :  { %v4455_v47 = vadd.f32 %v4452_v17, %v7639_v45  ;;  %v4476_v16 = vadd.f32 %v4473_v59, %v7641_v0  ;;  %v8022_v0 = vld [vmem:[#allocation12_spill] sm:$0xff]  ;;  %v8025_v59 = vld [vmem:[#allocation14_spill] sm:$0xff] }
0x10eb   :  { %v5633_v4 = vmul.f32 -1.442695, %v4455_v47  ;;  %v5634_v10 = vmul.f32 -1.442695, %v4476_v16 }
0x10ed   :  { %6074 = vpow2.f32 %v5633_v4 }
0x10ee   :  { %6076 = vpow2.f32 %v5634_v10 }
0x10ef   :  { %v4515_v18 = vpop.f32.mrf.mxu3  ;;  %v4494_v11 = vpop.f32.mrf.mxu2 }
0x10f0   :  { %v4518_v33 = vadd.f32 %v4515_v18, %v7636_v36  ;;  %v4497_v30 = vadd.f32 %v4494_v11, %v8022_v0  ;;  %v5658_v11 = vld [vmem:[%s7997_s6 + $0x40] sm:$0xff] }
0x10f2   :  { %v5635_v5 = vmul.f32 -1.442695, %v4518_v33 }
0x10f3   :  { %v6075_v2 = vpop.eup %6074 }
0x10f4   :  { %v6077_v37 = vpop.eup %6076  ;;  %v4522_v28 = vadd.f32 1.0, %v6075_v2  ;;  %6078 = vpow2.f32 %v5635_v5  ;;  %v5661_v5 = vld [vmem:[%s7997_s6 + $0x58] sm:$0xff]  ;;  %v5660_v2 = vld [vmem:[%s7997_s6 + $0x50] sm:$0xff] }
0x10f5   :  { %v4541_v32 = vadd.f32 1.0, %v6077_v37  ;;  %v5659_v37 = vld [vmem:[%s7997_s6 + $0x48] sm:$0xff] }
0x10f6   :  { %6080 = vrcp.f32 %v4522_v28  ;;  %v4534_v21 = vand.u32 2147483648, %v4522_v28  ;;  %v4532_v34 = vand.u32 2147483647, %v4522_v28  ;;  %vm4528_vm15 = vweird.f32 %v4522_v28 }
0x10f7   :  { %6082 = vrcp.f32 %v4541_v32  ;;  %v4553_v23 = vand.u32 2147483648, %v4541_v32  ;;  %v4551_v27 = vand.u32 2147483647, %v4541_v32  ;;  %vm4547_vm1 = vweird.f32 %v4541_v32 }
0x10f8   :  { %v4535_v40 = vor.u32 1.1754944e-38, %v4534_v21  ;;  %vm4533_vm4 = vcmp.eq.f32.partialorder %v4532_v34, 8.507059e+37 }
0x10f9   :  { %v4554_v13 = vor.u32 1.1754944e-38, %v4553_v23  ;;  %vm4552_vm5 = vcmp.eq.f32.partialorder %v4551_v27, 8.507059e+37 }
0x10fa   :  { %v6079_v52 = vpop.eup %6078 }
0x10fb   :  { %v4561_v45 = vadd.f32 1.0, %v6079_v52 }
0x10fc   :  { %v6081_v43 = vpop.eup %6080 }
0x10fd   :  { %v6083_v49 = vpop.eup %6082  ;;  %v4524_v35 = vmul.f32 %v6081_v43, %v4522_v28  ;;  %6084 = vrcp.f32 %v4561_v45  ;;  %vm4529_vm13 = vweird.f32 %v6081_v43  ;;  %v4573_v14 = vand.u32 2147483648, %v4561_v45 }
0x10fe   :  { %v4543_v31 = vmul.f32 %v6083_v49, %v4541_v32  ;;  %6086 = vtanh.f32 %v4497_v30  ;;  %vm4548_vm14 = vweird.f32 %v6083_v49  ;;  %vm4530_vm2 = vmor %vm4528_vm15, %vm4529_vm13  ;;  %vm4567_vm7 = vweird.f32 %v4561_v45 }
0x10ff   :  { %v4525_v19 = vsub.f32 1.0, %v4524_v35  ;;  %vm4549_vm3 = vmor %vm4547_vm1, %vm4548_vm14  ;;  %v4571_v1 = vand.u32 2147483647, %v4561_v45  ;;  %v4574_v53 = vor.u32 1.1754944e-38, %v4573_v14 }
0x1100   :  { %v4544_v36 = vsub.f32 1.0, %v4543_v31 }
0x1101   :  { %v4526_v55 = vmul.f32 %v6081_v43, %v4525_v19  ;;  %vm4572_vm9 = vcmp.eq.f32.partialorder %v4571_v1, 8.507059e+37 }
0x1102   :  { %v4545_v44 = vmul.f32 %v6083_v49, %v4544_v36 }
0x1103   :  { %v6085_v9 = vpop.eup %6084  ;;  %v4527_v29 = vadd.f32 %v6081_v43, %v4526_v55 }
0x1104   :  { %v4546_v61 = vadd.f32 %v6083_v49, %v4545_v44  ;;  %v4563_v46 = vmul.f32 %v6085_v9, %v4561_v45  ;;  %v6087_v26 = vpop.eup %6086  ;;  %vm4568_vm6 = vweird.f32 %v6085_v9 }
0x1105   :  { %v4531_v51 = vsel %vm4530_vm2, %v6081_v43, %v4527_v29  ;;  %vm4569_vm8 = vmor %vm4567_vm7, %vm4568_vm6  ;;  %v8026_v43 = vld [vmem:[#allocation13_spill] sm:$0xff] }
0x1106   :  { %v4536_v22 = vsel %vm4533_vm4, %v4535_v40, %v4531_v51  ;;  %v4550_v62 = vsel %vm4549_vm3, %v6083_v49, %v4546_v61  ;;  %v4564_v20 = vsub.f32 1.0, %v4563_v46 }
0x1107   :  { %v4555_v63 = vsel %vm4552_vm5, %v4554_v13, %v4550_v62  ;;  %v4578_v41 = vmul.f32 %v6087_v26, %v4536_v22 }
0x1108   :  { %v4577_v60 = vmul.f32 %v4555_v63, %v7811_v12  ;;  %v4565_v50 = vmul.f32 %v6085_v9, %v4564_v20 }
0x110a   :  { %v7832_v57 = vadd.f32 %v4578_v41, %v4577_v60  ;;  %v4566_v38 = vadd.f32 %v6085_v9, %v4565_v50 }
0x110c   :  { %6088 = vtanh.f32 %v7832_v57  ;;  %v4570_v8 = vsel %vm4569_vm8, %v6085_v9, %v4566_v38 }
0x110d   :  { %v4575_v6 = vsel %vm4572_vm9, %v4574_v53, %v4570_v8 }
0x1112   :  { %v6089_v24 = vpop.eup %6088 }
0x1113   :  { %v4581_v48 = vmul.f32 %v6089_v24, %v4575_v6 }
0x1115   :  { %4582 = vst.msk [vmem:[#allocation2 + $0x28] sm:$0xff] %vm93_vm0, %v4581_v48  ;;  %5636 = vmatmul.msk.f32.vlgmr.msra.gmra.mxu0 %vm93_vm0, %v4581_v48  ;;  %5637 = vmatmul.msk.f32.vlgmr.msrb.gmra.mxu1 %vm93_vm0, %v4581_v48 }
0x1116   :  { %5638 = vmatmul.msk.f32.vlgmr.msrb.gmra.mxu2 %vm93_vm0, %v4581_v48  ;;  %5639 = vmatmul.msk.f32.vlgmr.msra.gmra.mxu3 %vm93_vm0, %v4581_v48 }
0x1117   :  { %4948 = vmatpush.msra.mxu0 %v5661_v5 }
0x1119   :  { %4949 = vmatpush.msra.mxu0 %v5660_v2 }
0x111b   :  { %4950 = vmatpush.msra.mxu0 %v5659_v37 }
0x111d   :  { %4951 = vmatpush.msra.mxu0 %v5658_v11 }
0x1192   :  { %v4603_v12 = vpop.f32.mrf.mxu0  ;;  %v4624_v54 = vpop.f32.mrf.mxu1 }
0x1193   :  { %v4606_v25 = vadd.f32 %v4603_v12, %v8023_v56  ;;  %v4627_v42 = vadd.f32 %v4624_v54, %v8024_v15  ;;  %v5651_v12 = vld [vmem:[%s8001_s10 + $0x88] sm:$0xff]  ;;  %v5652_v54 = vld [vmem:[%s8001_s10 + $0x90] sm:$0xff]  ;;  %v5653_v56 = vld [vmem:[%s8001_s10 + $0x98] sm:$0xff] }
0x1194   :  { %v5655_v15 = vld [vmem:[%s8001_s10 + $0xa8] sm:$0xff] }
0x1195   :  { %v5640_v7 = vmul.f32 -1.442695, %v4606_v25  ;;  %v5641_v58 = vmul.f32 -1.442695, %v4627_v42  ;;  %v5654_v25 = vld [vmem:[%s8001_s10 + $0xa0] sm:$0xff]  ;;  %v5656_v42 = vld [vmem:[%s8001_s10 + $0xb0] sm:$0xff] }
0x1197   :  { %6090 = vpow2.f32 %v5640_v7  ;;  %v5657_v7 = vld [vmem:[%s8001_s10 + $0xb8] sm:$0xff] }
0x1198   :  { %6092 = vpow2.f32 %v5641_v58  ;;  %v5674_v58 = vld [vmem:[%s7999_s8 + $0x58] sm:$0xff] }
0x1199   :  { %v4666_v17 = vpop.f32.mrf.mxu3  ;;  %v4645_v28 = vpop.f32.mrf.mxu2  ;;  %5031 = vmatpush.msrb.mxu1 %v5674_v58 }
0x119a   :  { %v4669_v47 = vadd.f32 %v4666_v17, %v8025_v59  ;;  %v4648_v0 = vadd.f32 %v4645_v28, %v8026_v43  ;;  %v5673_v17 = vld [vmem:[%s7999_s8 + $0x50] sm:$0xff]  ;;  %v5672_v59 = vld [vmem:[%s7999_s8 + $0x48] sm:$0xff]  ;;  %v7914_v28 = vld [vmem:[%s7998_s7 + $0x2] ss:$0 sm:$0xff] }
0x119b   :  { %5032 = vmatpush.msrb.mxu1 %v5673_v17 }
0x119c   :  { %v5642_v16 = vmul.f32 -1.442695, %v4669_v47  ;;  %v5671_v47 = vld [vmem:[%s7999_s8 + $0x40] sm:$0xff] }
0x119d   :  { %v6091_v4 = vpop.eup %6090  ;;  %5033 = vmatpush.msrb.mxu1 %v5672_v59 }
0x119e   :  { %v6093_v10 = vpop.eup %6092  ;;  %v4673_v18 = vadd.f32 1.0, %v6091_v4  ;;  %6094 = vpow2.f32 %v5642_v16 }
0x119f   :  { %v4692_v33 = vadd.f32 1.0, %v6093_v10  ;;  %5034 = vmatpush.msrb.mxu1 %v5671_v47  ;;  %v8027_v10 = vld [vmem:[#allocation17_spill] sm:$0xff] }
0x11a0   :  { %6096 = vrcp.f32 %v4673_v18  ;;  %v4685_v36 = vand.u32 2147483648, %v4673_v18  ;;  %v4683_v55 = vand.u32 2147483647, %v4673_v18  ;;  %vm4679_vm12 = vweird.f32 %v4673_v18 }
0x11a1   :  { %6098 = vrcp.f32 %v4692_v33  ;;  %v4704_v21 = vand.u32 2147483648, %v4692_v33  ;;  %v4702_v44 = vand.u32 2147483647, %v4692_v33  ;;  %vm4698_vm13 = vweird.f32 %v4692_v33 }
0x11a2   :  { %v4686_v29 = vor.u32 1.1754944e-38, %v4685_v36  ;;  %vm4684_vm1 = vcmp.eq.f32.partialorder %v4683_v55, 8.507059e+37 }
0x11a3   :  { %v4705_v46 = vor.u32 1.1754944e-38, %v4704_v21  ;;  %vm4703_vm2 = vcmp.eq.f32.partialorder %v4702_v44, 8.507059e+37 }
0x11a4   :  { %v6095_v32 = vpop.eup %6094 }
0x11a5   :  { %v4712_v52 = vadd.f32 1.0, %v6095_v32  ;;  %v6206_v32 = vld [vmem:[%s7996_s5 + $0xb] ss:$0 sm:$0xff] }
0x11a6   :  { %v6097_v45 = vpop.eup %6096  ;;  %v3655_v11 = vadd.f32 %v6206_v32, %v7802_v3 }
0x11a7   :  { %v6099_v30 = vpop.eup %6098  ;;  %v4675_v49 = vmul.f32 %v6097_v45, %v4673_v18  ;;  %6100 = vrcp.f32 %v4712_v52  ;;  %vm4680_vm10 = vweird.f32 %v6097_v45  ;;  %v4724_v14 = vand.u32 2147483648, %v4712_v52 }
0x11a8   :  { %v4694_v35 = vmul.f32 %v6099_v30, %v4692_v33  ;;  %6102 = vtanh.f32 %v4648_v0  ;;  %vm4699_vm11 = vweird.f32 %v6099_v30  ;;  %vm4681_vm14 = vmor %vm4679_vm12, %vm4680_vm10  ;;  %vm4718_vm4 = vweird.f32 %v4712_v52  ;;  %v8028_v33 = vld [vmem:[#allocation18_spill] sm:$0xff] }
0x11a9   :  { %v4676_v31 = vsub.f32 1.0, %v4675_v49  ;;  %vm4700_vm15 = vmor %vm4698_vm13, %vm4699_vm11  ;;  %v4722_v1 = vand.u32 2147483647, %v4712_v52  ;;  %v4725_v53 = vor.u32 1.1754944e-38, %v4724_v14 }
0x11aa   :  { %v4695_v19 = vsub.f32 1.0, %v4694_v35 }
0x11ab   :  { %v4677_v23 = vmul.f32 %v6097_v45, %v4676_v31  ;;  %vm4723_vm6 = vcmp.eq.f32.partialorder %v4722_v1, 8.507059e+37 }
0x11ac   :  { %v4696_v34 = vmul.f32 %v6099_v30, %v4695_v19 }
0x11ad   :  { %v6101_v27 = vpop.eup %6100  ;;  %v4678_v9 = vadd.f32 %v6097_v45, %v4677_v23 }
0x11ae   :  { %v4697_v40 = vadd.f32 %v6099_v30, %v4696_v34  ;;  %v4714_v61 = vmul.f32 %v6101_v27, %v4712_v52  ;;  %v6103_v51 = vpop.eup %6102  ;;  %vm4719_vm3 = vweird.f32 %v6101_v27  ;;  %v6207_v34 = vld [vmem:[%s7996_s5 + $0xa] ss:$0 sm:$0xff] }
0x11af   :  { %v4682_v13 = vsel %vm4681_vm14, %v6097_v45, %v4678_v9  ;;  %vm4720_vm5 = vmor %vm4718_vm4, %vm4719_vm3  ;;  %v3604_v44 = vadd.f32 %v6207_v34, %v7800_v39  ;;  %v5736_v34 = vld [vmem:[%s8000_s9 + $0x2] ss:$0 sm:$0xff] }
0x11b0   :  { %v4687_v26 = vsel %vm4684_vm1, %v4686_v29, %v4682_v13  ;;  %v4701_v22 = vsel %vm4700_vm15, %v6099_v30, %v4697_v40  ;;  %v4715_v62 = vsub.f32 1.0, %v4714_v61 }
0x11b1   :  { %v4706_v20 = vsel %vm4703_vm2, %v4705_v46, %v4701_v22  ;;  %v4729_v63 = vmul.f32 %v6103_v51, %v4687_v26 }
0x11b2   :  { %v4728_v41 = vmul.f32 %v4706_v20, %v7832_v57  ;;  %v4716_v60 = vmul.f32 %v6101_v27, %v4715_v62  ;;  %v5650_v57 = vld [vmem:[%s8001_s10 + $0x80] sm:$0xff] }
0x11b4   :  { %v7857_v50 = vadd.f32 %v4729_v63, %v4728_v41  ;;  %v4717_v38 = vadd.f32 %v6101_v27, %v4716_v60 }
0x11b6   :  { %6104 = vtanh.f32 %v7857_v50  ;;  %v4721_v8 = vsel %vm4720_vm5, %v6101_v27, %v4717_v38 }
0x11b7   :  { %v4726_v6 = vsel %vm4723_vm6, %v4725_v53, %v4721_v8 }
0x11bc   :  { %v6105_v24 = vpop.eup %6104 }
0x11bd   :  { %v4732_v48 = vmul.f32 %v6105_v24, %v4726_v6 }
0x11bf   :  { %4733 = vst.msk [vmem:[#allocation2 + $0x30] sm:$0xff] %vm93_vm0, %v4732_v48  ;;  %5643 = vmatmul.msk.f32.vlgmr.msrb.gmra.mxu0 %vm93_vm0, %v4732_v48  ;;  %5644 = vmatmul.msk.f32.vlgmr.msra.gmra.mxu1 %vm93_vm0, %v4732_v48 }
0x11c0   :  { %5645 = vmatmul.msk.f32.vlgmr.msra.gmra.mxu2 %vm93_vm0, %v4732_v48  ;;  %5646 = vmatmul.msk.f32.vlgmr.msrb.gmra.mxu3 %vm93_vm0, %v4732_v48 }
0x11c7   :  { %5663 = vmatmul.msk.f32.vlgmr.msra.gmra.mxu0 %vm93_vm0, %v5650_v57 }
0x11cf   :  { %5664 = vmatmul.msk.f32.gmra.mxu0 %vm93_vm0, %v5651_v12 }
0x11d7   :  { %5665 = vmatmul.msk.f32.gmra.mxu0 %vm93_vm0, %v5652_v54 }
0x11df   :  { %5666 = vmatmul.msk.f32.gmra.mxu0 %vm93_vm0, %v5653_v56 }
0x11e7   :  { %5667 = vmatmul.msk.f32.gmra.mxu0 %vm93_vm0, %v5654_v25 }
0x11ef   :  { %5668 = vmatmul.msk.f32.gmra.mxu0 %vm93_vm0, %v5655_v15 }
0x11f7   :  { %5669 = vmatmul.msk.f32.gmra.mxu0 %vm93_vm0, %v5656_v42 }
0x11ff   :  { %5670 = vmatmul.msk.f32.gmra.mxu0 %vm93_vm0, %v5657_v7 }
0x123c   :  { %v4754_v16 = vpop.f32.mrf.mxu0  ;;  %v4775_v4 = vpop.f32.mrf.mxu1 }
0x123d   :  { %v4757_v18 = vadd.f32 %v4754_v16, %v8027_v10  ;;  %v4778_v5 = vadd.f32 %v4775_v4, %v8028_v33  ;;  %v5070_v33 = vld [vmem:[%s8002_s11 + $0x10] sm:$0xff] }
0x123f   :  { %v5647_v2 = vmul.f32 -1.442695, %v4757_v18  ;;  %v5648_v37 = vmul.f32 -1.442695, %v4778_v5 }
0x1241   :  { %6106 = vpow2.f32 %v5647_v2 }
0x1242   :  { %6108 = vpow2.f32 %v5648_v37 }
0x1243   :  { %v4817_v52 = vpop.f32.mrf.mxu3  ;;  %v4796_v23 = vpop.f32.mrf.mxu2 }
0x1244   :  { %v4820_v45 = vadd.f32 %v4817_v52, %v3655_v11  ;;  %v4953_v43 = vpop.f32.mrf.mxu0  ;;  %v4799_v40 = vadd.f32 %v4796_v23, %v3604_v44 }
0x1245   :  { %v4954_v0 = vadd.f32 %v7914_v28, %v4953_v43 }
0x1246   :  { %v5649_v30 = vmul.f32 -1.442695, %v4820_v45 }
0x1247   :  { %v6107_v49 = vpop.eup %6106  ;;  %v4977_v35 = vmax.f32 %v4954_v0, 0.0 }
0x1248   :  { %v6109_v31 = vpop.eup %6108  ;;  %v4824_v19 = vadd.f32 1.0, %v6107_v49  ;;  %6110 = vpow2.f32 %v5649_v30 }
0x1249   :  { %v4843_v36 = vadd.f32 1.0, %v6109_v31  ;;  %5676 = vmatmul.msk.f32.vlgmr.msrb.gmra.mxu1 %vm93_vm0, %v4977_v35 }
0x124a   :  { %6112 = vrcp.f32 %v4824_v19  ;;  %v4834_v22 = vand.u32 2147483647, %v4824_v19  ;;  %v4836_v62 = vand.u32 2147483648, %v4824_v19  ;;  %vm4830_vm9 = vweird.f32 %v4824_v19 }
0x124b   :  { %6114 = vrcp.f32 %v4843_v36  ;;  %v4855_v63 = vand.u32 2147483648, %v4843_v36  ;;  %v4853_v38 = vand.u32 2147483647, %v4843_v36  ;;  %vm4849_vm10 = vweird.f32 %v4843_v36 }
0x124c   :  { %v4956_v21 = vpop.f32.mrf.mxu0  ;;  %v4837_v53 = vor.u32 1.1754944e-38, %v4836_v62  ;;  %vm4835_vm13 = vcmp.eq.f32.partialorder %v4834_v22, 8.507059e+37 }
0x124d   :  { %v4957_v3 = vadd.f32 %v7914_v28, %v4956_v21  ;;  %v4856_v48 = vor.u32 1.1754944e-38, %v4855_v63  ;;  %vm4854_vm14 = vcmp.eq.f32.partialorder %v4853_v38, 8.507059e+37  ;;  %v4888_v63 = vld [vmem:[#allocation2 + $0x18] sm:$0xff]  ;;  %v4889_v38 = vld [vmem:[#allocation2 + $0x20] sm:$0xff] }
0x124e   :  { %v6111_v55 = vpop.eup %6110 }
0x124f   :  { %v7927_v27 = vadd.f32 1.0, %v6111_v55  ;;  %v4978_v9 = vmax.f32 %v4957_v3, 0.0  ;;  %v5069_v3 = vld [vmem:[%s8002_s11 + $0x8] sm:$0xff]  ;;  %v5068_v55 = vld [vmem:[%s8002_s11] sm:$0xff] }
0x1250   :  { %v6113_v29 = vpop.eup %6112 }
0x1251   :  { %v6115_v61 = vpop.eup %6114  ;;  %v4826_v46 = vmul.f32 %v6113_v29, %v4824_v19  ;;  %6116 = vrcp.f32 %v7927_v27  ;;  %5677 = vmatmul.msk.f32.gmra.mxu1 %vm93_vm0, %v4978_v9  ;;  %vm4831_vm7 = vweird.f32 %v6113_v29  ;;  %v4875_v10 = vand.u32 2147483648, %v7927_v27 }
0x1252   :  { %v4845_v13 = vmul.f32 %v6115_v61, %v4843_v36  ;;  %6118 = vtanh.f32 %v4799_v40  ;;  %vm4850_vm8 = vweird.f32 %v6115_v61  ;;  %vm4832_vm11 = vmor %vm4830_vm9, %vm4831_vm7  ;;  %vm4869_vm1 = vweird.f32 %v7927_v27 }
0x1253   :  { %v4827_v51 = vsub.f32 1.0, %v4826_v46  ;;  %vm4851_vm12 = vmor %vm4849_vm10, %vm4850_vm8  ;;  %v4873_v18 = vand.u32 2147483647, %v7927_v27  ;;  %v4876_v2 = vor.u32 1.1754944e-38, %v4875_v10 }
0x1254   :  { %v4846_v26 = vsub.f32 1.0, %v4845_v13  ;;  %v4959_v20 = vpop.f32.mrf.mxu0 }
0x1255   :  { %v4828_v39 = vmul.f32 %v6113_v29, %v4827_v51  ;;  %v4960_v41 = vadd.f32 %v7914_v28, %v4959_v20  ;;  %vm4874_vm3 = vcmp.eq.f32.partialorder %v4873_v18, 8.507059e+37 }
0x1256   :  { %v4847_v60 = vmul.f32 %v6115_v61, %v4846_v26  ;;  %v4887_v26 = vld [vmem:[#allocation2 + $0x10] sm:$0xff] }
0x1257   :  { %v6117_v14 = vpop.eup %6116  ;;  %v4829_v1 = vadd.f32 %v6113_v29, %v4828_v39  ;;  %v4979_v8 = vmax.f32 %v4960_v41, 0.0 }
0x1258   :  { %v4848_v24 = vadd.f32 %v6115_v61, %v4847_v60  ;;  %v4865_v6 = vmul.f32 %v6117_v14, %v7927_v27  ;;  %v6119_v12 = vpop.eup %6118  ;;  %vm4870_vm15 = vweird.f32 %v6117_v14 }
0x1259   :  { %v4833_v57 = vsel %vm4832_vm11, %v6113_v29, %v4829_v1  ;;  %5678 = vmatmul.msk.f32.gmra.mxu1 %vm93_vm0, %v4979_v8  ;;  %vm4871_vm2 = vmor %vm4869_vm1, %vm4870_vm15 }
0x125a   :  { %v4838_v54 = vsel %vm4835_vm13, %v4837_v53, %v4833_v57  ;;  %v4852_v56 = vsel %vm4851_vm12, %v6115_v61, %v4848_v24  ;;  %v4866_v25 = vsub.f32 1.0, %v4865_v6  ;;  %v4886_v61 = vld [vmem:[#allocation2 + $0x8] sm:$0xff]  ;;  %v4891_v57 = vld [vmem:[#allocation2 + $0x30] sm:$0xff] }
0x125b   :  { %v4857_v15 = vsel %vm4854_vm14, %v4856_v48, %v4852_v56  ;;  %v4880_v42 = vmul.f32 %v6119_v12, %v4838_v54  ;;  %v4890_v53 = vld [vmem:[#allocation2 + $0x28] sm:$0xff] }
0x125c   :  { %v4879_v7 = vmul.f32 %v4857_v15, %v7857_v50  ;;  %v4867_v58 = vmul.f32 %v6117_v14, %v4866_v25  ;;  %v4962_v17 = vpop.f32.mrf.mxu0  ;;  %v5071_v50 = vld [vmem:[%s8002_s11 + $0x18] sm:$0xff] }
0x125d   :  { %v4963_v59 = vadd.f32 %v7914_v28, %v4962_v17  ;;  %5112 = vmatpush.msrb.mxu2 %v5071_v50 }
0x125e   :  { %v4881_v47 = vadd.f32 %v4880_v42, %v4879_v7  ;;  %v4868_v16 = vadd.f32 %v6117_v14, %v4867_v58  ;;  %v7975_v42 = vld [vmem:[%s8003_s12] ss:$0 sm:$0xff]  ;;  %s6291_s12 = smov [#allocation8]  }
0x125f   :  { %v4980_v4 = vmax.f32 %v4963_v59, 0.0  ;;  %5113 = vmatpush.msrb.mxu2 %v5070_v33  ;;  %s5305_s20 = sshll.u32 %s6291_s12, 4  ;;  %s5306_s20 = int_to_ptr.vmem [resolvable:$true] %s5305_s20 }
0x1260   :  { %6120 = vtanh.f32 %v4881_v47  ;;  %v4872_v5 = vsel %vm4871_vm2, %v6117_v14, %v4868_v16 }
0x1261   :  { %5679 = vmatmul.msk.f32.gmra.mxu1 %vm93_vm0, %v4980_v4  ;;  %v4877_v52 = vsel %vm4874_vm3, %v4876_v2, %v4872_v5  ;;  %5114 = vmatpush.msrb.mxu2 %v5069_v3 }
0x1263   :  { %5115 = vmatpush.msrb.mxu2 %v5068_v55 }
0x1264   :  { %v4965_v37 = vpop.f32.mrf.mxu0 }
0x1265   :  { %v4966_v32 = vadd.f32 %v7914_v28, %v4965_v37 }
0x1266   :  { %v6121_v11 = vpop.eup %6120 }
0x1267   :  { %v4883_v45 = vmul.f32 %v6121_v11, %v4877_v52  ;;  %v4981_v43 = vmax.f32 %v4966_v32, 0.0 }
0x1269   :  { %4884 = vst.msk [vmem:[#allocation2 + $0x38] sm:$0xff] %vm93_vm0, %v4883_v45  ;;  %5680 = vmatmul.msk.f32.gmra.mxu1 %vm93_vm0, %v4981_v43 }
0x126c   :  { %v4968_v0 = vpop.f32.mrf.mxu0 }
0x126d   :  { %v4969_v30 = vadd.f32 %v7914_v28, %v4968_v0 }
0x126f   :  { %v4982_v49 = vmax.f32 %v4969_v30, 0.0 }
0x1270   :  { %v4892_v25 = vld [vmem:[#allocation2 + $0x38] sm:$0xff] }
0x1271   :  { %5681 = vmatmul.msk.f32.gmra.mxu1 %vm93_vm0, %v4982_v49 }
0x1274   :  { %v4971_v35 = vpop.f32.mrf.mxu0 }
0x1275   :  { %v4972_v31 = vadd.f32 %v7914_v28, %v4971_v35 }
0x1277   :  { %v4983_v19 = vmax.f32 %v4972_v31, 0.0 }
0x1279   :  { %5682 = vmatmul.msk.f32.gmra.mxu1 %vm93_vm0, %v4983_v19 }
0x127c   :  { %v4974_v36 = vpop.f32.mrf.mxu0 }
0x127d   :  { %v4975_v21 = vadd.f32 %v7914_v28, %v4974_v36  ;;  %v4885_v28 = vld [vmem:[#allocation2] sm:$0xff] }
0x127f   :  { %v4984_v23 = vmax.f32 %v4975_v21, 0.0 }
0x1281   :  { %5683 = vmatmul.msk.f32.gmra.mxu1 %vm93_vm0, %v4984_v23 }
0x12c6   :  { %v5036_v44 = vpop.f32.mrf.mxu1 }
0x12c7   :  { %v5037_v27 = vadd.f32 %v5736_v34, %v5036_v44 }
0x12c9   :  { %v5060_v9 = vadd.f32 %v5037_v27, %v4885_v28 }
0x12cb   :  { %5684 = vmatmul.msk.f32.vlgmr.msrb.gmra.mxu2 %vm93_vm0, %v5060_v9 }
0x12ce   :  { %v5039_v29 = vpop.f32.mrf.mxu1 }
0x12cf   :  { %v5040_v40 = vadd.f32 %v5736_v34, %v5039_v29 }
0x12d1   :  { %v5061_v46 = vadd.f32 %v5040_v40, %v4886_v61 }
0x12d3   :  { %5685 = vmatmul.msk.f32.gmra.mxu2 %vm93_vm0, %v5061_v46 }
0x12d6   :  { %v5042_v13 = vpop.f32.mrf.mxu1 }
0x12d7   :  { %v5043_v51 = vadd.f32 %v5736_v34, %v5042_v13 }
0x12d9   :  { %v5062_v22 = vadd.f32 %v5043_v51, %v4887_v26 }
0x12db   :  { %5686 = vmatmul.msk.f32.gmra.mxu2 %vm93_vm0, %v5062_v22 }
0x12de   :  { %v5045_v62 = vpop.f32.mrf.mxu1 }
0x12df   :  { %v5046_v20 = vadd.f32 %v5736_v34, %v5045_v62 }
0x12e1   :  { %v5063_v39 = vadd.f32 %v5046_v20, %v4888_v63 }
0x12e3   :  { %5687 = vmatmul.msk.f32.gmra.mxu2 %vm93_vm0, %v5063_v39 }
0x12e6   :  { %v5048_v41 = vpop.f32.mrf.mxu1 }
0x12e7   :  { %v5049_v60 = vadd.f32 %v5736_v34, %v5048_v41 }
0x12e9   :  { %v5064_v14 = vadd.f32 %v5049_v60, %v4889_v38 }
0x12eb   :  { %5688 = vmatmul.msk.f32.gmra.mxu2 %vm93_vm0, %v5064_v14 }
0x12ee   :  { %v5051_v1 = vpop.f32.mrf.mxu1 }
0x12ef   :  { %v5052_v8 = vadd.f32 %v5736_v34, %v5051_v1 }
0x12f1   :  { %v5065_v24 = vadd.f32 %v5052_v8, %v4890_v53 }
0x12f3   :  { %5689 = vmatmul.msk.f32.gmra.mxu2 %vm93_vm0, %v5065_v24 }
0x12f6   :  { %v5054_v6 = vpop.f32.mrf.mxu1 }
0x12f7   :  { %v5055_v48 = vadd.f32 %v5736_v34, %v5054_v6 }
0x12f9   :  { %v5066_v12 = vadd.f32 %v5055_v48, %v4891_v57 }
0x12fb   :  { %5690 = vmatmul.msk.f32.gmra.mxu2 %vm93_vm0, %v5066_v12 }
0x12fe   :  { %v5057_v54 = vpop.f32.mrf.mxu1 }
0x12ff   :  { %v5058_v56 = vadd.f32 %v5736_v34, %v5057_v54 }
0x1301   :  { %v5067_v15 = vadd.f32 %v5058_v56, %v4892_v25 }
0x1303   :  { %5691 = vmatmul.msk.f32.gmra.mxu2 %vm93_vm0, %v5067_v15 }
0x134e   :  { %v5117_v7 = vpop.f32.mrf.mxu2 }
0x134f   :  { %v5118_v58 = vadd.f32 %v7975_v42, %v5117_v7 }
0x1351   :  { %v5692_v17 = vmul.f32 -1.442695, %v5118_v58 }
0x1353   :  { %6122 = vpow2.f32 %v5692_v17 }
0x1356   :  { %v5120_v59 = vpop.f32.mrf.mxu2 }
0x1357   :  { %v5121_v47 = vadd.f32 %v7975_v42, %v5120_v59 }
0x1359   :  { %v6123_v16 = vpop.eup %6122  ;;  %v5693_v4 = vmul.f32 -1.442695, %v5121_v47 }
0x135a   :  { %v5165_v10 = vadd.f32 1.0, %v6123_v16 }
0x135b   :  { %6124 = vpow2.f32 %v5693_v4 }
0x135c   :  { %6126 = vrcp.f32 %v5165_v10  ;;  %v5184_v52 = vand.u32 2147483648, %v5165_v10  ;;  %v5182_v0 = vand.u32 2147483647, %v5165_v10  ;;  %vm5178_vm4 = vweird.f32 %v5165_v10 }
0x135e   :  { %v5123_v18 = vpop.f32.mrf.mxu2  ;;  %v5185_v36 = vor.u32 1.1754944e-38, %v5184_v52  ;;  %vm5183_vm6 = vcmp.eq.f32.partialorder %v5182_v0, 8.507059e+37 }
0x135f   :  { %v5124_v50 = vadd.f32 %v7975_v42, %v5123_v18 }
0x1361   :  { %v6125_v33 = vpop.eup %6124  ;;  %v5694_v5 = vmul.f32 -1.442695, %v5124_v50 }
0x1362   :  { %v6127_v2 = vpop.eup %6126  ;;  %v5166_v37 = vadd.f32 1.0, %v6125_v33 }
0x1363   :  { %v5174_v32 = vmul.f32 %v6127_v2, %v5165_v10  ;;  %6128 = vpow2.f32 %v5694_v5  ;;  %vm5179_vm0 = vweird.f32 %v6127_v2 }
0x1364   :  { %6130 = vrcp.f32 %v5166_v37  ;;  %vm5180_vm5 = vmor %vm5178_vm4, %vm5179_vm0  ;;  %v5199_v44 = vand.u32 2147483648, %v5166_v37  ;;  %v5197_v9 = vand.u32 2147483647, %v5166_v37  ;;  %vm5193_vm8 = vweird.f32 %v5166_v37 }
0x1365   :  { %v5175_v11 = vsub.f32 1.0, %v5174_v32 }
0x1366   :  { %v5126_v45 = vpop.f32.mrf.mxu2  ;;  %v5200_v51 = vor.u32 1.1754944e-38, %v5199_v44  ;;  %vm5198_vm10 = vcmp.eq.f32.partialorder %v5197_v9, 8.507059e+37 }
0x1367   :  { %v5176_v43 = vmul.f32 %v6127_v2, %v5175_v11  ;;  %v5127_v30 = vadd.f32 %v7975_v42, %v5126_v45 }
0x1369   :  { %v6129_v49 = vpop.eup %6128  ;;  %v5177_v35 = vadd.f32 %v6127_v2, %v5176_v43  ;;  %v5695_v31 = vmul.f32 -1.442695, %v5127_v30 }
0x136a   :  { %v6131_v19 = vpop.eup %6130  ;;  %v5167_v21 = vadd.f32 1.0, %v6129_v49 }
0x136b   :  { %v5181_v23 = vsel %vm5180_vm5, %v6127_v2, %v5177_v35  ;;  %v5189_v3 = vmul.f32 %v6131_v19, %v5166_v37  ;;  %6132 = vpow2.f32 %v5695_v31  ;;  %vm5194_vm7 = vweird.f32 %v6131_v19 }
0x136c   :  { %v5186_v55 = vsel %vm5183_vm6, %v5185_v36, %v5181_v23  ;;  %6134 = vrcp.f32 %v5167_v21  ;;  %vm5195_vm9 = vmor %vm5193_vm8, %vm5194_vm7  ;;  %v5214_v39 = vand.u32 2147483648, %v5167_v21  ;;  %v5212_v38 = vand.u32 2147483647, %v5167_v21 }
0x136d   :  { %5293 = vst [vmem:[#allocation8] sm:$0xff] %v5186_v55  ;;  %v5190_v34 = vsub.f32 1.0, %v5189_v3  ;;  %vm5208_vm12 = vweird.f32 %v5167_v21 }
0x136e   :  { %v5129_v27 = vpop.f32.mrf.mxu2  ;;  %v5215_v6 = vor.u32 1.1754944e-38, %v5214_v39  ;;  %vm5213_vm14 = vcmp.eq.f32.partialorder %v5212_v38, 8.507059e+37 }
0x136f   :  { %v5191_v28 = vmul.f32 %v6131_v19, %v5190_v34  ;;  %v5130_v29 = vadd.f32 %v7975_v42, %v5129_v27 }
0x1371   :  { %v6133_v40 = vpop.eup %6132  ;;  %v5192_v61 = vadd.f32 %v6131_v19, %v5191_v28  ;;  %v5696_v46 = vmul.f32 -1.442695, %v5130_v29 }
0x1372   :  { %v6135_v13 = vpop.eup %6134  ;;  %v5168_v26 = vadd.f32 1.0, %v6133_v40 }
0x1373   :  { %v5196_v22 = vsel %vm5195_vm9, %v6131_v19, %v5192_v61  ;;  %v5204_v62 = vmul.f32 %v6135_v13, %v5167_v21  ;;  %6136 = vpow2.f32 %v5696_v46  ;;  %vm5209_vm11 = vweird.f32 %v6135_v13 }
0x1374   :  { %v5201_v20 = vsel %vm5198_vm10, %v5200_v51, %v5196_v22  ;;  %6138 = vrcp.f32 %v5168_v26  ;;  %vm5210_vm13 = vmor %vm5208_vm12, %vm5209_vm11  ;;  %v5229_v25 = vand.u32 2147483648, %v5168_v26  ;;  %v5227_v58 = vand.u32 2147483647, %v5168_v26 }
0x1375   :  { %5294 = vst [vmem:[#allocation8 + $0x8] sm:$0xff] %v5201_v20  ;;  %v5205_v63 = vsub.f32 1.0, %v5204_v62  ;;  %vm5223_vm1 = vweird.f32 %v5168_v26 }
0x1376   :  { %v5132_v41 = vpop.f32.mrf.mxu2  ;;  %v5230_v10 = vor.u32 1.1754944e-38, %v5229_v25  ;;  %vm5228_vm3 = vcmp.eq.f32.partialorder %v5227_v58, 8.507059e+37 }
0x1377   :  { %v5206_v60 = vmul.f32 %v6135_v13, %v5205_v63  ;;  %v5133_v14 = vadd.f32 %v7975_v42, %v5132_v41 }
0x1379   :  { %v6137_v1 = vpop.eup %6136  ;;  %v5207_v8 = vadd.f32 %v6135_v13, %v5206_v60  ;;  %v5697_v53 = vmul.f32 -1.442695, %v5133_v14 }
0x137a   :  { %v6139_v24 = vpop.eup %6138  ;;  %v5169_v48 = vadd.f32 1.0, %v6137_v1 }
0x137b   :  { %v5211_v57 = vsel %vm5210_vm13, %v6135_v13, %v5207_v8  ;;  %v5219_v12 = vmul.f32 %v6139_v24, %v5168_v26  ;;  %6140 = vpow2.f32 %v5697_v53  ;;  %vm5224_vm15 = vweird.f32 %v6139_v24 }
0x137c   :  { %v5216_v54 = vsel %vm5213_vm14, %v5215_v6, %v5211_v57  ;;  %6142 = vrcp.f32 %v5169_v48  ;;  %vm5225_vm2 = vmor %vm5223_vm1, %vm5224_vm15  ;;  %v5244_v37 = vand.u32 2147483648, %v5169_v48  ;;  %v5242_v52 = vand.u32 2147483647, %v5169_v48 }
0x137d   :  { %5295 = vst [vmem:[#allocation8 + $0x10] sm:$0xff] %v5216_v54  ;;  %v5220_v56 = vsub.f32 1.0, %v5219_v12  ;;  %vm5238_vm4 = vweird.f32 %v5169_v48 }
0x137e   :  { %v5135_v15 = vpop.f32.mrf.mxu2  ;;  %v5245_v35 = vor.u32 1.1754944e-38, %v5244_v37  ;;  %vm5243_vm6 = vcmp.eq.f32.partialorder %v5242_v52, 8.507059e+37 }
0x137f   :  { %v5221_v7 = vmul.f32 %v6139_v24, %v5220_v56  ;;  %v5136_v17 = vadd.f32 %v7975_v42, %v5135_v15 }
0x1381   :  { %v6141_v59 = vpop.eup %6140  ;;  %v5222_v47 = vadd.f32 %v6139_v24, %v5221_v7  ;;  %v5698_v16 = vmul.f32 -1.442695, %v5136_v17 }
0x1382   :  { %v6143_v4 = vpop.eup %6142  ;;  %v5170_v18 = vadd.f32 1.0, %v6141_v59 }
0x1383   :  { %v5226_v50 = vsel %vm5225_vm2, %v6139_v24, %v5222_v47  ;;  %v5234_v33 = vmul.f32 %v6143_v4, %v5169_v48  ;;  %6144 = vpow2.f32 %v5698_v16  ;;  %vm5239_vm0 = vweird.f32 %v6143_v4 }
0x1384   :  { %v5231_v5 = vsel %vm5228_vm3, %v5230_v10, %v5226_v50  ;;  %6146 = vrcp.f32 %v5170_v18  ;;  %vm5240_vm5 = vmor %vm5238_vm4, %vm5239_vm0  ;;  %v5259_v3 = vand.u32 2147483648, %v5170_v18  ;;  %vm5253_vm8 = vweird.f32 %v5170_v18 }
0x1385   :  { %5296 = vst [vmem:[#allocation8 + $0x18] sm:$0xff] %v5231_v5  ;;  %v5235_v2 = vsub.f32 1.0, %v5234_v33 }
0x1386   :  { %v5138_v32 = vpop.f32.mrf.mxu2  ;;  %v5260_v28 = vor.u32 1.1754944e-38, %v5259_v3 }
0x1387   :  { %v5236_v11 = vmul.f32 %v6143_v4, %v5235_v2  ;;  %v5139_v45 = vadd.f32 %v7975_v42, %v5138_v32  ;;  %v5257_v42 = vand.u32 2147483647, %v5170_v18 }
0x1389   :  { %v6145_v43 = vpop.eup %6144  ;;  %v5237_v0 = vadd.f32 %v6143_v4, %v5236_v11  ;;  %v5699_v30 = vmul.f32 -1.442695, %v5139_v45  ;;  %vm5258_vm10 = vcmp.eq.f32.partialorder %v5257_v42, 8.507059e+37 }
0x138a   :  { %v6147_v49 = vpop.eup %6146  ;;  %v5171_v31 = vadd.f32 1.0, %v6145_v43 }
0x138b   :  { %v5241_v19 = vsel %vm5240_vm5, %v6143_v4, %v5237_v0  ;;  %v5249_v36 = vmul.f32 %v6147_v49, %v5170_v18  ;;  %6148 = vpow2.f32 %v5699_v30  ;;  %vm5254_vm7 = vweird.f32 %v6147_v49 }
0x138c   :  { %v5246_v21 = vsel %vm5243_vm6, %v5245_v35, %v5241_v19  ;;  %6150 = vrcp.f32 %v5171_v31  ;;  %vm5255_vm9 = vmor %vm5253_vm8, %vm5254_vm7  ;;  %v5274_v13 = vand.u32 2147483648, %v5171_v31  ;;  %v5272_v26 = vand.u32 2147483647, %v5171_v31 }
0x138d   :  { %5297 = vst [vmem:[#allocation8 + $0x20] sm:$0xff] %v5246_v21  ;;  %v5250_v23 = vsub.f32 1.0, %v5249_v36  ;;  %vm5268_vm12 = vweird.f32 %v5171_v31 }
0x138e   :  { %v5275_v20 = vor.u32 1.1754944e-38, %v5274_v13  ;;  %vm5273_vm14 = vcmp.eq.f32.partialorder %v5272_v26, 8.507059e+37 }
0x138f   :  { %v5251_v55 = vmul.f32 %v6147_v49, %v5250_v23 }
0x1391   :  { %v6149_v34 = vpop.eup %6148  ;;  %v5252_v44 = vadd.f32 %v6147_v49, %v5251_v55 }
0x1392   :  { %v6151_v27 = vpop.eup %6150  ;;  %v5172_v9 = vadd.f32 1.0, %v6149_v34 }
0x1393   :  { %v5256_v29 = vsel %vm5255_vm9, %v6147_v49, %v5252_v44  ;;  %v5264_v40 = vmul.f32 %v6151_v27, %v5171_v31  ;;  %vm5269_vm11 = vweird.f32 %v6151_v27 }
0x1394   :  { %v5261_v61 = vsel %vm5258_vm10, %v5260_v28, %v5256_v29  ;;  %6152 = vrcp.f32 %v5172_v9  ;;  %vm5270_vm13 = vmor %vm5268_vm12, %vm5269_vm11  ;;  %v5289_v38 = vand.u32 2147483648, %v5172_v9  ;;  %v5287_v1 = vand.u32 2147483647, %v5172_v9 }
0x1395   :  { %5298 = vst [vmem:[#allocation8 + $0x28] sm:$0xff] %v5261_v61  ;;  %v5265_v46 = vsub.f32 1.0, %v5264_v40  ;;  %vm5283_vm1 = vweird.f32 %v5172_v9 }
0x1396   :  { %v5290_v53 = vor.u32 1.1754944e-38, %v5289_v38  ;;  %vm5288_vm3 = vcmp.eq.f32.partialorder %v5287_v1, 8.507059e+37 }
0x1397   :  { %v5266_v51 = vmul.f32 %v6151_v27, %v5265_v46 }
0x1399   :  { %v5267_v22 = vadd.f32 %v6151_v27, %v5266_v51 }
0x139a   :  { %v6153_v62 = vpop.eup %6152 }
0x139b   :  { %v5271_v63 = vsel %vm5270_vm13, %v6151_v27, %v5267_v22  ;;  %v5279_v39 = vmul.f32 %v6153_v62, %v5172_v9  ;;  %vm5284_vm15 = vweird.f32 %v6153_v62 }
0x139c   :  { %v5276_v41 = vsel %vm5273_vm14, %v5275_v20, %v5271_v63  ;;  %vm5285_vm2 = vmor %vm5283_vm1, %vm5284_vm15 }
0x139d   :  { %5299 = vst [vmem:[#allocation8 + $0x30] sm:$0xff] %v5276_v41  ;;  %v5280_v60 = vsub.f32 1.0, %v5279_v39 }
0x139f   :  { %v5281_v14 = vmul.f32 %v6153_v62, %v5280_v60 }
0x13a1   :  { %v5282_v8 = vadd.f32 %v6153_v62, %v5281_v14 }
0x13a3   :  { %v5286_v24 = vsel %vm5285_vm2, %v6153_v62, %v5282_v8 }
0x13a4   :  { %v5291_v6 = vsel %vm5288_vm3, %v5290_v53, %v5286_v24 }
0x13a5   :  { %5300 = vst [vmem:[#allocation8 + $0x38] sm:$0xff] %v5291_v6 }
0x13a6   :  { %5313 = dma.vmem_to_hbm [thread:$0]  %s5306_s20, 1024, %s5308_s23, [#allocation5], %s6287_s16, %s6287_s16, %s6288_s17  }
0x13a7   :  { %6284 = dma.done.wait [#allocation5], 1024  }
0x13a8   :  { %6285 = vsyncadd [#allocation5], 4294966272 }
0x13a9   :  { %5318 = vsyncpa [#allocation4], 1 }
0x13aa   :  { %5319 = vsyncpa [#allocation7], 1 }
0x13ab   :  { %5320 = vsyncpa [#allocation5], 1 }

</bundles_post_ra>
